<compile_context>
chip_gen: v7x
topology: tpu7x:2x2x1
jax: 0.10.0
libtpu: 0.0.40
codegen_flags: <defaults>
</compile_context>

<pallas_src>
import functools

import jax
import jax.numpy as jnp
from jax.experimental import pallas as pl
from jax.experimental.pallas import tpu as pltpu

EPS = 1e-5
LANE = 128

# MXU input dtype and HBM storage dtype of inter-kernel activations.
# bf16 halves HBM traffic (these kernels are bandwidth bound on every
# generation) and uses the fast bf16 MXU path on v6e/v7x; accumulation and all
# BatchNorm statistics stay f32.  Use jnp.float32 for exact f32 reference math.
MATMUL_DTYPE = jnp.bfloat16
STORE_DTYPE = jnp.bfloat16

# Row-tile target for the flattened (pixels, channels) kernels.  1024 rows x
# 128 lanes keeps mem-bound kernels near the HBM roofline (per-grid-step
# overhead ~0.35us).  Use ~1024-2048 on v5e/v6e, ~512-1024 on v7x.
_ROW_TILE_TARGET = 1024

_COMPILER_PARAMS_1D = pltpu.CompilerParams(
    dimension_semantics=("parallel",),
    # Above the 16/32 MiB scoped defaults, and <= the ~48 MiB safe ceiling on
    # v7x (64 MiB physical VMEM); v5e/v6e have 128 MiB physical.
    vmem_limit_bytes=48 * 1024 * 1024,
)


# --------------------------------------------------------------------------
# Small helpers.
# --------------------------------------------------------------------------
def _round_up(x, m):
    return (x + m - 1) // m * m


def _row_tile_and_pad(m, target=_ROW_TILE_TARGET):
    """Pick a row tile (multiple of 8) and the padded row count it divides."""
    if m <= target:
        tm = _round_up(m, 8)
        return tm, tm
    return target, _round_up(m, target)


def _pad_rows(a2d, m_pad):
    if a2d.shape[0] == m_pad:
        return a2d
    return jnp.pad(a2d, ((0, m_pad - a2d.shape[0]), (0, 0)))


def _pad_axis(a, axis, size, value=0.0):
    pad = size - a.shape[axis]
    if pad == 0:
        return a
    widths = [(0, 0)] * a.ndim
    widths[axis] = (0, pad)
    return jnp.pad(a, widths, constant_values=value)


def _mask_padded_rows(v, valid_rows):
    """Zero out rows >= valid_rows of the current tile (for BN stats)."""
    if valid_rows is None:
        return v
    tm = v.shape[0]
    rows = pl.program_id(0) * tm + jax.lax.broadcasted_iota(jnp.int32, (tm, 1), 0)
    return jnp.where(rows < valid_rows, v, 0.0)


def _bn_scale_shift(ssum, ssq, gamma, beta, count):
    """Fold global batch stats into a per-channel affine y*scale + shift."""
    s = jnp.sum(ssum, axis=(0, 1))                 # (C,)
    sq = jnp.sum(ssq, axis=(0, 1))                 # (C,)
    mean = s / count
    var = jnp.maximum(sq / count - mean * mean, 0.0)   # biased, clamped >= 0
    inv = jax.lax.rsqrt(var + EPS)
    scale = gamma * inv
    shift = beta - mean * scale
    return scale.reshape(1, -1), shift.reshape(1, -1)


# --------------------------------------------------------------------------
# K1 (first bottleneck): expand matmul STATS ONLY -- h1 is never materialized.
# Zero-padded rows contribute zero, so no masking is needed here.
# --------------------------------------------------------------------------
def _expand_stats_kernel(x_ref, w1_ref, ssum_ref, ssq_ref):
    h = jnp.dot(x_ref[...].astype(MATMUL_DTYPE), w1_ref[...],
                preferred_element_type=jnp.float32)
    ssum_ref[...] = jnp.sum(h, axis=0, keepdims=True)[None]
    ssq_ref[...] = jnp.sum(h * h, axis=0, keepdims=True)[None]


def _expand_stats(x2d, w1):
    m, cin = x2d.shape
    tp = w1.shape[1]
    tm, m_pad = _row_tile_and_pad(m)
    g = m_pad // tm
    x2d = _pad_rows(x2d, m_pad)
    return pl.pallas_call(
        _expand_stats_kernel,
        out_shape=(
            jax.ShapeDtypeStruct((g, 1, tp), jnp.float32),
            jax.ShapeDtypeStruct((g, 1, tp), jnp.float32),
        ),
        grid=(g,),
        in_specs=[
            pl.BlockSpec((tm, cin), lambda i: (i, 0)),
            pl.BlockSpec((cin, tp), lambda i: (0, 0)),   # weights stay resident
        ],
        out_specs=(
            pl.BlockSpec((1, 1, tp), lambda i: (i, 0, 0)),
            pl.BlockSpec((1, 1, tp), lambda i: (i, 0, 0)),
        ),
        compiler_params=_COMPILER_PARAMS_1D,
    )(x2d, w1)


# --------------------------------------------------------------------------
# K1 (bottlenecks 2..n): previous BN3 affine (+ residual) fused with this
# block's expand stats; also materializes the block input x (used by K2 and as
# the residual of this block).  Replaces the old standalone K4 for all but the
# last bottleneck.
# --------------------------------------------------------------------------
def _bn3_expand_kernel(y_ref, sc_ref, sh_ref, w1_ref,
                       x_ref, ssum_ref, ssq_ref, *, valid_rows):
    xn = y_ref[...].astype(jnp.float32) * sc_ref[...] + sh_ref[...]
    xb = xn.astype(STORE_DTYPE)
    x_ref[...] = xb
    h = jnp.dot(xb.astype(MATMUL_DTYPE), w1_ref[...],
                preferred_element_type=jnp.float32)
    h = _mask_padded_rows(h, valid_rows)
    ssum_ref[...] = jnp.sum(h, axis=0, keepdims=True)[None]
    ssq_ref[...] = jnp.sum(h * h, axis=0, keepdims=True)[None]


def _bn3_res_expand_kernel(y_ref, sc_ref, sh_ref, r_ref, w1_ref,
                           x_ref, ssum_ref, ssq_ref, *, valid_rows):
    xn = (y_ref[...].astype(jnp.float32) * sc_ref[...] + sh_ref[...]
          + r_ref[...].astype(jnp.float32))
    xb = xn.astype(STORE_DTYPE)
    x_ref[...] = xb
    h = jnp.dot(xb.astype(MATMUL_DTYPE), w1_ref[...],
                preferred_element_type=jnp.float32)
    h = _mask_padded_rows(h, valid_rows)
    ssum_ref[...] = jnp.sum(h, axis=0, keepdims=True)[None]
    ssq_ref[...] = jnp.sum(h * h, axis=0, keepdims=True)[None]


def _bn3_expand_stats(y2d, scale3, shift3, res2d, w1):
    m, cp = y2d.shape
    tp = w1.shape[1]
    tm, m_pad = _row_tile_and_pad(m)
    g = m_pad // tm
    valid_rows = m if m_pad != m else None
    y_p = _pad_rows(y2d, m_pad)

    row_spec = pl.BlockSpec((tm, cp), lambda i: (i, 0))
    vec_spec = pl.BlockSpec((1, cp), lambda i: (0, 0))
    w_spec = pl.BlockSpec((cp, tp), lambda i: (0, 0))
    if res2d is None:
        kern = functools.partial(_bn3_expand_kernel, valid_rows=valid_rows)
        in_specs = [row_spec, vec_spec, vec_spec, w_spec]
        args = (y_p, scale3, shift3, w1)
    else:
        kern = functools.partial(_bn3_res_expand_kernel, valid_rows=valid_rows)
        in_specs = [row_spec, vec_spec, vec_spec, row_spec, w_spec]
        args = (y_p, scale3, shift3, _pad_rows(res2d, m_pad), w1)

    x_out, s, q = pl.pallas_call(
        kern,
        out_shape=(
            jax.ShapeDtypeStruct((m_pad, cp), STORE_DTYPE),
            jax.ShapeDtypeStruct((g, 1, tp), jnp.float32),
            jax.ShapeDtypeStruct((g, 1, tp), jnp.float32),
        ),
        grid=(g,),
        in_specs=in_specs,
        out_specs=(
            row_spec,
            pl.BlockSpec((1, 1, tp), lambda i: (i, 0, 0)),
            pl.BlockSpec((1, 1, tp), lambda i: (i, 0, 0)),
        ),
        compiler_params=_COMPILER_PARAMS_1D,
    )(*args)
    return (x_out if m_pad == m else x_out[:m]), s, q


# --------------------------------------------------------------------------
# K2: 1x1 expand (recomputed) + BN1 + ReLU + KxK depthwise conv (pad=1,
# stride=s) + BN2 partial stats.  Register accumulation, single store.
# --------------------------------------------------------------------------
def _fused_dw_kernel(x_ref, w1_ref, sc_ref, sh_ref, wd_ref,
                     o_ref, ssum_ref, ssq_ref, apad_ref, *, K, stride):
    _, H, W, cin = x_ref.shape
    _, Ho, Wo, tp = o_ref.shape
    P = 1
    H1 = H + 2 * P - K + 1          # stride-1 output height
    W1 = W + 2 * P - K + 1

    # Zero the padded scratch once; its border stays zero for all grid steps,
    # the interior is fully overwritten below every step.
    @pl.when(pl.program_id(0) == 0)
    def _():
        apad_ref[...] = jnp.zeros_like(apad_ref)

    # Expand matmul recomputed here (K1 only produced BN1 statistics), fused
    # with the BN1 affine + ReLU.  MXU matmul with f32 accumulation.
    x2 = x_ref[...].reshape(H * W, cin)
    h = jnp.dot(x2.astype(MATMUL_DTYPE), w1_ref[...],
                preferred_element_type=jnp.float32)
    a = jnp.maximum(h * sc_ref[...] + sh_ref[...], 0.0)
    apad_ref[P:H + P, P:W + P, :] = a.reshape(H, W, tp)

    # Depthwise conv: all K*K taps accumulate into a register/VMEM-held value;
    # o_ref is written exactly once (no read-modify-write on the output ref).
    wd = wd_ref[...]
    acc = jnp.zeros((H1, W1, tp), jnp.float32)
    for dh in range(K):
        band = apad_ref[dh:dh + H1, :, :]        # loaded once, reused over dw
        for dw in range(K):
            acc = acc + band[:, dw:dw + W1, :] * wd[dh * K + dw]
    if stride > 1:
        acc = acc[::stride, ::stride, :]         # decimate to the strided output

    o_ref[...] = acc[None].astype(o_ref.dtype)
    # BN2 partial stats straight from the in-register accumulator.
    ssum_ref[...] = jnp.sum(acc, axis=(0, 1)).reshape(1, 1, tp)
    ssq_ref[...] = jnp.sum(acc * acc, axis=(0, 1)).reshape(1, 1, tp)


def _fused_dwconv(x4, w1, scale1, shift1, wd, *, K, stride):
    # TODO(synk): for large images on v7x (64 MiB VMEM), add an H-strip grid
    # axis with a (K-1)-row halo instead of whole-image-per-batch blocks.
    n, H, W, cin = x4.shape
    tp = w1.shape[1]
    P = 1
    Ho = (H + 2 * P - K) // stride + 1
    Wo = (W + 2 * P - K) // stride + 1
    kern = functools.partial(_fused_dw_kernel, K=K, stride=stride)
    return pl.pallas_call(
        kern,
        out_shape=(
            jax.ShapeDtypeStruct((n, Ho, Wo, tp), STORE_DTYPE),
            jax.ShapeDtypeStruct((n, 1, tp), jnp.float32),
            jax.ShapeDtypeStruct((n, 1, tp), jnp.float32),
        ),
        grid=(n,),
        in_specs=[
            pl.BlockSpec((1, H, W, cin), lambda b: (b, 0, 0, 0)),
            pl.BlockSpec((cin, tp), lambda b: (0, 0)),
            pl.BlockSpec((1, tp), lambda b: (0, 0)),
            pl.BlockSpec((1, tp), lambda b: (0, 0)),
            pl.BlockSpec((K * K, tp), lambda b: (0, 0)),
        ],
        out_specs=(
            pl.BlockSpec((1, Ho, Wo, tp), lambda b: (b, 0, 0, 0)),
            pl.BlockSpec((1, 1, tp), lambda b: (b, 0, 0)),
            pl.BlockSpec((1, 1, tp), lambda b: (b, 0, 0)),
        ),
        scratch_shapes=[pltpu.VMEM((H + 2 * P, W + 2 * P, tp), jnp.float32)],
        compiler_params=_COMPILER_PARAMS_1D,
    )(x4, w1, scale1, shift1, wd)


# --------------------------------------------------------------------------
# K3: BN2 + ReLU + 1x1 project conv + BN3 partial stats.
# --------------------------------------------------------------------------
def _project_kernel(h_ref, sc_ref, sh_ref, w2_ref, y_ref, ssum_ref, ssq_ref,
                    *, valid_rows):
    a = jnp.maximum(h_ref[...].astype(jnp.float32) * sc_ref[...] + sh_ref[...],
                    0.0)
    y = jnp.dot(a.astype(MATMUL_DTYPE), w2_ref[...],
                preferred_element_type=jnp.float32)
    y = _mask_padded_rows(y, valid_rows)
    y_ref[...] = y.astype(y_ref.dtype)
    ssum_ref[...] = jnp.sum(y, axis=0, keepdims=True)[None]
    ssq_ref[...] = jnp.sum(y * y, axis=0, keepdims=True)[None]


def _project(h2d, scale2, shift2, w2):
    m, tp = h2d.shape
    cp = w2.shape[1]
    tm, m_pad = _row_tile_and_pad(m)
    g = m_pad // tm
    valid_rows = m if m_pad != m else None
    h_p = _pad_rows(h2d, m_pad)
    kern = functools.partial(_project_kernel, valid_rows=valid_rows)
    y, s, q = pl.pallas_call(
        kern,
        out_shape=(
            jax.ShapeDtypeStruct((m_pad, cp), STORE_DTYPE),
            jax.ShapeDtypeStruct((g, 1, cp), jnp.float32),
            jax.ShapeDtypeStruct((g, 1, cp), jnp.float32),
        ),
        grid=(g,),
        in_specs=[
            pl.BlockSpec((tm, tp), lambda i: (i, 0)),
            pl.BlockSpec((1, tp), lambda i: (0, 0)),
            pl.BlockSpec((1, tp), lambda i: (0, 0)),
            pl.BlockSpec((tp, cp), lambda i: (0, 0)),
        ],
        out_specs=(
            pl.BlockSpec((tm, cp), lambda i: (i, 0)),
            pl.BlockSpec((1, 1, cp), lambda i: (i, 0, 0)),
            pl.BlockSpec((1, 1, cp), lambda i: (i, 0, 0)),
        ),
        compiler_params=_COMPILER_PARAMS_1D,
    )(h_p, scale2, shift2, w2)
    return (y if m_pad == m else y[:m]), s, q


# --------------------------------------------------------------------------
# K4: final BN3 affine (+ residual) -- used only for the LAST bottleneck
# (earlier bottlenecks have it fused into the next block's K1).
# --------------------------------------------------------------------------
def _bn_kernel(y_ref, sc_ref, sh_ref, o_ref):
    o_ref[...] = (y_ref[...].astype(jnp.float32) * sc_ref[...]
                  + sh_ref[...]).astype(o_ref.dtype)


def _bn_res_kernel(y_ref, sc_ref, sh_ref, r_ref, o_ref):
    o_ref[...] = (y_ref[...].astype(jnp.float32) * sc_ref[...] + sh_ref[...]
                  + r_ref[...].astype(jnp.float32)).astype(o_ref.dtype)


def _bn_affine(y2d, scale, shift, res2d=None):
    m, cp = y2d.shape
    tm, m_pad = _row_tile_and_pad(m)
    g = m_pad // tm
    row_spec = pl.BlockSpec((tm, cp), lambda i: (i, 0))
    vec_spec = pl.BlockSpec((1, cp), lambda i: (0, 0))
    y_p = _pad_rows(y2d, m_pad)
    if res2d is None:
        kern, in_specs, args = _bn_kernel, [row_spec, vec_spec, vec_spec], \
            (y_p, scale, shift)
    else:
        kern, in_specs, args = _bn_res_kernel, \
            [row_spec, vec_spec, vec_spec, row_spec], \
            (y_p, scale, shift, _pad_rows(res2d, m_pad))
    out = pl.pallas_call(
        kern,
        out_shape=jax.ShapeDtypeStruct((m_pad, cp), jnp.float32),
        grid=(g,),
        in_specs=in_specs,
        out_specs=row_spec,
        compiler_params=_COMPILER_PARAMS_1D,
    )(*args)
    return out if m_pad == m else out[:m]


# --------------------------------------------------------------------------
# Bottleneck / block wrappers.
# --------------------------------------------------------------------------
def _bottleneck_tail(x4, bn1_partials, p, *, K, stride):
    """K2 + K3 given the materialized block input and its BN1 partial stats."""
    n, H, W, _ = x4.shape
    s1, q1 = bn1_partials
    scale1, shift1 = _bn_scale_shift(s1, q1, p["g1"], p["be1"], n * H * W)

    h2, s2, q2 = _fused_dwconv(x4, p["w1"], scale1, shift1, p["wd"],
                               K=K, stride=stride)
    _, Ho, Wo, tp = h2.shape
    m2 = n * Ho * Wo
    scale2, shift2 = _bn_scale_shift(s2, q2, p["gd"], p["bed"], m2)

    y, s3, q3 = _project(h2.reshape(m2, tp), scale2, shift2, p["w2"])
    scale3, shift3 = _bn_scale_shift(s3, q3, p["g2"], p["be2"], m2)
    return y, scale3, shift3, (Ho, Wo)


def init_bottleneck_params(key, in_channels, out_channels, K, t, alpha):
    """Deterministic synthetic params at PyTorch-equivalent (logical) shapes."""
    T = in_channels * t
    C = int(out_channels * alpha)
    ks = jax.random.split(key, 12)
    f32 = jnp.float32
    return dict(
        # 1x1 expand conv: PyTorch weight (T, Cin, 1, 1) -> (Cin, T)
        w1=0.1 * jax.random.normal(ks[0], (in_channels, T), f32),
        b1=0.1 * jax.random.normal(ks[1], (T,), f32),   # unused: cancels under BN
        g1=1.0 + 0.1 * jax.random.normal(ks[2], (T,), f32),
        be1=0.1 * jax.random.normal(ks[3], (T,), f32),
        # depthwise conv: PyTorch weight (T, 1, K, K) -> (K*K, T)
        wd=0.1 * jax.random.normal(ks[4], (K * K, T), f32),
        bd=0.1 * jax.random.normal(ks[5], (T,), f32),   # unused: cancels under BN
        gd=1.0 + 0.1 * jax.random.normal(ks[6], (T,), f32),
        bed=0.1 * jax.random.normal(ks[7], (T,), f32),
        # 1x1 project conv: PyTorch weight (C, T, 1, 1) -> (T, C)
        w2=0.1 * jax.random.normal(ks[8], (T, C), f32),
        b2=0.1 * jax.random.normal(ks[9], (C,), f32),   # unused: cancels under BN
        g2=1.0 + 0.1 * jax.random.normal(ks[10], (C,), f32),
        be2=0.1 * jax.random.normal(ks[11], (C,), f32),
    )


def prepare_bottleneck_params(p, in_channels_phys):
    """Pad weights / BN params so channel (lane) dims are 128-multiples.

    Padded channels carry exact zeros through every stage (weights padded with
    0, gamma with 1, beta with 0), so results are identical after the final
    channel slice.  Conv biases are dropped: a constant per-channel bias is
    cancelled exactly by the batch-mean subtraction of training-mode BN.
    """
    T = p["w1"].shape[1]
    C = p["w2"].shape[1]
    Tp = _round_up(T, LANE)
    Cp = _round_up(C, LANE)
    f32 = jnp.float32
    return dict(
        w1=_pad_axis(_pad_axis(p["w1"], 0, in_channels_phys), 1, Tp)
            .astype(MATMUL_DTYPE),
        wd=_pad_axis(p["wd"], 1, Tp).astype(f32),
        w2=_pad_axis(_pad_axis(p["w2"], 0, Tp), 1, Cp).astype(MATMUL_DTYPE),
        g1=_pad_axis(p["g1"], 0, Tp, 1.0).astype(f32),
        be1=_pad_axis(p["be1"], 0, Tp).astype(f32),
        gd=_pad_axis(p["gd"], 0, Tp, 1.0).astype(f32),
        bed=_pad_axis(p["bed"], 0, Tp).astype(f32),
        g2=_pad_axis(p["g2"], 0, Cp, 1.0).astype(f32),
        be2=_pad_axis(p["be2"], 0, Cp).astype(f32),
    )


def inverted_residual_block(x_nchw, params1, params2, *, K, stride, n):
    """Forward pass of InvertedResidualBlock.  x_nchw: (N, Cin, H, W) f32."""
    out_c = params1["w2"].shape[1]                     # logical out channels
    x = jnp.transpose(x_nchw, (0, 2, 3, 1))            # NCHW -> NHWC
    N_, H, W, cin = x.shape
    cin_p = _round_up(cin, LANE)
    x = _pad_axis(x, 3, cin_p).astype(STORE_DTYPE)

    p1 = prepare_bottleneck_params(params1, cin_p)
    cp = p1["w2"].shape[1]                             # padded out channels
    p2 = prepare_bottleneck_params(params2, cp)

    # ---- Bottleneck 1 (no residual): K1 is a stats-only pass over x. ----
    x2d = x.reshape(N_ * H * W, cin_p)
    bn1_partials = _expand_stats(x2d, p1["w1"])
    y, scale3, shift3, (H, W) = _bottleneck_tail(x, bn1_partials, p1,
                                                 K=K, stride=stride)
    res2d = None

    # ---- Bottlenecks 2..n (residual): previous BN3 (+ residual) is folded
    # into this block's fused expand-stats kernel (old K4 disappears). ----
    for _ in range(1, n):
        xi2d, s1, q1 = _bn3_expand_stats(y, scale3, shift3, res2d, p2["w1"])
        xi = xi2d.reshape(N_, H, W, cp)
        y, scale3, shift3, (H, W) = _bottleneck_tail(xi, (s1, q1), p2,
                                                     K=K, stride=1)
        res2d = xi2d

    # ---- Final BN3 affine (+ residual when the last bottleneck has r=True).
    out2d = _bn_affine(y, scale3, shift3, res2d)
    out = out2d.reshape(N_, H, W, cp)[..., :out_c]     # drop lane padding
    return jnp.transpose(out, (0, 3, 1, 2))            # NHWC -> NCHW


if __name__ == "__main__":
    # Module hyperparameters (small, consistent with the PyTorch forward).
    N, in_channels, H, W = 2, 4, 16, 16
    out_channels, kernel_size, t, alpha, stride, n = 8, 3, 2, 1.0, 1, 2

    key = jax.random.PRNGKey(0)
    kx, k1, k2 = jax.random.split(key, 3)

    x = jax.random.normal(kx, (N, in_channels, H, W), jnp.float32)
    params1 = init_bottleneck_params(k1, in_channels, out_channels,
                                     kernel_size, t, alpha)
    params2 = init_bottleneck_params(k2, out_channels, out_channels,
                                     kernel_size, t, alpha)

    fwd = jax.jit(functools.partial(inverted_residual_block,
                                    K=kernel_size, stride=stride, n=n))
    y = fwd(x, params1, params2)
    jax.block_until_ready(y)
    assert y.shape == (N, int(out_channels * alpha), H, W)
    print("KERNEL_OK")
</pallas_src>

<mosaic_0001>
module attributes {stable_mosaic.version = 11 : i64} {
  func.func @_expand_stats_kernel(%arg0: i32, %arg1: memref<512x128xbf16, #tpu.memory_space<vmem>>, %arg2: memref<128x128xbf16, #tpu.memory_space<vmem>>, %arg3: memref<1x1x128xf32, #tpu.memory_space<vmem>>, %arg4: memref<1x1x128xf32, #tpu.memory_space<vmem>>) attributes {dimension_semantics = [#tpu.dimension_semantics<parallel>], iteration_bounds = array<i64: 1>, scalar_prefetch = 0 : i64, scratch_operands = 0 : i64, tpu.core_type = #tpu.core_type<tc>, window_params = [{transform_indices = @transform_0, window_bounds = array<i64: 512, 128>}, {pipeline_mode = #tpu.pipeline_mode<synchronous>, transform_indices = @transform_1, window_bounds = array<i64: 128, 128>}, {transform_indices = @transform_2, window_bounds = array<i64: 1, 1, 128>}, {transform_indices = @transform_3, window_bounds = array<i64: 1, 1, 128>}]} {
    %c0 = arith.constant 0 : index
    %c0_0 = arith.constant 0 : index
    %0 = vector.load %arg1[%c0, %c0_0] : memref<512x128xbf16, #tpu.memory_space<vmem>>, vector<512x128xbf16>
    %c0_1 = arith.constant 0 : index
    %c0_2 = arith.constant 0 : index
    %1 = vector.load %arg2[%c0_1, %c0_2] : memref<128x128xbf16, #tpu.memory_space<vmem>>, vector<128x128xbf16>
    %cst = arith.constant dense<0.000000e+00> : vector<512x128xf32>
    %2 = tpu.matmul %0, %1, %cst {dimension_numbers = #tpu.dot_dimension_numbers<[1], [0], [0], [1], [0, 0, 1, 1], [], []>} : vector<512x128xbf16>, vector<128x128xbf16>, vector<512x128xf32> -> vector<512x128xf32>
    %cst_3 = arith.constant dense<0.000000e+00> : vector<128xf32>
    %3 = vector.multi_reduction <add>, %2, %cst_3 [0] : vector<512x128xf32> to vector<128xf32>
    %4 = vector.shape_cast %3 : vector<128xf32> to vector<1x128xf32>
    %5 = vector.shape_cast %4 : vector<1x128xf32> to vector<1x1x128xf32>
    %c0_4 = arith.constant 0 : index
    %c0_5 = arith.constant 0 : index
    %c0_6 = arith.constant 0 : index
    %6 = vector.load %arg3[%c0_4, %c0_5, %c0_6] : memref<1x1x128xf32, #tpu.memory_space<vmem>>, vector<1x1x128xf32>
    tpu.vector_store %arg3[%c0_4, %c0_5, %c0_6], %5 {strides = array<i32>} : memref<1x1x128xf32, #tpu.memory_space<vmem>>, vector<1x1x128xf32>,
    %7 = arith.mulf %2, %2 : vector<512x128xf32>
    %cst_7 = arith.constant dense<0.000000e+00> : vector<128xf32>
    %8 = vector.multi_reduction <add>, %7, %cst_7 [0] : vector<512x128xf32> to vector<128xf32>
    %9 = vector.shape_cast %8 : vector<128xf32> to vector<1x128xf32>
    %10 = vector.shape_cast %9 : vector<1x128xf32> to vector<1x1x128xf32>
    %c0_8 = arith.constant 0 : index
    %c0_9 = arith.constant 0 : index
    %c0_10 = arith.constant 0 : index
    %11 = vector.load %arg4[%c0_8, %c0_9, %c0_10] : memref<1x1x128xf32, #tpu.memory_space<vmem>>, vector<1x1x128xf32>
    tpu.vector_store %arg4[%c0_8, %c0_9, %c0_10], %10 {strides = array<i32>} : memref<1x1x128xf32, #tpu.memory_space<vmem>>, vector<1x1x128xf32>,
    return
  }
  func.func @transform_0(%arg0: i32) -> (i32, i32) {
    %c0_i32 = arith.constant 0 : i32
    %c0_i32_0 = arith.constant 0 : i32
    return %arg0, %c0_i32 : i32, i32
  }
  func.func @transform_1(%arg0: i32) -> (i32, i32) {
    %c0_i32 = arith.constant 0 : i32
    %c0_i32_0 = arith.constant 0 : i32
    %c0_i32_1 = arith.constant 0 : i32
    return %c0_i32, %c0_i32_0 : i32, i32
  }
  func.func @transform_2(%arg0: i32) -> (i32, i32, i32) {
    %c0_i32 = arith.constant 0 : i32
    %c0_i32_0 = arith.constant 0 : i32
    %c0_i32_1 = arith.constant 0 : i32
    return %arg0, %c0_i32, %c0_i32_0 : i32, i32, i32
  }
  func.func @transform_3(%arg0: i32) -> (i32, i32, i32) {
    %c0_i32 = arith.constant 0 : i32
    %c0_i32_0 = arith.constant 0 : i32
    %c0_i32_1 = arith.constant 0 : i32
    return %arg0, %c0_i32, %c0_i32_0 : i32, i32, i32
  }
}

module attributes {stable_mosaic.version = 11 : i64} {
  func.func @_fused_dw_kernel(%arg0: i32, %arg1: memref<1x16x16x128xbf16, #tpu.memory_space<vmem>>, %arg2: memref<128x128xbf16, #tpu.memory_space<vmem>>, %arg3: memref<1x128xf32, #tpu.memory_space<vmem>>, %arg4: memref<1x128xf32, #tpu.memory_space<vmem>>, %arg5: memref<9x128xf32, #tpu.memory_space<vmem>>, %arg6: memref<1x16x16x128xbf16, #tpu.memory_space<vmem>>, %arg7: memref<1x1x128xf32, #tpu.memory_space<vmem>>, %arg8: memref<1x1x128xf32, #tpu.memory_space<vmem>>, %arg9: memref<18x18x128xf32, #tpu.memory_space<vmem>>) attributes {dimension_semantics = [#tpu.dimension_semantics<parallel>], iteration_bounds = array<i64: 2>, scalar_prefetch = 0 : i64, scratch_operands = 1 : i64, tpu.core_type = #tpu.core_type<tc>, window_params = [{transform_indices = @transform_0, window_bounds = array<i64: 1, 16, 16, 128>}, {pipeline_mode = #tpu.pipeline_mode<synchronous>, transform_indices = @transform_1, window_bounds = array<i64: 128, 128>}, {pipeline_mode = #tpu.pipeline_mode<synchronous>, transform_indices = @transform_2, window_bounds = array<i64: 1, 128>}, {pipeline_mode = #tpu.pipeline_mode<synchronous>, transform_indices = @transform_3, window_bounds = array<i64: 1, 128>}, {pipeline_mode = #tpu.pipeline_mode<synchronous>, transform_indices = @transform_4, window_bounds = array<i64: 9, 128>}, {transform_indices = @transform_5, window_bounds = array<i64: 1, 16, 16, 128>}, {transform_indices = @transform_6, window_bounds = array<i64: 1, 1, 128>}, {transform_indices = @transform_7, window_bounds = array<i64: 1, 1, 128>}]} {
    %c0_i32 = arith.constant 0 : i32
    %0 = arith.cmpi eq, %arg0, %c0_i32 : i32
    %1 = arith.extui %0 : i1 to i32
    %c0_i32_0 = arith.constant 0 : i32
    %2 = arith.cmpi ne, %1, %c0_i32_0 : i32
    scf.if %2 {
      %cst_36 = arith.constant 0.000000e+00 : f32
      %95 = vector.broadcast %cst_36 : f32 to vector<18x18x128xf32>
      %c0_37 = arith.constant 0 : index
      %c0_38 = arith.constant 0 : index
      %c0_39 = arith.constant 0 : index
      %96 = vector.load %arg9[%c0_37, %c0_38, %c0_39] : memref<18x18x128xf32, #tpu.memory_space<vmem>>, vector<18x18x128xf32>
      tpu.vector_store %arg9[%c0_37, %c0_38, %c0_39], %95 {strides = array<i32>} : memref<18x18x128xf32, #tpu.memory_space<vmem>>, vector<18x18x128xf32>,
    } else {
    }
    %c0 = arith.constant 0 : index
    %c0_1 = arith.constant 0 : index
    %c0_2 = arith.constant 0 : index
    %c0_3 = arith.constant 0 : index
    %3 = vector.load %arg1[%c0, %c0_1, %c0_2, %c0_3] : memref<1x16x16x128xbf16, #tpu.memory_space<vmem>>, vector<1x16x16x128xbf16>
    %4 = vector.shape_cast %3 : vector<1x16x16x128xbf16> to vector<256x128xbf16>
    %c0_4 = arith.constant 0 : index
    %c0_5 = arith.constant 0 : index
    %5 = vector.load %arg2[%c0_4, %c0_5] : memref<128x128xbf16, #tpu.memory_space<vmem>>, vector<128x128xbf16>
    %cst = arith.constant dense<0.000000e+00> : vector<256x128xf32>
    %6 = tpu.matmul %4, %5, %cst {dimension_numbers = #tpu.dot_dimension_numbers<[1], [0], [0], [1], [0, 0, 1, 1], [], []>} : vector<256x128xbf16>, vector<128x128xbf16>, vector<256x128xf32> -> vector<256x128xf32>
    %c0_6 = arith.constant 0 : index
    %c0_7 = arith.constant 0 : index
    %7 = vector.load %arg3[%c0_6, %c0_7] : memref<1x128xf32, #tpu.memory_space<vmem>>, vector<1x128xf32>
    %8 = vector.broadcast %7 : vector<1x128xf32> to vector<256x128xf32>
    %9 = arith.mulf %6, %8 : vector<256x128xf32>
    %c0_8 = arith.constant 0 : index
    %c0_9 = arith.constant 0 : index
    %10 = vector.load %arg4[%c0_8, %c0_9] : memref<1x128xf32, #tpu.memory_space<vmem>>, vector<1x128xf32>
    %11 = vector.broadcast %10 : vector<1x128xf32> to vector<256x128xf32>
    %12 = arith.addf %9, %11 : vector<256x128xf32>
    %cst_10 = arith.constant 0.000000e+00 : f32
    %13 = vector.broadcast %cst_10 : f32 to vector<256x128xf32>
    %14 = arith.maximumf %12, %13 : vector<256x128xf32>
    %15 = vector.shape_cast %14 : vector<256x128xf32> to vector<16x16x128xf32>
    %c1 = arith.constant 1 : index
    %c1_11 = arith.constant 1 : index
    %c0_12 = arith.constant 0 : index
    %16 = vector.load %arg9[%c1, %c1_11, %c0_12] : memref<18x18x128xf32, #tpu.memory_space<vmem>>, vector<16x16x128xf32>
    tpu.vector_store %arg9[%c1, %c1_11, %c0_12], %15 {strides = array<i32>} : memref<18x18x128xf32, #tpu.memory_space<vmem>>, vector<16x16x128xf32>,
    %c0_13 = arith.constant 0 : index
    %c0_14 = arith.constant 0 : index
    %17 = vector.load %arg5[%c0_13, %c0_14] : memref<9x128xf32, #tpu.memory_space<vmem>>, vector<9x128xf32>
    %cst_15 = arith.constant 0.000000e+00 : f32
    %18 = vector.broadcast %cst_15 : f32 to vector<16x16x128xf32>
    %c0_16 = arith.constant 0 : index
    %c0_17 = arith.constant 0 : index
    %c0_18 = arith.constant 0 : index
    %19 = vector.load %arg9[%c0_16, %c0_17, %c0_18] : memref<18x18x128xf32, #tpu.memory_space<vmem>>, vector<16x18x128xf32>
    %20 = vector.extract_strided_slice %19 {offsets = [0, 0, 0], sizes = [16, 16, 128], strides = [1, 1, 1]} : vector<16x18x128xf32> to vector<16x16x128xf32>
    %21 = vector.extract_strided_slice %17 {offsets = [0, 0], sizes = [1, 128], strides = [1, 1]} : vector<9x128xf32> to vector<1x128xf32>
    %22 = vector.shape_cast %21 : vector<1x128xf32> to vector<128xf32>
    %23 = vector.shape_cast %22 : vector<128xf32> to vector<1x1x128xf32>
    %24 = vector.broadcast %23 : vector<1x1x128xf32> to vector<16x16x128xf32>
    %25 = arith.mulf %20, %24 : vector<16x16x128xf32>
    %26 = arith.addf %18, %25 : vector<16x16x128xf32>
    %27 = vector.extract_strided_slice %19 {offsets = [0, 1, 0], sizes = [16, 16, 128], strides = [1, 1, 1]} : vector<16x18x128xf32> to vector<16x16x128xf32>
    %28 = vector.extract_strided_slice %17 {offsets = [1, 0], sizes = [1, 128], strides = [1, 1]} : vector<9x128xf32> to vector<1x128xf32>
    %29 = vector.shape_cast %28 : vector<1x128xf32> to vector<128xf32>
    %30 = vector.shape_cast %29 : vector<128xf32> to vector<1x1x128xf32>
    %31 = vector.broadcast %30 : vector<1x1x128xf32> to vector<16x16x128xf32>
    %32 = arith.mulf %27, %31 : vector<16x16x128xf32>
    %33 = arith.addf %26, %32 : vector<16x16x128xf32>
    %34 = vector.extract_strided_slice %19 {offsets = [0, 2, 0], sizes = [16, 16, 128], strides = [1, 1, 1]} : vector<16x18x128xf32> to vector<16x16x128xf32>
    %35 = vector.extract_strided_slice %17 {offsets = [2, 0], sizes = [1, 128], strides = [1, 1]} : vector<9x128xf32> to vector<1x128xf32>
    %36 = vector.shape_cast %35 : vector<1x128xf32> to vector<128xf32>
    %37 = vector.shape_cast %36 : vector<128xf32> to vector<1x1x128xf32>
    %38 = vector.broadcast %37 : vector<1x1x128xf32> to vector<16x16x128xf32>
    %39 = arith.mulf %34, %38 : vector<16x16x128xf32>
    %40 = arith.addf %33, %39 : vector<16x16x128xf32>
    %c1_19 = arith.constant 1 : index
    %c0_20 = arith.constant 0 : index
    %c0_21 = arith.constant 0 : index
    %41 = vector.load %arg9[%c1_19, %c0_20, %c0_21] : memref<18x18x128xf32, #tpu.memory_space<vmem>>, vector<16x18x128xf32>
    %42 = vector.extract_strided_slice %41 {offsets = [0, 0, 0], sizes = [16, 16, 128], strides = [1, 1, 1]} : vector<16x18x128xf32> to vector<16x16x128xf32>
    %43 = vector.extract_strided_slice %17 {offsets = [3, 0], sizes = [1, 128], strides = [1, 1]} : vector<9x128xf32> to vector<1x128xf32>
    %44 = vector.shape_cast %43 : vector<1x128xf32> to vector<128xf32>
    %45 = vector.shape_cast %44 : vector<128xf32> to vector<1x1x128xf32>
    %46 = vector.broadcast %45 : vector<1x1x128xf32> to vector<16x16x128xf32>
    %47 = arith.mulf %42, %46 : vector<16x16x128xf32>
    %48 = arith.addf %40, %47 : vector<16x16x128xf32>
    %49 = vector.extract_strided_slice %41 {offsets = [0, 1, 0], sizes = [16, 16, 128], strides = [1, 1, 1]} : vector<16x18x128xf32> to vector<16x16x128xf32>
    %50 = vector.extract_strided_slice %17 {offsets = [4, 0], sizes = [1, 128], strides = [1, 1]} : vector<9x128xf32> to vector<1x128xf32>
    %51 = vector.shape_cast %50 : vector<1x128xf32> to vector<128xf32>
    %52 = vector.shape_cast %51 : vector<128xf32> to vector<1x1x128xf32>
    %53 = vector.broadcast %52 : vector<1x1x128xf32> to vector<16x16x128xf32>
    %54 = arith.mulf %49, %53 : vector<16x16x128xf32>
    %55 = arith.addf %48, %54 : vector<16x16x128xf32>
    %56 = vector.extract_strided_slice %41 {offsets = [0, 2, 0], sizes = [16, 16, 128], strides = [1, 1, 1]} : vector<16x18x128xf32> to vector<16x16x128xf32>
    %57 = vector.extract_strided_slice %17 {offsets = [5, 0], sizes = [1, 128], strides = [1, 1]} : vector<9x128xf32> to vector<1x128xf32>
    %58 = vector.shape_cast %57 : vector<1x128xf32> to vector<128xf32>
    %59 = vector.shape_cast %58 : vector<128xf32> to vector<1x1x128xf32>
    %60 = vector.broadcast %59 : vector<1x1x128xf32> to vector<16x16x128xf32>
    %61 = arith.mulf %56, %60 : vector<16x16x128xf32>
    %62 = arith.addf %55, %61 : vector<16x16x128xf32>
    %c2 = arith.constant 2 : index
    %c0_22 = arith.constant 0 : index
    %c0_23 = arith.constant 0 : index
    %63 = vector.load %arg9[%c2, %c0_22, %c0_23] : memref<18x18x128xf32, #tpu.memory_space<vmem>>, vector<16x18x128xf32>
    %64 = vector.extract_strided_slice %63 {offsets = [0, 0, 0], sizes = [16, 16, 128], strides = [1, 1, 1]} : vector<16x18x128xf32> to vector<16x16x128xf32>
    %65 = vector.extract_strided_slice %17 {offsets = [6, 0], sizes = [1, 128], strides = [1, 1]} : vector<9x128xf32> to vector<1x128xf32>
    %66 = vector.shape_cast %65 : vector<1x128xf32> to vector<128xf32>
    %67 = vector.shape_cast %66 : vector<128xf32> to vector<1x1x128xf32>
    %68 = vector.broadcast %67 : vector<1x1x128xf32> to vector<16x16x128xf32>
    %69 = arith.mulf %64, %68 : vector<16x16x128xf32>
    %70 = arith.addf %62, %69 : vector<16x16x128xf32>
    %71 = vector.extract_strided_slice %63 {offsets = [0, 1, 0], sizes = [16, 16, 128], strides = [1, 1, 1]} : vector<16x18x128xf32> to vector<16x16x128xf32>
    %72 = vector.extract_strided_slice %17 {offsets = [7, 0], sizes = [1, 128], strides = [1, 1]} : vector<9x128xf32> to vector<1x128xf32>
    %73 = vector.shape_cast %72 : vector<1x128xf32> to vector<128xf32>
    %74 = vector.shape_cast %73 : vector<128xf32> to vector<1x1x128xf32>
    %75 = vector.broadcast %74 : vector<1x1x128xf32> to vector<16x16x128xf32>
    %76 = arith.mulf %71, %75 : vector<16x16x128xf32>
    %77 = arith.addf %70, %76 : vector<16x16x128xf32>
    %78 = vector.extract_strided_slice %63 {offsets = [0, 2, 0], sizes = [16, 16, 128], strides = [1, 1, 1]} : vector<16x18x128xf32> to vector<16x16x128xf32>
    %79 = vector.extract_strided_slice %17 {offsets = [8, 0], sizes = [1, 128], strides = [1, 1]} : vector<9x128xf32> to vector<1x128xf32>
    %80 = vector.shape_cast %79 : vector<1x128xf32> to vector<128xf32>
    %81 = vector.shape_cast %80 : vector<128xf32> to vector<1x1x128xf32>
    %82 = vector.broadcast %81 : vector<1x1x128xf32> to vector<16x16x128xf32>
    %83 = arith.mulf %78, %82 : vector<16x16x128xf32>
    %84 = arith.addf %77, %83 : vector<16x16x128xf32>
    %85 = vector.shape_cast %84 : vector<16x16x128xf32> to vector<1x16x16x128xf32>
    %86 = arith.truncf %85 : vector<1x16x16x128xf32> to vector<1x16x16x128xbf16>
    %c0_24 = arith.constant 0 : index
    %c0_25 = arith.constant 0 : index
    %c0_26 = arith.constant 0 : index
    %c0_27 = arith.constant 0 : index
    %87 = vector.load %arg6[%c0_24, %c0_25, %c0_26, %c0_27] : memref<1x16x16x128xbf16, #tpu.memory_space<vmem>>, vector<1x16x16x128xbf16>
    tpu.vector_store %arg6[%c0_24, %c0_25, %c0_26, %c0_27], %86 {strides = array<i32>} : memref<1x16x16x128xbf16, #tpu.memory_space<vmem>>, vector<1x16x16x128xbf16>,
    %cst_28 = arith.constant dense<0.000000e+00> : vector<128xf32>
    %88 = vector.multi_reduction <add>, %84, %cst_28 [0, 1] : vector<16x16x128xf32> to vector<128xf32>
    %89 = vector.shape_cast %88 : vector<128xf32> to vector<1x1x128xf32>
    %c0_29 = arith.constant 0 : index
    %c0_30 = arith.constant 0 : index
    %c0_31 = arith.constant 0 : index
    %90 = vector.load %arg7[%c0_29, %c0_30, %c0_31] : memref<1x1x128xf32, #tpu.memory_space<vmem>>, vector<1x1x128xf32>
    tpu.vector_store %arg7[%c0_29, %c0_30, %c0_31], %89 {strides = array<i32>} : memref<1x1x128xf32, #tpu.memory_space<vmem>>, vector<1x1x128xf32>,
    %91 = arith.mulf %84, %84 : vector<16x16x128xf32>
    %cst_32 = arith.constant dense<0.000000e+00> : vector<128xf32>
    %92 = vector.multi_reduction <add>, %91, %cst_32 [0, 1] : vector<16x16x128xf32> to vector<128xf32>
    %93 = vector.shape_cast %92 : vector<128xf32> to vector<1x1x128xf32>
    %c0_33 = arith.constant 0 : index
    %c0_34 = arith.constant 0 : index
    %c0_35 = arith.constant 0 : index
    %94 = vector.load %arg8[%c0_33, %c0_34, %c0_35] : memref<1x1x128xf32, #tpu.memory_space<vmem>>, vector<1x1x128xf32>
    tpu.vector_store %arg8[%c0_33, %c0_34, %c0_35], %93 {strides = array<i32>} : memref<1x1x128xf32, #tpu.memory_space<vmem>>, vector<1x1x128xf32>,
    return
  }
  func.func @transform_0(%arg0: i32) -> (i32, i32, i32, i32) {
    %c0_i32 = arith.constant 0 : i32
    %c0_i32_0 = arith.constant 0 : i32
    %c0_i32_1 = arith.constant 0 : i32
    %c0_i32_2 = arith.constant 0 : i32
    return %arg0, %c0_i32, %c0_i32_0, %c0_i32_1 : i32, i32, i32, i32
  }
  func.func @transform_1(%arg0: i32) -> (i32, i32) {
    %c0_i32 = arith.constant 0 : i32
    %c0_i32_0 = arith.constant 0 : i32
    %c0_i32_1 = arith.constant 0 : i32
    return %c0_i32, %c0_i32_0 : i32, i32
  }
  func.func @transform_2(%arg0: i32) -> (i32, i32) {
    %c0_i32 = arith.constant 0 : i32
    %c0_i32_0 = arith.constant 0 : i32
    %c0_i32_1 = arith.constant 0 : i32
    return %c0_i32, %c0_i32_0 : i32, i32
  }
  func.func @transform_3(%arg0: i32) -> (i32, i32) {
    %c0_i32 = arith.constant 0 : i32
    %c0_i32_0 = arith.constant 0 : i32
    %c0_i32_1 = arith.constant 0 : i32
    return %c0_i32, %c0_i32_0 : i32, i32
  }
  func.func @transform_4(%arg0: i32) -> (i32, i32) {
    %c0_i32 = arith.constant 0 : i32
    %c0_i32_0 = arith.constant 0 : i32
    %c0_i32_1 = arith.constant 0 : i32
    return %c0_i32, %c0_i32_0 : i32, i32
  }
  func.func @transform_5(%arg0: i32) -> (i32, i32, i32, i32) {
    %c0_i32 = arith.constant 0 : i32
    %c0_i32_0 = arith.constant 0 : i32
    %c0_i32_1 = arith.constant 0 : i32
    %c0_i32_2 = arith.constant 0 : i32
    return %arg0, %c0_i32, %c0_i32_0, %c0_i32_1 : i32, i32, i32, i32
  }
  func.func @transform_6(%arg0: i32) -> (i32, i32, i32) {
    %c0_i32 = arith.constant 0 : i32
    %c0_i32_0 = arith.constant 0 : i32
    %c0_i32_1 = arith.constant 0 : i32
    return %arg0, %c0_i32, %c0_i32_0 : i32, i32, i32
  }
  func.func @transform_7(%arg0: i32) -> (i32, i32, i32) {
    %c0_i32 = arith.constant 0 : i32
    %c0_i32_0 = arith.constant 0 : i32
    %c0_i32_1 = arith.constant 0 : i32
    return %arg0, %c0_i32, %c0_i32_0 : i32, i32, i32
  }
}

module attributes {stable_mosaic.version = 11 : i64} {
  func.func @_project_kernel(%arg0: i32, %arg1: memref<512x128xbf16, #tpu.memory_space<vmem>>, %arg2: memref<1x128xf32, #tpu.memory_space<vmem>>, %arg3: memref<1x128xf32, #tpu.memory_space<vmem>>, %arg4: memref<128x128xbf16, #tpu.memory_space<vmem>>, %arg5: memref<512x128xbf16, #tpu.memory_space<vmem>>, %arg6: memref<1x1x128xf32, #tpu.memory_space<vmem>>, %arg7: memref<1x1x128xf32, #tpu.memory_space<vmem>>) attributes {dimension_semantics = [#tpu.dimension_semantics<parallel>], iteration_bounds = array<i64: 1>, scalar_prefetch = 0 : i64, scratch_operands = 0 : i64, tpu.core_type = #tpu.core_type<tc>, window_params = [{transform_indices = @transform_0, window_bounds = array<i64: 512, 128>}, {pipeline_mode = #tpu.pipeline_mode<synchronous>, transform_indices = @transform_1, window_bounds = array<i64: 1, 128>}, {pipeline_mode = #tpu.pipeline_mode<synchronous>, transform_indices = @transform_2, window_bounds = array<i64: 1, 128>}, {pipeline_mode = #tpu.pipeline_mode<synchronous>, transform_indices = @transform_3, window_bounds = array<i64: 128, 128>}, {transform_indices = @transform_4, window_bounds = array<i64: 512, 128>}, {transform_indices = @transform_5, window_bounds = array<i64: 1, 1, 128>}, {transform_indices = @transform_6, window_bounds = array<i64: 1, 1, 128>}]} {
    %c0 = arith.constant 0 : index
    %c0_0 = arith.constant 0 : index
    %0 = vector.load %arg1[%c0, %c0_0] : memref<512x128xbf16, #tpu.memory_space<vmem>>, vector<512x128xbf16>
    %1 = arith.extf %0 : vector<512x128xbf16> to vector<512x128xf32>
    %c0_1 = arith.constant 0 : index
    %c0_2 = arith.constant 0 : index
    %2 = vector.load %arg2[%c0_1, %c0_2] : memref<1x128xf32, #tpu.memory_space<vmem>>, vector<1x128xf32>
    %3 = vector.broadcast %2 : vector<1x128xf32> to vector<512x128xf32>
    %4 = arith.mulf %1, %3 : vector<512x128xf32>
    %c0_3 = arith.constant 0 : index
    %c0_4 = arith.constant 0 : index
    %5 = vector.load %arg3[%c0_3, %c0_4] : memref<1x128xf32, #tpu.memory_space<vmem>>, vector<1x128xf32>
    %6 = vector.broadcast %5 : vector<1x128xf32> to vector<512x128xf32>
    %7 = arith.addf %4, %6 : vector<512x128xf32>
    %cst = arith.constant 0.000000e+00 : f32
    %8 = vector.broadcast %cst : f32 to vector<512x128xf32>
    %9 = arith.maximumf %7, %8 : vector<512x128xf32>
    %10 = arith.truncf %9 : vector<512x128xf32> to vector<512x128xbf16>
    %c0_5 = arith.constant 0 : index
    %c0_6 = arith.constant 0 : index
    %11 = vector.load %arg4[%c0_5, %c0_6] : memref<128x128xbf16, #tpu.memory_space<vmem>>, vector<128x128xbf16>
    %cst_7 = arith.constant dense<0.000000e+00> : vector<512x128xf32>
    %12 = tpu.matmul %10, %11, %cst_7 {dimension_numbers = #tpu.dot_dimension_numbers<[1], [0], [0], [1], [0, 0, 1, 1], [], []>} : vector<512x128xbf16>, vector<128x128xbf16>, vector<512x128xf32> -> vector<512x128xf32>
    %13 = arith.truncf %12 : vector<512x128xf32> to vector<512x128xbf16>
    %c0_8 = arith.constant 0 : index
    %c0_9 = arith.constant 0 : index
    %14 = vector.load %arg5[%c0_8, %c0_9] : memref<512x128xbf16, #tpu.memory_space<vmem>>, vector<512x128xbf16>
    tpu.vector_store %arg5[%c0_8, %c0_9], %13 {strides = array<i32>} : memref<512x128xbf16, #tpu.memory_space<vmem>>, vector<512x128xbf16>,
    %cst_10 = arith.constant dense<0.000000e+00> : vector<128xf32>
    %15 = vector.multi_reduction <add>, %12, %cst_10 [0] : vector<512x128xf32> to vector<128xf32>
    %16 = vector.shape_cast %15 : vector<128xf32> to vector<1x128xf32>
    %17 = vector.shape_cast %16 : vector<1x128xf32> to vector<1x1x128xf32>
    %c0_11 = arith.constant 0 : index
    %c0_12 = arith.constant 0 : index
    %c0_13 = arith.constant 0 : index
    %18 = vector.load %arg6[%c0_11, %c0_12, %c0_13] : memref<1x1x128xf32, #tpu.memory_space<vmem>>, vector<1x1x128xf32>
    tpu.vector_store %arg6[%c0_11, %c0_12, %c0_13], %17 {strides = array<i32>} : memref<1x1x128xf32, #tpu.memory_space<vmem>>, vector<1x1x128xf32>,
    %19 = arith.mulf %12, %12 : vector<512x128xf32>
    %cst_14 = arith.constant dense<0.000000e+00> : vector<128xf32>
    %20 = vector.multi_reduction <add>, %19, %cst_14 [0] : vector<512x128xf32> to vector<128xf32>
    %21 = vector.shape_cast %20 : vector<128xf32> to vector<1x128xf32>
    %22 = vector.shape_cast %21 : vector<1x128xf32> to vector<1x1x128xf32>
    %c0_15 = arith.constant 0 : index
    %c0_16 = arith.constant 0 : index
    %c0_17 = arith.constant 0 : index
    %23 = vector.load %arg7[%c0_15, %c0_16, %c0_17] : memref<1x1x128xf32, #tpu.memory_space<vmem>>, vector<1x1x128xf32>
    tpu.vector_store %arg7[%c0_15, %c0_16, %c0_17], %22 {strides = array<i32>} : memref<1x1x128xf32, #tpu.memory_space<vmem>>, vector<1x1x128xf32>,
    return
  }
  func.func @transform_0(%arg0: i32) -> (i32, i32) {
    %c0_i32 = arith.constant 0 : i32
    %c0_i32_0 = arith.constant 0 : i32
    return %arg0, %c0_i32 : i32, i32
  }
  func.func @transform_1(%arg0: i32) -> (i32, i32) {
    %c0_i32 = arith.constant 0 : i32
    %c0_i32_0 = arith.constant 0 : i32
    %c0_i32_1 = arith.constant 0 : i32
    return %c0_i32, %c0_i32_0 : i32, i32
  }
  func.func @transform_2(%arg0: i32) -> (i32, i32) {
    %c0_i32 = arith.constant 0 : i32
    %c0_i32_0 = arith.constant 0 : i32
    %c0_i32_1 = arith.constant 0 : i32
    return %c0_i32, %c0_i32_0 : i32, i32
  }
  func.func @transform_3(%arg0: i32) -> (i32, i32) {
    %c0_i32 = arith.constant 0 : i32
    %c0_i32_0 = arith.constant 0 : i32
    %c0_i32_1 = arith.constant 0 : i32
    return %c0_i32, %c0_i32_0 : i32, i32
  }
  func.func @transform_4(%arg0: i32) -> (i32, i32) {
    %c0_i32 = arith.constant 0 : i32
    %c0_i32_0 = arith.constant 0 : i32
    return %arg0, %c0_i32 : i32, i32
  }
  func.func @transform_5(%arg0: i32) -> (i32, i32, i32) {
    %c0_i32 = arith.constant 0 : i32
    %c0_i32_0 = arith.constant 0 : i32
    %c0_i32_1 = arith.constant 0 : i32
    return %arg0, %c0_i32, %c0_i32_0 : i32, i32, i32
  }
  func.func @transform_6(%arg0: i32) -> (i32, i32, i32) {
    %c0_i32 = arith.constant 0 : i32
    %c0_i32_0 = arith.constant 0 : i32
    %c0_i32_1 = arith.constant 0 : i32
    return %arg0, %c0_i32, %c0_i32_0 : i32, i32, i32
  }
}

module attributes {stable_mosaic.version = 11 : i64} {
  func.func @_bn3_expand_kernel(%arg0: i32, %arg1: memref<512x128xbf16, #tpu.memory_space<vmem>>, %arg2: memref<1x128xf32, #tpu.memory_space<vmem>>, %arg3: memref<1x128xf32, #tpu.memory_space<vmem>>, %arg4: memref<128x128xbf16, #tpu.memory_space<vmem>>, %arg5: memref<512x128xbf16, #tpu.memory_space<vmem>>, %arg6: memref<1x1x128xf32, #tpu.memory_space<vmem>>, %arg7: memref<1x1x128xf32, #tpu.memory_space<vmem>>) attributes {dimension_semantics = [#tpu.dimension_semantics<parallel>], iteration_bounds = array<i64: 1>, scalar_prefetch = 0 : i64, scratch_operands = 0 : i64, tpu.core_type = #tpu.core_type<tc>, window_params = [{transform_indices = @transform_0, window_bounds = array<i64: 512, 128>}, {pipeline_mode = #tpu.pipeline_mode<synchronous>, transform_indices = @transform_1, window_bounds = array<i64: 1, 128>}, {pipeline_mode = #tpu.pipeline_mode<synchronous>, transform_indices = @transform_2, window_bounds = array<i64: 1, 128>}, {pipeline_mode = #tpu.pipeline_mode<synchronous>, transform_indices = @transform_3, window_bounds = array<i64: 128, 128>}, {transform_indices = @transform_4, window_bounds = array<i64: 512, 128>}, {transform_indices = @transform_5, window_bounds = array<i64: 1, 1, 128>}, {transform_indices = @transform_6, window_bounds = array<i64: 1, 1, 128>}]} {
    %c0 = arith.constant 0 : index
    %c0_0 = arith.constant 0 : index
    %0 = vector.load %arg1[%c0, %c0_0] : memref<512x128xbf16, #tpu.memory_space<vmem>>, vector<512x128xbf16>
    %1 = arith.extf %0 : vector<512x128xbf16> to vector<512x128xf32>
    %c0_1 = arith.constant 0 : index
    %c0_2 = arith.constant 0 : index
    %2 = vector.load %arg2[%c0_1, %c0_2] : memref<1x128xf32, #tpu.memory_space<vmem>>, vector<1x128xf32>
    %3 = vector.broadcast %2 : vector<1x128xf32> to vector<512x128xf32>
    %4 = arith.mulf %1, %3 : vector<512x128xf32>
    %c0_3 = arith.constant 0 : index
    %c0_4 = arith.constant 0 : index
    %5 = vector.load %arg3[%c0_3, %c0_4] : memref<1x128xf32, #tpu.memory_space<vmem>>, vector<1x128xf32>
    %6 = vector.broadcast %5 : vector<1x128xf32> to vector<512x128xf32>
    %7 = arith.addf %4, %6 : vector<512x128xf32>
    %8 = arith.truncf %7 : vector<512x128xf32> to vector<512x128xbf16>
    %c0_5 = arith.constant 0 : index
    %c0_6 = arith.constant 0 : index
    %9 = vector.load %arg5[%c0_5, %c0_6] : memref<512x128xbf16, #tpu.memory_space<vmem>>, vector<512x128xbf16>
    tpu.vector_store %arg5[%c0_5, %c0_6], %8 {strides = array<i32>} : memref<512x128xbf16, #tpu.memory_space<vmem>>, vector<512x128xbf16>,
    %c0_7 = arith.constant 0 : index
    %c0_8 = arith.constant 0 : index
    %10 = vector.load %arg4[%c0_7, %c0_8] : memref<128x128xbf16, #tpu.memory_space<vmem>>, vector<128x128xbf16>
    %cst = arith.constant dense<0.000000e+00> : vector<512x128xf32>
    %11 = tpu.matmul %8, %10, %cst {dimension_numbers = #tpu.dot_dimension_numbers<[1], [0], [0], [1], [0, 0, 1, 1], [], []>} : vector<512x128xbf16>, vector<128x128xbf16>, vector<512x128xf32> -> vector<512x128xf32>
    %cst_9 = arith.constant dense<0.000000e+00> : vector<128xf32>
    %12 = vector.multi_reduction <add>, %11, %cst_9 [0] : vector<512x128xf32> to vector<128xf32>
    %13 = vector.shape_cast %12 : vector<128xf32> to vector<1x128xf32>
    %14 = vector.shape_cast %13 : vector<1x128xf32> to vector<1x1x128xf32>
    %c0_10 = arith.constant 0 : index
    %c0_11 = arith.constant 0 : index
    %c0_12 = arith.constant 0 : index
    %15 = vector.load %arg6[%c0_10, %c0_11, %c0_12] : memref<1x1x128xf32, #tpu.memory_space<vmem>>, vector<1x1x128xf32>
    tpu.vector_store %arg6[%c0_10, %c0_11, %c0_12], %14 {strides = array<i32>} : memref<1x1x128xf32, #tpu.memory_space<vmem>>, vector<1x1x128xf32>,
    %16 = arith.mulf %11, %11 : vector<512x128xf32>
    %cst_13 = arith.constant dense<0.000000e+00> : vector<128xf32>
    %17 = vector.multi_reduction <add>, %16, %cst_13 [0] : vector<512x128xf32> to vector<128xf32>
    %18 = vector.shape_cast %17 : vector<128xf32> to vector<1x128xf32>
    %19 = vector.shape_cast %18 : vector<1x128xf32> to vector<1x1x128xf32>
    %c0_14 = arith.constant 0 : index
    %c0_15 = arith.constant 0 : index
    %c0_16 = arith.constant 0 : index
    %20 = vector.load %arg7[%c0_14, %c0_15, %c0_16] : memref<1x1x128xf32, #tpu.memory_space<vmem>>, vector<1x1x128xf32>
    tpu.vector_store %arg7[%c0_14, %c0_15, %c0_16], %19 {strides = array<i32>} : memref<1x1x128xf32, #tpu.memory_space<vmem>>, vector<1x1x128xf32>,
    return
  }
  func.func @transform_0(%arg0: i32) -> (i32, i32) {
    %c0_i32 = arith.constant 0 : i32
    %c0_i32_0 = arith.constant 0 : i32
    return %arg0, %c0_i32 : i32, i32
  }
  func.func @transform_1(%arg0: i32) -> (i32, i32) {
    %c0_i32 = arith.constant 0 : i32
    %c0_i32_0 = arith.constant 0 : i32
    %c0_i32_1 = arith.constant 0 : i32
    return %c0_i32, %c0_i32_0 : i32, i32
  }
  func.func @transform_2(%arg0: i32) -> (i32, i32) {
    %c0_i32 = arith.constant 0 : i32
    %c0_i32_0 = arith.constant 0 : i32
    %c0_i32_1 = arith.constant 0 : i32
    return %c0_i32, %c0_i32_0 : i32, i32
  }
  func.func @transform_3(%arg0: i32) -> (i32, i32) {
    %c0_i32 = arith.constant 0 : i32
    %c0_i32_0 = arith.constant 0 : i32
    %c0_i32_1 = arith.constant 0 : i32
    return %c0_i32, %c0_i32_0 : i32, i32
  }
  func.func @transform_4(%arg0: i32) -> (i32, i32) {
    %c0_i32 = arith.constant 0 : i32
    %c0_i32_0 = arith.constant 0 : i32
    return %arg0, %c0_i32 : i32, i32
  }
  func.func @transform_5(%arg0: i32) -> (i32, i32, i32) {
    %c0_i32 = arith.constant 0 : i32
    %c0_i32_0 = arith.constant 0 : i32
    %c0_i32_1 = arith.constant 0 : i32
    return %arg0, %c0_i32, %c0_i32_0 : i32, i32, i32
  }
  func.func @transform_6(%arg0: i32) -> (i32, i32, i32) {
    %c0_i32 = arith.constant 0 : i32
    %c0_i32_0 = arith.constant 0 : i32
    %c0_i32_1 = arith.constant 0 : i32
    return %arg0, %c0_i32, %c0_i32_0 : i32, i32, i32
  }
}

module attributes {stable_mosaic.version = 11 : i64} {
  func.func @_bn_res_kernel(%arg0: i32, %arg1: memref<512x128xbf16, #tpu.memory_space<vmem>>, %arg2: memref<1x128xf32, #tpu.memory_space<vmem>>, %arg3: memref<1x128xf32, #tpu.memory_space<vmem>>, %arg4: memref<512x128xbf16, #tpu.memory_space<vmem>>, %arg5: memref<512x128xf32, #tpu.memory_space<vmem>>) attributes {dimension_semantics = [#tpu.dimension_semantics<parallel>], iteration_bounds = array<i64: 1>, scalar_prefetch = 0 : i64, scratch_operands = 0 : i64, tpu.core_type = #tpu.core_type<tc>, window_params = [{transform_indices = @transform_0, window_bounds = array<i64: 512, 128>}, {pipeline_mode = #tpu.pipeline_mode<synchronous>, transform_indices = @transform_1, window_bounds = array<i64: 1, 128>}, {pipeline_mode = #tpu.pipeline_mode<synchronous>, transform_indices = @transform_2, window_bounds = array<i64: 1, 128>}, {transform_indices = @transform_3, window_bounds = array<i64: 512, 128>}, {transform_indices = @transform_4, window_bounds = array<i64: 512, 128>}]} {
    %c0 = arith.constant 0 : index
    %c0_0 = arith.constant 0 : index
    %0 = vector.load %arg1[%c0, %c0_0] : memref<512x128xbf16, #tpu.memory_space<vmem>>, vector<512x128xbf16>
    %1 = arith.extf %0 : vector<512x128xbf16> to vector<512x128xf32>
    %c0_1 = arith.constant 0 : index
    %c0_2 = arith.constant 0 : index
    %2 = vector.load %arg2[%c0_1, %c0_2] : memref<1x128xf32, #tpu.memory_space<vmem>>, vector<1x128xf32>
    %3 = vector.broadcast %2 : vector<1x128xf32> to vector<512x128xf32>
    %4 = arith.mulf %1, %3 : vector<512x128xf32>
    %c0_3 = arith.constant 0 : index
    %c0_4 = arith.constant 0 : index
    %5 = vector.load %arg3[%c0_3, %c0_4] : memref<1x128xf32, #tpu.memory_space<vmem>>, vector<1x128xf32>
    %6 = vector.broadcast %5 : vector<1x128xf32> to vector<512x128xf32>
    %7 = arith.addf %4, %6 : vector<512x128xf32>
    %c0_5 = arith.constant 0 : index
    %c0_6 = arith.constant 0 : index
    %8 = vector.load %arg4[%c0_5, %c0_6] : memref<512x128xbf16, #tpu.memory_space<vmem>>, vector<512x128xbf16>
    %9 = arith.extf %8 : vector<512x128xbf16> to vector<512x128xf32>
    %10 = arith.addf %7, %9 : vector<512x128xf32>
    %c0_7 = arith.constant 0 : index
    %c0_8 = arith.constant 0 : index
    %11 = vector.load %arg5[%c0_7, %c0_8] : memref<512x128xf32, #tpu.memory_space<vmem>>, vector<512x128xf32>
    tpu.vector_store %arg5[%c0_7, %c0_8], %10 {strides = array<i32>} : memref<512x128xf32, #tpu.memory_space<vmem>>, vector<512x128xf32>,
    return
  }
  func.func @transform_0(%arg0: i32) -> (i32, i32) {
    %c0_i32 = arith.constant 0 : i32
    %c0_i32_0 = arith.constant 0 : i32
    return %arg0, %c0_i32 : i32, i32
  }
  func.func @transform_1(%arg0: i32) -> (i32, i32) {
    %c0_i32 = arith.constant 0 : i32
    %c0_i32_0 = arith.constant 0 : i32
    %c0_i32_1 = arith.constant 0 : i32
    return %c0_i32, %c0_i32_0 : i32, i32
  }
  func.func @transform_2(%arg0: i32) -> (i32, i32) {
    %c0_i32 = arith.constant 0 : i32
    %c0_i32_0 = arith.constant 0 : i32
    %c0_i32_1 = arith.constant 0 : i32
    return %c0_i32, %c0_i32_0 : i32, i32
  }
  func.func @transform_3(%arg0: i32) -> (i32, i32) {
    %c0_i32 = arith.constant 0 : i32
    %c0_i32_0 = arith.constant 0 : i32
    return %arg0, %c0_i32 : i32, i32
  }
  func.func @transform_4(%arg0: i32) -> (i32, i32) {
    %c0_i32 = arith.constant 0 : i32
    %c0_i32_0 = arith.constant 0 : i32
    return %arg0, %c0_i32 : i32, i32
  }
}

</mosaic_0001>

<bundles_post_ra>
// kernel: inverted_residual_block.7
= control target key start
LH: loop header
LB: loop body
LE: loop exit
PB: predicated region body
PF: predicated region fallthrough
CT: control target
= control target key end

     0   :  { %s1357_s1 = inlined_call_operand.vmem [shape: bf16[128,128], index: 1, kind: input, shape index: {}]   ;;  %s1358_s0 = inlined_call_operand.vmem [shape: bf16[512,128], index: 0, kind: input, shape index: {}]   ;;  %s1359_s2 = inlined_call_operand.vmem [shape: f32[1,1,128], index: 2, kind: output, shape index: {0}]   ;;  %s1360_s3 = inlined_call_operand.vmem [shape: f32[1,1,128], index: 3, kind: output, shape index: {1}]  }
   0x1   :  { %v1011_v0 = vld [vmem:[%s1357_s1] sm:$0xff]   ;;  %v1012_v1 = vld [vmem:[%s1357_s1 + $0x8] sm:$0xff]   ;;  %v1013_v2 = vld [vmem:[%s1357_s1 + $0x10] sm:$0xff]  }
   0x2   :  { %915 = vmatprep.subr.bf16.mxu0 %v1011_v0  ;;  %995 = vmatprep.subr.bf16.mxu1 %v1011_v0  ;;  %v1014_v3 = vld [vmem:[%s1357_s1 + $0x18] sm:$0xff]   ;;  %v1019_v4 = vld [vmem:[%s1358_s0] sm:$0xff]   ;;  %v1016_v6 = vld [vmem:[%s1357_s1 + $0x28] sm:$0xff]  }
   0x3   :  { %916 = vmatpush3.bf16.msra.mxu0 %v1011_v0  ;;  %1003 = vmatpush3.bf16.msra.mxu1 %v1011_v0  ;;  %v1015_v5 = vld [vmem:[%s1357_s1 + $0x20] sm:$0xff]   ;;  %v1017_v7 = vld [vmem:[%s1357_s1 + $0x30] sm:$0xff]   ;;  %v1018_v8 = vld [vmem:[%s1357_s1 + $0x38] sm:$0xff]  }
   0x4   :  { %917 = vmatprep.subr.bf16.mxu0 %v1012_v1  ;;  %996 = vmatprep.subr.bf16.mxu1 %v1012_v1  ;;  %v1035_v9 = vld [vmem:[%s1358_s0 + $0x80] sm:$0xff]   ;;  %v1020_v10 = vld [vmem:[%s1358_s0 + $0x8] sm:$0xff]   ;;  %v1021_v11 = vld [vmem:[%s1358_s0 + $0x10] sm:$0xff]  }
   0x5   :  { %931 = vmatprep.mubr.bf16.mxu0 %v1019_v4  ;;  %963 = vmatprep.mubr.bf16.mxu1 %v1035_v9  ;;  %v1036_v12 = vld [vmem:[%s1358_s0 + $0x88] sm:$0xff]   ;;  %v1037_v13 = vld [vmem:[%s1358_s0 + $0x90] sm:$0xff]   ;;  %v1022_v14 = vld [vmem:[%s1358_s0 + $0x18] sm:$0xff]  }
   0x6   :  { %v1023_v15 = vld [vmem:[%s1358_s0 + $0x20] sm:$0xff]   ;;  %v1038_v16 = vld [vmem:[%s1358_s0 + $0x98] sm:$0xff]   ;;  %v1024_v18 = vld [vmem:[%s1358_s0 + $0x28] sm:$0xff]  }
   0x7   :  { %918 = vmatpush3.bf16.msra.mxu0 %v1012_v1  ;;  %1004 = vmatpush3.bf16.msra.mxu1 %v1012_v1  ;;  %v1039_v17 = vld [vmem:[%s1358_s0 + $0xa0] sm:$0xff]   ;;  %v1040_v19 = vld [vmem:[%s1358_s0 + $0xa8] sm:$0xff]   ;;  %v1025_v20 = vld [vmem:[%s1358_s0 + $0x30] sm:$0xff]  }
   0x8   :  { %919 = vmatprep.subr.bf16.mxu0 %v1013_v2  ;;  %997 = vmatprep.subr.bf16.mxu1 %v1013_v2  ;;  %v1041_v21 = vld [vmem:[%s1358_s0 + $0xb0] sm:$0xff]   ;;  %v1026_v22 = vld [vmem:[%s1358_s0 + $0x38] sm:$0xff]   ;;  %v1027_v24 = vld [vmem:[%s1358_s0 + $0x40] sm:$0xff]  }
   0x9   :  { %v1042_v23 = vld [vmem:[%s1358_s0 + $0xb8] sm:$0xff]   ;;  %v1043_v25 = vld [vmem:[%s1358_s0 + $0xc0] sm:$0xff]   ;;  %v1028_v26 = vld [vmem:[%s1358_s0 + $0x48] sm:$0xff]  }
   0xa   :  { %v1044_v27 = vld [vmem:[%s1358_s0 + $0xc8] sm:$0xff]   ;;  %v1029_v28 = vld [vmem:[%s1358_s0 + $0x50] sm:$0xff]   ;;  %v1030_v30 = vld [vmem:[%s1358_s0 + $0x58] sm:$0xff]  }
   0xb   :  { %920 = vmatpush3.bf16.msra.mxu0 %v1013_v2  ;;  %1005 = vmatpush3.bf16.msra.mxu1 %v1013_v2  ;;  %v1045_v29 = vld [vmem:[%s1358_s0 + $0xd0] sm:$0xff]   ;;  %v1046_v31 = vld [vmem:[%s1358_s0 + $0xd8] sm:$0xff]   ;;  %v1031_v32 = vld [vmem:[%s1358_s0 + $0x60] sm:$0xff]  }
   0xc   :  { %921 = vmatprep.subr.bf16.mxu0 %v1014_v3  ;;  %998 = vmatprep.subr.bf16.mxu1 %v1014_v3  ;;  %v1047_v33 = vld [vmem:[%s1358_s0 + $0xe0] sm:$0xff]   ;;  %v1032_v34 = vld [vmem:[%s1358_s0 + $0x68] sm:$0xff]   ;;  %v1033_v36 = vld [vmem:[%s1358_s0 + $0x70] sm:$0xff]  }
   0xd   :  { %v1048_v35 = vld [vmem:[%s1358_s0 + $0xe8] sm:$0xff]   ;;  %v1049_v37 = vld [vmem:[%s1358_s0 + $0xf0] sm:$0xff]   ;;  %v1034_v38 = vld [vmem:[%s1358_s0 + $0x78] sm:$0xff]  }
   0xe   :  { %v1050_v39 = vld [vmem:[%s1358_s0 + $0xf8] sm:$0xff]  }
   0xf   :  { %922 = vmatpush3.bf16.msra.mxu0 %v1014_v3  ;;  %1006 = vmatpush3.bf16.msra.mxu1 %v1014_v3 }
  0x10   :  { %923 = vmatprep.subr.bf16.mxu0 %v1015_v5  ;;  %999 = vmatprep.subr.bf16.mxu1 %v1015_v5 }
  0x13   :  { %924 = vmatpush3.bf16.msra.mxu0 %v1015_v5  ;;  %1007 = vmatpush3.bf16.msra.mxu1 %v1015_v5 }
  0x14   :  { %925 = vmatprep.subr.bf16.mxu0 %v1016_v6  ;;  %1000 = vmatprep.subr.bf16.mxu1 %v1016_v6 }
  0x17   :  { %926 = vmatpush3.bf16.msra.mxu0 %v1016_v6  ;;  %1008 = vmatpush3.bf16.msra.mxu1 %v1016_v6 }
  0x18   :  { %927 = vmatprep.subr.bf16.mxu0 %v1017_v7  ;;  %1001 = vmatprep.subr.bf16.mxu1 %v1017_v7 }
  0x1b   :  { %928 = vmatpush3.bf16.msra.mxu0 %v1017_v7  ;;  %1009 = vmatpush3.bf16.msra.mxu1 %v1017_v7 }
  0x1c   :  { %929 = vmatprep.subr.bf16.mxu0 %v1018_v8  ;;  %1002 = vmatprep.subr.bf16.mxu1 %v1018_v8 }
  0x1f   :  { %930 = vmatpush3.bf16.msra.mxu0 %v1018_v8  ;;  %1010 = vmatpush3.bf16.msra.mxu1 %v1018_v8 }
  0x22   :  { %932 = vmatmul.mubr.bf16.vlgmr.msra.gmra.mrb[0].mxu0 %v1020_v10  ;;  %964 = vmatmul.mubr.bf16.vlgmr.msra.gmra.mrb[0].mxu1 %v1036_v12 }
  0x23   :  { %935 = vmatprep.mubr.bf16.mxu0 %v1021_v11  ;;  %967 = vmatprep.mubr.bf16.mxu1 %v1037_v13 }
  0x2a   :  { %936 = vmatmul.mubr.bf16.gmra.mrb[4].mxu0 %v1022_v14  ;;  %968 = vmatmul.mubr.bf16.gmra.mrb[4].mxu1 %v1038_v16 }
  0x2b   :  { %939 = vmatprep.mubr.bf16.mxu0 %v1023_v15  ;;  %971 = vmatprep.mubr.bf16.mxu1 %v1039_v17 }
  0x32   :  { %940 = vmatmul.mubr.bf16.gmra.mrb[8].mxu0 %v1024_v18  ;;  %972 = vmatmul.mubr.bf16.gmra.mrb[8].mxu1 %v1040_v19 }
  0x33   :  { %943 = vmatprep.mubr.bf16.mxu0 %v1025_v20  ;;  %975 = vmatprep.mubr.bf16.mxu1 %v1041_v21 }
  0x3a   :  { %944 = vmatmul.mubr.bf16.gmra.mrb[12].mxu0 %v1026_v22  ;;  %976 = vmatmul.mubr.bf16.gmra.mrb[12].mxu1 %v1042_v23 }
  0x3b   :  { %947 = vmatprep.mubr.bf16.mxu0 %v1027_v24  ;;  %979 = vmatprep.mubr.bf16.mxu1 %v1043_v25 }
  0x42   :  { %948 = vmatmul.mubr.bf16.gmra.mrb[16].mxu0 %v1028_v26  ;;  %980 = vmatmul.mubr.bf16.gmra.mrb[16].mxu1 %v1044_v27 }
  0x43   :  { %951 = vmatprep.mubr.bf16.mxu0 %v1029_v28  ;;  %983 = vmatprep.mubr.bf16.mxu1 %v1045_v29 }
  0x4a   :  { %952 = vmatmul.mubr.bf16.gmra.mrb[20].mxu0 %v1030_v30  ;;  %984 = vmatmul.mubr.bf16.gmra.mrb[20].mxu1 %v1046_v31 }
  0x4b   :  { %955 = vmatprep.mubr.bf16.mxu0 %v1031_v32  ;;  %987 = vmatprep.mubr.bf16.mxu1 %v1047_v33 }
  0x52   :  { %956 = vmatmul.mubr.bf16.gmra.mrb[24].mxu0 %v1032_v34  ;;  %988 = vmatmul.mubr.bf16.gmra.mrb[24].mxu1 %v1048_v35 }
  0x53   :  { %959 = vmatprep.mubr.bf16.mxu0 %v1033_v36  ;;  %991 = vmatprep.mubr.bf16.mxu1 %v1049_v37 }
  0x5a   :  { %960 = vmatmul.mubr.bf16.gmra.mrb[28].mxu0 %v1034_v38  ;;  %992 = vmatmul.mubr.bf16.gmra.mrb[28].mxu1 %v1050_v39 }
  0xf5   :  { %v933_v40 = vpop.f32.mrb[0].mxu0  ;;  %v1191_v41 = vpop.f32.mrb[0].mxu1 }
  0xf6   :  { %v368_v42 = vpop.f32.mrb[1].mxu0  ;;  %v1193_v43 = vpop.f32.mrb[1].mxu1  ;;  %v695_v51 = vmul.f32 %v933_v40, %v933_v40 }
  0xf7   :  { %v934_v44 = vpop.f32.mrb[2].mxu0  ;;  %v1195_v45 = vpop.f32.mrb[2].mxu1  ;;  %v693_v48 = vmul.f32 %v368_v42, %v368_v42 }
  0xf8   :  { %v371_v46 = vpop.f32.mrb[3].mxu0  ;;  %v1197_v47 = vpop.f32.mrb[3].mxu1  ;;  %v696_v54 = vmul.f32 %v934_v44, %v934_v44 }
  0xf9   :  { %v623_v49 = vadd.f32 %v371_v46, %v368_v42  ;;  %v694_v50 = vmul.f32 %v371_v46, %v371_v46 }
  0xfb   :  { %v624_v52 = vadd.f32 %v933_v40, %v623_v49  ;;  %v757_v53 = vadd.f32 %v694_v50, %v693_v48 }
  0xfd   :  { %v758_v55 = vadd.f32 %v757_v53, %v695_v51  ;;  %v937_v56 = vpop.f32.mrb[4].mxu0  ;;  %v625_v57 = vadd.f32 %v934_v44, %v624_v52  ;;  %v1199_v58 = vpop.f32.mrb[4].mxu1 }
  0xfe   :  { %v384_v59 = vpop.f32.mrb[5].mxu0  ;;  %v1201_v60 = vpop.f32.mrb[5].mxu1  ;;  %v699_v7 = vmul.f32 %v937_v56, %v937_v56 }
  0xff   :  { %v626_v61 = vadd.f32 %v625_v57, %v384_v59  ;;  %v697_v62 = vmul.f32 %v384_v59, %v384_v59  ;;  %v759_v63 = vadd.f32 %v758_v55, %v696_v54  ;;  %v938_v0 = vpop.f32.mrb[6].mxu0  ;;  %v1203_v1 = vpop.f32.mrb[6].mxu1 }
 0x100   :  { %v387_v2 = vpop.f32.mrb[7].mxu0  ;;  %v1205_v3 = vpop.f32.mrb[7].mxu1  ;;  %v700_v10 = vmul.f32 %v938_v0, %v938_v0 }
 0x101   :  { %v760_v4 = vadd.f32 %v759_v63, %v697_v62  ;;  %v627_v5 = vadd.f32 %v626_v61, %v387_v2  ;;  %v698_v6 = vmul.f32 %v387_v2, %v387_v2 }
 0x103   :  { %v628_v8 = vadd.f32 %v937_v56, %v627_v5  ;;  %v761_v9 = vadd.f32 %v760_v4, %v698_v6 }
 0x105   :  { %v762_v11 = vadd.f32 %v761_v9, %v699_v7  ;;  %v941_v12 = vpop.f32.mrb[8].mxu0  ;;  %v629_v13 = vadd.f32 %v938_v0, %v628_v8  ;;  %v1207_v14 = vpop.f32.mrb[8].mxu1 }
 0x106   :  { %v400_v15 = vpop.f32.mrb[9].mxu0  ;;  %v1209_v16 = vpop.f32.mrb[9].mxu1  ;;  %v703_v27 = vmul.f32 %v941_v12, %v941_v12 }
 0x107   :  { %v630_v17 = vadd.f32 %v629_v13, %v400_v15  ;;  %v701_v18 = vmul.f32 %v400_v15, %v400_v15  ;;  %v763_v19 = vadd.f32 %v762_v11, %v700_v10  ;;  %v942_v20 = vpop.f32.mrb[10].mxu0  ;;  %v1211_v21 = vpop.f32.mrb[10].mxu1 }
 0x108   :  { %v403_v22 = vpop.f32.mrb[11].mxu0  ;;  %v1213_v23 = vpop.f32.mrb[11].mxu1  ;;  %v704_v30 = vmul.f32 %v942_v20, %v942_v20 }
 0x109   :  { %v764_v24 = vadd.f32 %v763_v19, %v701_v18  ;;  %v631_v25 = vadd.f32 %v630_v17, %v403_v22  ;;  %v702_v26 = vmul.f32 %v403_v22, %v403_v22 }
 0x10b   :  { %v632_v28 = vadd.f32 %v941_v12, %v631_v25  ;;  %v765_v29 = vadd.f32 %v764_v24, %v702_v26 }
 0x10d   :  { %v766_v31 = vadd.f32 %v765_v29, %v703_v27  ;;  %v945_v32 = vpop.f32.mrb[12].mxu0  ;;  %v633_v33 = vadd.f32 %v942_v20, %v632_v28  ;;  %v1215_v34 = vpop.f32.mrb[12].mxu1 }
 0x10e   :  { %v416_v35 = vpop.f32.mrb[13].mxu0  ;;  %v1217_v36 = vpop.f32.mrb[13].mxu1  ;;  %v707_v51 = vmul.f32 %v945_v32, %v945_v32 }
 0x10f   :  { %v634_v37 = vadd.f32 %v633_v33, %v416_v35  ;;  %v705_v38 = vmul.f32 %v416_v35, %v416_v35  ;;  %v767_v39 = vadd.f32 %v766_v31, %v704_v30  ;;  %v946_v40 = vpop.f32.mrb[14].mxu0  ;;  %v1219_v42 = vpop.f32.mrb[14].mxu1 }
 0x110   :  { %v419_v44 = vpop.f32.mrb[15].mxu0  ;;  %v1221_v46 = vpop.f32.mrb[15].mxu1  ;;  %v708_v54 = vmul.f32 %v946_v40, %v946_v40 }
 0x111   :  { %v768_v48 = vadd.f32 %v767_v39, %v705_v38  ;;  %v635_v49 = vadd.f32 %v634_v37, %v419_v44  ;;  %v706_v50 = vmul.f32 %v419_v44, %v419_v44 }
 0x113   :  { %v636_v52 = vadd.f32 %v945_v32, %v635_v49  ;;  %v769_v53 = vadd.f32 %v768_v48, %v706_v50 }
 0x115   :  { %v770_v55 = vadd.f32 %v769_v53, %v707_v51  ;;  %v949_v56 = vpop.f32.mrb[16].mxu0  ;;  %v637_v57 = vadd.f32 %v946_v40, %v636_v52  ;;  %v1223_v59 = vpop.f32.mrb[16].mxu1 }
 0x116   :  { %v432_v61 = vpop.f32.mrb[17].mxu0  ;;  %v1225_v62 = vpop.f32.mrb[17].mxu1  ;;  %v711_v11 = vmul.f32 %v949_v56, %v949_v56 }
 0x117   :  { %v638_v63 = vadd.f32 %v637_v57, %v432_v61  ;;  %v709_v0 = vmul.f32 %v432_v61, %v432_v61  ;;  %v771_v2 = vadd.f32 %v770_v55, %v708_v54  ;;  %v950_v4 = vpop.f32.mrb[18].mxu0  ;;  %v1227_v5 = vpop.f32.mrb[18].mxu1 }
 0x118   :  { %v435_v6 = vpop.f32.mrb[19].mxu0  ;;  %v1229_v7 = vpop.f32.mrb[19].mxu1  ;;  %v712_v15 = vmul.f32 %v950_v4, %v950_v4 }
 0x119   :  { %v772_v8 = vadd.f32 %v771_v2, %v709_v0  ;;  %v639_v9 = vadd.f32 %v638_v63, %v435_v6  ;;  %v710_v10 = vmul.f32 %v435_v6, %v435_v6 }
 0x11b   :  { %v640_v12 = vadd.f32 %v949_v56, %v639_v9  ;;  %v773_v13 = vadd.f32 %v772_v8, %v710_v10 }
 0x11d   :  { %v774_v17 = vadd.f32 %v773_v13, %v711_v11  ;;  %v953_v18 = vpop.f32.mrb[20].mxu0  ;;  %v641_v19 = vadd.f32 %v950_v4, %v640_v12  ;;  %v1231_v20 = vpop.f32.mrb[20].mxu1 }
 0x11e   :  { %v448_v22 = vpop.f32.mrb[21].mxu0  ;;  %v1233_v24 = vpop.f32.mrb[21].mxu1  ;;  %v715_v37 = vmul.f32 %v953_v18, %v953_v18 }
 0x11f   :  { %v642_v25 = vadd.f32 %v641_v19, %v448_v22  ;;  %v713_v26 = vmul.f32 %v448_v22, %v448_v22  ;;  %v775_v27 = vadd.f32 %v774_v17, %v712_v15  ;;  %v954_v28 = vpop.f32.mrb[22].mxu0  ;;  %v1235_v29 = vpop.f32.mrb[22].mxu1 }
 0x120   :  { %v451_v30 = vpop.f32.mrb[23].mxu0  ;;  %v1237_v31 = vpop.f32.mrb[23].mxu1  ;;  %v716_v40 = vmul.f32 %v954_v28, %v954_v28 }
 0x121   :  { %v776_v32 = vadd.f32 %v775_v27, %v713_v26  ;;  %v643_v33 = vadd.f32 %v642_v25, %v451_v30  ;;  %v714_v35 = vmul.f32 %v451_v30, %v451_v30 }
 0x123   :  { %v644_v38 = vadd.f32 %v953_v18, %v643_v33  ;;  %v777_v39 = vadd.f32 %v776_v32, %v714_v35 }
 0x125   :  { %v778_v44 = vadd.f32 %v777_v39, %v715_v37  ;;  %v957_v48 = vpop.f32.mrb[24].mxu0  ;;  %v645_v49 = vadd.f32 %v954_v28, %v644_v38  ;;  %v1239_v50 = vpop.f32.mrb[24].mxu1 }
 0x126   :  { %v464_v51 = vpop.f32.mrb[25].mxu0  ;;  %v1241_v52 = vpop.f32.mrb[25].mxu1  ;;  %v719_v6 = vmul.f32 %v957_v48, %v957_v48 }
 0x127   :  { %v646_v53 = vadd.f32 %v645_v49, %v464_v51  ;;  %v717_v54 = vmul.f32 %v464_v51, %v464_v51  ;;  %v779_v55 = vadd.f32 %v778_v44, %v716_v40  ;;  %v958_v56 = vpop.f32.mrb[26].mxu0  ;;  %v1243_v57 = vpop.f32.mrb[26].mxu1  ;;  %v725_v49 = vmul.f32 %v1193_v43, %v1193_v43 }
 0x128   :  { %v467_v61 = vpop.f32.mrb[27].mxu0  ;;  %v1245_v63 = vpop.f32.mrb[27].mxu1  ;;  %v720_v10 = vmul.f32 %v958_v56, %v958_v56 }
 0x129   :  { %v780_v0 = vadd.f32 %v779_v55, %v717_v54  ;;  %v647_v2 = vadd.f32 %v646_v53, %v467_v61  ;;  %v718_v4 = vmul.f32 %v467_v61, %v467_v61  ;;  %v727_v61 = vmul.f32 %v1191_v41, %v1191_v41 }
 0x12b   :  { %v648_v8 = vadd.f32 %v957_v48, %v647_v2  ;;  %v781_v9 = vadd.f32 %v780_v0, %v718_v4  ;;  %v728_v4 = vmul.f32 %v1195_v45, %v1195_v45 }
 0x12d   :  { %v782_v11 = vadd.f32 %v781_v9, %v719_v6  ;;  %v961_v12 = vpop.f32.mrb[28].mxu0  ;;  %v649_v13 = vadd.f32 %v958_v56, %v648_v8  ;;  %v1247_v15 = vpop.f32.mrb[28].mxu1  ;;  %v726_v56 = vmul.f32 %v1197_v47, %v1197_v47 }
 0x12e   :  { %v480_v17 = vpop.f32.mrb[29].mxu0  ;;  %v1249_v18 = vpop.f32.mrb[29].mxu1  ;;  %v723_v37 = vmul.f32 %v961_v12, %v961_v12 }
 0x12f   :  { %v650_v19 = vadd.f32 %v649_v13, %v480_v17  ;;  %v721_v22 = vmul.f32 %v480_v17, %v480_v17  ;;  %v783_v25 = vadd.f32 %v782_v11, %v720_v10  ;;  %v962_v26 = vpop.f32.mrb[30].mxu0  ;;  %v1251_v27 = vpop.f32.mrb[30].mxu1 }
 0x130   :  { %v483_v28 = vpop.f32.mrb[31].mxu0  ;;  %v1253_v30 = vpop.f32.mrb[31].mxu1  ;;  %v724_v40 = vmul.f32 %v962_v26, %v962_v26 }
 0x131   :  { %v784_v32 = vadd.f32 %v783_v25, %v721_v22  ;;  %v651_v33 = vadd.f32 %v650_v19, %v483_v28  ;;  %v722_v35 = vmul.f32 %v483_v28, %v483_v28 }
 0x133   :  { %v652_v38 = vadd.f32 %v961_v12, %v651_v33  ;;  %v785_v39 = vadd.f32 %v784_v32, %v722_v35  ;;  %v730_v12 = vmul.f32 %v1205_v3, %v1205_v3  ;;  %v734_v32 = vmul.f32 %v1213_v23, %v1213_v23 }
 0x135   :  { %v786_v44 = vadd.f32 %v785_v39, %v723_v37  ;;  %v653_v48 = vadd.f32 %v962_v26, %v652_v38 }
 0x137   :  { %v654_v51 = vadd.f32 %v653_v48, %v1193_v43  ;;  %v787_v53 = vadd.f32 %v786_v44, %v724_v40  ;;  %v729_v43 = vmul.f32 %v1201_v60, %v1201_v60  ;;  %v738_v48 = vmul.f32 %v1221_v46, %v1221_v46 }
 0x139   :  { %v788_v54 = vadd.f32 %v787_v53, %v725_v49  ;;  %v655_v55 = vadd.f32 %v654_v51, %v1197_v47 }
 0x13b   :  { %v656_v0 = vadd.f32 %v1191_v41, %v655_v55  ;;  %v789_v2 = vadd.f32 %v788_v54, %v726_v56  ;;  %v731_v41 = vmul.f32 %v1199_v58, %v1199_v58 }
 0x13d   :  { %v790_v6 = vadd.f32 %v789_v2, %v727_v61  ;;  %v657_v8 = vadd.f32 %v1195_v45, %v656_v0  ;;  %v732_v45 = vmul.f32 %v1203_v1, %v1203_v1  ;;  %v742_v0 = vmul.f32 %v1229_v7, %v1229_v7 }
 0x13f   :  { %v658_v9 = vadd.f32 %v657_v8, %v1201_v60  ;;  %v791_v10 = vadd.f32 %v790_v6, %v728_v4  ;;  %v733_v60 = vmul.f32 %v1209_v16, %v1209_v16 }
 0x141   :  { %v792_v11 = vadd.f32 %v791_v10, %v729_v43  ;;  %v659_v47 = vadd.f32 %v658_v9, %v1205_v3 }
 0x143   :  { %v660_v13 = vadd.f32 %v1199_v58, %v659_v47  ;;  %v793_v17 = vadd.f32 %v792_v11, %v730_v12  ;;  %v735_v58 = vmul.f32 %v1207_v14, %v1207_v14  ;;  %v746_v11 = vmul.f32 %v1237_v31, %v1237_v31 }
 0x145   :  { %v794_v19 = vadd.f32 %v793_v17, %v731_v41  ;;  %v661_v22 = vadd.f32 %v1203_v1, %v660_v13  ;;  %v736_v1 = vmul.f32 %v1211_v21, %v1211_v21 }
 0x147   :  { %v662_v25 = vadd.f32 %v661_v22, %v1209_v16  ;;  %v795_v26 = vadd.f32 %v794_v19, %v732_v45  ;;  %v737_v16 = vmul.f32 %v1217_v36, %v1217_v36  ;;  %v750_v22 = vmul.f32 %v1245_v63, %v1245_v63 }
 0x149   :  { %v796_v28 = vadd.f32 %v795_v26, %v733_v60  ;;  %v663_v3 = vadd.f32 %v662_v25, %v1213_v23 }
 0x14b   :  { %v664_v33 = vadd.f32 %v1207_v14, %v663_v3  ;;  %v797_v35 = vadd.f32 %v796_v28, %v734_v32  ;;  %v739_v14 = vmul.f32 %v1215_v34, %v1215_v34 }
 0x14d   :  { %v798_v37 = vadd.f32 %v797_v35, %v735_v58  ;;  %v665_v38 = vadd.f32 %v1211_v21, %v664_v33  ;;  %v740_v21 = vmul.f32 %v1219_v42, %v1219_v42  ;;  %v754_v33 = vmul.f32 %v1253_v30, %v1253_v30 }
 0x14f   :  { %v666_v39 = vadd.f32 %v665_v38, %v1217_v36  ;;  %v799_v40 = vadd.f32 %v798_v37, %v736_v1  ;;  %v741_v36 = vmul.f32 %v1225_v62, %v1225_v62 }
 0x151   :  { %v800_v44 = vadd.f32 %v799_v40, %v737_v16  ;;  %v667_v23 = vadd.f32 %v666_v39, %v1221_v46 }
 0x153   :  { %v668_v49 = vadd.f32 %v1215_v34, %v667_v23  ;;  %v801_v51 = vadd.f32 %v800_v44, %v738_v48  ;;  %v743_v34 = vmul.f32 %v1223_v59, %v1223_v59 }
 0x155   :  { %v802_v53 = vadd.f32 %v801_v51, %v739_v14  ;;  %v669_v54 = vadd.f32 %v1219_v42, %v668_v49  ;;  %v744_v42 = vmul.f32 %v1227_v5, %v1227_v5 }
 0x157   :  { %v670_v55 = vadd.f32 %v669_v54, %v1225_v62  ;;  %v803_v56 = vadd.f32 %v802_v53, %v740_v21  ;;  %v745_v62 = vmul.f32 %v1233_v24, %v1233_v24 }
 0x159   :  { %v804_v61 = vadd.f32 %v803_v56, %v741_v36  ;;  %v671_v46 = vadd.f32 %v670_v55, %v1229_v7 }
 0x15b   :  { %v672_v2 = vadd.f32 %v1223_v59, %v671_v46  ;;  %v805_v4 = vadd.f32 %v804_v61, %v742_v0  ;;  %v747_v59 = vmul.f32 %v1231_v20, %v1231_v20 }
 0x15d   :  { %v806_v6 = vadd.f32 %v805_v4, %v743_v34  ;;  %v673_v8 = vadd.f32 %v1227_v5, %v672_v2  ;;  %v748_v5 = vmul.f32 %v1235_v29, %v1235_v29 }
 0x15f   :  { %v674_v43 = vadd.f32 %v673_v8, %v1233_v24  ;;  %v807_v9 = vadd.f32 %v806_v6, %v744_v42  ;;  %v749_v24 = vmul.f32 %v1241_v52, %v1241_v52 }
 0x161   :  { %v808_v10 = vadd.f32 %v807_v9, %v745_v62  ;;  %v675_v7 = vadd.f32 %v674_v43, %v1237_v31 }
 0x163   :  { %v676_v47 = vadd.f32 %v1231_v20, %v675_v7  ;;  %v809_v12 = vadd.f32 %v808_v10, %v746_v11  ;;  %v751_v20 = vmul.f32 %v1239_v50, %v1239_v50 }
 0x165   :  { %v810_v41 = vadd.f32 %v809_v12, %v747_v59  ;;  %v677_v13 = vadd.f32 %v1235_v29, %v676_v47  ;;  %v752_v29 = vmul.f32 %v1243_v57, %v1243_v57 }
 0x167   :  { %v678_v17 = vadd.f32 %v677_v13, %v1241_v52  ;;  %v811_v45 = vadd.f32 %v810_v41, %v748_v5  ;;  %v753_v52 = vmul.f32 %v1249_v18, %v1249_v18 }
 0x169   :  { %v812_v19 = vadd.f32 %v811_v45, %v749_v24  ;;  %v679_v31 = vadd.f32 %v678_v17, %v1245_v63 }
 0x16b   :  { %v680_v60 = vadd.f32 %v1239_v50, %v679_v31  ;;  %v813_v25 = vadd.f32 %v812_v19, %v750_v22  ;;  %v755_v50 = vmul.f32 %v1247_v15, %v1247_v15 }
 0x16d   :  { %v814_v26 = vadd.f32 %v813_v25, %v751_v20  ;;  %v681_v28 = vadd.f32 %v1243_v57, %v680_v60  ;;  %v756_v57 = vmul.f32 %v1251_v27, %v1251_v27 }
 0x16f   :  { %v682_v3 = vadd.f32 %v681_v28, %v1249_v18  ;;  %v815_v32 = vadd.f32 %v814_v26, %v752_v29 }
 0x171   :  { %v816_v58 = vadd.f32 %v815_v32, %v753_v52  ;;  %v683_v63 = vadd.f32 %v682_v3, %v1253_v30 }
 0x173   :  { %v684_v35 = vadd.f32 %v1247_v15, %v683_v63  ;;  %v817_v1 = vadd.f32 %v816_v58, %v754_v33 }
 0x175   :  { %v685_v37 = vadd.f32 %v1251_v27, %v684_v35  ;;  %v818_v38 = vadd.f32 %v817_v1, %v755_v50 }
 0x177   :  { %v686_v18 = vrot.slane %v685_v37, 4  ;;  %v819_v16 = vadd.f32 %v818_v38, %v756_v57 }
 0x179   :  { %v687_v39 = vadd.f32 %v686_v18, %v685_v37  ;;  %v820_v40 = vrot.slane %v819_v16, 4 }
 0x17b   :  { %v688_v44 = vrot.slane %v687_v39, 2  ;;  %v821_v23 = vadd.f32 %v820_v40, %v819_v16 }
 0x17d   :  { %v689_v48 = vadd.f32 %v688_v44, %v687_v39  ;;  %v822_v30 = vrot.slane %v821_v23, 2 }
 0x17f   :  { %v690_v14 = vrot.slane %v689_v48, 1  ;;  %v823_v49 = vadd.f32 %v822_v30, %v821_v23 }
 0x181   :  { %v691_v51 = vadd.f32 %v690_v14, %v689_v48  ;;  %v824_v21 = vrot.slane %v823_v49, 1 }
 0x183   :  { %692 = vst [vmem:[%s1359_s2] sm:$0x1] %v691_v51  ;;  %v825_v15 = vadd.f32 %v824_v21, %v823_v49 }
 0x185   :  { %826 = vst [vmem:[%s1360_s3] sm:$0x1] %v825_v15 }

// kernel: inverted_residual_block.10
= control target key start
LH: loop header
LB: loop body
LE: loop exit
PB: predicated region body
PF: predicated region fallthrough
CT: control target
= control target key end

     0   :  { %s2435_s3 = inlined_call_operand.vmem [shape: bf16[128,128], index: 3, kind: input, shape index: {}]   ;;  %s2436_s0 = inlined_call_operand.vmem [shape: bf16[512,128], index: 0, kind: input, shape index: {}]   ;;  %s2437_s1 = inlined_call_operand.vmem [shape: f32[1,128], index: 1, kind: input, shape index: {}]   ;;  %s2438_s2 = inlined_call_operand.vmem [shape: f32[1,128], index: 2, kind: input, shape index: {}]   ;;  %s2439_s4 = inlined_call_operand.vmem [shape: bf16[512,128], index: 4, kind: output, shape index: {0}]   ;;  %s2440_s5 = inlined_call_operand.vmem [shape: f32[1,1,128], index: 5, kind: output, shape index: {1}]   ;;  %s2441_s6 = inlined_call_operand.vmem [shape: f32[1,1,128], index: 6, kind: output, shape index: {2}]  }
   0x1   :  { %v1804_v0 = vld [vmem:[%s2435_s3] sm:$0xff]   ;;  %v1805_v1 = vld [vmem:[%s2435_s3 + $0x8] sm:$0xff]   ;;  %v1806_v2 = vld [vmem:[%s2435_s3 + $0x10] sm:$0xff]  }
   0x2   :  { %1708 = vmatprep.subr.bf16.mxu0 %v1804_v0  ;;  %1788 = vmatprep.subr.bf16.mxu1 %v1804_v0  ;;  %v1807_v3 = vld [vmem:[%s2435_s3 + $0x18] sm:$0xff]   ;;  %v1319_v4 = vld [vmem:[%s2436_s0] sm:$0xff]   ;;  %v1606_v8 = vld [vmem:[%s2436_s0 + $0x8] sm:$0xff]  }
   0x3   :  { %1709 = vmatpush3.bf16.msra.mxu0 %v1804_v0  ;;  %1796 = vmatpush3.bf16.msra.mxu1 %v1804_v0  ;;  %v1865_v5 = vld [vmem:[%s2437_s1] ss:$0 sm:$0xff]  ;;  %v1320_v6 = vunpack.c.l.bf16 %v1319_v4  ;;  %v1321_v7 = vunpack.c.h.bf16 %v1319_v4  ;;  %v1607_v9 = vld [vmem:[%s2436_s0 + $0x10] sm:$0xff]   ;;  %v1608_v10 = vld [vmem:[%s2436_s0 + $0x18] sm:$0xff]   ;;  %v1324_v12 = vunpack.c.l.bf16 %v1606_v8  ;;  %v1325_v13 = vunpack.c.h.bf16 %v1606_v8 }
   0x4   :  { %1710 = vmatprep.subr.bf16.mxu0 %v1805_v1  ;;  %1789 = vmatprep.subr.bf16.mxu1 %v1805_v1  ;;  %v1879_v11 = vld [vmem:[%s2438_s2] ss:$0 sm:$0xff]  ;;  %v1328_v14 = vunpack.c.l.bf16 %v1607_v9  ;;  %v1329_v15 = vunpack.c.h.bf16 %v1607_v9  ;;  %v1332_v18 = vunpack.c.l.bf16 %v1608_v10  ;;  %v1333_v19 = vunpack.c.h.bf16 %v1608_v10  ;;  %v1610_v30 = vld [vmem:[%s2436_s0 + $0x28] sm:$0xff]   ;;  %v1611_v35 = vld [vmem:[%s2436_s0 + $0x30] sm:$0xff]  }
   0x5   :  { %v156_v16 = vmul.f32 %v1320_v6, %v1865_v5  ;;  %v157_v17 = vmul.f32 %v1321_v7, %v1865_v5  ;;  %v1808_v20 = vld [vmem:[%s2435_s3 + $0x20] sm:$0xff]   ;;  %v158_v21 = vmul.f32 %v1324_v12, %v1865_v5  ;;  %v159_v22 = vmul.f32 %v1325_v13, %v1865_v5  ;;  %v1612_v40 = vld [vmem:[%s2436_s0 + $0x38] sm:$0xff]   ;;  %v1809_v41 = vld [vmem:[%s2435_s3 + $0x28] sm:$0xff]  }
   0x6   :  { %v160_v23 = vmul.f32 %v1328_v14, %v1865_v5  ;;  %v161_v24 = vmul.f32 %v1329_v15, %v1865_v5  ;;  %v1609_v25 = vld [vmem:[%s2436_s0 + $0x20] sm:$0xff]   ;;  %v162_v28 = vmul.f32 %v1332_v18, %v1865_v5  ;;  %v163_v29 = vmul.f32 %v1333_v19, %v1865_v5  ;;  %v1810_v59 = vld [vmem:[%s2435_s3 + $0x30] sm:$0xff]   ;;  %v1614_v0 = vld [vmem:[%s2436_s0 + $0x48] sm:$0xff]  }
   0x7   :  { %1711 = vmatpush3.bf16.msra.mxu0 %v1805_v1  ;;  %1797 = vmatpush3.bf16.msra.mxu1 %v1805_v1  ;;  %v227_v26 = vadd.f32 %v1879_v11, %v156_v16  ;;  %v228_v27 = vadd.f32 %v1879_v11, %v157_v17  ;;  %v229_v31 = vadd.f32 %v1879_v11, %v158_v21  ;;  %v1336_v39 = vunpack.c.l.bf16 %v1609_v25  ;;  %v1613_v54 = vld [vmem:[%s2436_s0 + $0x40] sm:$0xff]   ;;  %v1615_v6 = vld [vmem:[%s2436_s0 + $0x50] sm:$0xff]   ;;  %v1616_v16 = vld [vmem:[%s2436_s0 + $0x58] sm:$0xff]  }
   0x8   :  { %1712 = vmatprep.subr.bf16.mxu0 %v1806_v2  ;;  %1790 = vmatprep.subr.bf16.mxu1 %v1806_v2  ;;  %v230_v32 = vadd.f32 %v1879_v11, %v159_v22  ;;  %v231_v33 = vadd.f32 %v1879_v11, %v160_v23  ;;  %v232_v34 = vadd.f32 %v1879_v11, %v161_v24  ;;  %v1337_v44 = vunpack.c.h.bf16 %v1609_v25  ;;  %v1811_v17 = vld [vmem:[%s2435_s3 + $0x38] sm:$0xff]   ;;  %v1617_v22 = vld [vmem:[%s2436_s0 + $0x60] sm:$0xff]  }
   0x9   :  { %v291_v36 = vpack.c.bf16 %v228_v27, %v227_v26  ;;  %v233_v37 = vadd.f32 %v1879_v11, %v162_v28  ;;  %v234_v38 = vadd.f32 %v1879_v11, %v163_v29  ;;  %v1340_v45 = vunpack.c.l.bf16 %v1610_v30 }
   0xa   :  { %v1915_v42 = vpack.c.bf16 %v230_v32, %v229_v31  ;;  %v1917_v43 = vpack.c.bf16 %v232_v34, %v231_v33  ;;  %v164_v47 = vmul.f32 %v1336_v39, %v1865_v5  ;;  %v1341_v48 = vunpack.c.h.bf16 %v1610_v30 }
   0xb   :  { %1713 = vmatpush3.bf16.msra.mxu0 %v1806_v2  ;;  %1798 = vmatpush3.bf16.msra.mxu1 %v1806_v2  ;;  %1450 = vst [vmem:[%s2439_s4] sm:$0xff] %v291_v36   ;;  %v1922_v46 = vpack.c.bf16 %v234_v38, %v233_v37  ;;  %v1344_v49 = vunpack.c.l.bf16 %v1611_v35  ;;  %v165_v50 = vmul.f32 %v1337_v44, %v1865_v5  ;;  %v1345_v52 = vunpack.c.h.bf16 %v1611_v35  ;;  %v1618_v35 = vld [vmem:[%s2436_s0 + $0x68] sm:$0xff]  }
   0xc   :  { %1714 = vmatprep.subr.bf16.mxu0 %v1807_v3  ;;  %1791 = vmatprep.subr.bf16.mxu1 %v1807_v3  ;;  %1637 = vst [vmem:[%s2439_s4 + $0x8] sm:$0xff] %v1915_v42   ;;  %1638 = vst [vmem:[%s2439_s4 + $0x10] sm:$0xff] %v1917_v43   ;;  %v166_v51 = vmul.f32 %v1340_v45, %v1865_v5  ;;  %v1348_v53 = vunpack.c.l.bf16 %v1612_v40  ;;  %v235_v55 = vadd.f32 %v1879_v11, %v164_v47  ;;  %v1619_v47 = vld [vmem:[%s2436_s0 + $0x70] sm:$0xff]  }
   0xd   :  { %1724 = vmatprep.mubr.bf16.mxu0 %v291_v36  ;;  %1639 = vst [vmem:[%s2439_s4 + $0x18] sm:$0xff] %v1922_v46   ;;  %v167_v56 = vmul.f32 %v1341_v48, %v1865_v5  ;;  %v168_v57 = vmul.f32 %v1344_v49, %v1865_v5  ;;  %v1349_v58 = vunpack.c.h.bf16 %v1612_v40  ;;  %v236_v60 = vadd.f32 %v1879_v11, %v165_v50 }
   0xe   :  { %v237_v61 = vadd.f32 %v1879_v11, %v166_v51  ;;  %v169_v62 = vmul.f32 %v1345_v52, %v1865_v5  ;;  %v170_v63 = vmul.f32 %v1348_v53, %v1865_v5  ;;  %v1352_v4 = vunpack.c.l.bf16 %v1613_v54  ;;  %v1620_v52 = vld [vmem:[%s2436_s0 + $0x78] sm:$0xff]  }
   0xf   :  { %1715 = vmatpush3.bf16.msra.mxu0 %v1807_v3  ;;  %1799 = vmatpush3.bf16.msra.mxu1 %v1807_v3  ;;  %v238_v1 = vadd.f32 %v1879_v11, %v167_v56  ;;  %v239_v2 = vadd.f32 %v1879_v11, %v168_v57  ;;  %v171_v3 = vmul.f32 %v1349_v58, %v1865_v5  ;;  %v1353_v10 = vunpack.c.h.bf16 %v1613_v54 }
  0x10   :  { %1716 = vmatprep.subr.bf16.mxu0 %v1808_v20  ;;  %1792 = vmatprep.subr.bf16.mxu1 %v1808_v20  ;;  %v1961_v7 = vpack.c.bf16 %v236_v60, %v235_v55  ;;  %v240_v8 = vadd.f32 %v1879_v11, %v169_v62  ;;  %v241_v9 = vadd.f32 %v1879_v11, %v170_v63  ;;  %v1356_v15 = vunpack.c.l.bf16 %v1614_v0 }
  0x11   :  { %v1965_v12 = vpack.c.bf16 %v238_v1, %v237_v61  ;;  %v242_v13 = vadd.f32 %v1879_v11, %v171_v3  ;;  %v172_v14 = vmul.f32 %v1352_v4, %v1865_v5  ;;  %v173_v19 = vmul.f32 %v1353_v10, %v1865_v5  ;;  %v1621_v61 = vld [vmem:[%s2436_s0 + $0x80] sm:$0xff]  }
  0x12   :  { %1640 = vst [vmem:[%s2439_s4 + $0x20] sm:$0xff] %v1961_v7   ;;  %v1979_v18 = vpack.c.bf16 %v240_v8, %v239_v2  ;;  %v1360_v21 = vunpack.c.l.bf16 %v1615_v6  ;;  %v174_v25 = vmul.f32 %v1356_v15, %v1865_v5  ;;  %v1361_v26 = vunpack.c.h.bf16 %v1615_v6  ;;  %v1622_v8 = vld [vmem:[%s2436_s0 + $0x88] sm:$0xff]  }
  0x13   :  { %1717 = vmatpush3.bf16.msra.mxu0 %v1808_v20  ;;  %1800 = vmatpush3.bf16.msra.mxu1 %v1808_v20  ;;  %v1357_v20 = vunpack.c.h.bf16 %v1614_v0  ;;  %1641 = vst [vmem:[%s2439_s4 + $0x28] sm:$0xff] %v1965_v12   ;;  %v1989_v23 = vpack.c.bf16 %v242_v13, %v241_v9  ;;  %v243_v24 = vadd.f32 %v1879_v11, %v172_v14  ;;  %v1364_v30 = vunpack.c.l.bf16 %v1616_v16  ;;  %v1623_v14 = vld [vmem:[%s2436_s0 + $0x90] sm:$0xff]  }
  0x14   :  { %1718 = vmatprep.subr.bf16.mxu0 %v1809_v41  ;;  %1793 = vmatprep.subr.bf16.mxu1 %v1809_v41  ;;  %1642 = vst [vmem:[%s2439_s4 + $0x30] sm:$0xff] %v1979_v18   ;;  %v244_v27 = vadd.f32 %v1879_v11, %v173_v19  ;;  %v176_v29 = vmul.f32 %v1360_v21, %v1865_v5  ;;  %v1365_v33 = vunpack.c.h.bf16 %v1616_v16  ;;  %v1368_v34 = vunpack.c.l.bf16 %v1617_v22 }
  0x15   :  { %v175_v28 = vmul.f32 %v1357_v20, %v1865_v5  ;;  %1643 = vst [vmem:[%s2439_s4 + $0x38] sm:$0xff] %v1989_v23   ;;  %v245_v31 = vadd.f32 %v1879_v11, %v174_v25  ;;  %v177_v32 = vmul.f32 %v1361_v26, %v1865_v5  ;;  %v178_v39 = vmul.f32 %v1364_v30, %v1865_v5 }
  0x16   :  { %v2009_v36 = vpack.c.bf16 %v244_v27, %v243_v24  ;;  %v247_v38 = vadd.f32 %v1879_v11, %v176_v29  ;;  %v1369_v44 = vunpack.c.h.bf16 %v1617_v22  ;;  %v180_v45 = vmul.f32 %v1368_v34, %v1865_v5  ;;  %v1624_v24 = vld [vmem:[%s2436_s0 + $0x98] sm:$0xff]   ;;  %v1625_v29 = vld [vmem:[%s2436_s0 + $0xa0] sm:$0xff]  }
  0x17   :  { %1719 = vmatpush3.bf16.msra.mxu0 %v1809_v41  ;;  %1801 = vmatpush3.bf16.msra.mxu1 %v1809_v41  ;;  %v246_v37 = vadd.f32 %v1879_v11, %v175_v28  ;;  %v248_v40 = vadd.f32 %v1879_v11, %v177_v32  ;;  %v179_v41 = vmul.f32 %v1365_v33, %v1865_v5  ;;  %v1372_v50 = vunpack.c.l.bf16 %v1618_v35 }
  0x18   :  { %1720 = vmatprep.subr.bf16.mxu0 %v1810_v59  ;;  %1794 = vmatprep.subr.bf16.mxu1 %v1810_v59  ;;  %1644 = vst [vmem:[%s2439_s4 + $0x40] sm:$0xff] %v2009_v36   ;;  %v249_v49 = vadd.f32 %v1879_v11, %v178_v39  ;;  %v1373_v51 = vunpack.c.h.bf16 %v1618_v35  ;;  %v181_v55 = vmul.f32 %v1369_v44, %v1865_v5  ;;  %v1377_v60 = vunpack.c.h.bf16 %v1619_v47 }
  0x19   :  { %v2024_v48 = vpack.c.bf16 %v246_v37, %v245_v31  ;;  %v2030_v53 = vpack.c.bf16 %v248_v40, %v247_v38  ;;  %v250_v54 = vadd.f32 %v1879_v11, %v179_v41  ;;  %v251_v56 = vadd.f32 %v1879_v11, %v180_v45  ;;  %v1626_v45 = vld [vmem:[%s2436_s0 + $0xa8] sm:$0xff]  }
  0x1a   :  { %v182_v57 = vmul.f32 %v1372_v50, %v1865_v5  ;;  %v183_v58 = vmul.f32 %v1373_v51, %v1865_v5  ;;  %v252_v63 = vadd.f32 %v1879_v11, %v181_v55  ;;  %v1380_v0 = vunpack.c.l.bf16 %v1620_v52 }
  0x1b   :  { %1721 = vmatpush3.bf16.msra.mxu0 %v1810_v59  ;;  %1802 = vmatpush3.bf16.msra.mxu1 %v1810_v59  ;;  %1645 = vst [vmem:[%s2439_s4 + $0x48] sm:$0xff] %v2024_v48   ;;  %v1376_v59 = vunpack.c.l.bf16 %v1619_v47  ;;  %1646 = vst [vmem:[%s2439_s4 + $0x50] sm:$0xff] %v2030_v53   ;;  %v2048_v62 = vpack.c.bf16 %v250_v54, %v249_v49  ;;  %v1381_v1 = vunpack.c.h.bf16 %v1620_v52  ;;  %v1384_v13 = vunpack.c.l.bf16 %v1621_v61 }
  0x1c   :  { %1722 = vmatprep.subr.bf16.mxu0 %v1811_v17  ;;  %1795 = vmatprep.subr.bf16.mxu1 %v1811_v17  ;;  %v253_v2 = vadd.f32 %v1879_v11, %v182_v57  ;;  %v254_v3 = vadd.f32 %v1879_v11, %v183_v58  ;;  %v185_v6 = vmul.f32 %v1377_v60, %v1865_v5  ;;  %v1388_v22 = vunpack.c.l.bf16 %v1622_v8  ;;  %v1628_v60 = vld [vmem:[%s2436_s0 + $0xb8] sm:$0xff]  }
  0x1d   :  { %v184_v4 = vmul.f32 %v1376_v59, %v1865_v5  ;;  %1647 = vst [vmem:[%s2439_s4 + $0x58] sm:$0xff] %v2048_v62   ;;  %v186_v9 = vmul.f32 %v1380_v0, %v1865_v5  ;;  %v187_v10 = vmul.f32 %v1381_v1, %v1865_v5  ;;  %v188_v21 = vmul.f32 %v1384_v13, %v1865_v5 }
  0x1e   :  { %v2071_v15 = vpack.c.bf16 %v254_v3, %v253_v2  ;;  %v256_v16 = vadd.f32 %v1879_v11, %v185_v6  ;;  %v1389_v27 = vunpack.c.h.bf16 %v1622_v8  ;;  %v1392_v28 = vunpack.c.l.bf16 %v1623_v14  ;;  %v1629_v8 = vld [vmem:[%s2436_s0 + $0xc0] sm:$0xff]  }
  0x1f   :  { %1723 = vmatpush3.bf16.msra.mxu0 %v1811_v17  ;;  %1803 = vmatpush3.bf16.msra.mxu1 %v1811_v17  ;;  %v1385_v17 = vunpack.c.h.bf16 %v1621_v61  ;;  %v257_v19 = vadd.f32 %v1879_v11, %v186_v9  ;;  %v258_v20 = vadd.f32 %v1879_v11, %v187_v10  ;;  %v259_v31 = vadd.f32 %v1879_v11, %v188_v21 }
  0x20   :  { %1649 = vst [vmem:[%s2439_s4 + $0x68] sm:$0xff] %v2071_v15   ;;  %v190_v32 = vmul.f32 %v1388_v22, %v1865_v5  ;;  %v1393_v33 = vunpack.c.h.bf16 %v1623_v14  ;;  %v191_v35 = vmul.f32 %v1389_v27, %v1865_v5  ;;  %v192_v37 = vmul.f32 %v1392_v28, %v1865_v5  ;;  %v1631_v27 = vld [vmem:[%s2436_s0 + $0xd0] sm:$0xff]  }
  0x21   :  { %v189_v26 = vmul.f32 %v1385_v17, %v1865_v5  ;;  %v2095_v30 = vpack.c.bf16 %v258_v20, %v257_v19  ;;  %v1396_v38 = vunpack.c.l.bf16 %v1624_v24  ;;  %v1397_v41 = vunpack.c.h.bf16 %v1624_v24  ;;  %v1630_v20 = vld [vmem:[%s2436_s0 + $0xc8] sm:$0xff]  }
  0x22   :  { %1725 = vmatmul.mubr.bf16.vlgmr.msra.gmra.mrb[0].mxu0 %v1915_v42  ;;  %v2064_v42 = vpack.c.bf16 %v252_v63, %v251_v56  ;;  %v261_v39 = vadd.f32 %v1879_v11, %v190_v32  ;;  %v193_v40 = vmul.f32 %v1393_v33, %v1865_v5  ;;  %v1400_v44 = vunpack.c.l.bf16 %v1625_v29 }
  0x23   :  { %1728 = vmatprep.mubr.bf16.mxu0 %v1917_v43  ;;  %v255_v43 = vadd.f32 %v1879_v11, %v184_v4  ;;  %v260_v34 = vadd.f32 %v1879_v11, %v189_v26  ;;  %1651 = vst [vmem:[%s2439_s4 + $0x78] sm:$0xff] %v2095_v30   ;;  %v262_v49 = vadd.f32 %v1879_v11, %v191_v35  ;;  %v1401_v55 = vunpack.c.h.bf16 %v1625_v29 }
  0x24   :  { %1648 = vst [vmem:[%s2439_s4 + $0x60] sm:$0xff] %v2064_v42   ;;  %v263_v50 = vadd.f32 %v1879_v11, %v192_v37  ;;  %v194_v51 = vmul.f32 %v1396_v38, %v1865_v5  ;;  %v264_v52 = vadd.f32 %v1879_v11, %v193_v40  ;;  %v195_v54 = vmul.f32 %v1397_v41, %v1865_v5  ;;  %v1632_v37 = vld [vmem:[%s2436_s0 + $0xd8] sm:$0xff]   ;;  %v1633_v41 = vld [vmem:[%s2436_s0 + $0xe0] sm:$0xff]  }
  0x25   :  { %v2089_v25 = vpack.c.bf16 %v256_v16, %v255_v43  ;;  %v307_v47 = vpack.c.bf16 %v260_v34, %v259_v31  ;;  %v196_v56 = vmul.f32 %v1400_v44, %v1865_v5  ;;  %v308_v57 = vpack.c.bf16 %v262_v49, %v261_v39 }
  0x26   :  { %v265_v58 = vadd.f32 %v1879_v11, %v194_v51  ;;  %v1405_v59 = vunpack.c.h.bf16 %v1626_v45  ;;  %v309_v61 = vpack.c.bf16 %v264_v52, %v263_v50  ;;  %v266_v63 = vadd.f32 %v1879_v11, %v195_v54 }
  0x27   :  { %1650 = vst [vmem:[%s2439_s4 + $0x70] sm:$0xff] %v2089_v25   ;;  %1652 = vst [vmem:[%s2439_s4 + $0x80] sm:$0xff] %v307_v47   ;;  %1756 = vmatprep.mubr.bf16.mxu1 %v307_v47  ;;  %v197_v0 = vmul.f32 %v1401_v55, %v1865_v5  ;;  %v267_v1 = vadd.f32 %v1879_v11, %v196_v56  ;;  %v1412_v13 = vunpack.c.l.bf16 %v1628_v60  ;;  %v1413_v14 = vunpack.c.h.bf16 %v1628_v60 }
  0x28   :  { %1653 = vst [vmem:[%s2439_s4 + $0x88] sm:$0xff] %v308_v57   ;;  %1757 = vmatmul.mubr.bf16.vlgmr.msra.gmra.mrb[0].mxu1 %v308_v57  ;;  %v199_v3 = vmul.f32 %v1405_v59, %v1865_v5  ;;  %1654 = vst [vmem:[%s2439_s4 + $0x90] sm:$0xff] %v309_v61   ;;  %v310_v9 = vpack.c.bf16 %v266_v63, %v265_v58  ;;  %v1416_v26 = vunpack.c.l.bf16 %v1629_v8  ;;  %v1417_v32 = vunpack.c.h.bf16 %v1629_v8  ;;  %v1634_v58 = vld [vmem:[%s2436_s0 + $0xe8] sm:$0xff]  }
  0x29   :  { %1760 = vmatprep.mubr.bf16.mxu1 %v309_v61  ;;  %v268_v10 = vadd.f32 %v1879_v11, %v197_v0  ;;  %v202_v22 = vmul.f32 %v1412_v13, %v1865_v5  ;;  %v203_v24 = vmul.f32 %v1413_v14, %v1865_v5  ;;  %v1421_v39 = vunpack.c.h.bf16 %v1630_v20 }
  0x2a   :  { %1729 = vmatmul.mubr.bf16.gmra.mrb[4].mxu0 %v1922_v46  ;;  %v1627_v46 = vld [vmem:[%s2436_s0 + $0xb0] sm:$0xff]   ;;  %v270_v16 = vadd.f32 %v1879_v11, %v199_v3  ;;  %1655 = vst [vmem:[%s2439_s4 + $0x98] sm:$0xff] %v310_v9   ;;  %v204_v35 = vmul.f32 %v1416_v26, %v1865_v5  ;;  %v205_v38 = vmul.f32 %v1417_v32, %v1865_v5  ;;  %v1424_v40 = vunpack.c.l.bf16 %v1631_v27 }
  0x2b   :  { %1732 = vmatprep.mubr.bf16.mxu0 %v1961_v7  ;;  %v1404_v7 = vunpack.c.l.bf16 %v1626_v45  ;;  %v1408_v4 = vunpack.c.l.bf16 %v1627_v46  ;;  %v1409_v6 = vunpack.c.h.bf16 %v1627_v46  ;;  %v311_v21 = vpack.c.bf16 %v268_v10, %v267_v1  ;;  %v1635_v3 = vld [vmem:[%s2436_s0 + $0xf0] sm:$0xff]   ;;  %v1636_v10 = vld [vmem:[%s2436_s0 + $0xf8] sm:$0xff]  }
  0x2c   :  { %v273_v33 = vadd.f32 %v1879_v11, %v202_v22  ;;  %v274_v34 = vadd.f32 %v1879_v11, %v203_v24  ;;  %v275_v45 = vadd.f32 %v1879_v11, %v204_v35  ;;  %v1425_v49 = vunpack.c.h.bf16 %v1631_v27 }
  0x2d   :  { %v198_v2 = vmul.f32 %v1404_v7, %v1865_v5  ;;  %v200_v17 = vmul.f32 %v1408_v4, %v1865_v5  ;;  %v201_v19 = vmul.f32 %v1409_v6, %v1865_v5  ;;  %1656 = vst [vmem:[%s2439_s4 + $0xa0] sm:$0xff] %v311_v21   ;;  %v276_v50 = vadd.f32 %v1879_v11, %v205_v38 }
  0x2e   :  { %v2186_v44 = vpack.c.bf16 %v274_v34, %v273_v33  ;;  %v207_v51 = vmul.f32 %v1421_v39, %v1865_v5  ;;  %v208_v52 = vmul.f32 %v1424_v40, %v1865_v5  ;;  %v1428_v54 = vunpack.c.l.bf16 %v1632_v37 }
  0x2f   :  { %v269_v43 = vadd.f32 %v1879_v11, %v198_v2  ;;  %v271_v29 = vadd.f32 %v1879_v11, %v200_v17  ;;  %v272_v31 = vadd.f32 %v1879_v11, %v201_v19  ;;  %v209_v56 = vmul.f32 %v1425_v49, %v1865_v5 }
  0x30   :  { %1761 = vmatmul.mubr.bf16.gmra.mrb[4].mxu1 %v310_v9  ;;  %1659 = vst [vmem:[%s2439_s4 + $0xb8] sm:$0xff] %v2186_v44   ;;  %v1429_v46 = vunpack.c.h.bf16 %v1632_v37  ;;  %v1432_v57 = vunpack.c.l.bf16 %v1633_v41  ;;  %v315_v7 = vpack.c.bf16 %v276_v50, %v275_v45  ;;  %v278_v59 = vadd.f32 %v1879_v11, %v207_v51 }
  0x31   :  { %v2164_v28 = vpack.c.bf16 %v270_v16, %v269_v43  ;;  %1764 = vmatprep.mubr.bf16.mxu1 %v311_v21  ;;  %v279_v60 = vadd.f32 %v1879_v11, %v208_v52  ;;  %v210_v61 = vmul.f32 %v1428_v54, %v1865_v5  ;;  %v280_v63 = vadd.f32 %v1879_v11, %v209_v56 }
  0x32   :  { %1733 = vmatmul.mubr.bf16.gmra.mrb[8].mxu0 %v1965_v12  ;;  %v1420_v12 = vunpack.c.l.bf16 %v1630_v20  ;;  %v211_v0 = vmul.f32 %v1429_v46, %v1865_v5  ;;  %v1433_v1 = vunpack.c.h.bf16 %v1633_v41  ;;  %v212_v2 = vmul.f32 %v1432_v57, %v1865_v5  ;;  %1660 = vst [vmem:[%s2439_s4 + $0xc0] sm:$0xff] %v315_v7  }
  0x33   :  { %1736 = vmatprep.mubr.bf16.mxu0 %v1979_v18  ;;  %1657 = vst [vmem:[%s2439_s4 + $0xa8] sm:$0xff] %v2164_v28   ;;  %v313_v18 = vpack.c.bf16 %v272_v31, %v271_v29  ;;  %v281_v6 = vadd.f32 %v1879_v11, %v210_v61  ;;  %v1436_v8 = vunpack.c.l.bf16 %v1634_v58  ;;  %v1437_v9 = vunpack.c.h.bf16 %v1634_v58 }
  0x34   :  { %v206_v47 = vmul.f32 %v1420_v12, %v1865_v5  ;;  %v317_v13 = vpack.c.bf16 %v280_v63, %v279_v60  ;;  %v282_v14 = vadd.f32 %v1879_v11, %v211_v0  ;;  %v283_v43 = vadd.f32 %v1879_v11, %v212_v2 }
  0x35   :  { %1658 = vst [vmem:[%s2439_s4 + $0xb0] sm:$0xff] %v313_v18   ;;  %v214_v16 = vmul.f32 %v1436_v8, %v1865_v5  ;;  %v215_v17 = vmul.f32 %v1437_v9, %v1865_v5  ;;  %v1440_v19 = vunpack.c.l.bf16 %v1635_v3  ;;  %v1441_v20 = vunpack.c.h.bf16 %v1635_v3 }
  0x36   :  { %v277_v55 = vadd.f32 %v1879_v11, %v206_v47  ;;  %1662 = vst [vmem:[%s2439_s4 + $0xd0] sm:$0xff] %v317_v13   ;;  %v1444_v22 = vunpack.c.l.bf16 %v1636_v10  ;;  %v1445_v24 = vunpack.c.h.bf16 %v1636_v10 }
  0x37   :  { %v285_v26 = vadd.f32 %v1879_v11, %v214_v16  ;;  %v286_v27 = vadd.f32 %v1879_v11, %v215_v17  ;;  %v216_v29 = vmul.f32 %v1440_v19, %v1865_v5  ;;  %v217_v31 = vmul.f32 %v1441_v20, %v1865_v5 }
  0x38   :  { %v316_v4 = vpack.c.bf16 %v278_v59, %v277_v55  ;;  %1765 = vmatmul.mubr.bf16.gmra.mrb[8].mxu1 %v2164_v28  ;;  %v218_v33 = vmul.f32 %v1444_v22, %v1865_v5  ;;  %v219_v34 = vmul.f32 %v1445_v24, %v1865_v5 }
  0x39   :  { %1768 = vmatprep.mubr.bf16.mxu1 %v313_v18  ;;  %v320_v35 = vpack.c.bf16 %v286_v27, %v285_v26  ;;  %v287_v28 = vadd.f32 %v1879_v11, %v216_v29  ;;  %v288_v12 = vadd.f32 %v1879_v11, %v217_v31 }
  0x3a   :  { %1737 = vmatmul.mubr.bf16.gmra.mrb[12].mxu0 %v1989_v23  ;;  %v213_v23 = vmul.f32 %v1433_v1, %v1865_v5  ;;  %1661 = vst [vmem:[%s2439_s4 + $0xc8] sm:$0xff] %v316_v4   ;;  %v289_v37 = vadd.f32 %v1879_v11, %v218_v33  ;;  %v290_v18 = vadd.f32 %v1879_v11, %v219_v34 }
  0x3b   :  { %1740 = vmatprep.mubr.bf16.mxu0 %v2009_v36  ;;  %v318_v36 = vpack.c.bf16 %v282_v14, %v281_v6  ;;  %1665 = vst [vmem:[%s2439_s4 + $0xe8] sm:$0xff] %v320_v35   ;;  %v321_v5 = vpack.c.bf16 %v288_v12, %v287_v28 }
  0x3c   :  { %v284_v21 = vadd.f32 %v1879_v11, %v213_v23  ;;  %v322_v38 = vpack.c.bf16 %v290_v18, %v289_v37 }
  0x3d   :  { %1663 = vst [vmem:[%s2439_s4 + $0xd8] sm:$0xff] %v318_v36   ;;  %1666 = vst [vmem:[%s2439_s4 + $0xf0] sm:$0xff] %v321_v5  }
  0x3e   :  { %v319_v32 = vpack.c.bf16 %v284_v21, %v283_v43  ;;  %1667 = vst [vmem:[%s2439_s4 + $0xf8] sm:$0xff] %v322_v38  }
  0x40   :  { %1664 = vst [vmem:[%s2439_s4 + $0xe0] sm:$0xff] %v319_v32   ;;  %1769 = vmatmul.mubr.bf16.gmra.mrb[12].mxu1 %v2186_v44 }
  0x41   :  { %1772 = vmatprep.mubr.bf16.mxu1 %v315_v7 }
  0x42   :  { %1741 = vmatmul.mubr.bf16.gmra.mrb[16].mxu0 %v2024_v48 }
  0x43   :  { %1744 = vmatprep.mubr.bf16.mxu0 %v2030_v53 }
  0x48   :  { %1773 = vmatmul.mubr.bf16.gmra.mrb[16].mxu1 %v316_v4 }
  0x49   :  { %1776 = vmatprep.mubr.bf16.mxu1 %v317_v13 }
  0x4a   :  { %1745 = vmatmul.mubr.bf16.gmra.mrb[20].mxu0 %v2048_v62 }
  0x4b   :  { %1748 = vmatprep.mubr.bf16.mxu0 %v2064_v42 }
  0x50   :  { %1777 = vmatmul.mubr.bf16.gmra.mrb[20].mxu1 %v318_v36 }
  0x51   :  { %1780 = vmatprep.mubr.bf16.mxu1 %v319_v32 }
  0x52   :  { %1749 = vmatmul.mubr.bf16.gmra.mrb[24].mxu0 %v2071_v15 }
  0x53   :  { %1752 = vmatprep.mubr.bf16.mxu0 %v2089_v25 }
  0x58   :  { %1781 = vmatmul.mubr.bf16.gmra.mrb[24].mxu1 %v320_v35 }
  0x59   :  { %1784 = vmatprep.mubr.bf16.mxu1 %v321_v5 }
  0x5a   :  { %1753 = vmatmul.mubr.bf16.gmra.mrb[28].mxu0 %v2095_v30 }
  0x60   :  { %1785 = vmatmul.mubr.bf16.gmra.mrb[28].mxu1 %v322_v38 }
  0xf5   :  { %v1726_v11 = vpop.f32.mrb[0].mxu0 }
  0xf6   :  { %v709_v48 = vpop.f32.mrb[1].mxu0  ;;  %v1036_v41 = vmul.f32 %v1726_v11, %v1726_v11 }
  0xf7   :  { %v1727_v53 = vpop.f32.mrb[2].mxu0  ;;  %v1034_v62 = vmul.f32 %v709_v48, %v709_v48 }
  0xf8   :  { %v712_v39 = vpop.f32.mrb[3].mxu0  ;;  %v1037_v15 = vmul.f32 %v1727_v53, %v1727_v53 }
  0xf9   :  { %v964_v40 = vadd.f32 %v712_v39, %v709_v48  ;;  %v1035_v42 = vmul.f32 %v712_v39, %v712_v39 }
  0xfb   :  { %v965_v44 = vadd.f32 %v1726_v11, %v964_v40  ;;  %v1098_v45 = vadd.f32 %v1035_v42, %v1034_v62  ;;  %v2269_v58 = vpop.f32.mrb[0].mxu1 }
  0xfc   :  { %v2271_v7 = vpop.f32.mrb[1].mxu1 }
  0xfd   :  { %v1099_v47 = vadd.f32 %v1098_v45, %v1036_v41  ;;  %v1730_v25 = vpop.f32.mrb[4].mxu0  ;;  %v966_v49 = vadd.f32 %v1727_v53, %v965_v44  ;;  %v2273_v63 = vpop.f32.mrb[2].mxu1 }
  0xfe   :  { %v725_v50 = vpop.f32.mrb[5].mxu0  ;;  %v1040_v59 = vmul.f32 %v1730_v25, %v1730_v25  ;;  %v2275_v0 = vpop.f32.mrb[3].mxu1 }
  0xff   :  { %v967_v51 = vadd.f32 %v966_v49, %v725_v50  ;;  %v1038_v30 = vmul.f32 %v725_v50, %v725_v50  ;;  %v1100_v52 = vadd.f32 %v1099_v47, %v1037_v15  ;;  %v1731_v54 = vpop.f32.mrb[6].mxu0 }
 0x100   :  { %v728_v55 = vpop.f32.mrb[7].mxu0  ;;  %v1041_v1 = vmul.f32 %v1731_v54, %v1731_v54 }
 0x101   :  { %v1101_v56 = vadd.f32 %v1100_v52, %v1038_v30  ;;  %v968_v46 = vadd.f32 %v967_v51, %v728_v55  ;;  %v1039_v57 = vmul.f32 %v728_v55, %v728_v55 }
 0x103   :  { %v969_v60 = vadd.f32 %v1730_v25, %v968_v46  ;;  %v1102_v61 = vadd.f32 %v1101_v56, %v1039_v57  ;;  %v2277_v17 = vpop.f32.mrb[4].mxu1 }
 0x104   :  { %v2279_v19 = vpop.f32.mrb[5].mxu1 }
 0x105   :  { %v1103_v2 = vadd.f32 %v1102_v61, %v1040_v59  ;;  %v1734_v3 = vpop.f32.mrb[8].mxu0  ;;  %v970_v4 = vadd.f32 %v1731_v54, %v969_v60  ;;  %v2281_v22 = vpop.f32.mrb[6].mxu1 }
 0x106   :  { %v741_v6 = vpop.f32.mrb[9].mxu0  ;;  %v1044_v20 = vmul.f32 %v1734_v3, %v1734_v3  ;;  %v2283_v24 = vpop.f32.mrb[7].mxu1 }
 0x107   :  { %v971_v8 = vadd.f32 %v970_v4, %v741_v6  ;;  %v1042_v9 = vmul.f32 %v741_v6, %v741_v6  ;;  %v1104_v10 = vadd.f32 %v1103_v2, %v1041_v1  ;;  %v1735_v13 = vpop.f32.mrb[10].mxu0 }
 0x108   :  { %v744_v14 = vpop.f32.mrb[11].mxu0  ;;  %v1045_v26 = vmul.f32 %v1735_v13, %v1735_v13 }
 0x109   :  { %v1105_v23 = vadd.f32 %v1104_v10, %v1042_v9  ;;  %v972_v43 = vadd.f32 %v971_v8, %v744_v14  ;;  %v1043_v16 = vmul.f32 %v744_v14, %v744_v14 }
 0x10b   :  { %v973_v36 = vadd.f32 %v1734_v3, %v972_v43  ;;  %v1106_v21 = vadd.f32 %v1105_v23, %v1043_v16  ;;  %v2285_v38 = vpop.f32.mrb[8].mxu1 }
 0x10c   :  { %v2287_v11 = vpop.f32.mrb[9].mxu1 }
 0x10d   :  { %v1107_v27 = vadd.f32 %v1106_v21, %v1044_v20  ;;  %v1738_v29 = vpop.f32.mrb[12].mxu0  ;;  %v974_v31 = vadd.f32 %v1735_v13, %v973_v36  ;;  %v2289_v62 = vpop.f32.mrb[10].mxu1 }
 0x10e   :  { %v757_v32 = vpop.f32.mrb[13].mxu0  ;;  %v1048_v48 = vmul.f32 %v1738_v29, %v1738_v29  ;;  %v2291_v40 = vpop.f32.mrb[11].mxu1 }
 0x10f   :  { %v975_v33 = vadd.f32 %v974_v31, %v757_v32  ;;  %v1046_v34 = vmul.f32 %v757_v32, %v757_v32  ;;  %v1108_v35 = vadd.f32 %v1107_v27, %v1045_v26  ;;  %v1739_v28 = vpop.f32.mrb[14].mxu0 }
 0x110   :  { %v760_v12 = vpop.f32.mrb[15].mxu0  ;;  %v1049_v42 = vmul.f32 %v1739_v28, %v1739_v28 }
 0x111   :  { %v1109_v37 = vadd.f32 %v1108_v35, %v1046_v34  ;;  %v976_v18 = vadd.f32 %v975_v33, %v760_v12  ;;  %v1047_v5 = vmul.f32 %v760_v12, %v760_v12 }
 0x113   :  { %v977_v53 = vadd.f32 %v1738_v29, %v976_v18  ;;  %v1110_v39 = vadd.f32 %v1109_v37, %v1047_v5  ;;  %v2293_v55 = vpop.f32.mrb[12].mxu1 }
 0x114   :  { %v2295_v56 = vpop.f32.mrb[13].mxu1 }
 0x115   :  { %v1111_v41 = vadd.f32 %v1110_v39, %v1048_v48  ;;  %v1742_v44 = vpop.f32.mrb[16].mxu0  ;;  %v978_v45 = vadd.f32 %v1739_v28, %v977_v53  ;;  %v2297_v60 = vpop.f32.mrb[14].mxu1 }
 0x116   :  { %v773_v15 = vpop.f32.mrb[17].mxu0  ;;  %v1052_v46 = vmul.f32 %v1742_v44, %v1742_v44  ;;  %v2299_v61 = vpop.f32.mrb[15].mxu1 }
 0x117   :  { %v979_v47 = vadd.f32 %v978_v45, %v773_v15  ;;  %v1050_v25 = vmul.f32 %v773_v15, %v773_v15  ;;  %v1112_v49 = vadd.f32 %v1111_v41, %v1049_v42  ;;  %v1743_v50 = vpop.f32.mrb[18].mxu0 }
 0x118   :  { %v776_v51 = vpop.f32.mrb[19].mxu0  ;;  %v1053_v1 = vmul.f32 %v1743_v50, %v1743_v50 }
 0x119   :  { %v1113_v30 = vadd.f32 %v1112_v49, %v1050_v25  ;;  %v980_v52 = vadd.f32 %v979_v47, %v776_v51  ;;  %v1051_v54 = vmul.f32 %v776_v51, %v776_v51 }
 0x11b   :  { %v981_v57 = vadd.f32 %v1742_v44, %v980_v52  ;;  %v1114_v59 = vadd.f32 %v1113_v30, %v1051_v54  ;;  %v2301_v20 = vpop.f32.mrb[16].mxu1 }
 0x11c   :  { %v2303_v36 = vpop.f32.mrb[17].mxu1 }
 0x11d   :  { %v1115_v2 = vadd.f32 %v1114_v59, %v1052_v46  ;;  %v1746_v3 = vpop.f32.mrb[20].mxu0  ;;  %v982_v4 = vadd.f32 %v1743_v50, %v981_v57  ;;  %v2305_v29 = vpop.f32.mrb[18].mxu1 }
 0x11e   :  { %v789_v6 = vpop.f32.mrb[21].mxu0  ;;  %v1056_v21 = vmul.f32 %v1746_v3, %v1746_v3  ;;  %v2307_v31 = vpop.f32.mrb[19].mxu1 }
 0x11f   :  { %v983_v8 = vadd.f32 %v982_v4, %v789_v6  ;;  %v1054_v9 = vmul.f32 %v789_v6, %v789_v6  ;;  %v1116_v10 = vadd.f32 %v1115_v2, %v1053_v1  ;;  %v1747_v13 = vpop.f32.mrb[22].mxu0 }
 0x120   :  { %v792_v14 = vpop.f32.mrb[23].mxu0  ;;  %v1057_v32 = vmul.f32 %v1747_v13, %v1747_v13 }
 0x121   :  { %v1117_v23 = vadd.f32 %v1116_v10, %v1054_v9  ;;  %v984_v43 = vadd.f32 %v983_v8, %v792_v14  ;;  %v1055_v16 = vmul.f32 %v792_v14, %v792_v14 }
 0x123   :  { %v985_v26 = vadd.f32 %v1746_v3, %v984_v43  ;;  %v1118_v27 = vadd.f32 %v1117_v23, %v1055_v16  ;;  %v2309_v41 = vpop.f32.mrb[20].mxu1 }
 0x124   :  { %v2311_v44 = vpop.f32.mrb[21].mxu1 }
 0x125   :  { %v1119_v33 = vadd.f32 %v1118_v27, %v1056_v21  ;;  %v1750_v34 = vpop.f32.mrb[24].mxu0  ;;  %v986_v35 = vadd.f32 %v1747_v13, %v985_v26  ;;  %v2313_v25 = vpop.f32.mrb[22].mxu1  ;;  %v1066_v27 = vmul.f32 %v2271_v7, %v2271_v7 }
 0x126   :  { %v805_v28 = vpop.f32.mrb[25].mxu0  ;;  %v1060_v45 = vmul.f32 %v1750_v34, %v1750_v34  ;;  %v2315_v49 = vpop.f32.mrb[23].mxu1 }
 0x127   :  { %v987_v12 = vadd.f32 %v986_v35, %v805_v28  ;;  %v1058_v37 = vmul.f32 %v805_v28, %v805_v28  ;;  %v1120_v18 = vadd.f32 %v1119_v33, %v1057_v32  ;;  %v1751_v5 = vpop.f32.mrb[26].mxu0  ;;  %v1067_v28 = vmul.f32 %v2275_v0, %v2275_v0 }
 0x128   :  { %v808_v48 = vpop.f32.mrb[27].mxu0  ;;  %v1061_v50 = vmul.f32 %v1751_v5, %v1751_v5 }
 0x129   :  { %v1121_v53 = vadd.f32 %v1120_v18, %v1058_v37  ;;  %v988_v39 = vadd.f32 %v987_v12, %v808_v48  ;;  %v1059_v42 = vmul.f32 %v808_v48, %v808_v48  ;;  %v1068_v18 = vmul.f32 %v2269_v58, %v2269_v58 }
 0x12b   :  { %v989_v15 = vadd.f32 %v1750_v34, %v988_v39  ;;  %v1122_v47 = vadd.f32 %v1121_v53, %v1059_v42  ;;  %v2317_v8 = vpop.f32.mrb[24].mxu1  ;;  %v1069_v39 = vmul.f32 %v2273_v63, %v2273_v63 }
 0x12c   :  { %v2319_v9 = vpop.f32.mrb[25].mxu1 }
 0x12d   :  { %v1123_v51 = vadd.f32 %v1122_v47, %v1060_v45  ;;  %v1754_v30 = vpop.f32.mrb[28].mxu0  ;;  %v990_v52 = vadd.f32 %v1751_v5, %v989_v15  ;;  %v2321_v23 = vpop.f32.mrb[26].mxu1  ;;  %v1070_v45 = vmul.f32 %v2279_v19, %v2279_v19 }
 0x12e   :  { %v821_v54 = vpop.f32.mrb[29].mxu0  ;;  %v1064_v10 = vmul.f32 %v1754_v30, %v1754_v30  ;;  %v2323_v43 = vpop.f32.mrb[27].mxu1 }
 0x12f   :  { %v991_v46 = vadd.f32 %v990_v52, %v821_v54  ;;  %v1062_v57 = vmul.f32 %v821_v54, %v821_v54  ;;  %v1124_v59 = vadd.f32 %v1123_v51, %v1061_v50  ;;  %v1755_v1 = vpop.f32.mrb[30].mxu0  ;;  %v1071_v51 = vmul.f32 %v2283_v24, %v2283_v24 }
 0x130   :  { %v824_v2 = vpop.f32.mrb[31].mxu0  ;;  %v1065_v16 = vmul.f32 %v1755_v1, %v1755_v1 }
 0x131   :  { %v1125_v3 = vadd.f32 %v1124_v59, %v1062_v57  ;;  %v992_v4 = vadd.f32 %v991_v46, %v824_v2  ;;  %v1063_v6 = vmul.f32 %v824_v2, %v824_v2 }
 0x133   :  { %v993_v13 = vadd.f32 %v1754_v30, %v992_v4  ;;  %v1126_v14 = vadd.f32 %v1125_v3, %v1063_v6  ;;  %v2331_v12 = vpop.f32.mrb[28].mxu1  ;;  %v1072_v30 = vmul.f32 %v2277_v17, %v2277_v17  ;;  %v1075_v3 = vmul.f32 %v2291_v40, %v2291_v40 }
 0x134   :  { %v2333_v37 = vpop.f32.mrb[29].mxu1 }
 0x135   :  { %v1127_v21 = vadd.f32 %v1126_v14, %v1064_v10  ;;  %v994_v26 = vadd.f32 %v1755_v1, %v993_v13  ;;  %v2338_v53 = vpop.f32.mrb[30].mxu1 }
 0x137   :  { %v995_v32 = vadd.f32 %v994_v26, %v2271_v7  ;;  %v1128_v33 = vadd.f32 %v1127_v21, %v1065_v16  ;;  %v2340_v7 = vpop.f32.mrb[31].mxu1  ;;  %v1079_v26 = vmul.f32 %v2299_v61, %v2299_v61 }
 0x139   :  { %v1129_v34 = vadd.f32 %v1128_v33, %v1066_v27  ;;  %v996_v35 = vadd.f32 %v995_v32, %v2275_v0 }
 0x13b   :  { %v997_v5 = vadd.f32 %v2269_v58, %v996_v35  ;;  %v1130_v48 = vadd.f32 %v1129_v34, %v1067_v28 }
 0x13d   :  { %v1131_v42 = vadd.f32 %v1130_v48, %v1068_v18  ;;  %v998_v0 = vadd.f32 %v2273_v63, %v997_v5  ;;  %v1073_v63 = vmul.f32 %v2281_v22, %v2281_v22  ;;  %v1083_v5 = vmul.f32 %v2307_v31, %v2307_v31 }
 0x13f   :  { %v999_v15 = vadd.f32 %v998_v0, %v2279_v19  ;;  %v1132_v47 = vadd.f32 %v1131_v42, %v1069_v39  ;;  %v1074_v19 = vmul.f32 %v2287_v11, %v2287_v11 }
 0x141   :  { %v1133_v50 = vadd.f32 %v1132_v47, %v1070_v45  ;;  %v1000_v58 = vadd.f32 %v999_v15, %v2283_v24 }
 0x143   :  { %v1001_v52 = vadd.f32 %v2277_v17, %v1000_v58  ;;  %v1134_v54 = vadd.f32 %v1133_v50, %v1071_v51  ;;  %v1076_v17 = vmul.f32 %v2285_v38, %v2285_v38  ;;  %v1087_v50 = vmul.f32 %v2315_v49, %v2315_v49 }
 0x145   :  { %v1135_v46 = vadd.f32 %v1134_v54, %v1072_v30  ;;  %v1002_v57 = vadd.f32 %v2281_v22, %v1001_v52  ;;  %v1077_v22 = vmul.f32 %v2289_v62, %v2289_v62 }
 0x147   :  { %v1003_v59 = vadd.f32 %v1002_v57, %v2287_v11  ;;  %v1136_v1 = vadd.f32 %v1135_v46, %v1073_v63  ;;  %v1078_v11 = vmul.f32 %v2295_v56, %v2295_v56  ;;  %v1091_v57 = vmul.f32 %v2323_v43, %v2323_v43 }
 0x149   :  { %v1137_v2 = vadd.f32 %v1136_v1, %v1074_v19  ;;  %v1004_v24 = vadd.f32 %v1003_v59, %v2291_v40 }
 0x14b   :  { %v1005_v4 = vadd.f32 %v2285_v38, %v1004_v24  ;;  %v1138_v6 = vadd.f32 %v1137_v2, %v1075_v3  ;;  %v1080_v38 = vmul.f32 %v2293_v55, %v2293_v55 }
 0x14d   :  { %v1139_v10 = vadd.f32 %v1138_v6, %v1076_v17  ;;  %v1006_v13 = vadd.f32 %v2289_v62, %v1005_v4  ;;  %v1081_v62 = vmul.f32 %v2297_v60, %v2297_v60  ;;  %v1095_v4 = vmul.f32 %v2340_v7, %v2340_v7 }
 0x14f   :  { %v1007_v14 = vadd.f32 %v1006_v13, %v2295_v56  ;;  %v1140_v16 = vadd.f32 %v1139_v10, %v1077_v22  ;;  %v1082_v56 = vmul.f32 %v2303_v36, %v2303_v36 }
 0x151   :  { %v1141_v21 = vadd.f32 %v1140_v16, %v1078_v11  ;;  %v1008_v40 = vadd.f32 %v1007_v14, %v2299_v61 }
 0x153   :  { %v1009_v27 = vadd.f32 %v2293_v55, %v1008_v40  ;;  %v1142_v32 = vadd.f32 %v1141_v21, %v1079_v26  ;;  %v1084_v55 = vmul.f32 %v2301_v20, %v2301_v20 }
 0x155   :  { %v1143_v33 = vadd.f32 %v1142_v32, %v1080_v38  ;;  %v1010_v34 = vadd.f32 %v2297_v60, %v1009_v27  ;;  %v1085_v60 = vmul.f32 %v2305_v29, %v2305_v29 }
 0x157   :  { %v1011_v35 = vadd.f32 %v1010_v34, %v2303_v36  ;;  %v1144_v28 = vadd.f32 %v1143_v33, %v1081_v62  ;;  %v1086_v36 = vmul.f32 %v2311_v44, %v2311_v44 }
 0x159   :  { %v1145_v18 = vadd.f32 %v1144_v28, %v1082_v56  ;;  %v1012_v61 = vadd.f32 %v1011_v35, %v2307_v31 }
 0x15b   :  { %v1013_v48 = vadd.f32 %v2301_v20, %v1012_v61  ;;  %v1146_v39 = vadd.f32 %v1145_v18, %v1083_v5  ;;  %v1088_v20 = vmul.f32 %v2309_v41, %v2309_v41 }
 0x15d   :  { %v1147_v42 = vadd.f32 %v1146_v39, %v1084_v55  ;;  %v1014_v0 = vadd.f32 %v2305_v29, %v1013_v48  ;;  %v1089_v29 = vmul.f32 %v2313_v25, %v2313_v25 }
 0x15f   :  { %v1015_v45 = vadd.f32 %v1014_v0, %v2311_v44  ;;  %v1148_v15 = vadd.f32 %v1147_v42, %v1085_v60  ;;  %v1090_v44 = vmul.f32 %v2319_v9, %v2319_v9 }
 0x161   :  { %v1149_v47 = vadd.f32 %v1148_v15, %v1086_v36  ;;  %v1016_v31 = vadd.f32 %v1015_v45, %v2315_v49 }
 0x163   :  { %v1017_v58 = vadd.f32 %v2309_v41, %v1016_v31  ;;  %v1150_v51 = vadd.f32 %v1149_v47, %v1087_v50  ;;  %v1092_v41 = vmul.f32 %v2317_v8, %v2317_v8 }
 0x165   :  { %v1151_v30 = vadd.f32 %v1150_v51, %v1088_v20  ;;  %v1018_v52 = vadd.f32 %v2313_v25, %v1017_v58  ;;  %v1093_v25 = vmul.f32 %v2321_v23, %v2321_v23 }
 0x167   :  { %v1019_v54 = vadd.f32 %v1018_v52, %v2319_v9  ;;  %v1152_v63 = vadd.f32 %v1151_v30, %v1089_v29  ;;  %v1094_v9 = vmul.f32 %v2333_v37, %v2333_v37 }
 0x169   :  { %v1153_v46 = vadd.f32 %v1152_v63, %v1090_v44  ;;  %v1020_v49 = vadd.f32 %v1019_v54, %v2323_v43 }
 0x16b   :  { %v1021_v19 = vadd.f32 %v2317_v8, %v1020_v49  ;;  %v1154_v59 = vadd.f32 %v1153_v46, %v1091_v57  ;;  %v1096_v8 = vmul.f32 %v2331_v12, %v2331_v12 }
 0x16d   :  { %v1155_v1 = vadd.f32 %v1154_v59, %v1092_v41  ;;  %v1022_v2 = vadd.f32 %v2321_v23, %v1021_v19  ;;  %v1097_v23 = vmul.f32 %v2338_v53, %v2338_v53 }
 0x16f   :  { %v1023_v24 = vadd.f32 %v1022_v2, %v2333_v37  ;;  %v1156_v3 = vadd.f32 %v1155_v1, %v1093_v25 }
 0x171   :  { %v1157_v17 = vadd.f32 %v1156_v3, %v1094_v9  ;;  %v1024_v43 = vadd.f32 %v1023_v24, %v2340_v7 }
 0x173   :  { %v1025_v6 = vadd.f32 %v2331_v12, %v1024_v43  ;;  %v1158_v22 = vadd.f32 %v1157_v17, %v1095_v4 }
 0x175   :  { %v1026_v10 = vadd.f32 %v2338_v53, %v1025_v6  ;;  %v1159_v13 = vadd.f32 %v1158_v22, %v1096_v8 }
 0x177   :  { %v1027_v37 = vrot.slane %v1026_v10, 4  ;;  %v1160_v11 = vadd.f32 %v1159_v13, %v1097_v23 }
 0x179   :  { %v1028_v14 = vadd.f32 %v1027_v37, %v1026_v10  ;;  %v1161_v16 = vrot.slane %v1160_v11, 4 }
 0x17b   :  { %v1029_v21 = vrot.slane %v1028_v14, 2  ;;  %v1162_v40 = vadd.f32 %v1161_v16, %v1160_v11 }
 0x17d   :  { %v1030_v26 = vadd.f32 %v1029_v21, %v1028_v14  ;;  %v1163_v7 = vrot.slane %v1162_v40, 2 }
 0x17f   :  { %v1031_v38 = vrot.slane %v1030_v26, 1  ;;  %v1164_v27 = vadd.f32 %v1163_v7, %v1162_v40 }
 0x181   :  { %v1032_v32 = vadd.f32 %v1031_v38, %v1030_v26  ;;  %v1165_v62 = vrot.slane %v1164_v27, 1 }
 0x183   :  { %1033 = vst [vmem:[%s2440_s5] sm:$0x1] %v1032_v32  ;;  %v1166_v12 = vadd.f32 %v1165_v62, %v1164_v27 }
 0x185   :  { %1167 = vst [vmem:[%s2441_s6] sm:$0x1] %v1166_v12 }

// kernel: inverted_residual_block.9
= control target key start
LH: loop header
LB: loop body
LE: loop exit
PB: predicated region body
PF: predicated region fallthrough
CT: control target
= control target key end

     0   :  { %s2529_s3 = inlined_call_operand.vmem [shape: bf16[128,128], index: 3, kind: input, shape index: {}]   ;;  %s2530_s0 = inlined_call_operand.vmem [shape: bf16[512,128], index: 0, kind: input, shape index: {}]   ;;  %s2531_s1 = inlined_call_operand.vmem [shape: f32[1,128], index: 1, kind: input, shape index: {}]   ;;  %s2532_s2 = inlined_call_operand.vmem [shape: f32[1,128], index: 2, kind: input, shape index: {}]   ;;  %s2533_s4 = inlined_call_operand.vmem [shape: bf16[512,128], index: 4, kind: output, shape index: {0}]   ;;  %s2534_s5 = inlined_call_operand.vmem [shape: f32[1,1,128], index: 5, kind: output, shape index: {1}]   ;;  %s2535_s6 = inlined_call_operand.vmem [shape: f32[1,1,128], index: 6, kind: output, shape index: {2}]  }
   0x1   :  { %v1900_v0 = vld [vmem:[%s2529_s3] sm:$0xff]   ;;  %v1901_v1 = vld [vmem:[%s2529_s3 + $0x8] sm:$0xff]   ;;  %v1902_v2 = vld [vmem:[%s2529_s3 + $0x10] sm:$0xff]  }
   0x2   :  { %1804 = vmatprep.subr.bf16.mxu0 %v1900_v0  ;;  %1884 = vmatprep.subr.bf16.mxu1 %v1900_v0  ;;  %v1903_v3 = vld [vmem:[%s2529_s3 + $0x18] sm:$0xff]   ;;  %v1415_v4 = vld [vmem:[%s2530_s0] sm:$0xff]   ;;  %v1702_v8 = vld [vmem:[%s2530_s0 + $0x8] sm:$0xff]  }
   0x3   :  { %1805 = vmatpush3.bf16.msra.mxu0 %v1900_v0  ;;  %1892 = vmatpush3.bf16.msra.mxu1 %v1900_v0  ;;  %v1961_v5 = vld [vmem:[%s2531_s1] ss:$0 sm:$0xff]  ;;  %v1416_v6 = vunpack.c.l.bf16 %v1415_v4  ;;  %v1417_v7 = vunpack.c.h.bf16 %v1415_v4  ;;  %v1703_v9 = vld [vmem:[%s2530_s0 + $0x10] sm:$0xff]   ;;  %v1420_v14 = vunpack.c.l.bf16 %v1702_v8  ;;  %v1421_v15 = vunpack.c.h.bf16 %v1702_v8  ;;  %v1905_v22 = vld [vmem:[%s2529_s3 + $0x28] sm:$0xff]  }
   0x4   :  { %1806 = vmatprep.subr.bf16.mxu0 %v1901_v1  ;;  %1885 = vmatprep.subr.bf16.mxu1 %v1901_v1  ;;  %v1972_v10 = vld [vmem:[%s2532_s2] ss:$0 sm:$0xff]  ;;  %v1424_v16 = vunpack.c.l.bf16 %v1703_v9  ;;  %v1425_v19 = vunpack.c.h.bf16 %v1703_v9  ;;  %v1704_v26 = vld [vmem:[%s2530_s0 + $0x18] sm:$0xff]   ;;  %v1906_v31 = vld [vmem:[%s2529_s3 + $0x30] sm:$0xff]  }
   0x5   :  { %v156_v11 = vmul.f32 %v1416_v6, %v1961_v5  ;;  %v157_v12 = vmul.f32 %v1417_v7, %v1961_v5  ;;  %v1904_v13 = vld [vmem:[%s2529_s3 + $0x20] sm:$0xff]   ;;  %v158_v23 = vmul.f32 %v1420_v14, %v1961_v5  ;;  %v159_v24 = vmul.f32 %v1421_v15, %v1961_v5  ;;  %v1706_v38 = vld [vmem:[%s2530_s0 + $0x28] sm:$0xff]   ;;  %v1707_v41 = vld [vmem:[%s2530_s0 + $0x30] sm:$0xff]  }
   0x6   :  { %v160_v25 = vmul.f32 %v1424_v16, %v1961_v5  ;;  %v161_v28 = vmul.f32 %v1425_v19, %v1961_v5  ;;  %v1705_v29 = vld [vmem:[%s2530_s0 + $0x20] sm:$0xff]   ;;  %v1428_v30 = vunpack.c.l.bf16 %v1704_v26  ;;  %v1429_v35 = vunpack.c.h.bf16 %v1704_v26  ;;  %v1708_v42 = vld [vmem:[%s2530_s0 + $0x38] sm:$0xff]   ;;  %v1710_v63 = vld [vmem:[%s2530_s0 + $0x48] sm:$0xff]  }
   0x7   :  { %1807 = vmatpush3.bf16.msra.mxu0 %v1901_v1  ;;  %1893 = vmatpush3.bf16.msra.mxu1 %v1901_v1  ;;  %v227_v17 = vadd.f32 %v1972_v10, %v156_v11  ;;  %v228_v18 = vadd.f32 %v1972_v10, %v157_v12  ;;  %v229_v32 = vadd.f32 %v1972_v10, %v158_v23  ;;  %v1432_v37 = vunpack.c.l.bf16 %v1705_v29  ;;  %v1907_v43 = vld [vmem:[%s2529_s3 + $0x38] sm:$0xff]   ;;  %v1709_v48 = vld [vmem:[%s2530_s0 + $0x40] sm:$0xff]   ;;  %v1711_v4 = vld [vmem:[%s2530_s0 + $0x50] sm:$0xff]  }
   0x8   :  { %1808 = vmatprep.subr.bf16.mxu0 %v1902_v2  ;;  %1886 = vmatprep.subr.bf16.mxu1 %v1902_v2  ;;  %v230_v33 = vadd.f32 %v1972_v10, %v159_v24  ;;  %v231_v34 = vadd.f32 %v1972_v10, %v160_v25  ;;  %v232_v36 = vadd.f32 %v1972_v10, %v161_v28  ;;  %v1433_v40 = vunpack.c.h.bf16 %v1705_v29  ;;  %v1712_v23 = vld [vmem:[%s2530_s0 + $0x58] sm:$0xff]  }
   0x9   :  { %v291_v20 = vmax.f32 %v227_v17, 0.0  ;;  %v292_v21 = vmax.f32 %v228_v18, 0.0  ;;  %v162_v39 = vmul.f32 %v1428_v30, %v1961_v5  ;;  %v293_v44 = vmax.f32 %v229_v32, 0.0 }
   0xa   :  { %v294_v45 = vmax.f32 %v230_v33, 0.0  ;;  %v295_v46 = vmax.f32 %v231_v34, 0.0  ;;  %v163_v47 = vmul.f32 %v1429_v35, %v1961_v5  ;;  %v296_v49 = vmax.f32 %v232_v36, 0.0 }
   0xb   :  { %1809 = vmatpush3.bf16.msra.mxu0 %v1902_v2  ;;  %1894 = vmatpush3.bf16.msra.mxu1 %v1902_v2  ;;  %v355_v27 = vpack.c.bf16 %v292_v21, %v291_v20  ;;  %v164_v50 = vmul.f32 %v1432_v37, %v1961_v5  ;;  %v1436_v51 = vunpack.c.l.bf16 %v1706_v38  ;;  %v1437_v52 = vunpack.c.h.bf16 %v1706_v38 }
   0xc   :  { %1810 = vmatprep.subr.bf16.mxu0 %v1903_v3  ;;  %1887 = vmatprep.subr.bf16.mxu1 %v1903_v3  ;;  %v1440_v53 = vunpack.c.l.bf16 %v1707_v41  ;;  %v1441_v54 = vunpack.c.h.bf16 %v1707_v41  ;;  %v1444_v55 = vunpack.c.l.bf16 %v1708_v42  ;;  %v1445_v56 = vunpack.c.h.bf16 %v1708_v42 }
   0xd   :  { %1820 = vmatprep.mubr.bf16.mxu0 %v355_v27  ;;  %v165_v57 = vmul.f32 %v1433_v40, %v1961_v5  ;;  %v1448_v58 = vunpack.c.l.bf16 %v1709_v48  ;;  %v1449_v59 = vunpack.c.h.bf16 %v1709_v48  ;;  %v356_v60 = vpack.c.bf16 %v294_v45, %v293_v44  ;;  %v1717_v44 = vld [vmem:[%s2530_s0 + $0x80] sm:$0xff]  }
   0xe   :  { %v233_v61 = vadd.f32 %v1972_v10, %v162_v39  ;;  %v234_v62 = vadd.f32 %v1972_v10, %v163_v47  ;;  %v357_v0 = vpack.c.bf16 %v296_v49, %v295_v46  ;;  %v235_v1 = vadd.f32 %v1972_v10, %v164_v50 }
   0xf   :  { %1811 = vmatpush3.bf16.msra.mxu0 %v1903_v3  ;;  %1895 = vmatpush3.bf16.msra.mxu1 %v1903_v3  ;;  %v166_v2 = vmul.f32 %v1436_v51, %v1961_v5  ;;  %v167_v3 = vmul.f32 %v1437_v52, %v1961_v5  ;;  %v168_v6 = vmul.f32 %v1440_v53, %v1961_v5  ;;  %v1452_v14 = vunpack.c.l.bf16 %v1710_v63  ;;  %v2065_v52 = vld [vmem:[%s2530_s0 + $0x60] sm:$0xff]  }
  0x10   :  { %1812 = vmatprep.subr.bf16.mxu0 %v1904_v13  ;;  %1888 = vmatprep.subr.bf16.mxu1 %v1904_v13  ;;  %v169_v7 = vmul.f32 %v1441_v54, %v1961_v5  ;;  %v170_v8 = vmul.f32 %v1444_v55, %v1961_v5  ;;  %v171_v9 = vmul.f32 %v1445_v56, %v1961_v5  ;;  %v297_v15 = vmax.f32 %v233_v61, 0.0 }
  0x11   :  { %v236_v11 = vadd.f32 %v1972_v10, %v165_v57  ;;  %v172_v12 = vmul.f32 %v1448_v58, %v1961_v5  ;;  %v298_v16 = vmax.f32 %v234_v62, 0.0  ;;  %v1453_v17 = vunpack.c.h.bf16 %v1710_v63 }
  0x12   :  { %v1456_v18 = vunpack.c.l.bf16 %v1711_v4  ;;  %v299_v19 = vmax.f32 %v235_v1, 0.0  ;;  %v237_v20 = vadd.f32 %v1972_v10, %v166_v2  ;;  %v238_v21 = vadd.f32 %v1972_v10, %v167_v3 }
  0x13   :  { %1813 = vmatpush3.bf16.msra.mxu0 %v1904_v13  ;;  %1896 = vmatpush3.bf16.msra.mxu1 %v1904_v13  ;;  %v173_v13 = vmul.f32 %v1449_v59, %v1961_v5  ;;  %v239_v24 = vadd.f32 %v1972_v10, %v168_v6  ;;  %v240_v25 = vadd.f32 %v1972_v10, %v169_v7  ;;  %v300_v28 = vmax.f32 %v236_v11, 0.0  ;;  %v1718_v59 = vld [vmem:[%s2530_s0 + $0x88] sm:$0xff]   ;;  %v1720_v11 = vld [vmem:[%s2530_s0 + $0x98] sm:$0xff]  }
  0x14   :  { %1814 = vmatprep.subr.bf16.mxu0 %v1905_v22  ;;  %1889 = vmatprep.subr.bf16.mxu1 %v1905_v22  ;;  %v241_v26 = vadd.f32 %v1972_v10, %v170_v8  ;;  %v242_v27 = vadd.f32 %v1972_v10, %v171_v9  ;;  %v243_v29 = vadd.f32 %v1972_v10, %v172_v12  ;;  %v1460_v35 = vunpack.c.l.bf16 %v1712_v23 }
  0x15   :  { %v244_v30 = vadd.f32 %v1972_v10, %v173_v13  ;;  %v358_v32 = vpack.c.bf16 %v298_v16, %v297_v15  ;;  %v175_v33 = vmul.f32 %v1453_v17, %v1961_v5  ;;  %v176_v34 = vmul.f32 %v1456_v18, %v1961_v5 }
  0x16   :  { %v301_v36 = vmax.f32 %v237_v20, 0.0  ;;  %v302_v37 = vmax.f32 %v238_v21, 0.0  ;;  %v1461_v39 = vunpack.c.h.bf16 %v1712_v23  ;;  %v303_v40 = vmax.f32 %v239_v24, 0.0  ;;  %v1721_v24 = vld [vmem:[%s2530_s0 + $0xa0] sm:$0xff]  }
  0x17   :  { %1815 = vmatpush3.bf16.msra.mxu0 %v1905_v22  ;;  %1897 = vmatpush3.bf16.msra.mxu1 %v1905_v22  ;;  %v1457_v22 = vunpack.c.h.bf16 %v1711_v4  ;;  %v304_v41 = vmax.f32 %v240_v25, 0.0  ;;  %v305_v42 = vmax.f32 %v241_v26, 0.0  ;;  %v359_v45 = vpack.c.bf16 %v300_v28, %v299_v19 }
  0x18   :  { %1816 = vmatprep.subr.bf16.mxu0 %v1906_v31  ;;  %1890 = vmatprep.subr.bf16.mxu1 %v1906_v31  ;;  %v307_v46 = vmax.f32 %v243_v29, 0.0  ;;  %v308_v47 = vmax.f32 %v244_v30, 0.0  ;;  %v246_v49 = vadd.f32 %v1972_v10, %v175_v33  ;;  %v2059_v50 = vadd.f32 %v1972_v10, %v176_v34  ;;  %v1722_v33 = vld [vmem:[%s2530_s0 + $0xa8] sm:$0xff]  }
  0x19   :  { %v177_v38 = vmul.f32 %v1457_v22, %v1961_v5  ;;  %v178_v51 = vmul.f32 %v1460_v35, %v1961_v5  ;;  %v179_v54 = vmul.f32 %v1461_v39, %v1961_v5  ;;  %v1480_v55 = vunpack.c.l.bf16 %v1717_v44 }
  0x1a   :  { %v360_v56 = vpack.c.bf16 %v302_v37, %v301_v36  ;;  %v361_v57 = vpack.c.bf16 %v304_v41, %v303_v40  ;;  %v1464_v62 = vunpack.c.l.bf16 %v2065_v52  ;;  %v1481_v63 = vunpack.c.h.bf16 %v1717_v44 }
  0x1b   :  { %1817 = vmatpush3.bf16.msra.mxu0 %v1906_v31  ;;  %1898 = vmatpush3.bf16.msra.mxu1 %v1906_v31  ;;  %v174_v31 = vmul.f32 %v1452_v14, %v1961_v5  ;;  %v2068_v53 = vadd.f32 %v1972_v10, %v177_v38  ;;  %v310_v1 = vmax.f32 %v246_v49, 0.0  ;;  %v311_v2 = vmax.f32 %v2059_v50, 0.0 }
  0x1c   :  { %1818 = vmatprep.subr.bf16.mxu0 %v1907_v43  ;;  %1891 = vmatprep.subr.bf16.mxu1 %v1907_v43  ;;  %v2084_v3 = vadd.f32 %v1972_v10, %v178_v51  ;;  %v188_v4 = vmul.f32 %v1480_v55, %v1961_v5  ;;  %v2089_v7 = vadd.f32 %v1972_v10, %v179_v54  ;;  %v1484_v9 = vunpack.c.l.bf16 %v1718_v59 }
  0x1d   :  { %v245_v48 = vadd.f32 %v1972_v10, %v174_v31  ;;  %v312_v6 = vmax.f32 %v2068_v53, 0.0  ;;  %v189_v8 = vmul.f32 %v1481_v63, %v1961_v5  ;;  %v1465_v12 = vunpack.c.h.bf16 %v2065_v52 }
  0x1e   :  { %v259_v13 = vadd.f32 %v1972_v10, %v188_v4  ;;  %v1485_v14 = vunpack.c.h.bf16 %v1718_v59  ;;  %v2098_v16 = vmul.f32 %v1464_v62, %v1961_v5  ;;  %v190_v18 = vmul.f32 %v1484_v9, %v1961_v5 }
  0x1f   :  { %1819 = vmatpush3.bf16.msra.mxu0 %v1907_v43  ;;  %1899 = vmatpush3.bf16.msra.mxu1 %v1907_v43  ;;  %v306_v43 = vmax.f32 %v242_v27, 0.0  ;;  %v309_v61 = vmax.f32 %v245_v48, 0.0  ;;  %v260_v17 = vadd.f32 %v1972_v10, %v189_v8  ;;  %v1492_v23 = vunpack.c.l.bf16 %v1720_v11 }
  0x20   :  { %v323_v20 = vmax.f32 %v259_v13, 0.0  ;;  %v191_v21 = vmul.f32 %v1485_v14, %v1961_v5  ;;  %v261_v27 = vadd.f32 %v1972_v10, %v190_v18  ;;  %v1493_v31 = vunpack.c.h.bf16 %v1720_v11  ;;  %v1725_v18 = vld [vmem:[%s2530_s0 + $0xc0] sm:$0xff]  }
  0x21   :  { %v2071_v58 = vpack.c.bf16 %v306_v43, %v305_v42  ;;  %v2107_v25 = vpack.c.bf16 %v310_v1, %v309_v61  ;;  %v324_v26 = vmax.f32 %v260_v17, 0.0  ;;  %v1496_v37 = vunpack.c.l.bf16 %v1721_v24  ;;  %v1724_v1 = vld [vmem:[%s2530_s0 + $0xb8] sm:$0xff]  }
  0x22   :  { %1821 = vmatmul.mubr.bf16.vlgmr.msra.gmra.mrb[0].mxu0 %v356_v60  ;;  %v2076_v60 = vpack.c.bf16 %v308_v47, %v307_v46  ;;  %v262_v29 = vadd.f32 %v1972_v10, %v191_v21  ;;  %v325_v35 = vmax.f32 %v261_v27, 0.0  ;;  %v195_v40 = vmul.f32 %v1493_v31, %v1961_v5  ;;  %v1723_v46 = vld [vmem:[%s2530_s0 + $0xb0] sm:$0xff]   ;;  %v1714_v47 = vld [vmem:[%s2530_s0 + $0x68] sm:$0xff]  }
  0x23   :  { %1824 = vmatprep.mubr.bf16.mxu0 %v357_v0  ;;  %v1719_v0 = vld [vmem:[%s2530_s0 + $0x90] sm:$0xff]   ;;  %v371_v34 = vpack.c.bf16 %v324_v26, %v323_v20  ;;  %v1497_v43 = vunpack.c.h.bf16 %v1721_v24  ;;  %v196_v44 = vmul.f32 %v1496_v37, %v1961_v5  ;;  %v1501_v54 = vunpack.c.h.bf16 %v1722_v33 }
  0x24   :  { %v1488_v15 = vunpack.c.l.bf16 %v1719_v0  ;;  %v1489_v19 = vunpack.c.h.bf16 %v1719_v0  ;;  %v326_v38 = vmax.f32 %v262_v29, 0.0  ;;  %v266_v49 = vadd.f32 %v1972_v10, %v195_v40  ;;  %v1727_v40 = vld [vmem:[%s2530_s0 + $0xd0] sm:$0xff]  }
  0x25   :  { %1852 = vmatprep.mubr.bf16.mxu1 %v371_v34  ;;  %v199_v62 = vmul.f32 %v1501_v54, %v1961_v5  ;;  %v1504_v63 = vunpack.c.l.bf16 %v1723_v46  ;;  %v1505_v0 = vunpack.c.h.bf16 %v1723_v46  ;;  %v313_v4 = vmax.f32 %v2084_v3, 0.0 }
  0x26   :  { %v192_v22 = vmul.f32 %v1488_v15, %v1961_v5  ;;  %v193_v28 = vmul.f32 %v1489_v19, %v1961_v5  ;;  %v372_v48 = vpack.c.bf16 %v326_v38, %v325_v35  ;;  %v330_v61 = vmax.f32 %v266_v49, 0.0 }
  0x27   :  { %v1468_v8 = vunpack.c.l.bf16 %v1714_v47  ;;  %v314_v13 = vmax.f32 %v2089_v7, 0.0  ;;  %v1469_v14 = vunpack.c.h.bf16 %v1714_v47  ;;  %v200_v15 = vmul.f32 %v1504_v63, %v1961_v5 }
  0x28   :  { %v263_v30 = vadd.f32 %v1972_v10, %v192_v22  ;;  %v264_v36 = vadd.f32 %v1972_v10, %v193_v28  ;;  %1853 = vmatmul.mubr.bf16.vlgmr.msra.gmra.mrb[0].mxu1 %v372_v48  ;;  %v201_v17 = vmul.f32 %v1505_v0, %v1961_v5  ;;  %v181_v3 = vmul.f32 %v1465_v12, %v1961_v5 }
  0x29   :  { %v1508_v19 = vunpack.c.l.bf16 %v1724_v1  ;;  %v1509_v20 = vunpack.c.h.bf16 %v1724_v1  ;;  %v271_v24 = vadd.f32 %v1972_v10, %v200_v15  ;;  %v1512_v27 = vunpack.c.l.bf16 %v1725_v18  ;;  %v1728_v15 = vld [vmem:[%s2530_s0 + $0xd8] sm:$0xff]  }
  0x2a   :  { %1825 = vmatmul.mubr.bf16.gmra.mrb[4].mxu0 %v358_v32  ;;  %v194_v32 = vmul.f32 %v1492_v23, %v1961_v5  ;;  %v327_v39 = vmax.f32 %v263_v30, 0.0  ;;  %v328_v42 = vmax.f32 %v264_v36, 0.0  ;;  %v270_v23 = vadd.f32 %v1972_v10, %v199_v62 }
  0x2b   :  { %1828 = vmatprep.mubr.bf16.mxu0 %v359_v45  ;;  %v1500_v45 = vunpack.c.l.bf16 %v1722_v33  ;;  %v1513_v52 = vunpack.c.h.bf16 %v1725_v18  ;;  %v365_v12 = vpack.c.bf16 %v312_v6, %v311_v2  ;;  %v251_v28 = vadd.f32 %v1972_v10, %v2098_v16  ;;  %v1716_v33 = vld [vmem:[%s2530_s0 + $0x78] sm:$0xff]   ;;  %v1726_v16 = vld [vmem:[%s2530_s0 + $0xc8] sm:$0xff]  }
  0x2c   :  { %v265_v41 = vadd.f32 %v1972_v10, %v194_v32  ;;  %v373_v55 = vpack.c.bf16 %v328_v42, %v327_v39  ;;  %v252_v31 = vadd.f32 %v1972_v10, %v181_v3  ;;  %v182_v32 = vmul.f32 %v1468_v8, %v1961_v5 }
  0x2d   :  { %v198_v59 = vmul.f32 %v1500_v45, %v1961_v5  ;;  %v202_v34 = vmul.f32 %v1508_v19, %v1961_v5  ;;  %v203_v50 = vmul.f32 %v1509_v20, %v1961_v5  ;;  %v366_v35 = vpack.c.bf16 %v314_v13, %v313_v4 }
  0x2e   :  { %v329_v51 = vmax.f32 %v265_v41, 0.0  ;;  %1856 = vmatprep.mubr.bf16.mxu1 %v373_v55  ;;  %v183_v53 = vmul.f32 %v1469_v14, %v1961_v5  ;;  %v334_v6 = vmax.f32 %v270_v23, 0.0  ;;  %v335_v36 = vmax.f32 %v271_v24, 0.0 }
  0x2f   :  { %v269_v22 = vadd.f32 %v1972_v10, %v198_v59  ;;  %v204_v38 = vmul.f32 %v1512_v27, %v1961_v5  ;;  %v205_v39 = vmul.f32 %v1513_v52, %v1961_v5  ;;  %v315_v41 = vmax.f32 %v251_v28, 0.0 }
  0x30   :  { %v374_v21 = vpack.c.bf16 %v330_v61, %v329_v51  ;;  %v316_v45 = vmax.f32 %v252_v31, 0.0  ;;  %v273_v46 = vadd.f32 %v1972_v10, %v202_v34  ;;  %v274_v47 = vadd.f32 %v1972_v10, %v203_v50 }
  0x31   :  { %v333_v2 = vmax.f32 %v269_v22, 0.0  ;;  %v1516_v48 = vunpack.c.l.bf16 %v1726_v16  ;;  %v1517_v51 = vunpack.c.h.bf16 %v1726_v16  ;;  %v1520_v54 = vunpack.c.l.bf16 %v1727_v40 }
  0x32   :  { %1829 = vmatmul.mubr.bf16.gmra.mrb[8].mxu0 %v360_v56  ;;  %v197_v56 = vmul.f32 %v1497_v43, %v1961_v5  ;;  %1857 = vmatmul.mubr.bf16.gmra.mrb[4].mxu1 %v374_v21  ;;  %v1521_v55 = vunpack.c.h.bf16 %v1727_v40  ;;  %v276_v59 = vadd.f32 %v1972_v10, %v205_v39  ;;  %v254_v61 = vadd.f32 %v1972_v10, %v183_v53  ;;  %v1729_v21 = vld [vmem:[%s2530_s0 + $0xe0] sm:$0xff]  }
  0x33   :  { %1832 = vmatprep.mubr.bf16.mxu0 %v361_v57  ;;  %v267_v57 = vadd.f32 %v1972_v10, %v196_v44  ;;  %v1476_v44 = vunpack.c.l.bf16 %v1716_v33  ;;  %v376_v49 = vpack.c.bf16 %v334_v6, %v333_v2  ;;  %v1477_v0 = vunpack.c.h.bf16 %v1716_v33 }
  0x34   :  { %v268_v9 = vadd.f32 %v1972_v10, %v197_v56  ;;  %v253_v56 = vadd.f32 %v1972_v10, %v182_v32  ;;  %v367_v1 = vpack.c.bf16 %v316_v45, %v315_v41  ;;  %v337_v4 = vmax.f32 %v273_v46, 0.0  ;;  %v1731_v41 = vld [vmem:[%s2530_s0 + $0xf0] sm:$0xff]  }
  0x35   :  { %v331_v11 = vmax.f32 %v267_v57, 0.0  ;;  %v275_v57 = vadd.f32 %v1972_v10, %v204_v38  ;;  %v338_v8 = vmax.f32 %v274_v47, 0.0  ;;  %v208_v13 = vmul.f32 %v1520_v54, %v1961_v5 }
  0x36   :  { %v332_v7 = vmax.f32 %v268_v9, 0.0  ;;  %v206_v9 = vmul.f32 %v1516_v48, %v1961_v5  ;;  %v209_v14 = vmul.f32 %v1521_v55, %v1961_v5  ;;  %v340_v3 = vmax.f32 %v276_v59, 0.0 }
  0x37   :  { %v339_v18 = vmax.f32 %v275_v57, 0.0  ;;  %v187_v20 = vmul.f32 %v1477_v0, %v1961_v5  ;;  %v378_v23 = vpack.c.bf16 %v338_v8, %v337_v4  ;;  %v279_v27 = vadd.f32 %v1972_v10, %v208_v13 }
  0x38   :  { %v375_v26 = vpack.c.bf16 %v332_v7, %v331_v11  ;;  %v207_v11 = vmul.f32 %v1517_v51, %v1961_v5  ;;  %v318_v7 = vmax.f32 %v254_v61, 0.0  ;;  %v277_v24 = vadd.f32 %v1972_v10, %v206_v9 }
  0x39   :  { %v280_v52 = vadd.f32 %v1972_v10, %v209_v14  ;;  %v379_v28 = vpack.c.bf16 %v340_v3, %v339_v18  ;;  %v258_v33 = vadd.f32 %v1972_v10, %v187_v20  ;;  %v343_v2 = vmax.f32 %v279_v27, 0.0 }
  0x3a   :  { %1833 = vmatmul.mubr.bf16.gmra.mrb[12].mxu0 %v2071_v58  ;;  %v1715_v58 = vld [vmem:[%s2530_s0 + $0x70] sm:$0xff]   ;;  %1860 = vmatprep.mubr.bf16.mxu1 %v375_v26  ;;  %v1524_v26 = vunpack.c.l.bf16 %v1728_v15  ;;  %v341_v50 = vmax.f32 %v277_v24, 0.0  ;;  %v1536_v51 = vunpack.c.l.bf16 %v1731_v41  ;;  %v1537_v54 = vunpack.c.h.bf16 %v1731_v41 }
  0x3b   :  { %1836 = vmatprep.mubr.bf16.mxu0 %v2076_v60  ;;  %v272_v60 = vadd.f32 %v1972_v10, %v201_v17  ;;  %v1472_v29 = vunpack.c.l.bf16 %v1715_v58  ;;  %v1473_v30 = vunpack.c.h.bf16 %v1715_v58  ;;  %1861 = vmatmul.mubr.bf16.gmra.mrb[8].mxu1 %v376_v49  ;;  %v186_v17 = vmul.f32 %v1476_v44, %v1961_v5 }
  0x3c   :  { %v317_v58 = vmax.f32 %v253_v56, 0.0  ;;  %v344_v6 = vmax.f32 %v280_v52, 0.0  ;;  %v322_v40 = vmax.f32 %v258_v33, 0.0  ;;  %v217_v0 = vmul.f32 %v1537_v54, %v1961_v5 }
  0x3d   :  { %v336_v37 = vmax.f32 %v272_v60, 0.0  ;;  %v184_v42 = vmul.f32 %v1472_v29, %v1961_v5  ;;  %v185_v43 = vmul.f32 %v1473_v30, %v1961_v5  ;;  %v278_v60 = vadd.f32 %v1972_v10, %v207_v11 }
  0x3e   :  { %v1528_v29 = vunpack.c.l.bf16 %v1729_v21  ;;  %v1529_v30 = vunpack.c.h.bf16 %v1729_v21  ;;  %v368_v31 = vpack.c.bf16 %v318_v7, %v317_v58  ;;  %v257_v32 = vadd.f32 %v1972_v10, %v186_v17 }
  0x3f   :  { %v255_v62 = vadd.f32 %v1972_v10, %v184_v42  ;;  %v256_v63 = vadd.f32 %v1972_v10, %v185_v43  ;;  %v342_v53 = vmax.f32 %v278_v60, 0.0  ;;  %v381_v45 = vpack.c.bf16 %v344_v6, %v343_v2 }
  0x40   :  { %v213_v38 = vmul.f32 %v1529_v30, %v1961_v5  ;;  %v321_v39 = vmax.f32 %v257_v32, 0.0  ;;  %v288_v17 = vadd.f32 %v1972_v10, %v217_v0 }
  0x41   :  { %v319_v19 = vmax.f32 %v255_v62, 0.0  ;;  %v320_v22 = vmax.f32 %v256_v63, 0.0  ;;  %v380_v44 = vpack.c.bf16 %v342_v53, %v341_v50  ;;  %v216_v63 = vmul.f32 %v1536_v51, %v1961_v5 }
  0x42   :  { %1837 = vmatmul.mubr.bf16.gmra.mrb[16].mxu0 %v2107_v25  ;;  %v377_v25 = vpack.c.bf16 %v336_v37, %v335_v36  ;;  %v1730_v36 = vld [vmem:[%s2530_s0 + $0xe8] sm:$0xff]   ;;  %v212_v37 = vmul.f32 %v1528_v29, %v1961_v5  ;;  %v284_v49 = vadd.f32 %v1972_v10, %v213_v38  ;;  %v370_v55 = vpack.c.bf16 %v322_v40, %v321_v39 }
  0x43   :  { %1840 = vmatprep.mubr.bf16.mxu0 %v365_v12  ;;  %v1525_v12 = vunpack.c.h.bf16 %v1728_v15  ;;  %v369_v34 = vpack.c.bf16 %v320_v22, %v319_v19  ;;  %v1532_v43 = vunpack.c.l.bf16 %v1730_v36  ;;  %v1533_v47 = vunpack.c.h.bf16 %v1730_v36 }
  0x44   :  { %1864 = vmatprep.mubr.bf16.mxu1 %v377_v25  ;;  %v283_v48 = vadd.f32 %v1972_v10, %v212_v37  ;;  %v348_v62 = vmax.f32 %v284_v49, 0.0  ;;  %v287_v15 = vadd.f32 %v1972_v10, %v216_v63  ;;  %v352_v20 = vmax.f32 %v288_v17, 0.0 }
  0x45   :  { %1865 = vmatmul.mubr.bf16.gmra.mrb[12].mxu1 %v378_v23  ;;  %v211_v16 = vmul.f32 %v1525_v12, %v1961_v5  ;;  %v214_v56 = vmul.f32 %v1532_v43, %v1961_v5  ;;  %v215_v59 = vmul.f32 %v1533_v47, %v1961_v5 }
  0x46   :  { %1868 = vmatprep.mubr.bf16.mxu1 %v379_v28  ;;  %v347_v61 = vmax.f32 %v283_v48, 0.0  ;;  %v351_v19 = vmax.f32 %v287_v15, 0.0 }
  0x47   :  { %v282_v46 = vadd.f32 %v1972_v10, %v211_v16  ;;  %v285_v4 = vadd.f32 %v1972_v10, %v214_v56  ;;  %v286_v9 = vadd.f32 %v1972_v10, %v215_v59 }
  0x48   :  { %v383_v14 = vpack.c.bf16 %v348_v62, %v347_v61  ;;  %v385_v24 = vpack.c.bf16 %v352_v20, %v351_v19 }
  0x49   :  { %v346_v57 = vmax.f32 %v282_v46, 0.0  ;;  %v349_v18 = vmax.f32 %v285_v4, 0.0  ;;  %v350_v3 = vmax.f32 %v286_v9, 0.0 }
  0x4a   :  { %1841 = vmatmul.mubr.bf16.gmra.mrb[20].mxu0 %v366_v35  ;;  %v210_v35 = vmul.f32 %v1524_v26, %v1961_v5 }
  0x4b   :  { %1844 = vmatprep.mubr.bf16.mxu0 %v367_v1  ;;  %v1732_v1 = vld [vmem:[%s2530_s0 + $0xf8] sm:$0xff]   ;;  %v384_v21 = vpack.c.bf16 %v350_v3, %v349_v18 }
  0x4c   :  { %v281_v42 = vadd.f32 %v1972_v10, %v210_v35  ;;  %v1540_v11 = vunpack.c.l.bf16 %v1732_v1  ;;  %v1541_v13 = vunpack.c.h.bf16 %v1732_v1 }
  0x4d   :  { %1869 = vmatmul.mubr.bf16.gmra.mrb[16].mxu1 %v380_v44 }
  0x4e   :  { %v345_v25 = vmax.f32 %v281_v42, 0.0  ;;  %1872 = vmatprep.mubr.bf16.mxu1 %v381_v45  ;;  %v218_v58 = vmul.f32 %v1540_v11, %v1961_v5  ;;  %v219_v7 = vmul.f32 %v1541_v13, %v1961_v5 }
  0x50   :  { %v382_v8 = vpack.c.bf16 %v346_v57, %v345_v25  ;;  %v289_v22 = vadd.f32 %v1972_v10, %v218_v58  ;;  %v290_v23 = vadd.f32 %v1972_v10, %v219_v7 }
  0x52   :  { %1845 = vmatmul.mubr.bf16.gmra.mrb[24].mxu0 %v368_v31  ;;  %v353_v26 = vmax.f32 %v289_v22, 0.0  ;;  %v354_v60 = vmax.f32 %v290_v23, 0.0 }
  0x53   :  { %1848 = vmatprep.mubr.bf16.mxu0 %v369_v34 }
  0x54   :  { %v386_v27 = vpack.c.bf16 %v354_v60, %v353_v26 }
  0x55   :  { %1873 = vmatmul.mubr.bf16.gmra.mrb[20].mxu1 %v382_v8 }
  0x56   :  { %1876 = vmatprep.mubr.bf16.mxu1 %v383_v14 }
  0x5a   :  { %1849 = vmatmul.mubr.bf16.gmra.mrb[28].mxu0 %v370_v55 }
  0x5d   :  { %1877 = vmatmul.mubr.bf16.gmra.mrb[24].mxu1 %v384_v21 }
  0x5e   :  { %1880 = vmatprep.mubr.bf16.mxu1 %v385_v24 }
  0x65   :  { %1881 = vmatmul.mubr.bf16.gmra.mrb[28].mxu1 %v386_v27 }
  0xf5   :  { %v1822_v52 = vpop.f32.mrb[0].mxu0 }
  0xf6   :  { %v485_v12 = vpop.f32.mrb[1].mxu0  ;;  %v1132_v10 = vmul.f32 %v1822_v52, %v1822_v52 }
  0xf7   :  { %v1823_v28 = vpop.f32.mrb[2].mxu0  ;;  %v1130_v30 = vmul.f32 %v485_v12, %v485_v12 }
  0xf8   :  { %v1550_v29 = vpack.c.bf16 %v1823_v28, %v1822_v52  ;;  %v488_v5 = vpop.f32.mrb[3].mxu0  ;;  %v1133_v35 = vmul.f32 %v1823_v28, %v1823_v28 }
  0xf9   :  { %v1545_v31 = vpack.c.bf16 %v488_v5, %v485_v12  ;;  %v1060_v32 = vadd.f32 %v488_v5, %v485_v12  ;;  %v1131_v33 = vmul.f32 %v488_v5, %v488_v5 }
  0xfa   :  { %1733 = vst [vmem:[%s2533_s4 + $0x8] sm:$0xff] %v1550_v29  }
  0xfb   :  { %1546 = vst [vmem:[%s2533_s4] sm:$0xff] %v1545_v31   ;;  %v1061_v34 = vadd.f32 %v1822_v52, %v1060_v32  ;;  %v1194_v50 = vadd.f32 %v1131_v33, %v1130_v30  ;;  %v2253_v14 = vpop.f32.mrb[0].mxu1 }
  0xfc   :  { %v2255_v15 = vpop.f32.mrb[1].mxu1 }
  0xfd   :  { %v1195_v53 = vadd.f32 %v1194_v50, %v1132_v10  ;;  %v1826_v2 = vpop.f32.mrb[4].mxu0  ;;  %v1062_v6 = vadd.f32 %v1823_v28, %v1061_v34  ;;  %v2257_v7 = vpop.f32.mrb[2].mxu1 }
  0xfe   :  { %v501_v16 = vpop.f32.mrb[5].mxu0  ;;  %v1136_v46 = vmul.f32 %v1826_v2, %v1826_v2  ;;  %v1630_v20 = vpack.c.bf16 %v2257_v7, %v2253_v14  ;;  %v2261_v21 = vpop.f32.mrb[3].mxu1 }
  0xff   :  { %v1063_v36 = vadd.f32 %v1062_v6, %v501_v16  ;;  %v1134_v37 = vmul.f32 %v501_v16, %v501_v16  ;;  %v1196_v38 = vadd.f32 %v1195_v53, %v1133_v35  ;;  %v1827_v39 = vpop.f32.mrb[6].mxu0  ;;  %v1625_v60 = vpack.c.bf16 %v2261_v21, %v2255_v15 }
 0x100   :  { %v1560_v40 = vpack.c.bf16 %v1827_v39, %v1826_v2  ;;  %v504_v41 = vpop.f32.mrb[7].mxu0  ;;  %v1137_v49 = vmul.f32 %v1827_v39, %v1827_v39  ;;  %1749 = vst [vmem:[%s2533_s4 + $0x88] sm:$0xff] %v1630_v20  }
 0x101   :  { %v1197_v42 = vadd.f32 %v1196_v38, %v1134_v37  ;;  %v1555_v43 = vpack.c.bf16 %v504_v41, %v501_v16  ;;  %v1064_v44 = vadd.f32 %v1063_v36, %v504_v41  ;;  %v1135_v45 = vmul.f32 %v504_v41, %v504_v41  ;;  %1748 = vst [vmem:[%s2533_s4 + $0x80] sm:$0xff] %v1625_v60  }
 0x102   :  { %1735 = vst [vmem:[%s2533_s4 + $0x18] sm:$0xff] %v1560_v40  }
 0x103   :  { %1734 = vst [vmem:[%s2533_s4 + $0x10] sm:$0xff] %v1555_v43   ;;  %v1065_v47 = vadd.f32 %v1826_v2, %v1064_v44  ;;  %v1198_v48 = vadd.f32 %v1197_v42, %v1135_v45 }
 0x105   :  { %v1199_v51 = vadd.f32 %v1198_v48, %v1136_v46  ;;  %v1830_v54 = vpop.f32.mrb[8].mxu0  ;;  %v1066_v55 = vadd.f32 %v1827_v39, %v1065_v47  ;;  %v2277_v33 = vpop.f32.mrb[4].mxu1 }
 0x106   :  { %v517_v56 = vpop.f32.mrb[9].mxu0  ;;  %v1140_v9 = vmul.f32 %v1830_v54, %v1830_v54  ;;  %v2279_v10 = vpop.f32.mrb[5].mxu1 }
 0x107   :  { %v1067_v25 = vadd.f32 %v1066_v55, %v517_v56  ;;  %v1138_v57 = vmul.f32 %v517_v56, %v517_v56  ;;  %v1200_v59 = vadd.f32 %v1199_v51, %v1137_v49  ;;  %v1831_v61 = vpop.f32.mrb[10].mxu0  ;;  %v2281_v2 = vpop.f32.mrb[6].mxu1 }
 0x108   :  { %v1570_v62 = vpack.c.bf16 %v1831_v61, %v1830_v54  ;;  %v520_v63 = vpop.f32.mrb[11].mxu0  ;;  %v1141_v17 = vmul.f32 %v1831_v61, %v1831_v61  ;;  %v1640_v16 = vpack.c.bf16 %v2281_v2, %v2277_v33  ;;  %v2285_v36 = vpop.f32.mrb[7].mxu1 }
 0x109   :  { %v1201_v0 = vadd.f32 %v1200_v59, %v1138_v57  ;;  %v1565_v1 = vpack.c.bf16 %v520_v63, %v517_v56  ;;  %v1068_v4 = vadd.f32 %v1067_v25, %v520_v63  ;;  %v1139_v8 = vmul.f32 %v520_v63, %v520_v63 }
 0x10a   :  { %1737 = vst [vmem:[%s2533_s4 + $0x28] sm:$0xff] %v1570_v62   ;;  %v1635_v41 = vpack.c.bf16 %v2285_v36, %v2279_v10  ;;  %1751 = vst [vmem:[%s2533_s4 + $0x98] sm:$0xff] %v1640_v16  }
 0x10b   :  { %1736 = vst [vmem:[%s2533_s4 + $0x20] sm:$0xff] %v1565_v1   ;;  %v1069_v11 = vadd.f32 %v1830_v54, %v1068_v4  ;;  %v1202_v13 = vadd.f32 %v1201_v0, %v1139_v8 }
 0x10c   :  { %1750 = vst [vmem:[%s2533_s4 + $0x90] sm:$0xff] %v1635_v41  }
 0x10d   :  { %v1203_v18 = vadd.f32 %v1202_v13, %v1140_v9  ;;  %v1834_v3 = vpop.f32.mrb[12].mxu0  ;;  %v1070_v58 = vadd.f32 %v1831_v61, %v1069_v11 }
 0x10e   :  { %v533_v19 = vpop.f32.mrb[13].mxu0  ;;  %v1144_v30 = vmul.f32 %v1834_v3, %v1834_v3  ;;  %v2301_v54 = vpop.f32.mrb[8].mxu1 }
 0x10f   :  { %v1071_v22 = vadd.f32 %v1070_v58, %v533_v19  ;;  %v1142_v23 = vmul.f32 %v533_v19, %v533_v19  ;;  %v1204_v24 = vadd.f32 %v1203_v18, %v1141_v17  ;;  %v1835_v26 = vpop.f32.mrb[14].mxu0  ;;  %v2303_v55 = vpop.f32.mrb[9].mxu1 }
 0x110   :  { %v1580_v27 = vpack.c.bf16 %v1835_v26, %v1834_v3  ;;  %v536_v52 = vpop.f32.mrb[15].mxu0  ;;  %v1145_v34 = vmul.f32 %v1835_v26, %v1835_v26  ;;  %v2305_v61 = vpop.f32.mrb[10].mxu1 }
 0x111   :  { %v1205_v12 = vadd.f32 %v1204_v24, %v1142_v23  ;;  %v1575_v28 = vpack.c.bf16 %v536_v52, %v533_v19  ;;  %v1072_v29 = vadd.f32 %v1071_v22, %v536_v52  ;;  %v1143_v5 = vmul.f32 %v536_v52, %v536_v52  ;;  %v2309_v0 = vpop.f32.mrb[11].mxu1 }
 0x112   :  { %1739 = vst [vmem:[%s2533_s4 + $0x38] sm:$0xff] %v1580_v27   ;;  %v1650_v63 = vpack.c.bf16 %v2305_v61, %v2301_v54  ;;  %v1645_v11 = vpack.c.bf16 %v2309_v0, %v2303_v55 }
 0x113   :  { %1738 = vst [vmem:[%s2533_s4 + $0x30] sm:$0xff] %v1575_v28   ;;  %v1073_v31 = vadd.f32 %v1834_v3, %v1072_v29  ;;  %v1206_v32 = vadd.f32 %v1205_v12, %v1143_v5 }
 0x114   :  { %1753 = vst [vmem:[%s2533_s4 + $0xa8] sm:$0xff] %v1650_v63   ;;  %1752 = vst [vmem:[%s2533_s4 + $0xa0] sm:$0xff] %v1645_v11  }
 0x115   :  { %v1207_v50 = vadd.f32 %v1206_v32, %v1144_v30  ;;  %v1838_v35 = vpop.f32.mrb[16].mxu0  ;;  %v1074_v53 = vadd.f32 %v1835_v26, %v1073_v31 }
 0x116   :  { %v549_v6 = vpop.f32.mrb[17].mxu0  ;;  %v1148_v48 = vmul.f32 %v1838_v35, %v1838_v35 }
 0x117   :  { %v1075_v37 = vadd.f32 %v1074_v53, %v549_v6  ;;  %v1146_v38 = vmul.f32 %v549_v6, %v549_v6  ;;  %v1208_v39 = vadd.f32 %v1207_v50, %v1145_v34  ;;  %v1839_v40 = vpop.f32.mrb[18].mxu0 }
 0x118   :  { %v1590_v42 = vpack.c.bf16 %v1839_v40, %v1838_v35  ;;  %v552_v43 = vpop.f32.mrb[19].mxu0  ;;  %v1149_v56 = vmul.f32 %v1839_v40, %v1839_v40  ;;  %v2325_v24 = vpop.f32.mrb[12].mxu1 }
 0x119   :  { %v1209_v44 = vadd.f32 %v1208_v39, %v1146_v38  ;;  %v1585_v45 = vpack.c.bf16 %v552_v43, %v549_v6  ;;  %v1076_v46 = vadd.f32 %v1075_v37, %v552_v43  ;;  %v1147_v47 = vmul.f32 %v552_v43, %v552_v43  ;;  %v2327_v26 = vpop.f32.mrb[13].mxu1 }
 0x11a   :  { %1741 = vst [vmem:[%s2533_s4 + $0x48] sm:$0xff] %v1590_v42   ;;  %v2329_v28 = vpop.f32.mrb[14].mxu1 }
 0x11b   :  { %1740 = vst [vmem:[%s2533_s4 + $0x40] sm:$0xff] %v1585_v45   ;;  %v1077_v49 = vadd.f32 %v1838_v35, %v1076_v46  ;;  %v1210_v51 = vadd.f32 %v1209_v44, %v1147_v47  ;;  %v1660_v5 = vpack.c.bf16 %v2329_v28, %v2325_v24  ;;  %v2333_v30 = vpop.f32.mrb[15].mxu1 }
 0x11c   :  { %v1655_v35 = vpack.c.bf16 %v2333_v30, %v2327_v26 }
 0x11d   :  { %v1211_v25 = vadd.f32 %v1210_v51, %v1148_v48  ;;  %v1842_v57 = vpop.f32.mrb[20].mxu0  ;;  %v1078_v59 = vadd.f32 %v1839_v40, %v1077_v49  ;;  %1755 = vst [vmem:[%s2533_s4 + $0xb8] sm:$0xff] %v1660_v5  }
 0x11e   :  { %v565_v62 = vpop.f32.mrb[21].mxu0  ;;  %v1152_v20 = vmul.f32 %v1842_v57, %v1842_v57  ;;  %1754 = vst [vmem:[%s2533_s4 + $0xb0] sm:$0xff] %v1655_v35   ;;  %v1163_v35 = vmul.f32 %v2261_v21, %v2261_v21 }
 0x11f   :  { %v1079_v1 = vadd.f32 %v1078_v59, %v565_v62  ;;  %v1150_v4 = vmul.f32 %v565_v62, %v565_v62  ;;  %v1212_v8 = vadd.f32 %v1211_v25, %v1149_v56  ;;  %v1843_v9 = vpop.f32.mrb[22].mxu0 }
 0x120   :  { %v1600_v13 = vpack.c.bf16 %v1843_v9, %v1842_v57  ;;  %v568_v17 = vpop.f32.mrb[23].mxu0  ;;  %v1153_v60 = vmul.f32 %v1843_v9, %v1843_v9  ;;  %v2349_v43 = vpop.f32.mrb[16].mxu1 }
 0x121   :  { %v1213_v18 = vadd.f32 %v1212_v8, %v1150_v4  ;;  %v1595_v3 = vpack.c.bf16 %v568_v17, %v565_v62  ;;  %v1080_v58 = vadd.f32 %v1079_v1, %v568_v17  ;;  %v1151_v19 = vmul.f32 %v568_v17, %v568_v17  ;;  %v2351_v44 = vpop.f32.mrb[17].mxu1 }
 0x122   :  { %1743 = vst [vmem:[%s2533_s4 + $0x58] sm:$0xff] %v1600_v13   ;;  %v2353_v49 = vpop.f32.mrb[18].mxu1 }
 0x123   :  { %1742 = vst [vmem:[%s2533_s4 + $0x50] sm:$0xff] %v1595_v3   ;;  %v1081_v22 = vadd.f32 %v1842_v57, %v1080_v58  ;;  %v1214_v23 = vadd.f32 %v1213_v18, %v1151_v19  ;;  %v1670_v56 = vpack.c.bf16 %v2353_v49, %v2349_v43  ;;  %v2357_v25 = vpop.f32.mrb[19].mxu1 }
 0x124   :  { %v1665_v1 = vpack.c.bf16 %v2357_v25, %v2351_v44 }
 0x125   :  { %v1215_v27 = vadd.f32 %v1214_v23, %v1152_v20  ;;  %v1846_v52 = vpop.f32.mrb[24].mxu0  ;;  %v1082_v12 = vadd.f32 %v1843_v9, %v1081_v22  ;;  %1757 = vst [vmem:[%s2533_s4 + $0xc8] sm:$0xff] %v1670_v56  }
 0x126   :  { %v581_v29 = vpop.f32.mrb[25].mxu0  ;;  %v1156_v40 = vmul.f32 %v1846_v52, %v1846_v52  ;;  %1756 = vst [vmem:[%s2533_s4 + $0xc0] sm:$0xff] %v1665_v1  }
 0x127   :  { %v1083_v31 = vadd.f32 %v1082_v12, %v581_v29  ;;  %v1154_v32 = vmul.f32 %v581_v29, %v581_v29  ;;  %v1216_v34 = vadd.f32 %v1215_v27, %v1153_v60  ;;  %v1847_v50 = vpop.f32.mrb[26].mxu0  ;;  %v1162_v27 = vmul.f32 %v2255_v15, %v2255_v15 }
 0x128   :  { %v1610_v53 = vpack.c.bf16 %v1847_v50, %v1846_v52  ;;  %v584_v6 = vpop.f32.mrb[27].mxu0  ;;  %v1157_v45 = vmul.f32 %v1847_v50, %v1847_v50  ;;  %v2373_v19 = vpop.f32.mrb[20].mxu1 }
 0x129   :  { %v1217_v16 = vadd.f32 %v1216_v34, %v1154_v32  ;;  %v1605_v37 = vpack.c.bf16 %v584_v6, %v581_v29  ;;  %v1084_v38 = vadd.f32 %v1083_v31, %v584_v6  ;;  %v1155_v39 = vmul.f32 %v584_v6, %v584_v6  ;;  %v2375_v20 = vpop.f32.mrb[21].mxu1 }
 0x12a   :  { %1745 = vst [vmem:[%s2533_s4 + $0x68] sm:$0xff] %v1610_v53  }
 0x12b   :  { %1744 = vst [vmem:[%s2533_s4 + $0x60] sm:$0xff] %v1605_v37   ;;  %v1085_v41 = vadd.f32 %v1846_v52, %v1084_v38  ;;  %v1218_v42 = vadd.f32 %v1217_v16, %v1155_v39  ;;  %v2379_v52 = vpop.f32.mrb[22].mxu1  ;;  %v1165_v38 = vmul.f32 %v2257_v7, %v2257_v7 }
 0x12c   :  { %v1680_v12 = vpack.c.bf16 %v2379_v52, %v2373_v19  ;;  %v2383_v29 = vpop.f32.mrb[23].mxu1 }
 0x12d   :  { %v1219_v46 = vadd.f32 %v1218_v42, %v1156_v40  ;;  %v1850_v47 = vpop.f32.mrb[28].mxu0  ;;  %v1086_v48 = vadd.f32 %v1847_v50, %v1085_v41  ;;  %v1675_v32 = vpack.c.bf16 %v2383_v29, %v2375_v20  ;;  %v1166_v40 = vmul.f32 %v2279_v10, %v2279_v10 }
 0x12e   :  { %v597_v51 = vpop.f32.mrb[29].mxu0  ;;  %v1160_v18 = vmul.f32 %v1850_v47, %v1850_v47  ;;  %1759 = vst [vmem:[%s2533_s4 + $0xd8] sm:$0xff] %v1680_v12   ;;  %v1174_v12 = vmul.f32 %v2327_v26, %v2327_v26 }
 0x12f   :  { %v1087_v57 = vadd.f32 %v1086_v48, %v597_v51  ;;  %v1158_v59 = vmul.f32 %v597_v51, %v597_v51  ;;  %v1220_v62 = vadd.f32 %v1219_v46, %v1157_v45  ;;  %v1851_v63 = vpop.f32.mrb[30].mxu0  ;;  %1758 = vst [vmem:[%s2533_s4 + $0xd0] sm:$0xff] %v1675_v32  }
 0x130   :  { %v1620_v4 = vpack.c.bf16 %v1851_v63, %v1850_v47  ;;  %v600_v8 = vpop.f32.mrb[31].mxu0  ;;  %v1161_v22 = vmul.f32 %v1851_v63, %v1851_v63  ;;  %v2400_v16 = vpop.f32.mrb[24].mxu1 }
 0x131   :  { %v1221_v9 = vadd.f32 %v1220_v62, %v1158_v59  ;;  %v1615_v11 = vpack.c.bf16 %v600_v8, %v597_v51  ;;  %v1088_v13 = vadd.f32 %v1087_v57, %v600_v8  ;;  %v1159_v17 = vmul.f32 %v600_v8, %v600_v8  ;;  %v2402_v37 = vpop.f32.mrb[25].mxu1 }
 0x132   :  { %1747 = vst [vmem:[%s2533_s4 + $0x78] sm:$0xff] %v1620_v4   ;;  %v2409_v41 = vpop.f32.mrb[26].mxu1  ;;  %v1167_v51 = vmul.f32 %v2285_v36, %v2285_v36  ;;  %v1170_v4 = vmul.f32 %v2303_v55, %v2303_v55 }
 0x133   :  { %1746 = vst [vmem:[%s2533_s4 + $0x70] sm:$0xff] %v1615_v11   ;;  %v1089_v3 = vadd.f32 %v1850_v47, %v1088_v13  ;;  %v1222_v58 = vadd.f32 %v1221_v9, %v1159_v17  ;;  %v1690_v42 = vpack.c.bf16 %v2409_v41, %v2400_v16 }
 0x135   :  { %v1223_v23 = vadd.f32 %v1222_v58, %v1160_v18  ;;  %v1090_v60 = vadd.f32 %v1851_v63, %v1089_v3  ;;  %1761 = vst [vmem:[%s2533_s4 + $0xe8] sm:$0xff] %v1690_v42   ;;  %v1169_v63 = vmul.f32 %v2281_v2, %v2281_v2  ;;  %v1171_v3 = vmul.f32 %v2309_v0, %v2309_v0 }
 0x137   :  { %v1091_v5 = vadd.f32 %v1090_v60, %v2255_v15  ;;  %v1224_v31 = vadd.f32 %v1223_v23, %v1161_v22  ;;  %v1164_v15 = vmul.f32 %v2253_v14, %v2253_v14  ;;  %v1173_v23 = vmul.f32 %v2305_v61, %v2305_v61 }
 0x139   :  { %v1225_v34 = vadd.f32 %v1224_v31, %v1162_v27  ;;  %v1092_v50 = vadd.f32 %v1091_v5, %v2261_v21 }
 0x13b   :  { %v1093_v53 = vadd.f32 %v2253_v14, %v1092_v50  ;;  %v1226_v6 = vadd.f32 %v1225_v34, %v1163_v35  ;;  %v2413_v14 = vpop.f32.mrb[27].mxu1  ;;  %v1175_v34 = vmul.f32 %v2333_v30, %v2333_v30 }
 0x13c   :  { %v1685_v47 = vpack.c.bf16 %v2413_v14, %v2402_v37  ;;  %v2430_v59 = vpop.f32.mrb[28].mxu1 }
 0x13d   :  { %v1227_v39 = vadd.f32 %v1226_v6, %v1164_v15  ;;  %v1094_v21 = vadd.f32 %v2257_v7, %v1093_v53  ;;  %v2432_v62 = vpop.f32.mrb[29].mxu1 }
 0x13e   :  { %1760 = vst [vmem:[%s2533_s4 + $0xe0] sm:$0xff] %v1685_v47   ;;  %v2439_v8 = vpop.f32.mrb[30].mxu1 }
 0x13f   :  { %v1095_v45 = vadd.f32 %v1094_v21, %v2279_v10  ;;  %v1228_v46 = vadd.f32 %v1227_v39, %v1165_v38  ;;  %v1168_v10 = vmul.f32 %v2277_v33, %v2277_v33  ;;  %v1700_v9 = vpack.c.bf16 %v2439_v8, %v2430_v59 }
 0x140   :  { %v1179_v21 = vmul.f32 %v2357_v25, %v2357_v25 }
 0x141   :  { %v1229_v7 = vadd.f32 %v1228_v46, %v1166_v40  ;;  %v1096_v48 = vadd.f32 %v1095_v45, %v2285_v36  ;;  %1763 = vst [vmem:[%s2533_s4 + $0xf8] sm:$0xff] %v1700_v9   ;;  %v1187_v9 = vmul.f32 %v2413_v14, %v2413_v14 }
 0x143   :  { %v1097_v56 = vadd.f32 %v2277_v33, %v1096_v48  ;;  %v1230_v57 = vadd.f32 %v1229_v7, %v1167_v51  ;;  %v2443_v33 = vpop.f32.mrb[31].mxu1  ;;  %v1183_v51 = vmul.f32 %v2383_v29, %v2383_v29 }
 0x144   :  { %v1695_v17 = vpack.c.bf16 %v2443_v33, %v2432_v62 }
 0x145   :  { %v1231_v1 = vadd.f32 %v1230_v57, %v1168_v10  ;;  %v1098_v36 = vadd.f32 %v2281_v2, %v1097_v56 }
 0x146   :  { %1762 = vst [vmem:[%s2533_s4 + $0xf0] sm:$0xff] %v1695_v17  }
 0x147   :  { %v1099_v11 = vadd.f32 %v1098_v36, %v2303_v55  ;;  %v1232_v13 = vadd.f32 %v1231_v1, %v1169_v63  ;;  %v1172_v55 = vmul.f32 %v2301_v54, %v2301_v54 }
 0x149   :  { %v1233_v2 = vadd.f32 %v1232_v13, %v1170_v4  ;;  %v1100_v18 = vadd.f32 %v1099_v11, %v2309_v0 }
 0x14b   :  { %v1101_v58 = vadd.f32 %v2301_v54, %v1100_v18  ;;  %v1234_v22 = vadd.f32 %v1233_v2, %v1171_v3  ;;  %v1176_v54 = vmul.f32 %v2325_v24, %v2325_v24 }
 0x14d   :  { %v1235_v60 = vadd.f32 %v1234_v22, %v1172_v55  ;;  %v1102_v27 = vadd.f32 %v2305_v61, %v1101_v58  ;;  %v1177_v61 = vmul.f32 %v2329_v28, %v2329_v28  ;;  %v1191_v58 = vmul.f32 %v2443_v33, %v2443_v33 }
 0x14f   :  { %v1103_v0 = vadd.f32 %v1102_v27, %v2327_v26  ;;  %v1236_v5 = vadd.f32 %v1235_v60, %v1173_v23  ;;  %v1178_v26 = vmul.f32 %v2351_v44, %v2351_v44 }
 0x151   :  { %v1237_v31 = vadd.f32 %v1236_v5, %v1174_v12  ;;  %v1104_v32 = vadd.f32 %v1103_v0, %v2333_v30 }
 0x153   :  { %v1105_v50 = vadd.f32 %v2325_v24, %v1104_v32  ;;  %v1238_v35 = vadd.f32 %v1237_v31, %v1175_v34  ;;  %v1180_v24 = vmul.f32 %v2349_v43, %v2349_v43 }
 0x155   :  { %v1239_v15 = vadd.f32 %v1238_v35, %v1176_v54  ;;  %v1106_v53 = vadd.f32 %v2329_v28, %v1105_v50  ;;  %v1181_v28 = vmul.f32 %v2353_v49, %v2353_v49 }
 0x157   :  { %v1107_v6 = vadd.f32 %v1106_v53, %v2351_v44  ;;  %v1240_v38 = vadd.f32 %v1239_v15, %v1177_v61  ;;  %v1182_v44 = vmul.f32 %v2375_v20, %v2375_v20 }
 0x159   :  { %v1241_v39 = vadd.f32 %v1240_v38, %v1178_v26  ;;  %v1108_v30 = vadd.f32 %v1107_v6, %v2357_v25 }
 0x15b   :  { %v1109_v40 = vadd.f32 %v2349_v43, %v1108_v30  ;;  %v1242_v42 = vadd.f32 %v1241_v39, %v1179_v21  ;;  %v1184_v43 = vmul.f32 %v2373_v19, %v2373_v19 }
 0x15d   :  { %v1243_v45 = vadd.f32 %v1242_v42, %v1180_v24  ;;  %v1110_v46 = vadd.f32 %v2353_v49, %v1109_v40  ;;  %v1185_v49 = vmul.f32 %v2379_v52, %v2379_v52 }
 0x15f   :  { %v1111_v47 = vadd.f32 %v1110_v46, %v2375_v20  ;;  %v1244_v7 = vadd.f32 %v1243_v45, %v1181_v28  ;;  %v1186_v20 = vmul.f32 %v2402_v37, %v2402_v37 }
 0x161   :  { %v1245_v48 = vadd.f32 %v1244_v7, %v1182_v44  ;;  %v1112_v25 = vadd.f32 %v1111_v47, %v2383_v29 }
 0x163   :  { %v1113_v10 = vadd.f32 %v2373_v19, %v1112_v25  ;;  %v1246_v56 = vadd.f32 %v1245_v48, %v1183_v51  ;;  %v1188_v19 = vmul.f32 %v2400_v16, %v2400_v16 }
 0x165   :  { %v1247_v57 = vadd.f32 %v1246_v56, %v1184_v43  ;;  %v1114_v63 = vadd.f32 %v2379_v52, %v1113_v10  ;;  %v1189_v52 = vmul.f32 %v2409_v41, %v2409_v41 }
 0x167   :  { %v1115_v1 = vadd.f32 %v1114_v63, %v2402_v37  ;;  %v1248_v36 = vadd.f32 %v1247_v57, %v1185_v49  ;;  %v1190_v37 = vmul.f32 %v2432_v62, %v2432_v62 }
 0x169   :  { %v1249_v4 = vadd.f32 %v1248_v36, %v1186_v20  ;;  %v1116_v29 = vadd.f32 %v1115_v1, %v2413_v14 }
 0x16b   :  { %v1117_v11 = vadd.f32 %v2400_v16, %v1116_v29  ;;  %v1250_v13 = vadd.f32 %v1249_v4, %v1187_v9  ;;  %v1192_v16 = vmul.f32 %v2430_v59, %v2430_v59 }
 0x16d   :  { %v1251_v17 = vadd.f32 %v1250_v13, %v1188_v19  ;;  %v1118_v2 = vadd.f32 %v2409_v41, %v1117_v11  ;;  %v1193_v41 = vmul.f32 %v2439_v8, %v2439_v8 }
 0x16f   :  { %v1119_v18 = vadd.f32 %v1118_v2, %v2432_v62  ;;  %v1252_v3 = vadd.f32 %v1251_v17, %v1189_v52 }
 0x171   :  { %v1253_v55 = vadd.f32 %v1252_v3, %v1190_v37  ;;  %v1120_v14 = vadd.f32 %v1119_v18, %v2443_v33 }
 0x173   :  { %v1121_v22 = vadd.f32 %v2430_v59, %v1120_v14  ;;  %v1254_v23 = vadd.f32 %v1253_v55, %v1191_v58 }
 0x175   :  { %v1122_v60 = vadd.f32 %v2439_v8, %v1121_v22  ;;  %v1255_v27 = vadd.f32 %v1254_v23, %v1192_v16 }
 0x177   :  { %v1123_v62 = vrot.slane %v1122_v60, 4  ;;  %v1256_v12 = vadd.f32 %v1255_v27, %v1193_v41 }
 0x179   :  { %v1124_v0 = vadd.f32 %v1123_v62, %v1122_v60  ;;  %v1257_v5 = vrot.slane %v1256_v12, 4 }
 0x17b   :  { %v1125_v31 = vrot.slane %v1124_v0, 2  ;;  %v1258_v32 = vadd.f32 %v1257_v5, %v1256_v12 }
 0x17d   :  { %v1126_v34 = vadd.f32 %v1125_v31, %v1124_v0  ;;  %v1259_v33 = vrot.slane %v1258_v32, 2 }
 0x17f   :  { %v1127_v54 = vrot.slane %v1126_v34, 1  ;;  %v1260_v50 = vadd.f32 %v1259_v33, %v1258_v32 }
 0x181   :  { %v1128_v35 = vadd.f32 %v1127_v54, %v1126_v34  ;;  %v1261_v61 = vrot.slane %v1260_v50, 1 }
 0x183   :  { %1129 = vst [vmem:[%s2534_s5] sm:$0x1] %v1128_v35  ;;  %v1262_v59 = vadd.f32 %v1261_v61, %v1260_v50 }
 0x185   :  { %1263 = vst [vmem:[%s2535_s6] sm:$0x1] %v1262_v59 }

// kernel: inverted_residual_block.8
= control target key start
LH: loop header
LB: loop body
LE: loop exit
PB: predicated region body
PF: predicated region fallthrough
CT: control target
= control target key end

     0   :  { %s3416_s24 = smov 0   ;;  %s5508_s0 = inlined_call_operand.vmem [shape: bf16[2,16,16,128], index: 0, kind: input, shape index: {}]   ;;  %s5509_s1 = inlined_call_operand.vmem [shape: bf16[128,128], index: 1, kind: input, shape index: {}]   ;;  %s5510_s2 = inlined_call_operand.vmem [shape: f32[1,128], index: 2, kind: input, shape index: {}]   ;;  %s5511_s3 = inlined_call_operand.vmem [shape: f32[1,128], index: 3, kind: input, shape index: {}]   ;;  %s5512_s4 = inlined_call_operand.vmem [shape: f32[9,128], index: 4, kind: input, shape index: {}]   ;;  %s5513_s5 = inlined_call_operand.vmem [shape: bf16[2,16,16,128], index: 5, kind: output, shape index: {0}]   ;;  %s5514_s6 = inlined_call_operand.vmem [shape: f32[2,1,128], index: 6, kind: output, shape index: {1}]   ;;  %s5515_s7 = inlined_call_operand.vmem [shape: f32[2,1,128], index: 7, kind: output, shape index: {2}]  }
   0x1 LB: > { %s3041_s25 = sadd.s32 4294967295, %s3373_s24   ;;  %p3045_p0 = scmp.ge.s32.totalorder %s3373_s24, 1  ;;  %s3373_s24 = sphi %s3416_s24, %s18_s24  }
   0x2   : > { %p242_p1 = scmp.lt.s32.totalorder %s3373_s24, 3 }
   0x4   : > { %p243_p2 = pnand %p3045_p0, %p242_p1 }
   0x6   : > { %246 = sbr.rel (%p243_p2) target bundleno = 648 (0x288), region = 40 }
   0xd   : > { %p280_p3 = scmp.lt.s32.totalorder %s3041_s25, 1  ;;  %p3050_p4 = scmp.ne.s32.totalorder %s3041_s25, 0 }
   0xe   : > { %v3375_v0 = vmov (!%p3050_p4), 0.0  }
   0xf   : > { %s3424_s26 = scalar_select %p280_p3, %s3041_s25, 1 }
  0x10   : > { %300 = sbr.rel (%p3050_p4) target bundleno = 43 (0x2b), region = 44  ;;  %301 = vst [vmem:[#allocation2] sm:$0xff] (!%p3050_p4), %v3375_v0  ;;  %302 = vst [vmem:[#allocation2 + $0x8] sm:$0xff] (!%p3050_p4), %v3375_v0 }
  0x11   : > { %s3112_s27 = sshll.u32 %s3424_s26, 7  ;;  %s292_s30 = scalar_lea.vmem %s5514_s6, %s3424_s26  ;;  %303 = vst [vmem:[#allocation2 + $0x10] sm:$0x3] (!%p3050_p4), %v3375_v0  ;;  %304 = vst [vmem:[#allocation2 + $0x18] sm:$0xff] (!%p3050_p4), %v3375_v0 }
  0x12   : > { %s3434_s10 = scalar_lea.vmem %s5508_s0, %s3112_s27  ;;  %s3439_s13 = scalar_lea.vmem %s5513_s5, %s3112_s27  ;;  %305 = vst [vmem:[#allocation2 + $0x20] sm:$0xff] (!%p3050_p4), %v3375_v0  ;;  %306 = vst [vmem:[#allocation2 + $0x28] sm:$0x3] (!%p3050_p4), %v3375_v0 }
  0x13   : > { %s295_s16 = scalar_lea.vmem %s5515_s7, %s3424_s26  ;;  %307 = vst [vmem:[#allocation2 + $0x30] sm:$0xff] (!%p3050_p4), %v3375_v0  ;;  %308 = vst [vmem:[#allocation2 + $0x38] sm:$0xff] (!%p3050_p4), %v3375_v0 }
  0x14   : > { %309 = vst [vmem:[#allocation2 + $0x40] sm:$0x3] (!%p3050_p4), %v3375_v0  ;;  %310 = vst [vmem:[#allocation2 + $0x48] sm:$0xff] (!%p3050_p4), %v3375_v0 }
  0x15   : > { %311 = vst [vmem:[#allocation2 + $0x50] sm:$0xff] (!%p3050_p4), %v3375_v0  ;;  %312 = vst [vmem:[#allocation2 + $0x58] sm:$0x3] (!%p3050_p4), %v3375_v0 }
  0x16   : > { %313 = vst [vmem:[#allocation2 + $0x60] sm:$0xff] (!%p3050_p4), %v3375_v0  ;;  %314 = vst [vmem:[#allocation2 + $0x68] sm:$0xff] (!%p3050_p4), %v3375_v0 }
  0x17   : > { %315 = vst [vmem:[#allocation2 + $0x70] sm:$0x3] %v3375_v0  ;;  %316 = vst [vmem:[#allocation2 + $0x78] sm:$0xff] %v3375_v0 }
  0x18   : > { %317 = vst [vmem:[#allocation2 + $0x80] sm:$0xff] %v3375_v0  ;;  %318 = vst [vmem:[#allocation2 + $0x88] sm:$0x3] %v3375_v0 }
  0x19   : > { %319 = vst [vmem:[#allocation2 + $0x90] sm:$0xff] %v3375_v0  ;;  %320 = vst [vmem:[#allocation2 + $0x98] sm:$0xff] %v3375_v0 }
  0x1a   : > { %321 = vst [vmem:[#allocation2 + $0xa0] sm:$0x3] %v3375_v0  ;;  %322 = vst [vmem:[#allocation2 + $0xa8] sm:$0xff] %v3375_v0 }
  0x1b   : > { %323 = vst [vmem:[#allocation2 + $0xb0] sm:$0xff] %v3375_v0  ;;  %324 = vst [vmem:[#allocation2 + $0xb8] sm:$0x3] %v3375_v0 }
  0x1c   : > { %325 = vst [vmem:[#allocation2 + $0xc0] sm:$0xff] %v3375_v0  ;;  %326 = vst [vmem:[#allocation2 + $0xc8] sm:$0xff] %v3375_v0 }
  0x1d   : > { %327 = vst [vmem:[#allocation2 + $0xd0] sm:$0x3] %v3375_v0  ;;  %328 = vst [vmem:[#allocation2 + $0xd8] sm:$0xff] %v3375_v0 }
  0x1e   : > { %329 = vst [vmem:[#allocation2 + $0xe0] sm:$0xff] %v3375_v0  ;;  %330 = vst [vmem:[#allocation2 + $0xe8] sm:$0x3] %v3375_v0 }
  0x1f   : > { %331 = vst [vmem:[#allocation2 + $0xf0] sm:$0xff] %v3375_v0  ;;  %332 = vst [vmem:[#allocation2 + $0xf8] sm:$0xff] %v3375_v0 }
  0x20   : > { %333 = vst [vmem:[#allocation2 + $0x100] sm:$0x3] %v3375_v0  ;;  %334 = vst [vmem:[#allocation2 + $0x108] sm:$0xff] %v3375_v0 }
  0x21   : > { %335 = vst [vmem:[#allocation2 + $0x110] sm:$0xff] %v3375_v0  ;;  %336 = vst [vmem:[#allocation2 + $0x118] sm:$0x3] %v3375_v0 }
  0x22   : > { %337 = vst [vmem:[#allocation2 + $0x120] sm:$0xff] %v3375_v0  ;;  %338 = vst [vmem:[#allocation2 + $0x128] sm:$0xff] %v3375_v0 }
  0x23   : > { %339 = vst [vmem:[#allocation2 + $0x130] sm:$0x3] %v3375_v0  ;;  %340 = vst [vmem:[#allocation2 + $0x138] sm:$0xff] %v3375_v0 }
  0x24   : > { %341 = vst [vmem:[#allocation2 + $0x140] sm:$0xff] %v3375_v0  ;;  %342 = vst [vmem:[#allocation2 + $0x148] sm:$0x3] %v3375_v0 }
  0x25   : > { %343 = vst [vmem:[#allocation2 + $0x150] sm:$0xff] %v3375_v0  ;;  %344 = vst [vmem:[#allocation2 + $0x158] sm:$0xff] %v3375_v0 }
  0x26   : > { %345 = vst [vmem:[#allocation2 + $0x160] sm:$0x3] %v3375_v0  ;;  %346 = vst [vmem:[#allocation2 + $0x168] sm:$0xff] %v3375_v0 }
  0x27   : > { %347 = vst [vmem:[#allocation2 + $0x170] sm:$0xff] %v3375_v0  ;;  %348 = vst [vmem:[#allocation2 + $0x178] sm:$0x3] %v3375_v0 }
  0x28   : > { %349 = vst [vmem:[#allocation2 + $0x180] sm:$0xff] %v3375_v0  ;;  %350 = vst [vmem:[#allocation2 + $0x188] sm:$0xff] %v3375_v0 }
  0x29   : > { %351 = vst [vmem:[#allocation2 + $0x190] sm:$0x3] %v3375_v0  ;;  %352 = vst [vmem:[#allocation2 + $0x198] sm:$0xff] %v3375_v0 }
  0x2a   : > { %353 = vst [vmem:[#allocation2 + $0x1a0] sm:$0xff] %v3375_v0  ;;  %354 = vst [vmem:[#allocation2 + $0x1a8] sm:$0x3] %v3375_v0 }
  0x2b PF: > { %v3338_v1 = vld [vmem:[%s5509_s1] sm:$0xff]   ;;  %v3339_v2 = vld [vmem:[%s5509_s1 + $0x8] sm:$0xff]   ;;  %v3340_v3 = vld [vmem:[%s5509_s1 + $0x10] sm:$0xff]   ;;  %v901_v25 = vlaneseq  ;;  %vm1069_vm0 = vcmask 1046528   ;;  %vm1314_vm1 = vcmask 1045504  }
  0x2c   : > { %3265 = vmatprep.subr.bf16.mxu0 %v3338_v1  ;;  %3313 = vmatprep.subr.bf16.mxu1 %v3338_v1  ;;  %v3341_v4 = vld [vmem:[%s5509_s1 + $0x18] sm:$0xff]   ;;  %v3346_v5 = vld [vmem:[%s3434_s10] sm:$0xff]   ;;  %v3343_v8 = vld [vmem:[%s5509_s1 + $0x28] sm:$0xff]  }
  0x2d   : > { %3266 = vmatpush3.bf16.msra.mxu0 %v3338_v1  ;;  %3321 = vmatpush3.bf16.msra.mxu1 %v3338_v1  ;;  %v3342_v6 = vld [vmem:[%s5509_s1 + $0x20] sm:$0xff]   ;;  %v3344_v9 = vld [vmem:[%s5509_s1 + $0x30] sm:$0xff]   ;;  %v3345_v10 = vld [vmem:[%s5509_s1 + $0x38] sm:$0xff]   ;;  %v3485_v26 = vshrl.u32 %v901_v25, 7 }
  0x2e   : > { %3267 = vmatprep.subr.bf16.mxu0 %v3339_v2  ;;  %3314 = vmatprep.subr.bf16.mxu1 %v3339_v2  ;;  %v3352_v7 = vld [vmem:[%s3434_s10 + $0x40] sm:$0xff]   ;;  %v3347_v11 = vld [vmem:[%s3434_s10 + $0x8] sm:$0xff]   ;;  %v3348_v13 = vld [vmem:[%s3434_s10 + $0x10] sm:$0xff]  }
  0x2f   : > { %3281 = vmatprep.mubr.bf16.mxu0 %v3346_v5  ;;  %3297 = vmatprep.mubr.bf16.mxu1 %v3352_v7  ;;  %v3353_v12 = vld [vmem:[%s3434_s10 + $0x48] sm:$0xff]   ;;  %v3356_v14 = vld [vmem:[%s3434_s10 + $0x50] sm:$0xff]   ;;  %v3349_v15 = vld [vmem:[%s3434_s10 + $0x18] sm:$0xff]   ;;  %v971_v27 = vsub.s32 1, %v3485_v26  ;;  %v1216_v30 = vsub.s32 2, %v3485_v26  ;;  %v903_v33 = vsub.s32 0, %v3485_v26 }
  0x30   : > { %v3357_v16 = vld [vmem:[%s3434_s10 + $0x58] sm:$0xff]   ;;  %v3350_v17 = vld [vmem:[%s3434_s10 + $0x20] sm:$0xff]   ;;  %v3351_v19 = vld [vmem:[%s3434_s10 + $0x28] sm:$0xff]   ;;  %v1577_v42 = vsub.s32 4, %v3485_v26  ;;  %v1821_v44 = vsub.s32 5, %v3485_v26  ;;  %v2182_v45 = vsub.s32 7, %v3485_v26 }
  0x31   : > { %3268 = vmatpush3.bf16.msra.mxu0 %v3339_v2  ;;  %3322 = vmatpush3.bf16.msra.mxu1 %v3339_v2  ;;  %v3358_v18 = vld [vmem:[%s3434_s10 + $0x60] sm:$0xff]   ;;  %v3359_v20 = vld [vmem:[%s3434_s10 + $0x68] sm:$0xff]   ;;  %v3354_v21 = vld [vmem:[%s3434_s10 + $0x30] sm:$0xff]   ;;  %v1509_v25 = vsub.s32 3, %v3485_v26 }
  0x32   : > { %3269 = vmatprep.subr.bf16.mxu0 %v3340_v3  ;;  %3315 = vmatprep.subr.bf16.mxu1 %v3340_v3  ;;  %v3360_v22 = vld [vmem:[%s3434_s10 + $0x70] sm:$0xff]   ;;  %v3355_v23 = vld [vmem:[%s3434_s10 + $0x38] sm:$0xff]   ;;  %v3491_v28 = vld [vmem:[%s5512_s4] sm:$0xff] }
  0x33   : > { %v3361_v24 = vld [vmem:[%s3434_s10 + $0x78] sm:$0xff]   ;;  %v3494_v29 = vrot.slane %v3491_v28, %v971_v27  ;;  %v853_v31 = vld [vmem:[#allocation2] sm:$0xff]  ;;  %v854_v32 = vld [vmem:[#allocation2 + $0x8] sm:$0xff]  ;;  %v3501_v37 = vrot.slane %v3491_v28, %v1216_v30  ;;  %v3515_v41 = vrot.slane %v3491_v28, %v903_v33  ;;  %v3544_v27 = vrot.slane %v3491_v28, %v1577_v42 }
  0x34   : > { %v855_v34 = vld [vmem:[#allocation2 + $0x10] sm:$0x3]  ;;  %v3506_v38 = vld [vmem:[%s5510_s2] ss:$0 sm:$0xff]  ;;  %v2114_v30 = vsub.s32 6, %v3485_v26 }
  0x35   : > { %3270 = vmatpush3.bf16.msra.mxu0 %v3340_v3  ;;  %3323 = vmatpush3.bf16.msra.mxu1 %v3340_v3  ;;  %v973_v35 = vmul.f32 %v3494_v29, %v853_v31  ;;  %v974_v36 = vmul.f32 %v3494_v29, %v854_v32  ;;  %v975_v39 = vmul.f32 %v3494_v29, %v855_v34  ;;  %v3512_v40 = vld [vmem:[%s5511_s3] ss:$0 sm:$0xff] }
  0x36   : > { %3271 = vmatprep.subr.bf16.mxu0 %v3341_v4  ;;  %3316 = vmatprep.subr.bf16.mxu1 %v3341_v4  ;;  %v1218_v51 = vmul.f32 %v3501_v37, %v853_v31  ;;  %v1219_v55 = vmul.f32 %v3501_v37, %v854_v32  ;;  %v1220_v3 = vmul.f32 %v3501_v37, %v855_v34 }
  0x37   : > { %v1070_v46 = vrot.slane %v973_v35, 1  ;;  %v1071_v47 = vrot.slane %v974_v36, 1  ;;  %v1073_v57 = vrot.slane %v975_v39, 1  ;;  %v3549_v34 = vrot.slane %v3491_v28, %v1821_v44 }
  0x38   : > { %v3552_v35 = vrot.slane %v3491_v28, %v2182_v45  ;;  %v3564_v45 = vld [vmem:[%s5512_s4 + $0x8] ss:$0 sm:$0xff] }
  0x39   : > { %3272 = vmatpush3.bf16.msra.mxu0 %v3341_v4  ;;  %3324 = vmatpush3.bf16.msra.mxu1 %v3341_v4 }
  0x3a   : > { %3273 = vmatprep.subr.bf16.mxu0 %v3342_v6  ;;  %3317 = vmatprep.subr.bf16.mxu1 %v3342_v6 }
  0x3d   : > { %3274 = vmatpush3.bf16.msra.mxu0 %v3342_v6  ;;  %3325 = vmatpush3.bf16.msra.mxu1 %v3342_v6 }
  0x3e   : > { %3275 = vmatprep.subr.bf16.mxu0 %v3343_v8  ;;  %3318 = vmatprep.subr.bf16.mxu1 %v3343_v8 }
  0x41   : > { %3276 = vmatpush3.bf16.msra.mxu0 %v3343_v8  ;;  %3326 = vmatpush3.bf16.msra.mxu1 %v3343_v8 }
  0x42   : > { %3277 = vmatprep.subr.bf16.mxu0 %v3344_v9  ;;  %3319 = vmatprep.subr.bf16.mxu1 %v3344_v9 }
  0x45   : > { %3278 = vmatpush3.bf16.msra.mxu0 %v3344_v9  ;;  %3327 = vmatpush3.bf16.msra.mxu1 %v3344_v9 }
  0x46   : > { %3279 = vmatprep.subr.bf16.mxu0 %v3345_v10  ;;  %3320 = vmatprep.subr.bf16.mxu1 %v3345_v10 }
  0x49   : > { %3280 = vmatpush3.bf16.msra.mxu0 %v3345_v10  ;;  %3328 = vmatpush3.bf16.msra.mxu1 %v3345_v10  ;;  %v905_v10 = vmul.f32 %v3515_v41, %v853_v31 }
  0x4c   : > { %3282 = vmatmul.mubr.bf16.vlgmr.msra.gmra.mrb[0].mxu0 %v3347_v11  ;;  %3298 = vmatmul.mubr.bf16.vlgmr.msra.gmra.mrb[0].mxu1 %v3353_v12 }
  0x4d   : > { %3285 = vmatprep.mubr.bf16.mxu0 %v3348_v13  ;;  %3301 = vmatprep.mubr.bf16.mxu1 %v3356_v14  ;;  %v1072_v13 = vsel %vm1069_vm0, %v1070_v46, %v1071_v47  ;;  %v1315_v14 = vrot.slane %v1218_v51, 2 }
  0x4e   : > { %v1182_v36 = vadd.f32 %v1072_v13, %v905_v10 }
  0x54   : > { %3286 = vmatmul.mubr.bf16.gmra.mrb[4].mxu0 %v3349_v15  ;;  %3302 = vmatmul.mubr.bf16.gmra.mrb[4].mxu1 %v3357_v16 }
  0x55   : > { %3289 = vmatprep.mubr.bf16.mxu0 %v3350_v17  ;;  %3305 = vmatprep.mubr.bf16.mxu1 %v3358_v18  ;;  %v1316_v17 = vrot.slane %v1219_v55, 2 }
  0x57   : > { %v1317_v42 = vsel %vm1314_vm1, %v1315_v14, %v1316_v17 }
  0x5c   : > { %3290 = vmatmul.mubr.bf16.gmra.mrb[8].mxu0 %v3351_v19  ;;  %3306 = vmatmul.mubr.bf16.gmra.mrb[8].mxu1 %v3359_v20  ;;  %v906_v19 = vmul.f32 %v3515_v41, %v854_v32  ;;  %v1318_v20 = vrot.slane %v1220_v3, 2 }
  0x5d   : > { %3293 = vmatprep.mubr.bf16.mxu0 %v3354_v21  ;;  %3309 = vmatprep.mubr.bf16.mxu1 %v3360_v22  ;;  %v1074_v22 = vsel %vm1069_vm0, %v1071_v47, %v1073_v57  ;;  %v1427_v57 = vadd.f32 %v1317_v42, %v1182_v36 }
  0x5e   : > { %v1183_v46 = vadd.f32 %v1074_v22, %v906_v19  ;;  %v1319_v26 = vsel %vm1314_vm1, %v1316_v17, %v1318_v20 }
  0x64   : > { %3294 = vmatmul.mubr.bf16.gmra.mrb[12].mxu0 %v3355_v23  ;;  %3310 = vmatmul.mubr.bf16.gmra.mrb[12].mxu1 %v3361_v24 }
 0x11f   : > { %v3283_v43 = vpop.f32.mrb[0].mxu0  ;;  %v3299_v48 = vpop.f32.mrb[0].mxu1 }
 0x120   : > { %v717_v49 = vmul.f32 %v3283_v43, %v3506_v38  ;;  %v581_v50 = vpop.f32.mrb[1].mxu0  ;;  %v733_v52 = vmul.f32 %v3299_v48, %v3506_v38  ;;  %v645_v53 = vpop.f32.mrb[1].mxu1 }
 0x121   : > { %v715_v54 = vmul.f32 %v3506_v38, %v581_v50  ;;  %v3284_v56 = vpop.f32.mrb[2].mxu0  ;;  %v731_v58 = vmul.f32 %v3506_v38, %v645_v53  ;;  %v3300_v59 = vpop.f32.mrb[2].mxu1  ;;  %v3570_v53 = vrot.slane %v3491_v28, %v2114_v30 }
 0x122   : > { %v756_v60 = vadd.f32 %v3512_v40, %v717_v49  ;;  %v718_v61 = vmul.f32 %v3284_v56, %v3506_v38  ;;  %v584_v62 = vpop.f32.mrb[3].mxu0  ;;  %v772_v63 = vadd.f32 %v3512_v40, %v733_v52  ;;  %v734_v0 = vmul.f32 %v3300_v59, %v3506_v38  ;;  %v648_v33 = vpop.f32.mrb[3].mxu1 }
 0x123   : > { %v754_v1 = vadd.f32 %v3512_v40, %v715_v54  ;;  %v716_v2 = vmul.f32 %v3506_v38, %v584_v62  ;;  %v770_v4 = vadd.f32 %v3512_v40, %v731_v58  ;;  %v732_v50 = vmul.f32 %v3506_v38, %v648_v33 }
 0x124   : > { %v788_v5 = vmax.f32 %v756_v60, 0.0  ;;  %v757_v6 = vadd.f32 %v3512_v40, %v718_v61  ;;  %v804_v7 = vmax.f32 %v772_v63, 0.0  ;;  %v773_v8 = vadd.f32 %v3512_v40, %v734_v0 }
 0x125   : > { %v786_v9 = vmax.f32 %v754_v1, 0.0  ;;  %v755_v11 = vadd.f32 %v3512_v40, %v716_v2  ;;  %v802_v12 = vmax.f32 %v770_v4, 0.0  ;;  %v3567_v52 = vrot.slane %v3491_v28, %v1509_v25 }
 0x126   : > { %821 = vst [vmem:[#allocation2 + $0x31] sm:$0xff] %v788_v5  ;;  %v789_v15 = vmax.f32 %v757_v6, 0.0  ;;  %837 = vst [vmem:[#allocation2 + $0xf1] sm:$0xff] %v804_v7  ;;  %v805_v16 = vmax.f32 %v773_v8, 0.0  ;;  %v3587_v61 = vadd.f32 %v1319_v26, %v1183_v46  ;;  %v3605_v4 = vadd.f32 %v3512_v40, %v732_v50 }
 0x127   : > { %819 = vst [vmem:[#allocation2 + $0x19] sm:$0xff] %v786_v9  ;;  %v787_v18 = vmax.f32 %v755_v11, 0.0  ;;  %v3287_v21 = vpop.f32.mrb[4].mxu0  ;;  %835 = vst [vmem:[#allocation2 + $0xd9] sm:$0xff] %v802_v12 }
 0x128   : > { %822 = vst [vmem:[#allocation2 + $0x39] sm:$0xff] %v789_v15  ;;  %v721_v23 = vmul.f32 %v3287_v21, %v3506_v38  ;;  %v597_v24 = vpop.f32.mrb[5].mxu0  ;;  %838 = vst [vmem:[#allocation2 + $0xf9] sm:$0xff] %v805_v16 }
 0x129   : > { %820 = vst [vmem:[#allocation2 + $0x21] sm:$0xff] %v787_v18  ;;  %v719_v31 = vmul.f32 %v3506_v38, %v597_v24  ;;  %v3288_v32 = vpop.f32.mrb[6].mxu0  ;;  %5543 = vst [vmem:[#allocation3_spill] sm:$0xff] %v3605_v4 }
 0x12a   : > { %v760_v39 = vadd.f32 %v3512_v40, %v721_v23  ;;  %v600_v43 = vpop.f32.mrb[7].mxu0  ;;  %v722_v49 = vmul.f32 %v3288_v32, %v3506_v38 }
 0x12b   : > { %v758_v47 = vadd.f32 %v3512_v40, %v719_v31  ;;  %v720_v44 = vmul.f32 %v3506_v38, %v600_v43 }
 0x12c   : > { %v792_v48 = vmax.f32 %v760_v39, 0.0  ;;  %v3597_v1 = vadd.f32 %v3512_v40, %v722_v49 }
 0x12d   : > { %v859_v51 = vld [vmem:[#allocation2 + $0x30] sm:$0xff]  ;;  %v790_v54 = vmax.f32 %v758_v47, 0.0  ;;  %v3600_v2 = vadd.f32 %v3512_v40, %v720_v44 }
 0x12e   : > { %v3573_v55 = vmul.f32 %v3494_v29, %v859_v51  ;;  %v3576_v56 = vmul.f32 %v3501_v37, %v859_v51  ;;  %825 = vst [vmem:[#allocation2 + $0x61] sm:$0xff] %v792_v48  ;;  %v3579_v58 = vmul.f32 %v3544_v27, %v859_v51  ;;  %v3582_v59 = vmul.f32 %v3549_v34, %v859_v51  ;;  %v856_v28 = vld [vmem:[#allocation2 + $0x18] sm:$0xff] }
 0x12f   : > { %v3585_v60 = vmul.f32 %v3552_v35, %v859_v51  ;;  %823 = vst [vmem:[#allocation2 + $0x49] sm:$0xff] %v790_v54  ;;  %v3589_v62 = vpop.f32.mrb[8].mxu0  ;;  %v3592_v63 = vmul.f32 %v3564_v45, %v859_v51  ;;  %v3594_v0 = vld [vmem:[#allocation2 + $0x38] sm:$0xff]  ;;  %v3608_v5 = vmul.f32 %v3515_v41, %v859_v51  ;;  %v3612_v7 = vmul.f32 %v3567_v52, %v859_v51  ;;  %v861_v9 = vld [vmem:[#allocation2 + $0x40] sm:$0x3] }
 0x130   : > { %v3602_v3 = vpop.f32.mrb[9].mxu0  ;;  %v1080_v6 = vrot.slane %v3573_v55, 1  ;;  %v3615_v8 = vmul.f32 %v3570_v53, %v859_v51  ;;  %v1680_v12 = vrot.slane %v3579_v58, 1  ;;  %v3622_v13 = vmul.f32 %v3515_v41, %v856_v28  ;;  %v1464_v20 = vld [vmem:[#allocation2 + $0x40] sm:$0x3] }
 0x131   : > { %v3617_v10 = vpop.f32.mrb[10].mxu0  ;;  %v3625_v14 = vmul.f32 %v3494_v29, %v856_v28  ;;  %v980_v19 = vmul.f32 %v3494_v29, %v3594_v0  ;;  %v3635_v21 = vmul.f32 %v3501_v37, %v856_v28  ;;  %v1511_v22 = vmul.f32 %v3567_v52, %v856_v28  ;;  %v2066_v54 = vld [vmem:[#allocation2 + $0x40] sm:$0x3] }
 0x132   : > { %v3627_v15 = vpop.f32.mrb[11].mxu0  ;;  %v3639_v23 = vmul.f32 %v3544_v27, %v856_v28  ;;  %v981_v24 = vmul.f32 %v3494_v29, %v861_v9  ;;  %v3643_v25 = vmul.f32 %v3549_v34, %v856_v28  ;;  %v3647_v31 = vmul.f32 %v3501_v37, %v3594_v0  ;;  %v857_v55 = vld [vmem:[#allocation2 + $0x20] sm:$0xff] }
 0x133   : > { %v1081_v30 = vrot.slane %v980_v19, 1  ;;  %v1226_v32 = vmul.f32 %v3501_v37, %v861_v9  ;;  %v1075_v33 = vrot.slane %v3625_v14, 1  ;;  %v1583_v39 = vmul.f32 %v3544_v27, %v3594_v0 }
 0x134   : > { %v1083_v36 = vrot.slane %v981_v24, 1  ;;  %v1584_v43 = vmul.f32 %v3544_v27, %v1464_v20  ;;  %v910_v42 = vmul.f32 %v3515_v41, %v3594_v0  ;;  %v5516_v46 = vrot.slane %v3647_v31, 2  ;;  %v858_v24 = vld [vmem:[#allocation2 + $0x28] sm:$0x3] }
 0x135   : > { %v1328_v26 = vrot.slane %v1226_v32, 2  ;;  %v3659_v47 = vmul.f32 %v3549_v34, %v3594_v0  ;;  %v1681_v50 = vrot.slane %v1583_v39, 1  ;;  %v1828_v51 = vmul.f32 %v3549_v34, %v1464_v20 }
 0x136   : > { %v1084_v44 = vsel %vm1069_vm0, %v1081_v30, %v1083_v36  ;;  %v1543_v28 = vadd.f32 %v1511_v22, %v1427_v57  ;;  %v1675_v9 = vrot.slane %v3639_v23, 1  ;;  %v1683_v19 = vrot.slane %v1584_v43, 1 }
 0x137   : > { %v3661_v48 = vpop.f32.mrb[12].mxu0  ;;  %v3673_v16 = vsel %vm1069_vm0, %v1080_v6, %v1081_v30  ;;  %v3675_v36 = vadd.f32 %v1084_v44, %v910_v42  ;;  %v1514_v20 = vmul.f32 %v3567_v52, %v3594_v0  ;;  %v2185_v39 = vmul.f32 %v3552_v35, %v3594_v0 }
 0x138   : > { %5544 = vst [vmem:[#allocation4_spill] sm:$0xff] %v3661_v48  ;;  %v3666_v58 = vpop.f32.mrb[13].mxu0  ;;  %v3684_v57 = vsel %vm1314_vm1, %v5516_v46, %v1328_v26  ;;  %v5517_v22 = vrot.slane %v3659_v47, 2  ;;  %v1927_v23 = vrot.slane %v1828_v51, 2  ;;  %v2186_v43 = vmul.f32 %v3552_v35, %v2066_v54 }
 0x139   : > { %5545 = vst [vmem:[#allocation5_spill] sm:$0xff] %v3666_v58  ;;  %v3670_v32 = vpop.f32.mrb[14].mxu0  ;;  %5547 = vst [vmem:[#allocation7_spill] sm:$0xff] %v3684_v57  ;;  %v3689_v6 = vsel %vm1069_vm0, %v1680_v12, %v1681_v50  ;;  %v3693_v30 = vmul.f32 %v3570_v53, %v3594_v0  ;;  %v977_v42 = vmul.f32 %v3494_v29, %v857_v55  ;;  %v2281_v12 = vrot.slane %v2185_v39, 1  ;;  %v1461_v58 = vld [vmem:[#allocation2 + $0x28] sm:$0x3] }
 0x13a   : > { %5546 = vst [vmem:[#allocation6_spill] sm:$0xff] %v3670_v32  ;;  %v978_v44 = vmul.f32 %v3494_v29, %v858_v24  ;;  %v3698_v11 = vsel %vm1069_vm0, %v1681_v50, %v1683_v19  ;;  %v2429_v26 = vmul.f32 %v3564_v45, %v3594_v0  ;;  %v2430_v51 = vmul.f32 %v3564_v45, %v2066_v54  ;;  %v3715_v57 = vpop.f32.mrb[15].mxu0 }
 0x13b   : > { %v1222_v46 = vmul.f32 %v3501_v37, %v857_v55  ;;  %v1076_v14 = vrot.slane %v977_v42, 1  ;;  %v1223_v18 = vmul.f32 %v3501_v37, %v858_v24  ;;  %v3708_v17 = vsel %vm1314_vm1, %v5517_v22, %v1927_v23  ;;  %5548 = vst [vmem:[#allocation8_spill] sm:$0xff] %v3715_v57 }
 0x13c   : > { %v1078_v49 = vrot.slane %v978_v44, 1  ;;  %v2283_v32 = vrot.slane %v2186_v43, 1  ;;  %v908_v50 = vmul.f32 %v3515_v41, %v857_v55  ;;  %v1512_v39 = vmul.f32 %v3567_v52, %v857_v55 }
 0x13d   : > { %v1321_v19 = vrot.slane %v1222_v46, 2  ;;  %v1077_v0 = vsel %vm1069_vm0, %v1075_v33, %v1076_v14  ;;  %v1323_v4 = vrot.slane %v1223_v18, 2  ;;  %v2525_v42 = vrot.slane %v2429_v26, 2  ;;  %v865_v18 = vld [vmem:[#allocation2 + $0x60] sm:$0xff] }
 0x13e   : > { %v1079_v54 = vsel %vm1069_vm0, %v1076_v14, %v1078_v49  ;;  %v2527_v44 = vrot.slane %v2430_v51, 2  ;;  %v1580_v48 = vmul.f32 %v3544_v27, %v857_v55  ;;  %v5549_v23 = vrot.slane %v3585_v60, 1 }
 0x13f   : > { %v1185_v24 = vadd.f32 %v1079_v54, %v908_v50  ;;  %v1184_v46 = vadd.f32 %v1077_v0, %v3622_v13  ;;  %v1581_v33 = vmul.f32 %v3544_v27, %v1461_v58  ;;  %v1824_v49 = vmul.f32 %v3549_v34, %v857_v55 }
 0x140   : > { %v2282_v43 = vsel %vm1069_vm0, %v5549_v23, %v2281_v12  ;;  %v1324_v14 = vsel %vm1314_vm1, %v1321_v19, %v1323_v4  ;;  %v1544_v26 = vadd.f32 %v1512_v39, %v3587_v61  ;;  %v1676_v51 = vrot.slane %v1580_v48, 1 }
 0x141   : > { %v1825_v50 = vmul.f32 %v3549_v34, %v1461_v58  ;;  %v2284_v54 = vsel %vm1069_vm0, %v2281_v12, %v2283_v32  ;;  %v1430_v22 = vadd.f32 %v1324_v14, %v1185_v24  ;;  %v1678_v60 = vrot.slane %v1581_v33, 1 }
 0x142   : > { %v1920_v57 = vrot.slane %v1824_v49, 2  ;;  %v1677_v23 = vsel %vm1069_vm0, %v1675_v9, %v1676_v51  ;;  %v3729_v0 = vmul.f32 %v3494_v29, %v865_v18  ;;  %v3732_v55 = vmul.f32 %v3501_v37, %v865_v18 }
 0x143   : > { %v1922_v13 = vrot.slane %v1825_v50, 2  ;;  %v5550_v4 = vrot.slane %v3592_v63, 2  ;;  %v5551_v48 = vrot.slane %v3635_v21, 2  ;;  %v1679_v32 = vsel %vm1069_vm0, %v1676_v51, %v1678_v60 }
 0x144   : > { %v1787_v12 = vadd.f32 %v1677_v23, %v1543_v28  ;;  %v2528_v9 = vsel %vm1314_vm1, %v2525_v42, %v2527_v44  ;;  %v1788_v24 = vadd.f32 %v1679_v32, %v1544_v26  ;;  %v5552_v33 = vrot.slane %v3643_v25, 2  ;;  %v862_v44 = vld [vmem:[#allocation2 + $0x48] sm:$0xff] }
 0x145   : > { %v2526_v61 = vsel %vm1314_vm1, %v5550_v4, %v2525_v42  ;;  %v1322_v58 = vsel %vm1314_vm1, %v5551_v48, %v1321_v19  ;;  %v1546_v14 = vadd.f32 %v1514_v20, %v1430_v22  ;;  %v1923_v63 = vsel %vm1314_vm1, %v1920_v57, %v1922_v13 }
 0x146   : > { %v1429_v39 = vadd.f32 %v1322_v58, %v1184_v46  ;;  %v1921_v49 = vsel %vm1314_vm1, %v5552_v33, %v1920_v57  ;;  %v3747_v4 = vmul.f32 %v3515_v41, %v865_v18  ;;  %v2032_v21 = vadd.f32 %v1923_v63, %v1788_v24 }
 0x147   : > { %v2031_v50 = vadd.f32 %v1921_v49, %v1787_v12  ;;  %v1090_v19 = vrot.slane %v3729_v0, 1  ;;  %v3752_v42 = vmul.f32 %v3567_v52, %v865_v18  ;;  %v3756_v46 = vmul.f32 %v3544_v27, %v865_v18 }
 0x148   : > { %v3759_v20 = vmul.f32 %v3549_v34, %v865_v18  ;;  %v3762_v57 = vmul.f32 %v3570_v53, %v865_v18  ;;  %v2149_v22 = vadd.f32 %v3693_v30, %v2032_v21  ;;  %v3766_v26 = vmul.f32 %v3552_v35, %v865_v18 }
 0x149   : > { %v2148_v25 = vadd.f32 %v3615_v8, %v2031_v50  ;;  %v3769_v51 = vmul.f32 %v3564_v45, %v865_v18  ;;  %v1186_v8 = vadd.f32 %v3673_v16, %v3608_v5  ;;  %v3774_v23 = vmul.f32 %v3494_v29, %v862_v44 }
 0x14a   : > { %v3777_v13 = vmul.f32 %v3501_v37, %v862_v44  ;;  %v5553_v48 = vrot.slane %v3647_v31, 2  ;;  %v5554_v30 = vrot.slane %v3576_v56, 2  ;;  %v2393_v32 = vadd.f32 %v2284_v54, %v2149_v22 }
 0x14b   : > { %v2392_v60 = vadd.f32 %v2282_v43, %v2148_v25  ;;  %v1515_v18 = vmul.f32 %v3567_v52, %v862_v44  ;;  %v1545_v24 = vadd.f32 %v3612_v7, %v1429_v39  ;;  %v3787_v16 = vmul.f32 %v3515_v41, %v862_v44 }
 0x14c   : > { %v1327_v58 = vsel %vm1314_vm1, %v5554_v30, %v5553_v48  ;;  %v3790_v43 = vmul.f32 %v3544_v27, %v862_v44  ;;  %v3793_v33 = vmul.f32 %v3549_v34, %v862_v44  ;;  %v2637_v31 = vadd.f32 %v2528_v9, %v2393_v32 }
 0x14d   : > { %v1431_v12 = vadd.f32 %v1327_v58, %v1186_v8  ;;  %v2636_v5 = vadd.f32 %v2526_v61, %v2392_v60  ;;  %v1789_v49 = vadd.f32 %v3689_v6, %v1545_v24  ;;  %v5555_v25 = vrot.slane %v3659_v47, 2  ;;  %v883_v58 = vld [vmem:[#allocation2 + $0xf0] sm:$0xff] }
 0x14e   : > { %v5556_v22 = vrot.slane %v3582_v59, 2  ;;  %v2867_v6 = vmul.f32 %v2637_v31, %v2637_v31  ;;  %v793_v48 = vmax.f32 %v3597_v1, 0.0  ;;  %v791_v30 = vmax.f32 %v3600_v2, 0.0 }
 0x14f   : > { %v3149_v50 = vpack.c.bf16 %v2637_v31, %v2636_v5  ;;  %v3802_v21 = vadd.f32 %v1515_v18, %v1431_v12  ;;  %v2118_v12 = vmul.f32 %v3570_v53, %v862_v44  ;;  %v3816_v18 = vmul.f32 %v3552_v35, %v862_v44 }
 0x150   : > { %v1926_v8 = vsel %vm1314_vm1, %v5556_v22, %v5555_v25  ;;  %v3818_v47 = vadd.f32 %v2637_v31, %v2636_v5  ;;  %826 = vst [vmem:[#allocation2 + $0x69] sm:$0xff] %v793_v48  ;;  %824 = vst [vmem:[#allocation2 + $0x51] sm:$0xff] %v791_v30  ;;  %v2866_v59 = vmul.f32 %v2636_v5, %v2636_v5 }
 0x151   : > { %3150 = vst [vmem:[%s3439_s13] sm:$0xff] %v3149_v50   ;;  %v2033_v32 = vadd.f32 %v1926_v8, %v1789_v49  ;;  %v725_v24 = vmul.f32 %v3589_v62, %v3506_v38  ;;  %v723_v1 = vmul.f32 %v3506_v38, %v3602_v3  ;;  %v726_v2 = vmul.f32 %v3617_v10, %v3506_v38  ;;  %v3826_v49 = vpop.f32.mrb[4].mxu1 }
 0x152   : > { %5557 = vst [vmem:[#allocation9_spill] sm:$0xff] %v3826_v49  ;;  %v3829_v50 = vmul.f32 %v3564_v45, %v862_v44  ;;  %v1790_v31 = vadd.f32 %v3698_v11, %v1546_v14  ;;  %v724_v25 = vmul.f32 %v3506_v38, %v3627_v15  ;;  %v3835_v5 = vmul.f32 %v3494_v29, %v883_v58  ;;  %v5559_v44 = vld [vmem:[#allocation7_spill] sm:$0xff] }
 0x153   : > { %v3837_v62 = vadd.f32 %v2867_v6, %v2866_v59  ;;  %v764_v3 = vadd.f32 %v3512_v40, %v725_v24  ;;  %v762_v22 = vadd.f32 %v3512_v40, %v723_v1  ;;  %v765_v10 = vadd.f32 %v3512_v40, %v726_v2 }
 0x154   : > { %5558 = vst [vmem:[#allocation10_spill] sm:$0xff] %v3835_v5  ;;  %v3845_v48 = vadd.f32 %v5559_v44, %v3675_v36  ;;  %v763_v11 = vadd.f32 %v3512_v40, %v724_v25  ;;  %v3849_v38 = vmul.f32 %v3501_v37, %v883_v58  ;;  %v3852_v30 = vmul.f32 %v3544_v27, %v883_v58  ;;  %v3888_v25 = vld [vmem:[#allocation2 + $0xd8] sm:$0xff] }
 0x155   : > { %v796_v15 = vmax.f32 %v764_v3, 0.0  ;;  %v794_v14 = vmax.f32 %v762_v22, 0.0  ;;  %v797_v6 = vmax.f32 %v765_v10, 0.0  ;;  %v3854_v59 = vadd.f32 %v2118_v12, %v2033_v32  ;;  %v3868_v32 = vpop.f32.mrb[5].mxu1  ;;  %5569 = vst [vmem:[#allocation19_spill] sm:$0xff] %v3888_v25 }
 0x156   : > { %5560 = vst [vmem:[#allocation7_spill] sm:$0xff] %v3849_v38  ;;  %5561 = vst [vmem:[#allocation11_spill] sm:$0xff] %v3852_v30  ;;  %v3858_v1 = vadd.f32 %v3708_v17, %v1790_v31  ;;  %v795_v36 = vmax.f32 %v763_v11, 0.0  ;;  %v3861_v40 = vmul.f32 %v3515_v41, %v883_v58  ;;  %v3866_v3 = vmul.f32 %v3549_v34, %v883_v58 }
 0x157   : > { %829 = vst [vmem:[#allocation2 + $0x91] sm:$0xff] %v796_v15  ;;  %827 = vst [vmem:[#allocation2 + $0x79] sm:$0xff] %v794_v14  ;;  %v866_v12 = vld [vmem:[#allocation2 + $0x68] sm:$0xff]  ;;  %v867_v22 = vld [vmem:[#allocation2 + $0x70] sm:$0x3]  ;;  %v3871_v31 = vmul.f32 %v3567_v52, %v883_v58  ;;  %v3875_v44 = vmul.f32 %v3570_v53, %v883_v58  ;;  %v3878_v11 = vmul.f32 %v3552_v35, %v883_v58 }
 0x158   : > { %830 = vst [vmem:[#allocation2 + $0x99] sm:$0xff] %v797_v6  ;;  %5562 = vst [vmem:[#allocation12_spill] sm:$0xff] %v3861_v40  ;;  %v1470_v17 = vld [vmem:[#allocation2 + $0x70] sm:$0x3]  ;;  %v986_v15 = vmul.f32 %v3494_v29, %v866_v12  ;;  %v987_v14 = vmul.f32 %v3494_v29, %v867_v22  ;;  %v3883_v6 = vmul.f32 %v3501_v37, %v866_v12  ;;  %v864_v56 = vld [vmem:[#allocation2 + $0x58] sm:$0x3] }
 0x159   : > { %5563 = vst [vmem:[#allocation13_spill] sm:$0xff] %v3866_v3  ;;  %5564 = vst [vmem:[#allocation14_spill] sm:$0xff] %v3868_v32  ;;  %v1232_v10 = vmul.f32 %v3501_v37, %v867_v22  ;;  %v1589_v2 = vmul.f32 %v3544_v27, %v866_v12  ;;  %v1590_v54 = vmul.f32 %v3544_v27, %v1470_v17  ;;  %v2072_v60 = vld [vmem:[#allocation2 + $0x70] sm:$0x3] }
 0x15a   : > { %828 = vst [vmem:[#allocation2 + $0x81] sm:$0xff] %v795_v36  ;;  %5565 = vst [vmem:[#allocation15_spill] sm:$0xff] %v3871_v31  ;;  %v3886_v36 = vmul.f32 %v3564_v45, %v883_v58  ;;  %v3895_v28 = vmul.f32 %v3515_v41, %v3888_v25  ;;  %v1091_v61 = vrot.slane %v986_v15, 1  ;;  %v1093_v24 = vrot.slane %v987_v14, 1  ;;  %v3919_v39 = vld [vmem:[#allocation2 + $0x50] sm:$0xff] }
 0x15b   : > { %5566 = vst [vmem:[#allocation16_spill] sm:$0xff] %v3875_v44  ;;  %5567 = vst [vmem:[#allocation17_spill] sm:$0xff] %v3878_v11  ;;  %v3898_v8 = vmul.f32 %v3549_v34, %v866_v12  ;;  %v1834_v63 = vmul.f32 %v3549_v34, %v1470_v17  ;;  %v3904_v22 = vmul.f32 %v3494_v29, %v3888_v25  ;;  %v1338_v58 = vrot.slane %v1232_v10, 2  ;;  %v3947_v44 = vpop.f32.mrb[6].mxu1 }
 0x15c   : > { %5568 = vst [vmem:[#allocation18_spill] sm:$0xff] %v3886_v36  ;;  %5570 = vst [vmem:[#allocation20_spill] sm:$0xff] %v3895_v28  ;;  %v3908_v9 = vmul.f32 %v3501_v37, %v3888_v25  ;;  %v3912_v15 = vmul.f32 %v3567_v52, %v3888_v25  ;;  %v914_v14 = vmul.f32 %v3515_v41, %v866_v12  ;;  %v1691_v38 = vrot.slane %v1589_v2, 1 }
 0x15d   : > { %5571 = vst [vmem:[#allocation21_spill] sm:$0xff] %v3904_v22  ;;  %v3917_v17 = vmul.f32 %v3567_v52, %v866_v12  ;;  %v3924_v3 = vsel %vm1069_vm0, %v1090_v19, %v1091_v61  ;;  %v1094_v31 = vsel %vm1069_vm0, %v1091_v61, %v1093_v24  ;;  %v1693_v40 = vrot.slane %v1590_v54, 1  ;;  %5575 = vst [vmem:[#allocation24_spill] sm:$0xff] %v3947_v44 }
 0x15e   : > { %5572 = vst [vmem:[#allocation22_spill] sm:$0xff] %v3908_v9  ;;  %5573 = vst [vmem:[#allocation23_spill] sm:$0xff] %v3912_v15  ;;  %v1937_v15 = vrot.slane %v1834_v63, 2  ;;  %v2191_v10 = vmul.f32 %v3552_v35, %v866_v12  ;;  %v2192_v7 = vmul.f32 %v3552_v35, %v2072_v60  ;;  %v3931_v28 = vmul.f32 %v3564_v45, %v866_v12 }
 0x15f   : > { %v3934_v32 = vmul.f32 %v3564_v45, %v2072_v60  ;;  %v983_v0 = vmul.f32 %v3494_v29, %v3919_v39  ;;  %v984_v19 = vmul.f32 %v3494_v29, %v864_v56  ;;  %v3939_v61 = vadd.f32 %v1094_v31, %v914_v14 }
 0x160   : > { %v5574_v54 = vrot.slane %v3883_v6, 2  ;;  %v2121_v24 = vmul.f32 %v3570_v53, %v866_v12  ;;  %v2291_v2 = vrot.slane %v2191_v10, 1  ;;  %v5576_v60 = vrot.slane %v3756_v46, 1 }
 0x161   : > { %v1086_v30 = vrot.slane %v983_v0, 1  ;;  %v1088_v5 = vrot.slane %v984_v19, 1  ;;  %v1228_v31 = vmul.f32 %v3501_v37, %v3919_v39  ;;  %v3957_v14 = vsel %vm1069_vm0, %v1691_v38, %v1693_v40 }
 0x162   : > { %v3944_v63 = vsel %vm1314_vm1, %v5574_v54, %v1338_v58  ;;  %v3952_v49 = vsel %vm1069_vm0, %v5576_v60, %v1691_v38  ;;  %5577 = vst [vmem:[#allocation25_spill] sm:$0xff] %v3957_v14  ;;  %v2293_v58 = vrot.slane %v2192_v7, 1  ;;  %v912_v12 = vmul.f32 %v3515_v41, %v3919_v39  ;;  %v1467_v54 = vld [vmem:[#allocation2 + $0x58] sm:$0x3]  ;;  %v3972_v7 = vpop.f32.mrb[7].mxu1 }
 0x163   : > { %v1229_v10 = vmul.f32 %v3501_v37, %v864_v56  ;;  %v5578_v46 = vrot.slane %v3898_v8, 2  ;;  %v2535_v0 = vrot.slane %v3931_v28, 2  ;;  %v2537_v19 = vrot.slane %v3934_v32, 2  ;;  %5581 = vst [vmem:[#allocation27_spill] sm:$0xff] %v3972_v7 }
 0x164   : > { %v5580_v44 = vrot.slane %v3774_v23, 1  ;;  %v5582_v40 = vrot.slane %v3766_v26, 1  ;;  %v1089_v9 = vsel %vm1069_vm0, %v1086_v30, %v1088_v5  ;;  %v1331_v22 = vrot.slane %v1228_v31, 2 }
 0x165   : > { %v3965_v60 = vsel %vm1314_vm1, %v5578_v46, %v1937_v15  ;;  %v1516_v15 = vmul.f32 %v3567_v52, %v3919_v39  ;;  %v1333_v46 = vrot.slane %v1229_v10, 2  ;;  %v1586_v28 = vmul.f32 %v3544_v27, %v3919_v39 }
 0x166   : > { %5579 = vst [vmem:[#allocation26_spill] sm:$0xff] %v3965_v60  ;;  %v1087_v38 = vsel %vm1069_vm0, %v5580_v44, %v1086_v30  ;;  %v2292_v56 = vsel %vm1069_vm0, %v5582_v40, %v2291_v2  ;;  %v1587_v23 = vmul.f32 %v3544_v27, %v1467_v54  ;;  %v1830_v32 = vmul.f32 %v3549_v34, %v3919_v39  ;;  %v2069_v44 = vld [vmem:[#allocation2 + $0x58] sm:$0x3] }
 0x167   : > { %v2294_v26 = vsel %vm1069_vm0, %v2291_v2, %v2293_v58  ;;  %v1188_v40 = vadd.f32 %v1087_v38, %v3787_v16  ;;  %v1548_v5 = vadd.f32 %v1516_v15, %v3845_v48  ;;  %v1831_v30 = vmul.f32 %v3549_v34, %v1467_v54 }
 0x168   : > { %v1189_v31 = vadd.f32 %v1089_v9, %v912_v12  ;;  %v1686_v7 = vrot.slane %v1586_v28, 1  ;;  %v1688_v10 = vrot.slane %v1587_v23, 1  ;;  %v1930_v36 = vrot.slane %v1830_v32, 2 }
 0x169   : > { %v1932_v11 = vrot.slane %v1831_v30, 2  ;;  %v2119_v25 = vmul.f32 %v3570_v53, %v3919_v39  ;;  %v2188_v60 = vmul.f32 %v3552_v35, %v3919_v39  ;;  %v2189_v14 = vmul.f32 %v3552_v35, %v2069_v44 }
 0x16a   : > { %v1334_v2 = vsel %vm1314_vm1, %v1331_v22, %v1333_v46  ;;  %v5583_v16 = vrot.slane %v3790_v43, 1  ;;  %v1689_v9 = vsel %vm1069_vm0, %v1686_v7, %v1688_v10  ;;  %v5584_v58 = vrot.slane %v3793_v33, 2 }
 0x16b   : > { %v1792_v38 = vadd.f32 %v1689_v9, %v1548_v5  ;;  %v1933_v15 = vsel %vm1314_vm1, %v1930_v36, %v1932_v11  ;;  %v2151_v28 = vadd.f32 %v2119_v25, %v3858_v1  ;;  %v2286_v23 = vrot.slane %v2188_v60, 1 }
 0x16c   : > { %v1687_v48 = vsel %vm1069_vm0, %v5583_v16, %v1686_v7  ;;  %v1931_v12 = vsel %vm1314_vm1, %v5584_v58, %v1930_v36  ;;  %v2288_v32 = vrot.slane %v2189_v14, 1  ;;  %v2432_v43 = vmul.f32 %v3564_v45, %v3919_v39 }
 0x16d   : > { %v1791_v54 = vadd.f32 %v1687_v48, %v3802_v21  ;;  %v2433_v46 = vmul.f32 %v3564_v45, %v2069_v44  ;;  %v5585_v7 = vrot.slane %v3777_v13, 2  ;;  %v1434_v30 = vadd.f32 %v1334_v2, %v1189_v31  ;;  %v871_v21 = vld [vmem:[#allocation2 + $0x90] sm:$0xff] }
 0x16e   : > { %v2036_v16 = vadd.f32 %v1933_v15, %v1792_v38  ;;  %v5586_v5 = vrot.slane %v3816_v18, 1  ;;  %v2289_v1 = vsel %vm1069_vm0, %v2286_v23, %v2288_v32  ;;  %v2530_v25 = vrot.slane %v2432_v43, 2 }
 0x16f   : > { %v1332_v33 = vsel %vm1314_vm1, %v5585_v7, %v1331_v22  ;;  %v2035_v10 = vadd.f32 %v1931_v12, %v1791_v54  ;;  %v2532_v36 = vrot.slane %v2433_v46, 2  ;;  %v2395_v13 = vadd.f32 %v2289_v1, %v2151_v28  ;;  %v868_v46 = vld [vmem:[#allocation2 + $0x78] sm:$0xff] }
 0x170   : > { %v2287_v11 = vsel %vm1069_vm0, %v5586_v5, %v2286_v23  ;;  %v2153_v14 = vadd.f32 %v2121_v24, %v2036_v16  ;;  %v5587_v22 = vrot.slane %v3829_v50, 2  ;;  %v4022_v18 = vmul.f32 %v3494_v29, %v871_v21 }
 0x171   : > { %v2152_v39 = vadd.f32 %v3762_v57, %v2035_v10  ;;  %v2394_v60 = vadd.f32 %v2287_v11, %v3854_v59  ;;  %v2533_v31 = vsel %vm1314_vm1, %v2530_v25, %v2532_v36  ;;  %v4025_v2 = vmul.f32 %v3501_v37, %v871_v21 }
 0x172   : > { %v2531_v44 = vsel %vm1314_vm1, %v5587_v22, %v2530_v25  ;;  %v2397_v9 = vadd.f32 %v2294_v26, %v2153_v14  ;;  %v2639_v24 = vadd.f32 %v2533_v31, %v2395_v13  ;;  %v5588_v59 = vrot.slane %v3769_v51, 2 }
 0x173   : > { %v2396_v48 = vadd.f32 %v2292_v56, %v2152_v39  ;;  %v2638_v57 = vadd.f32 %v2531_v44, %v2394_v60  ;;  %v2538_v50 = vsel %vm1314_vm1, %v2535_v0, %v2537_v19  ;;  %v1433_v12 = vadd.f32 %v1332_v33, %v1188_v40 }
 0x174   : > { %v2536_v58 = vsel %vm1314_vm1, %v5588_v59, %v2535_v0  ;;  %v4032_v54 = vmul.f32 %v3544_v27, %v871_v21  ;;  %v4034_v15 = vadd.f32 %v2538_v50, %v2397_v9  ;;  %v4038_v26 = vadd.f32 %v3917_v17, %v1434_v30  ;;  %v4155_v9 = vld [vmem:[#allocation2 + $0x80] sm:$0xff] }
 0x175   : > { %v2640_v38 = vadd.f32 %v2536_v58, %v2396_v48  ;;  %v3154_v28 = vpack.c.bf16 %v2639_v24, %v2638_v57  ;;  %v2829_v56 = vadd.f32 %v3818_v47, %v2638_v57  ;;  %v2868_v23 = vmul.f32 %v2638_v57, %v2638_v57  ;;  %v872_v48 = vld [vmem:[#allocation2 + $0x98] sm:$0xff] }
 0x176   : > { %v4041_v51 = vmul.f32 %v3515_v41, %v871_v21  ;;  %v1100_v0 = vrot.slane %v4022_v18, 1  ;;  %v4048_v43 = vmul.f32 %v3549_v34, %v871_v21  ;;  %v2869_v47 = vmul.f32 %v2639_v24, %v2639_v24 }
 0x177   : > { %3226 = vst [vmem:[%s3439_s13 + $0x8] sm:$0xff] %v3154_v28   ;;  %v3159_v19 = vpack.c.bf16 %v4034_v15, %v2640_v38  ;;  %v2830_v40 = vadd.f32 %v2829_v56, %v2639_v24  ;;  %v2899_v17 = vadd.f32 %v3837_v62, %v2868_v23  ;;  %v4052_v7 = vmul.f32 %v3567_v52, %v871_v21  ;;  %v1476_v23 = vld [vmem:[#allocation2 + $0xa0] sm:$0x3] }
 0x178   : > { %v1700_v33 = vrot.slane %v4032_v54, 1  ;;  %v2870_v10 = vmul.f32 %v2640_v38, %v2640_v38  ;;  %v4059_v16 = vmul.f32 %v3552_v35, %v871_v21  ;;  %v1190_v5 = vadd.f32 %v3924_v3, %v3747_v4 }
 0x179   : > { %3227 = vst [vmem:[%s3439_s13 + $0x10] sm:$0xff] %v3159_v19   ;;  %v4056_v30 = vadd.f32 %v2830_v40, %v2640_v38  ;;  %v2900_v11 = vadd.f32 %v2899_v17, %v2869_v47  ;;  %v4064_v1 = vmul.f32 %v3564_v45, %v871_v21  ;;  %v4067_v62 = vmul.f32 %v3494_v29, %v868_v46 }
 0x17a   : > { %v4070_v25 = vmul.f32 %v3501_v37, %v868_v46  ;;  %v4074_v36 = vmul.f32 %v4034_v15, %v4034_v15  ;;  %v5589_v14 = vrot.slane %v3883_v6, 2  ;;  %v5590_v4 = vrot.slane %v3732_v55, 2 }
 0x17b   : > { %v1549_v60 = vadd.f32 %v3752_v42, %v1433_v12  ;;  %v4083_v13 = vadd.f32 %v2900_v11, %v2870_v10  ;;  %v4086_v22 = vmul.f32 %v3570_v53, %v871_v21  ;;  %v1519_v31 = vmul.f32 %v3567_v52, %v868_v46  ;;  %v873_v42 = vld [vmem:[#allocation2 + $0xa0] sm:$0x3]  ;;  %v4124_v11 = vpop.f32.mrb[8].mxu1 }
 0x17c   : > { %v1337_v3 = vsel %vm1314_vm1, %v5590_v4, %v5589_v14  ;;  %v4091_v57 = vmul.f32 %v3515_v41, %v868_v46  ;;  %v4094_v55 = vmul.f32 %v3544_v27, %v868_v46  ;;  %v4101_v58 = vmul.f32 %v3549_v34, %v868_v46  ;;  %5593 = vst [vmem:[#allocation28_spill] sm:$0xff] %v4124_v11 }
 0x17d   : > { %v1435_v44 = vadd.f32 %v1337_v3, %v1190_v5  ;;  %v1793_v6 = vadd.f32 %v3952_v49, %v1549_v60  ;;  %v5591_v50 = vrot.slane %v3898_v8, 2  ;;  %v5592_v12 = vrot.slane %v3759_v20, 2 }
 0x17e   : > { %v4109_v28 = vmul.f32 %v3552_v35, %v868_v46  ;;  %v4112_v49 = vmul.f32 %v3564_v45, %v868_v46  ;;  %v992_v56 = vmul.f32 %v3494_v29, %v872_v48  ;;  %v2122_v40 = vmul.f32 %v3570_v53, %v868_v46 }
 0x17f   : > { %v1936_v38 = vsel %vm1314_vm1, %v5592_v12, %v5591_v50  ;;  %v4115_v19 = vadd.f32 %v1519_v31, %v1435_v44  ;;  %v993_v47 = vmul.f32 %v3494_v29, %v873_v42  ;;  %v4120_v8 = vmul.f32 %v3501_v37, %v872_v48  ;;  %v4137_v50 = vpop.f32.mrb[9].mxu1 }
 0x180   : > { %v2037_v17 = vadd.f32 %v1936_v38, %v1793_v6  ;;  %v1101_v10 = vrot.slane %v992_v56, 1  ;;  %v1238_v5 = vmul.f32 %v3501_v37, %v873_v42  ;;  %v4128_v3 = vmul.f32 %v3544_v27, %v872_v48  ;;  %v2078_v42 = vld [vmem:[#allocation2 + $0xa0] sm:$0x3]  ;;  %5594 = vst [vmem:[#allocation29_spill] sm:$0xff] %v4137_v50  ;;  %v1473_v50 = vld [vmem:[#allocation2 + $0x88] sm:$0x3] }
 0x181   : > { %v1103_v4 = vrot.slane %v993_v47, 1  ;;  %v4131_v46 = vmul.f32 %v3544_v27, %v1476_v23  ;;  %v918_v31 = vmul.f32 %v3515_v41, %v872_v48  ;;  %v5529_v6 = vrot.slane %v4120_v8, 2 }
 0x182   : > { %v1348_v38 = vrot.slane %v1238_v5, 2  ;;  %v5528_v56 = vrot.slane %v4128_v3, 1  ;;  %v4142_v47 = vmul.f32 %v3549_v34, %v872_v48  ;;  %v4144_v32 = vadd.f32 %v2122_v40, %v2037_v17  ;;  %v870_v5 = vld [vmem:[#allocation2 + $0x88] sm:$0x3] }
 0x183   : > { %v1104_v12 = vsel %vm1069_vm0, %v1101_v10, %v1103_v4  ;;  %v4149_v39 = vsel %vm1069_vm0, %v1100_v0, %v1101_v10  ;;  %v1522_v24 = vmul.f32 %v3567_v52, %v872_v48  ;;  %v4153_v44 = vmul.f32 %v3549_v34, %v1476_v23 }
 0x184   : > { %v4162_v40 = vsel %vm1069_vm0, %v1700_v33, %v5528_v56  ;;  %v4166_v0 = vmul.f32 %v3552_v35, %v872_v48  ;;  %v4169_v17 = vmul.f32 %v3552_v35, %v2078_v42  ;;  %v4171_v23 = vadd.f32 %v1104_v12, %v918_v31 }
 0x185   : > { %v4174_v10 = vmul.f32 %v3570_v53, %v872_v48  ;;  %v4177_v4 = vmul.f32 %v3564_v45, %v872_v48  ;;  %v4180_v54 = vmul.f32 %v3564_v45, %v2078_v42  ;;  %v4185_v33 = vsel %vm1314_vm1, %v5529_v6, %v1348_v38 }
 0x186   : > { %5595 = vst [vmem:[#allocation30_spill] sm:$0xff] %v4171_v23  ;;  %5596 = vst [vmem:[#allocation31_spill] sm:$0xff] %v4185_v33  ;;  %v989_v31 = vmul.f32 %v3494_v29, %v4155_v9  ;;  %v990_v12 = vmul.f32 %v3494_v29, %v870_v5  ;;  %v916_v48 = vmul.f32 %v3515_v41, %v4155_v9  ;;  %v2301_v38 = vrot.slane %v4166_v0, 1 }
 0x187   : > { %v1234_v42 = vmul.f32 %v3501_v37, %v4155_v9  ;;  %v1235_v60 = vmul.f32 %v3501_v37, %v870_v5  ;;  %v2303_v6 = vrot.slane %v4169_v17, 1  ;;  %v5597_v11 = vrot.slane %v4067_v62, 1  ;;  %v4214_v62 = vpop.f32.mrb[10].mxu1 }
 0x188   : > { %v1096_v56 = vrot.slane %v989_v31, 1  ;;  %v1098_v14 = vrot.slane %v990_v12, 1  ;;  %v1436_v5 = vadd.f32 %v3944_v63, %v3939_v61  ;;  %v1520_v0 = vmul.f32 %v3567_v52, %v4155_v9  ;;  %5599 = vst [vmem:[#allocation32_spill] sm:$0xff] %v4214_v62  ;;  %v5600_v63 = vld [vmem:[#allocation25_spill] sm:$0xff] }
 0x189   : > { %v1341_v21 = vrot.slane %v1234_v42, 2  ;;  %v1343_v18 = vrot.slane %v1235_v60, 2  ;;  %v5598_v12 = vrot.slane %v4070_v25, 2  ;;  %v1593_v61 = vmul.f32 %v3544_v27, %v1473_v50 }
 0x18a   : > { %v1097_v33 = vsel %vm1069_vm0, %v5597_v11, %v1096_v56  ;;  %v1099_v23 = vsel %vm1069_vm0, %v1096_v56, %v1098_v14  ;;  %v1552_v11 = vadd.f32 %v1520_v0, %v1436_v5  ;;  %v1592_v14 = vmul.f32 %v3544_v27, %v4155_v9 }
 0x18b   : > { %v1192_v17 = vadd.f32 %v1097_v33, %v4091_v57  ;;  %v1193_v31 = vadd.f32 %v1099_v23, %v916_v48  ;;  %v1342_v60 = vsel %vm1314_vm1, %v5598_v12, %v1341_v21  ;;  %v1344_v42 = vsel %vm1314_vm1, %v1341_v21, %v1343_v18  ;;  %v2075_v21 = vld [vmem:[#allocation2 + $0x88] sm:$0x3] }
 0x18c   : > { %v1794_v56 = vadd.f32 %v5600_v63, %v4038_v26  ;;  %v1836_v25 = vmul.f32 %v3549_v34, %v4155_v9  ;;  %v1837_v23 = vmul.f32 %v3549_v34, %v1473_v50  ;;  %v1696_v18 = vrot.slane %v1592_v14, 1  ;;  %v5601_v48 = vld [vmem:[#allocation26_spill] sm:$0xff] }
 0x18d   : > { %v4221_v59 = vadd.f32 %v1342_v60, %v1192_v17  ;;  %v1438_v57 = vadd.f32 %v1344_v42, %v1193_v31  ;;  %v1698_v33 = vrot.slane %v1593_v61, 1  ;;  %v2123_v0 = vmul.f32 %v3570_v53, %v4155_v9 }
 0x18e   : > { %v2038_v5 = vadd.f32 %v5601_v48, %v1794_v56  ;;  %v1940_v20 = vrot.slane %v1836_v25, 2  ;;  %v1942_v26 = vrot.slane %v1837_v23, 2  ;;  %v2194_v17 = vmul.f32 %v3552_v35, %v4155_v9 }
 0x18f   : > { %v4229_v12 = vadd.f32 %v1522_v24, %v1438_v57  ;;  %v5602_v31 = vrot.slane %v4094_v55, 1  ;;  %v1699_v50 = vsel %vm1069_vm0, %v1696_v18, %v1698_v33  ;;  %v2195_v14 = vmul.f32 %v3552_v35, %v2075_v21 }
 0x190   : > { %v2155_v42 = vadd.f32 %v2123_v0, %v2038_v5  ;;  %v1796_v63 = vadd.f32 %v1699_v50, %v1552_v11  ;;  %v5603_v24 = vrot.slane %v4101_v58, 2  ;;  %v1943_v57 = vsel %vm1314_vm1, %v1940_v20, %v1942_v26 }
 0x191   : > { %v1697_v60 = vsel %vm1069_vm0, %v5602_v31, %v1696_v18  ;;  %v2296_v25 = vrot.slane %v2194_v17, 1  ;;  %v2298_v23 = vrot.slane %v2195_v14, 1  ;;  %v2438_v55 = vmul.f32 %v3564_v45, %v4155_v9 }
 0x192   : > { %v1795_v61 = vadd.f32 %v1697_v60, %v4115_v19  ;;  %v1941_v56 = vsel %vm1314_vm1, %v5603_v24, %v1940_v20  ;;  %v2439_v48 = vmul.f32 %v3564_v45, %v2075_v21  ;;  %v2040_v33 = vadd.f32 %v1943_v57, %v1796_v63  ;;  %v5613_v24 = vld [vmem:[#allocation19_spill] sm:$0xff] }
 0x193   : > { %v2832_v5 = vadd.f32 %v4056_v30, %v4034_v15  ;;  %v2902_v19 = vadd.f32 %v4083_v13, %v4074_v36  ;;  %v5604_v58 = vrot.slane %v4109_v28, 1  ;;  %v2299_v20 = vsel %vm1069_vm0, %v2296_v25, %v2298_v23 }
 0x194   : > { %v2039_v18 = vadd.f32 %v1941_v56, %v1795_v61  ;;  %v2540_v0 = vrot.slane %v2438_v55, 2  ;;  %v2542_v26 = vrot.slane %v2439_v48, 2  ;;  %v2157_v45 = vadd.f32 %v4174_v10, %v2040_v33  ;;  %v5617_v48 = vld [vmem:[#allocation17_spill] sm:$0xff]  ;;  %v5618_v33 = vld [vmem:[#allocation18_spill] sm:$0xff] }
 0x195   : > { %v2297_v11 = vsel %vm1069_vm0, %v5604_v58, %v2296_v25  ;;  %v2399_v17 = vadd.f32 %v2299_v20, %v2155_v42  ;;  %v5605_v15 = vrot.slane %v4059_v16, 1  ;;  %v2304_v36 = vsel %vm1069_vm0, %v2301_v38, %v2303_v6  ;;  %v885_v20 = vld [vmem:[#allocation2 + $0x100] sm:$0x3] }
 0x196   : > { %v2156_v9 = vadd.f32 %v4086_v22, %v2039_v18  ;;  %v2398_v21 = vadd.f32 %v2297_v11, %v4144_v32  ;;  %v5606_v13 = vrot.slane %v4112_v49, 2  ;;  %v2543_v31 = vsel %vm1314_vm1, %v2540_v0, %v2542_v26  ;;  %v884_v11 = vld [vmem:[#allocation2 + $0xf8] sm:$0xff] }
 0x197   : > { %v2302_v30 = vsel %vm1069_vm0, %v5605_v15, %v2301_v38  ;;  %v2401_v50 = vadd.f32 %v2304_v36, %v2157_v45  ;;  %v2643_v14 = vadd.f32 %v2543_v31, %v2399_v17  ;;  %v5607_v10 = vrot.slane %v4131_v46, 1  ;;  %v5620_v17 = vld [vmem:[#allocation22_spill] sm:$0xff] }
 0x198   : > { %v2541_v28 = vsel %vm1314_vm1, %v5606_v13, %v2540_v0  ;;  %v2400_v60 = vadd.f32 %v2302_v30, %v2156_v9  ;;  %v5608_v32 = vrot.slane %v4128_v3, 1  ;;  %v5609_v6 = vrot.slane %v4177_v4, 2  ;;  %v4286_v3 = vpop.f32.mrb[11].mxu1  ;;  %v5633_v30 = vld [vmem:[#allocation5_spill] sm:$0xff] }
 0x199   : > { %v2642_v22 = vadd.f32 %v2541_v28, %v2398_v21  ;;  %v5610_v49 = vrot.slane %v4064_v1, 2  ;;  %v5611_v42 = vrot.slane %v4180_v54, 2  ;;  %v4284_v46 = vmul.f32 %v3544_v27, %v5613_v24  ;;  %5614 = vst [vmem:[#allocation25_spill] sm:$0xff] %v4286_v3 }
 0x19a   : > { %v4270_v16 = vsel %vm1069_vm0, %v5608_v32, %v5607_v10  ;;  %v5612_v61 = vmov %v5609_v6  ;;  %v5615_v1 = vrot.slane %v4153_v44, 2  ;;  %v5616_v55 = vrot.slane %v4142_v47, 2 }
 0x19b   : > { %v2546_v38 = vsel %vm1314_vm1, %v5610_v49, %v5609_v6  ;;  %v2548_v63 = vsel %vm1314_vm1, %v5612_v61, %v5611_v42  ;;  %v3164_v25 = vpack.c.bf16 %v2643_v14, %v2642_v22  ;;  %v2833_v23 = vadd.f32 %v2832_v5, %v2642_v22  ;;  %v5619_v5 = vld [vmem:[#allocation21_spill] sm:$0xff] }
 0x19c   : > { %v2644_v56 = vadd.f32 %v2546_v38, %v2400_v60  ;;  %v4288_v57 = vadd.f32 %v2548_v63, %v2401_v50  ;;  %v4295_v4 = vsel %vm1314_vm1, %v5616_v55, %v5615_v1  ;;  %v2872_v54 = vmul.f32 %v2642_v22, %v2642_v22  ;;  %v1488_v60 = vld [vmem:[#allocation2 + $0x100] sm:$0x3] }
 0x19d   : > { %3228 = vst [vmem:[%s3439_s13 + $0x18] sm:$0xff] %v3164_v25   ;;  %v2834_v26 = vadd.f32 %v2833_v23, %v2643_v14  ;;  %v4304_v44 = vmul.f32 %v3549_v34, %v5613_v24  ;;  %v2873_v45 = vmul.f32 %v2643_v14, %v2643_v14  ;;  %v4313_v13 = vmul.f32 %v3552_v35, %v5613_v24 }
 0x19e   : > { %v3169_v0 = vpack.c.bf16 %v4288_v57, %v2644_v56  ;;  %v2903_v21 = vadd.f32 %v2902_v19, %v2872_v54  ;;  %v1004_v28 = vmul.f32 %v3494_v29, %v884_v11  ;;  %v1005_v31 = vmul.f32 %v3494_v29, %v885_v20  ;;  %v4320_v19 = vld [vmem:[%s5512_s4 + $0x8] ss:$0 sm:$0xff]  ;;  %v2090_v54 = vld [vmem:[#allocation2 + $0x100] sm:$0x3] }
 0x19f   : > { %v4309_v36 = vadd.f32 %v2834_v26, %v2644_v56  ;;  %v2874_v50 = vmul.f32 %v2644_v56, %v2644_v56  ;;  %v4324_v14 = vmul.f32 %v4320_v19, %v5613_v24  ;;  %v4327_v10 = vmul.f32 %v3501_v37, %v884_v11 }
 0x1a0   : > { %3229 = vst [vmem:[%s3439_s13 + $0x20] sm:$0xff] %v3169_v0   ;;  %v2904_v22 = vadd.f32 %v2903_v21, %v2873_v45  ;;  %v1121_v6 = vrot.slane %v1004_v28, 1  ;;  %v1123_v49 = vrot.slane %v1005_v31, 1  ;;  %v1250_v38 = vmul.f32 %v3501_v37, %v885_v20  ;;  %v5623_v21 = vld [vmem:[#allocation10_spill] sm:$0xff] }
 0x1a1   : > { %5621 = vst [vmem:[#allocation26_spill] sm:$0xff] %v4327_v10  ;;  %v926_v61 = vmul.f32 %v3515_v41, %v884_v11  ;;  %v1607_v63 = vmul.f32 %v3544_v27, %v884_v11  ;;  %v1608_v56 = vmul.f32 %v3544_v27, %v1488_v60  ;;  %v2875_v25 = vmul.f32 %v4288_v57, %v4288_v57 }
 0x1a2   : > { %v2905_v42 = vadd.f32 %v2904_v22, %v2874_v50  ;;  %v4338_v23 = vmul.f32 %v3570_v53, %v5613_v24  ;;  %v1124_v55 = vsel %vm1069_vm0, %v1121_v6, %v1123_v49  ;;  %v5530_v0 = vrot.slane %v4327_v10, 2 }
 0x1a3   : > { %v1368_v26 = vrot.slane %v1250_v38, 2  ;;  %v4345_v45 = vmul.f32 %v3567_v52, %v884_v11  ;;  %v5624_v28 = vrot.slane %v5623_v21, 1  ;;  %v1721_v24 = vrot.slane %v1607_v63, 1  ;;  %v4367_v63 = vld [vmem:[%s5510_s2] ss:$0 sm:$0xff] }
 0x1a4   : > { %v4353_v50 = vmul.f32 %v3549_v34, %v884_v11  ;;  %v2209_v22 = vmul.f32 %v3552_v35, %v884_v11  ;;  %v4356_v49 = vadd.f32 %v1124_v55, %v926_v61  ;;  %v1723_v20 = vrot.slane %v1608_v56, 1  ;;  %5629 = vst [vmem:[#allocation10_spill] sm:$0xff] %v4367_v63  ;;  %v5632_v55 = vld [vmem:[#allocation3_spill] sm:$0xff] }
 0x1a5   : > { %5622 = vst [vmem:[#allocation19_spill] sm:$0xff] %v4345_v45  ;;  %v4350_v31 = vsel %vm1069_vm0, %v5624_v28, %v1121_v6  ;;  %v4359_v1 = vmul.f32 %v3549_v34, %v1488_v60  ;;  %v2210_v38 = vmul.f32 %v3552_v35, %v2090_v54  ;;  %v2453_v21 = vmul.f32 %v4320_v19, %v884_v11  ;;  %v5630_v28 = vld [vmem:[#allocation4_spill] sm:$0xff] }
 0x1a6   : > { %5625 = vst [vmem:[#allocation17_spill] sm:$0xff] %v4350_v31  ;;  %5626 = vst [vmem:[#allocation18_spill] sm:$0xff] %v4353_v50  ;;  %v2321_v32 = vrot.slane %v2209_v22, 1  ;;  %v2454_v6 = vmul.f32 %v4320_v19, %v2090_v54  ;;  %v729_v61 = vmul.f32 %v4367_v63, %v5630_v28  ;;  %v4374_v60 = vsel %vm1314_vm1, %v5530_v0, %v1368_v26  ;;  %v5634_v54 = vld [vmem:[#allocation11_spill] sm:$0xff]  ;;  %v4391_v26 = vld [vmem:[%s5511_s3] ss:$0 sm:$0xff] }
 0x1a7   : > { %5627 = vst [vmem:[#allocation21_spill] sm:$0xff] %v4356_v49  ;;  %5628 = vst [vmem:[#allocation22_spill] sm:$0xff] %v4359_v1  ;;  %v2323_v56 = vrot.slane %v2210_v38, 1  ;;  %v803_v22 = vmax.f32 %v5632_v55, 0.0  ;;  %v727_v15 = vmul.f32 %v4367_v63, %v5633_v30  ;;  %v5635_v9 = vrot.slane %v5634_v54, 1 }
 0x1a8   : > { %5631 = vst [vmem:[#allocation4_spill] sm:$0xff] %v4374_v60  ;;  %v4386_v28 = vmul.f32 %v3570_v53, %v884_v11  ;;  %5637 = vst [vmem:[#allocation5_spill] sm:$0xff] %v4391_v26  ;;  %v768_v38 = vadd.f32 %v4391_v26, %v729_v61  ;;  %v4395_v55 = vsel %vm1069_vm0, %v1721_v24, %v1723_v20  ;;  %v5639_v30 = vrot.slane %v5617_v48, 1 }
 0x1a9   : > { %v4382_v58 = vsel %vm1069_vm0, %v5635_v9, %v1721_v24  ;;  %5638 = vst [vmem:[#allocation11_spill] sm:$0xff] %v4395_v55  ;;  %v2565_v54 = vrot.slane %v2453_v21, 2  ;;  %836 = vst [vmem:[#allocation2 + $0xe1] sm:$0xff] %v803_v22  ;;  %v766_v11 = vadd.f32 %v4391_v26, %v727_v15  ;;  %v4404_v18 = vsel %vm1069_vm0, %v2321_v32, %v2323_v56  ;;  %v5642_v22 = vld [vmem:[#allocation6_spill] sm:$0xff]  ;;  %v5645_v56 = vld [vmem:[#allocation8_spill] sm:$0xff] }
 0x1aa   : > { %5636 = vst [vmem:[#allocation3_spill] sm:$0xff] %v4382_v58  ;;  %v4400_v9 = vsel %vm1069_vm0, %v5639_v30, %v2321_v32  ;;  %v2567_v0 = vrot.slane %v2454_v6, 2  ;;  %v800_v3 = vmax.f32 %v768_v38, 0.0  ;;  %v1553_v61 = vadd.f32 %v4052_v7, %v4221_v59 }
 0x1ab   : > { %v798_v62 = vmax.f32 %v766_v11, 0.0  ;;  %v1194_v20 = vadd.f32 %v4149_v39, %v4041_v51  ;;  %v5640_v48 = vrot.slane %v4142_v47, 2  ;;  %v5641_v24 = vrot.slane %v4048_v43, 2  ;;  %v4427_v39 = vpop.f32.mrb[12].mxu1 }
 0x1ac   : > { %v730_v15 = vmul.f32 %v4367_v63, %v5642_v22  ;;  %833 = vst [vmem:[#allocation2 + $0xc1] sm:$0xff] %v800_v3  ;;  %v5643_v32 = vrot.slane %v4120_v8, 2  ;;  %v5644_v6 = vrot.slane %v4025_v2, 2  ;;  %v1797_v59 = vadd.f32 %v4162_v40, %v1553_v61  ;;  %5646 = vst [vmem:[#allocation6_spill] sm:$0xff] %v4427_v39  ;;  %v5649_v3 = vld [vmem:[#allocation9_spill] sm:$0xff]  ;;  %v4438_v38 = vpop.f32.mrb[13].mxu1 }
 0x1ad   : > { %v1946_v21 = vsel %vm1314_vm1, %v5641_v24, %v5640_v48  ;;  %v728_v51 = vmul.f32 %v4367_v63, %v5645_v56  ;;  %v1798_v43 = vadd.f32 %v4270_v16, %v4229_v12  ;;  %831 = vst [vmem:[#allocation2 + $0xa9] sm:$0xff] %v798_v62  ;;  %v4432_v8 = vadd.f32 %v4309_v36, %v4288_v57  ;;  %v5651_v62 = vld [vmem:[#allocation14_spill] sm:$0xff] }
 0x1ae   : > { %v1347_v7 = vsel %vm1314_vm1, %v5644_v6, %v5643_v32  ;;  %v769_v47 = vadd.f32 %v4391_v26, %v730_v15  ;;  %v4434_v2 = vadd.f32 %v2905_v42, %v2875_v25  ;;  %v737_v40 = vmul.f32 %v4367_v63, %v5649_v3  ;;  %5650 = vst [vmem:[#allocation9_spill] sm:$0xff] %v4438_v38  ;;  %v5653_v22 = vld [vmem:[#allocation30_spill] sm:$0xff]  ;;  %v5654_v15 = vld [vmem:[#allocation31_spill] sm:$0xff] }
 0x1af   : > { %5647 = vst [vmem:[#allocation8_spill] sm:$0xff] %v4432_v8  ;;  %v4440_v30 = vadd.f32 %v1946_v21, %v1797_v59  ;;  %v767_v12 = vadd.f32 %v4391_v26, %v728_v51  ;;  %v4444_v16 = vadd.f32 %v4295_v4, %v1798_v43  ;;  %v735_v11 = vmul.f32 %v4367_v63, %v5651_v62 }
 0x1b0   : > { %5648 = vst [vmem:[#allocation33_spill] sm:$0xff] %v4434_v2  ;;  %v5652_v57 = vrot.slane %v5618_v33, 2  ;;  %v4454_v42 = vsel %vm1314_vm1, %v2565_v54, %v2567_v0  ;;  %v4456_v25 = vadd.f32 %v1347_v7, %v1194_v20  ;;  %v801_v61 = vmax.f32 %v769_v47, 0.0  ;;  %v4458_v48 = vld [vmem:[#allocation2 + $0xe0] sm:$0xff]  ;;  %v882_v24 = vld [vmem:[#allocation2 + $0xe8] sm:$0x3] }
 0x1b1   : > { %v1485_v21 = vld [vmem:[#allocation2 + $0xe8] sm:$0x3]  ;;  %v799_v4 = vmax.f32 %v767_v12, 0.0  ;;  %v4462_v32 = vadd.f32 %v5654_v15, %v5653_v22  ;;  %v4465_v33 = vadd.f32 %v4391_v26, %v737_v40  ;;  %v4468_v6 = vadd.f32 %v4391_v26, %v735_v11  ;;  %v5657_v7 = vld [vmem:[#allocation24_spill] sm:$0xff] }
 0x1b2   : > { %v4451_v36 = vsel %vm1314_vm1, %v5652_v57, %v2565_v54  ;;  %v1001_v0 = vmul.f32 %v3494_v29, %v4458_v48  ;;  %v1002_v54 = vmul.f32 %v3494_v29, %v882_v24  ;;  %v1246_v20 = vmul.f32 %v3501_v37, %v4458_v48  ;;  %834 = vst [vmem:[#allocation2 + $0xc9] sm:$0xff] %v801_v61  ;;  %v2087_v8 = vld [vmem:[#allocation2 + $0xe8] sm:$0x3] }
 0x1b3   : > { %5655 = vst [vmem:[#allocation14_spill] sm:$0xff] %v4465_v33  ;;  %5656 = vst [vmem:[#allocation30_spill] sm:$0xff] %v4468_v6  ;;  %v4477_v59 = vmul.f32 %v4367_v63, %v5657_v7  ;;  %v924_v56 = vmul.f32 %v3515_v41, %v4458_v48  ;;  %v1247_v51 = vmul.f32 %v3501_v37, %v882_v24  ;;  %v877_v3 = vld [vmem:[#allocation2 + $0xc0] sm:$0xff]  ;;  %v5659_v39 = vrot.slane %v5619_v5, 1  ;;  %v5660_v63 = vld [vmem:[#allocation20_spill] sm:$0xff] }
 0x1b4   : > { %v4484_v43 = vmul.f32 %v3567_v52, %v4458_v48  ;;  %v1604_v47 = vmul.f32 %v3544_v27, %v4458_v48  ;;  %832 = vst [vmem:[#allocation2 + $0xb1] sm:$0xff] %v799_v4  ;;  %v1116_v40 = vrot.slane %v1001_v0, 1  ;;  %v1118_v12 = vrot.slane %v1002_v54, 1 }
 0x1b5   : > { %5658 = vst [vmem:[#allocation31_spill] sm:$0xff] %v4477_v59  ;;  %v1361_v62 = vrot.slane %v1246_v20, 2  ;;  %v1605_v11 = vmul.f32 %v3544_v27, %v1485_v21  ;;  %v4490_v57 = vmul.f32 %v3515_v41, %v877_v3  ;;  %v4493_v61 = vmul.f32 %v3494_v29, %v877_v3 }
 0x1b6   : > { %v4496_v24 = vmul.f32 %v3501_v37, %v877_v3  ;;  %v1848_v22 = vmul.f32 %v3549_v34, %v4458_v48  ;;  %v4501_v4 = vmul.f32 %v3567_v52, %v877_v3  ;;  %v4504_v15 = vmul.f32 %v3544_v27, %v877_v3 }
 0x1b7   : > { %v4507_v0 = vmul.f32 %v3549_v34, %v877_v3  ;;  %v4510_v54 = vmul.f32 %v3552_v35, %v877_v3  ;;  %v4514_v7 = vmul.f32 %v3570_v53, %v877_v3  ;;  %v4517_v38 = vmul.f32 %v4320_v19, %v877_v3 }
 0x1b8   : > { %v1117_v60 = vsel %vm1069_vm0, %v5659_v39, %v1116_v40  ;;  %v1119_v50 = vsel %vm1069_vm0, %v1116_v40, %v1118_v12  ;;  %v5661_v3 = vrot.slane %v5620_v17, 2  ;;  %v1363_v5 = vrot.slane %v1247_v51, 2 }
 0x1b9   : > { %v1200_v26 = vadd.f32 %v1117_v60, %v5660_v63  ;;  %v1201_v59 = vadd.f32 %v1119_v50, %v924_v56  ;;  %v1716_v10 = vrot.slane %v1604_v47, 1  ;;  %v1718_v39 = vrot.slane %v1605_v11, 1  ;;  %v4537_v63 = vpop.f32.mrb[14].mxu1 }
 0x1ba   : > { %v1362_v2 = vsel %vm1314_vm1, %v5661_v3, %v1361_v62  ;;  %v1849_v49 = vmul.f32 %v3549_v34, %v1485_v21  ;;  %v1960_v40 = vrot.slane %v1848_v22, 2  ;;  %v2206_v12 = vmul.f32 %v3552_v35, %v4458_v48  ;;  %5663 = vst [vmem:[#allocation20_spill] sm:$0xff] %v4537_v63 }
 0x1bb   : > { %v4533_v58 = vadd.f32 %v1362_v2, %v1200_v26  ;;  %v1364_v17 = vsel %vm1314_vm1, %v1361_v62, %v1363_v5  ;;  %v5664_v50 = vrot.slane %v4284_v46, 1  ;;  %v4547_v21 = vmul.f32 %v3570_v53, %v4458_v48  ;;  %v874_v26 = vld [vmem:[#allocation2 + $0xa8] sm:$0xff]  ;;  %v4549_v2 = vpop.f32.mrb[15].mxu1 }
 0x1bc   : > { %v1962_v56 = vrot.slane %v1849_v49, 2  ;;  %5665 = vst [vmem:[#allocation34_spill] sm:$0xff] %v4549_v2  ;;  %v4551_v51 = vadd.f32 %v1364_v17, %v1201_v59  ;;  %v4554_v47 = vsel %vm1069_vm0, %v1716_v10, %v1718_v39  ;;  %v2207_v62 = vmul.f32 %v3552_v35, %v2087_v8 }
 0x1bd   : > { %5662 = vst [vmem:[#allocation24_spill] sm:$0xff] %v4533_v58  ;;  %v4543_v60 = vsel %vm1069_vm0, %v5664_v50, %v1716_v10  ;;  %v2316_v11 = vrot.slane %v2206_v12, 1  ;;  %v5667_v46 = vrot.slane %v4304_v44, 2  ;;  %v2450_v3 = vmul.f32 %v4320_v19, %v4458_v48 }
 0x1be   : > { %5666 = vst [vmem:[#allocation35_spill] sm:$0xff] %v4551_v51  ;;  %v4563_v49 = vsel %vm1314_vm1, %v1960_v40, %v1962_v56  ;;  %v2451_v59 = vmul.f32 %v4320_v19, %v2087_v8  ;;  %v5668_v5 = vrot.slane %v4313_v13, 1  ;;  %v2318_v39 = vrot.slane %v2207_v62, 1 }
 0x1bf   : > { %v4560_v22 = vsel %vm1314_vm1, %v5667_v46, %v1960_v40  ;;  %v4574_v12 = vmul.f32 %v3515_v41, %v874_v26  ;;  %v4577_v44 = vmul.f32 %v3494_v29, %v874_v26  ;;  %v2560_v17 = vrot.slane %v2450_v3, 2  ;;  %v878_v46 = vld [vmem:[#allocation2 + $0xc8] sm:$0xff] }
 0x1c0   : > { %v4571_v10 = vsel %vm1069_vm0, %v5668_v5, %v2316_v11  ;;  %v2562_v40 = vrot.slane %v2451_v59, 2  ;;  %v4580_v50 = vmul.f32 %v3501_v37, %v874_v26  ;;  %v1523_v48 = vmul.f32 %v3567_v52, %v874_v26  ;;  %v879_v5 = vld [vmem:[#allocation2 + $0xd0] sm:$0x3] }
 0x1c1   : > { %5669 = vst [vmem:[#allocation36_spill] sm:$0xff] %v4571_v10  ;;  %v4584_v8 = vsel %vm1069_vm0, %v2316_v11, %v2318_v39  ;;  %v4588_v56 = vmul.f32 %v3544_v27, %v874_v26  ;;  %v4591_v62 = vmul.f32 %v3549_v34, %v874_v26  ;;  %v5671_v3 = vrot.slane %v4324_v14, 2 }
 0x1c2   : > { %5670 = vst [vmem:[#allocation37_spill] sm:$0xff] %v4584_v8  ;;  %v4599_v55 = vsel %vm1314_vm1, %v2560_v17, %v2562_v40  ;;  %v4603_v39 = vadd.f32 %v1523_v48, %v4456_v25  ;;  %v2126_v2 = vmul.f32 %v3570_v53, %v874_v26  ;;  %v4609_v63 = vmul.f32 %v3552_v35, %v874_v26  ;;  %v1482_v25 = vld [vmem:[#allocation2 + $0xd0] sm:$0x3] }
 0x1c3   : > { %v4596_v59 = vsel %vm1314_vm1, %v5671_v3, %v2560_v17  ;;  %5673 = vst [vmem:[#allocation39_spill] sm:$0xff] %v4599_v55  ;;  %v4612_v14 = vmul.f32 %v4320_v19, %v874_v26  ;;  %v922_v17 = vmul.f32 %v3515_v41, %v878_v46  ;;  %v998_v40 = vmul.f32 %v3494_v29, %v878_v46 }
 0x1c4   : > { %5672 = vst [vmem:[#allocation38_spill] sm:$0xff] %v4596_v59  ;;  %v999_v3 = vmul.f32 %v3494_v29, %v879_v5  ;;  %v4618_v48 = vadd.f32 %v2126_v2, %v4440_v30  ;;  %v1243_v13 = vmul.f32 %v3501_v37, %v878_v46  ;;  %v1244_v11 = vmul.f32 %v3501_v37, %v879_v5 }
 0x1c5   : > { %5674 = vst [vmem:[#allocation40_spill] sm:$0xff] %v4612_v14  ;;  %v1111_v26 = vrot.slane %v998_v40, 1  ;;  %v4625_v45 = vmul.f32 %v3567_v52, %v878_v46  ;;  %v1601_v55 = vmul.f32 %v3544_v27, %v878_v46  ;;  %v1602_v30 = vmul.f32 %v3544_v27, %v1482_v25 }
 0x1c6   : > { %v1113_v31 = vrot.slane %v999_v3, 1  ;;  %v1356_v51 = vrot.slane %v1243_v13, 2  ;;  %v1358_v1 = vrot.slane %v1244_v11, 2  ;;  %v5675_v2 = vrot.slane %v4493_v61, 1 }
 0x1c7   : > { %v1845_v5 = vmul.f32 %v3549_v34, %v878_v46  ;;  %v1846_v40 = vmul.f32 %v3549_v34, %v1482_v25  ;;  %v5676_v13 = vrot.slane %v4496_v24, 2  ;;  %v1711_v14 = vrot.slane %v1601_v55, 1 }
 0x1c8   : > { %v1112_v20 = vsel %vm1069_vm0, %v5675_v2, %v1111_v26  ;;  %v1114_v6 = vsel %vm1069_vm0, %v1111_v26, %v1113_v31  ;;  %v1359_v59 = vsel %vm1314_vm1, %v1356_v51, %v1358_v1  ;;  %v1713_v33 = vrot.slane %v1602_v30, 1  ;;  %v2084_v2 = vld [vmem:[#allocation2 + $0xd0] sm:$0x3] }
 0x1c9   : > { %v1198_v3 = vadd.f32 %v1112_v20, %v4490_v57  ;;  %v1199_v58 = vadd.f32 %v1114_v6, %v922_v17  ;;  %v1357_v11 = vsel %vm1314_vm1, %v5676_v13, %v1356_v51  ;;  %v1955_v61 = vrot.slane %v1845_v5, 2  ;;  %v4644_v57 = vld [vmem:[#allocation2 + $0xb0] sm:$0xff]  ;;  %v876_v5 = vld [vmem:[#allocation2 + $0xb8] sm:$0x3] }
 0x1ca   : > { %v1957_v8 = vrot.slane %v1846_v40, 2  ;;  %v4641_v26 = vmul.f32 %v3570_v53, %v878_v46  ;;  %v2203_v25 = vmul.f32 %v3552_v35, %v878_v46  ;;  %v5677_v6 = vrot.slane %v4504_v15, 1  ;;  %v5679_v51 = vld [vmem:[#allocation23_spill] sm:$0xff] }
 0x1cb   : > { %v1443_v10 = vadd.f32 %v1357_v11, %v1198_v3  ;;  %v1444_v31 = vadd.f32 %v1359_v59, %v1199_v58  ;;  %v4652_v1 = vsel %vm1069_vm0, %v1711_v14, %v1713_v33  ;;  %v5678_v55 = vrot.slane %v4507_v0, 2 }
 0x1cc   : > { %v4649_v24 = vsel %vm1069_vm0, %v5677_v6, %v1711_v14  ;;  %v4660_v58 = vsel %vm1314_vm1, %v1955_v61, %v1957_v8  ;;  %v2204_v15 = vmul.f32 %v3552_v35, %v2084_v2  ;;  %v2311_v30 = vrot.slane %v2203_v25, 1 }
 0x1cd   : > { %v4657_v20 = vsel %vm1314_vm1, %v5678_v55, %v1955_v61  ;;  %v1559_v59 = vadd.f32 %v5679_v51, %v1443_v10  ;;  %v1560_v17 = vadd.f32 %v4484_v43, %v1444_v31  ;;  %v2447_v40 = vmul.f32 %v4320_v19, %v878_v46 }
 0x1ce   : > { %v2448_v33 = vmul.f32 %v4320_v19, %v2084_v2  ;;  %v920_v0 = vmul.f32 %v3515_v41, %v4644_v57  ;;  %v995_v14 = vmul.f32 %v3494_v29, %v4644_v57  ;;  %v5680_v43 = vrot.slane %v4510_v54, 1 }
 0x1cf   : > { %v1803_v8 = vadd.f32 %v4543_v60, %v1559_v59  ;;  %v1804_v10 = vadd.f32 %v4554_v47, %v1560_v17  ;;  %v2313_v13 = vrot.slane %v2204_v15, 1  ;;  %v2555_v11 = vrot.slane %v2447_v40, 2 }
 0x1d0   : > { %v4676_v3 = vsel %vm1069_vm0, %v5680_v43, %v2311_v30  ;;  %v2557_v46 = vrot.slane %v2448_v33, 2  ;;  %v996_v61 = vmul.f32 %v3494_v29, %v876_v5  ;;  %v1106_v2 = vrot.slane %v995_v14, 1 }
 0x1d1   : > { %v2047_v31 = vadd.f32 %v4560_v22, %v1803_v8  ;;  %v2048_v25 = vadd.f32 %v4563_v49, %v1804_v10  ;;  %v4682_v6 = vsel %vm1069_vm0, %v2311_v30, %v2313_v13  ;;  %v1240_v60 = vmul.f32 %v3501_v37, %v4644_v57  ;;  %v5683_v49 = vld [vmem:[#allocation16_spill] sm:$0xff] }
 0x1d2   : > { %v5681_v54 = vrot.slane %v4517_v38, 2  ;;  %v4692_v55 = vsel %vm1314_vm1, %v2555_v11, %v2557_v46  ;;  %v5682_v51 = vrot.slane %v4577_v44, 1  ;;  %v1108_v59 = vrot.slane %v996_v61, 1  ;;  %v1479_v38 = vld [vmem:[#allocation2 + $0xb8] sm:$0x3] }
 0x1d3   : > { %v2164_v17 = vadd.f32 %v5683_v49, %v2047_v31  ;;  %v2165_v15 = vadd.f32 %v4386_v28, %v2048_v25  ;;  %v1241_v40 = vmul.f32 %v3501_v37, %v876_v5  ;;  %v1351_v14 = vrot.slane %v1240_v60, 2 }
 0x1d4   : > { %v4689_v47 = vsel %vm1314_vm1, %v5681_v54, %v2555_v11  ;;  %v1107_v22 = vsel %vm1069_vm0, %v5682_v51, %v1106_v2  ;;  %v1109_v33 = vsel %vm1069_vm0, %v1106_v2, %v1108_v59  ;;  %v1524_v8 = vmul.f32 %v3567_v52, %v4644_v57 }
 0x1d5   : > { %v1196_v30 = vadd.f32 %v1107_v22, %v4574_v12  ;;  %v1598_v44 = vmul.f32 %v3544_v27, %v4644_v57  ;;  %v2408_v10 = vadd.f32 %v4400_v9, %v2164_v17  ;;  %v2409_v43 = vadd.f32 %v4404_v18, %v2165_v15  ;;  %v2081_v22 = vld [vmem:[#allocation2 + $0xb8] sm:$0x3] }
 0x1d6   : > { %v1197_v13 = vadd.f32 %v1109_v33, %v920_v0  ;;  %v1353_v28 = vrot.slane %v1241_v40, 2  ;;  %v5684_v12 = vrot.slane %v4580_v50, 2  ;;  %v1556_v11 = vadd.f32 %v1524_v8, %v4462_v32 }
 0x1d7   : > { %v1599_v46 = vmul.f32 %v3544_v27, %v1479_v38  ;;  %v1706_v61 = vrot.slane %v1598_v44, 1  ;;  %v4714_v2 = vadd.f32 %v4451_v36, %v2408_v10  ;;  %v4717_v31 = vadd.f32 %v4454_v42, %v2409_v43 }
 0x1d8   : > { %v1352_v5 = vsel %vm1314_vm1, %v5684_v12, %v1351_v14  ;;  %v1354_v18 = vsel %vm1314_vm1, %v1351_v14, %v1353_v28  ;;  %v5685_v50 = vrot.slane %v4588_v56, 1  ;;  %v1842_v32 = vmul.f32 %v3549_v34, %v4644_v57 }
 0x1d9   : > { %v1441_v9 = vadd.f32 %v1352_v5, %v1196_v30  ;;  %v1442_v0 = vadd.f32 %v1354_v18, %v1197_v13  ;;  %v1708_v60 = vrot.slane %v1599_v46, 1  ;;  %v3189_v36 = vpack.c.bf16 %v4717_v31, %v4714_v2 }
 0x1da   : > { %v1707_v25 = vsel %vm1069_vm0, %v5685_v50, %v1706_v61  ;;  %v1843_v51 = vmul.f32 %v3549_v34, %v1479_v38  ;;  %v1950_v49 = vrot.slane %v1842_v32, 2  ;;  %v2127_v17 = vmul.f32 %v3570_v53, %v4644_v57 }
 0x1db   : > { %v1557_v54 = vadd.f32 %v4501_v4, %v1441_v9  ;;  %v1799_v42 = vadd.f32 %v1707_v25, %v4603_v39  ;;  %v1558_v59 = vadd.f32 %v4625_v45, %v1442_v0  ;;  %v1709_v56 = vsel %vm1069_vm0, %v1706_v61, %v1708_v60  ;;  %3233 = vst [vmem:[%s3439_s13 + $0x40] sm:$0xff] %v3189_v36   ;;  %v5689_v0 = vld [vmem:[#allocation37_spill] sm:$0xff]  ;;  %v5690_v60 = vld [vmem:[#allocation14_spill] sm:$0xff] }
 0x1dc   : > { %v1800_v15 = vadd.f32 %v1709_v56, %v1556_v11  ;;  %v1952_v40 = vrot.slane %v1843_v51, 2  ;;  %v2200_v4 = vmul.f32 %v3552_v35, %v4644_v57  ;;  %v5686_v38 = vrot.slane %v4591_v62, 2  ;;  %v5694_v51 = vld [vmem:[#allocation30_spill] sm:$0xff]  ;;  %v5695_v56 = vld [vmem:[#allocation39_spill] sm:$0xff] }
 0x1dd   : > { %v1801_v30 = vadd.f32 %v4649_v24, %v1557_v54  ;;  %v1802_v39 = vadd.f32 %v4652_v1, %v1558_v59  ;;  %v2159_v33 = vadd.f32 %v2127_v17, %v4444_v16  ;;  %v2201_v14 = vmul.f32 %v3552_v35, %v2081_v22  ;;  %v5696_v17 = vld [vmem:[#allocation22_spill] sm:$0xff] }
 0x1de   : > { %v1951_v45 = vsel %vm1314_vm1, %v5686_v38, %v1950_v49  ;;  %v1953_v8 = vsel %vm1314_vm1, %v1950_v49, %v1952_v40  ;;  %v2306_v24 = vrot.slane %v2200_v4, 1  ;;  %v2444_v1 = vmul.f32 %v4320_v19, %v4644_v57  ;;  %v5698_v40 = vld [vmem:[#allocation19_spill] sm:$0xff]  ;;  %v5700_v38 = vld [vmem:[#allocation17_spill] sm:$0xff] }
 0x1df   : > { %v2043_v44 = vadd.f32 %v1951_v45, %v1799_v42  ;;  %v2045_v10 = vadd.f32 %v4657_v20, %v1801_v30  ;;  %v2044_v43 = vadd.f32 %v1953_v8, %v1800_v15  ;;  %v2046_v13 = vadd.f32 %v4660_v58, %v1802_v39  ;;  %v5697_v30 = vld [vmem:[#allocation35_spill] sm:$0xff]  ;;  %v5699_v39 = vld [vmem:[#allocation12_spill] sm:$0xff] }
 0x1e0   : > { %v2308_v28 = vrot.slane %v2201_v14, 1  ;;  %v5687_v16 = vrot.slane %v4609_v63, 1  ;;  %v2445_v11 = vmul.f32 %v4320_v19, %v2081_v22  ;;  %v808_v32 = vmax.f32 %v5690_v60, 0.0  ;;  %v5701_v14 = vld [vmem:[#allocation8_spill] sm:$0xff] }
 0x1e1   : > { %v2160_v62 = vadd.f32 %v4514_v7, %v2043_v44  ;;  %v2162_v12 = vadd.f32 %v4338_v23, %v2045_v10  ;;  %v2161_v20 = vadd.f32 %v4641_v26, %v2044_v43  ;;  %v2163_v46 = vadd.f32 %v4547_v21, %v2046_v13  ;;  %v5688_v7 = vld [vmem:[#allocation36_spill] sm:$0xff]  ;;  %v5702_v43 = vld [vmem:[#allocation26_spill] sm:$0xff] }
 0x1e2   : > { %v2307_v5 = vsel %vm1069_vm0, %v5687_v16, %v2306_v24  ;;  %v2309_v58 = vsel %vm1069_vm0, %v2306_v24, %v2308_v28  ;;  %v2550_v23 = vrot.slane %v2444_v1, 2  ;;  %v2552_v25 = vrot.slane %v2445_v11, 2  ;;  %v5691_v26 = vld [vmem:[#allocation40_spill] sm:$0xff]  ;;  %841 = vst [vmem:[#allocation2 + $0x121] sm:$0xff] %v808_v32  ;;  %v5704_v28 = vld [vmem:[#allocation7_spill] sm:$0xff]  ;;  %v5717_v32 = vld [vmem:[#allocation13_spill] sm:$0xff] }
 0x1e3   : > { %v2402_v61 = vadd.f32 %v2307_v5, %v4618_v48  ;;  %v2403_v18 = vadd.f32 %v2309_v58, %v2159_v33  ;;  %v2404_v57 = vadd.f32 %v4676_v3, %v2160_v62  ;;  %v2406_v9 = vadd.f32 %v5688_v7, %v2162_v12  ;;  %v5693_v48 = vld [vmem:[#allocation38_spill] sm:$0xff]  ;;  %v5706_v12 = vld [vmem:[#allocation24_spill] sm:$0xff]  ;;  %v5707_v16 = vld [vmem:[#allocation15_spill] sm:$0xff] }
 0x1e4   : > { %v2405_v63 = vadd.f32 %v4682_v6, %v2161_v20  ;;  %v2407_v50 = vadd.f32 %v5689_v0, %v2163_v46  ;;  %v5692_v36 = vrot.slane %v5691_v26, 2  ;;  %v806_v3 = vmax.f32 %v5694_v51, 0.0  ;;  %v5708_v20 = vld [vmem:[#allocation33_spill] sm:$0xff]  ;;  %v5709_v58 = vld [vmem:[#allocation31_spill] sm:$0xff]  ;;  %v5712_v7 = vld [vmem:[#allocation10_spill] sm:$0xff] }
 0x1e5   : > { %v2648_v54 = vadd.f32 %v4689_v47, %v2404_v57  ;;  %v2650_v42 = vadd.f32 %v5693_v48, %v2406_v9  ;;  %v2553_v22 = vsel %vm1314_vm1, %v2550_v23, %v2552_v25  ;;  %v1967_v15 = vrot.slane %v5696_v17, 2  ;;  %v5711_v57 = vld [vmem:[#allocation27_spill] sm:$0xff] }
 0x1e6   : > { %v2551_v21 = vsel %vm1314_vm1, %v5692_v36, %v2550_v23  ;;  %v2649_v6 = vadd.f32 %v4692_v55, %v2405_v63  ;;  %v4773_v49 = vadd.f32 %v5695_v56, %v2407_v50  ;;  %v1562_v47 = vadd.f32 %v5698_v40, %v5697_v30  ;;  %839 = vst [vmem:[#allocation2 + $0x109] sm:$0xff] %v806_v3  ;;  %v5713_v23 = vld [vmem:[#allocation18_spill] sm:$0xff]  ;;  %v5715_v50 = vld [vmem:[#allocation3_spill] sm:$0xff] }
 0x1e7   : > { %v2646_v59 = vadd.f32 %v2551_v21, %v2402_v61  ;;  %v2647_v4 = vadd.f32 %v2553_v22, %v2403_v18  ;;  %v1202_v45 = vadd.f32 %v5700_v38, %v5699_v39  ;;  %v5703_v13 = vrot.slane %v5702_v43, 2  ;;  %v5710_v61 = vld [vmem:[#allocation5_spill] sm:$0xff]  ;;  %v5719_v21 = vld [vmem:[#allocation11_spill] sm:$0xff] }
 0x1e8   : > { %v3179_v33 = vpack.c.bf16 %v2649_v6, %v2648_v54  ;;  %v3184_v55 = vpack.c.bf16 %v4773_v49, %v2650_v42  ;;  %v5705_v1 = vrot.slane %v5704_v28, 2  ;;  %v1561_v5 = vadd.f32 %v5707_v16, %v5706_v12 }
 0x1e9   : > { %v2837_v8 = vadd.f32 %v5701_v14, %v2646_v59  ;;  %v2876_v44 = vmul.f32 %v2646_v59, %v2646_v59  ;;  %v3174_v10 = vpack.c.bf16 %v2647_v4, %v2646_v59  ;;  %v2877_v24 = vmul.f32 %v2647_v4, %v2647_v4  ;;  %v889_v30 = vld [vmem:[#allocation2 + $0x120] sm:$0xff] }
 0x1ea   : > { %v1367_v62 = vsel %vm1314_vm1, %v5705_v1, %v5703_v13  ;;  %3231 = vst [vmem:[%s3439_s13 + $0x30] sm:$0xff] %v3179_v33   ;;  %3232 = vst [vmem:[%s3439_s13 + $0x38] sm:$0xff] %v3184_v55   ;;  %v777_v18 = vadd.f32 %v5710_v61, %v5709_v58  ;;  %v736_v9 = vmul.f32 %v5712_v7, %v5711_v57  ;;  %v5714_v63 = vrot.slane %v5713_v23, 2 }
 0x1eb   : > { %v2838_v11 = vadd.f32 %v2837_v8, %v2647_v4  ;;  %v2907_v46 = vadd.f32 %v5708_v20, %v2876_v44  ;;  %3230 = vst [vmem:[%s3439_s13 + $0x28] sm:$0xff] %v3174_v10   ;;  %v1805_v25 = vadd.f32 %v5715_v50, %v1561_v5  ;;  %v5718_v26 = vrot.slane %v5717_v32, 2  ;;  %v5721_v4 = vld [vmem:[#allocation4_spill] sm:$0xff] }
 0x1ec   : > { %v1968_v0 = vsel %vm1314_vm1, %v5714_v63, %v1967_v15  ;;  %v5716_v60 = vmov %v5714_v63  ;;  %v1806_v48 = vadd.f32 %v5719_v21, %v1562_v47  ;;  %v2878_v3 = vmul.f32 %v2648_v54, %v2648_v54  ;;  %v5720_v15 = vld [vmem:[#allocation21_spill] sm:$0xff] }
 0x1ed   : > { %v1966_v36 = vsel %vm1314_vm1, %v5718_v26, %v5716_v60  ;;  %v2839_v51 = vadd.f32 %v2838_v11, %v2648_v54  ;;  %v2908_v22 = vadd.f32 %v2907_v46, %v2877_v24  ;;  %v809_v59 = vmax.f32 %v777_v18, 0.0 }
 0x1ee   : > { %v2879_v56 = vmul.f32 %v2649_v6, %v2649_v6  ;;  %v2880_v17 = vmul.f32 %v2650_v42, %v2650_v42  ;;  %v1447_v40 = vadd.f32 %v1367_v62, %v1202_v45  ;;  %v4809_v39 = vadd.f32 %v5721_v4, %v5720_v15  ;;  %v886_v45 = vld [vmem:[#allocation2 + $0x108] sm:$0xff] }
 0x1ef   : > { %v2840_v38 = vadd.f32 %v2839_v51, %v2649_v6  ;;  %v2909_v33 = vadd.f32 %v2908_v22, %v2878_v3  ;;  %842 = vst [vmem:[#allocation2 + $0x129] sm:$0xff] %v809_v59  ;;  %v4812_v55 = vadd.f32 %v5710_v61, %v736_v9  ;;  %v4816_v47 = vmul.f32 %v4773_v49, %v4773_v49 }
 0x1f0   : > { %v1009_v54 = vmul.f32 %v3494_v29, %v889_v30  ;;  %v4820_v14 = vmul.f32 %v3501_v37, %v889_v30  ;;  %v2049_v8 = vadd.f32 %v1966_v36, %v1805_v25  ;;  %v4822_v44 = vadd.f32 %v1968_v0, %v1806_v48 }
 0x1f1   : > { %v4824_v10 = vadd.f32 %v2840_v38, %v2650_v42  ;;  %v2910_v6 = vadd.f32 %v2909_v33, %v2879_v56  ;;  %v4827_v24 = vmul.f32 %v3544_v27, %v889_v30  ;;  %v4830_v43 = vmul.f32 %v3549_v34, %v889_v30 }
 0x1f2   : > { %v4833_v13 = vmul.f32 %v3515_v41, %v889_v30  ;;  %v4836_v28 = vmul.f32 %v3552_v35, %v889_v30  ;;  %v4840_v1 = vmul.f32 %v4714_v2, %v4714_v2  ;;  %v4844_v42 = vmul.f32 %v4717_v31, %v4717_v31 }
 0x1f3   : > { %v2911_v62 = vadd.f32 %v2910_v6, %v2880_v17  ;;  %v4847_v12 = vmul.f32 %v3567_v52, %v889_v30  ;;  %v4850_v16 = vmul.f32 %v4320_v19, %v889_v30  ;;  %v4853_v5 = vmul.f32 %v3494_v29, %v886_v45 }
 0x1f4   : > { %v1130_v11 = vrot.slane %v1009_v54, 1  ;;  %v4857_v46 = vmul.f32 %v3570_v53, %v889_v30  ;;  %v4860_v58 = vmul.f32 %v3501_v37, %v886_v45  ;;  %v1730_v18 = vrot.slane %v4827_v24, 1 }
 0x1f5   : > { %5722 = vst [vmem:[#allocation23_spill] sm:$0xff] %v4847_v12  ;;  %v1531_v9 = vmul.f32 %v3567_v52, %v886_v45  ;;  %v4866_v23 = vmul.f32 %v3544_v27, %v886_v45  ;;  %v4871_v50 = vmul.f32 %v3515_v41, %v886_v45  ;;  %v4874_v25 = vmul.f32 %v3549_v34, %v886_v45  ;;  %v5724_v12 = vld [vmem:[#allocation28_spill] sm:$0xff] }
 0x1f6   : > { %v890_v60 = vld [vmem:[#allocation2 + $0x128] sm:$0xff]  ;;  %v891_v32 = vld [vmem:[#allocation2 + $0x130] sm:$0x3]  ;;  %v2134_v36 = vmul.f32 %v3570_v53, %v886_v45  ;;  %v4879_v21 = vmul.f32 %v3552_v35, %v886_v45  ;;  %v4882_v48 = vmul.f32 %v4320_v19, %v886_v45  ;;  %v2912_v0 = vadd.f32 %v2911_v62, %v4816_v47 }
 0x1f7   : > { %v1494_v51 = vld [vmem:[#allocation2 + $0x130] sm:$0x3]  ;;  %v1010_v22 = vmul.f32 %v3494_v29, %v890_v60  ;;  %v1011_v59 = vmul.f32 %v3494_v29, %v891_v32  ;;  %v1255_v56 = vmul.f32 %v3501_v37, %v890_v60  ;;  %v4888_v17 = vadd.f32 %v1531_v9, %v1447_v40 }
 0x1f8   : > { %v1256_v15 = vmul.f32 %v3501_v37, %v891_v32  ;;  %v1613_v4 = vmul.f32 %v3544_v27, %v890_v60  ;;  %v1614_v45 = vmul.f32 %v3544_v27, %v1494_v51  ;;  %v4895_v6 = vadd.f32 %v2134_v36, %v2049_v8  ;;  %v2096_v9 = vld [vmem:[#allocation2 + $0x130] sm:$0x3] }
 0x1f9   : > { %v1131_v33 = vrot.slane %v1010_v22, 1  ;;  %v1133_v54 = vrot.slane %v1011_v59, 1  ;;  %v930_v40 = vmul.f32 %v3515_v41, %v890_v60  ;;  %v1376_v30 = vrot.slane %v1255_v56, 2 }
 0x1fa   : > { %v1378_v26 = vrot.slane %v1256_v15, 2  ;;  %v4901_v32 = vmul.f32 %v3567_v52, %v890_v60  ;;  %v1731_v57 = vrot.slane %v1613_v4, 1  ;;  %v1857_v8 = vmul.f32 %v3549_v34, %v890_v60 }
 0x1fb   : > { %v1132_v22 = vsel %vm1069_vm0, %v1130_v11, %v1131_v33  ;;  %v1134_v59 = vsel %vm1069_vm0, %v1131_v33, %v1133_v54  ;;  %v1858_v36 = vmul.f32 %v3549_v34, %v1494_v51  ;;  %v1733_v24 = vrot.slane %v1614_v45, 1 }
 0x1fc   : > { %5723 = vst [vmem:[#allocation16_spill] sm:$0xff] %v4901_v32  ;;  %v4908_v3 = vmul.f32 %v3570_v53, %v890_v60  ;;  %v2215_v38 = vmul.f32 %v3552_v35, %v890_v60  ;;  %v2216_v56 = vmul.f32 %v3552_v35, %v2096_v9  ;;  %v2459_v15 = vmul.f32 %v4320_v19, %v890_v60 }
 0x1fd   : > { %v2460_v4 = vmul.f32 %v4320_v19, %v2096_v9  ;;  %v807_v11 = vmax.f32 %v4812_v55, 0.0  ;;  %v2842_v33 = vadd.f32 %v4824_v10, %v4773_v49  ;;  %v1207_v54 = vadd.f32 %v1134_v59, %v930_v40  ;;  %v5725_v10 = vld [vmem:[#allocation29_spill] sm:$0xff] }
 0x1fe   : > { %v1379_v51 = vsel %vm1314_vm1, %v1376_v30, %v1378_v26  ;;  %v4919_v45 = vsel %vm1069_vm0, %v1730_v18, %v1731_v57  ;;  %v1975_v63 = vrot.slane %v1857_v8, 2  ;;  %v1977_v20 = vrot.slane %v1858_v36, 2  ;;  %v5727_v36 = vld [vmem:[#allocation32_spill] sm:$0xff] }
 0x1ff   : > { %840 = vst [vmem:[#allocation2 + $0x111] sm:$0xff] %v807_v11  ;;  %v2843_v60 = vadd.f32 %v2842_v33, %v4714_v2  ;;  %v741_v9 = vmul.f32 %v5712_v7, %v5724_v12  ;;  %v2331_v55 = vrot.slane %v2215_v38, 1  ;;  %v2333_v32 = vrot.slane %v2216_v56, 1  ;;  %v5728_v56 = vld [vmem:[#allocation25_spill] sm:$0xff] }
 0x200   : > { %v2913_v49 = vadd.f32 %v2912_v0, %v4840_v1  ;;  %v739_v26 = vmul.f32 %v5712_v7, %v5725_v10  ;;  %v2575_v40 = vrot.slane %v2459_v15, 2  ;;  %v2577_v18 = vrot.slane %v2460_v4, 2 }
 0x201   : > { %v4929_v59 = vadd.f32 %v2843_v60, %v4717_v31  ;;  %v780_v47 = vadd.f32 %v5710_v61, %v741_v9  ;;  %v1206_v12 = vadd.f32 %v1132_v22, %v4833_v13  ;;  %v5726_v38 = vrot.slane %v4820_v14, 2 }
 0x202   : > { %v4933_v62 = vadd.f32 %v2913_v49, %v4844_v42  ;;  %v778_v2 = vadd.f32 %v5710_v61, %v739_v26  ;;  %v4941_v0 = vsel %vm1069_vm0, %v1731_v57, %v1733_v24  ;;  %v742_v31 = vmul.f32 %v5712_v7, %v5727_v36  ;;  %v5732_v49 = vld [vmem:[#allocation6_spill] sm:$0xff] }
 0x203   : > { %v1377_v1 = vsel %vm1314_vm1, %v5726_v38, %v1376_v30  ;;  %v812_v8 = vmax.f32 %v780_v47, 0.0  ;;  %v740_v15 = vmul.f32 %v5712_v7, %v5728_v56  ;;  %v4948_v42 = vsel %vm1314_vm1, %v1975_v63, %v1977_v20 }
 0x204   : > { %v5729_v4 = vrot.slane %v4836_v28, 1  ;;  %v4956_v14 = vsel %vm1069_vm0, %v2331_v55, %v2333_v32  ;;  %v810_v57 = vmax.f32 %v778_v2, 0.0  ;;  %v5730_v30 = vrot.slane %v4850_v16, 2 }
 0x205   : > { %v4964_v22 = vsel %vm1314_vm1, %v2575_v40, %v2577_v18  ;;  %845 = vst [vmem:[#allocation2 + $0x151] sm:$0xff] %v812_v8  ;;  %v4966_v20 = vadd.f32 %v1377_v1, %v1206_v12  ;;  %v5731_v28 = vrot.slane %v4830_v43, 2  ;;  %v4974_v16 = vadd.f32 %v5710_v61, %v742_v31 }
 0x206   : > { %v4953_v13 = vsel %vm1069_vm0, %v5729_v4, %v2331_v55  ;;  %v4961_v24 = vsel %vm1314_vm1, %v5730_v30, %v2575_v40  ;;  %v887_v33 = vld [vmem:[#allocation2 + $0x110] sm:$0xff]  ;;  %v888_v32 = vld [vmem:[#allocation2 + $0x118] sm:$0x3]  ;;  %843 = vst [vmem:[#allocation2 + $0x139] sm:$0xff] %v810_v57  ;;  %v4977_v9 = vadd.f32 %v5710_v61, %v740_v15  ;;  %v4979_v55 = vadd.f32 %v1379_v51, %v1207_v54  ;;  %v5733_v57 = vld [vmem:[#allocation9_spill] sm:$0xff] }
 0x207   : > { %v4971_v11 = vsel %vm1314_vm1, %v5731_v28, %v1975_v63  ;;  %v1491_v60 = vld [vmem:[#allocation2 + $0x118] sm:$0x3]  ;;  %v745_v10 = vmul.f32 %v5712_v7, %v5732_v49  ;;  %v928_v43 = vmul.f32 %v3515_v41, %v887_v33  ;;  %v1007_v63 = vmul.f32 %v3494_v29, %v887_v33 }
 0x208   : > { %v1008_v26 = vmul.f32 %v3494_v29, %v888_v32  ;;  %v1252_v40 = vmul.f32 %v3501_v37, %v887_v33  ;;  %v1253_v18 = vmul.f32 %v3501_v37, %v888_v32  ;;  %v1532_v47 = vmul.f32 %v3567_v52, %v887_v33  ;;  %v5734_v28 = vld [vmem:[#allocation20_spill] sm:$0xff] }
 0x209   : > { %v1610_v2 = vmul.f32 %v3544_v27, %v887_v33  ;;  %v1611_v54 = vmul.f32 %v3544_v27, %v1491_v60  ;;  %v1126_v51 = vrot.slane %v1007_v63, 1  ;;  %v1854_v1 = vmul.f32 %v3549_v34, %v887_v33 }
 0x20a   : > { %v1128_v12 = vrot.slane %v1008_v26, 1  ;;  %v1371_v38 = vrot.slane %v1252_v40, 2  ;;  %v1373_v8 = vrot.slane %v1253_v18, 2  ;;  %v1564_v36 = vadd.f32 %v1532_v47, %v4809_v39  ;;  %v2093_v40 = vld [vmem:[#allocation2 + $0x118] sm:$0x3] }
 0x20b   : > { %v1726_v31 = vrot.slane %v1610_v2, 1  ;;  %v1728_v56 = vrot.slane %v1611_v54, 1  ;;  %v1855_v4 = vmul.f32 %v3549_v34, %v1491_v60  ;;  %v4997_v30 = vmul.f32 %v5712_v7, %v5733_v57  ;;  %v5737_v60 = vld [vmem:[#allocation34_spill] sm:$0xff] }
 0x20c   : > { %v1129_v15 = vsel %vm1069_vm0, %v1126_v51, %v1128_v12  ;;  %v5001_v32 = vmul.f32 %v5712_v7, %v5734_v28  ;;  %v5735_v49 = vrot.slane %v4853_v5, 1  ;;  %v5736_v39 = vrot.slane %v4866_v23, 1 }
 0x20d   : > { %v5010_v18 = vadd.f32 %v5710_v61, %v745_v10  ;;  %v5014_v47 = vmul.f32 %v5712_v7, %v5737_v60  ;;  %v1729_v2 = vsel %vm1069_vm0, %v1726_v31, %v1728_v56  ;;  %v1970_v12 = vrot.slane %v1854_v1, 2 }
 0x20e   : > { %v1127_v63 = vsel %vm1069_vm0, %v5735_v49, %v1126_v51  ;;  %v1727_v26 = vsel %vm1069_vm0, %v5736_v39, %v1726_v31  ;;  %v1972_v5 = vrot.slane %v1855_v4, 2  ;;  %v1205_v57 = vadd.f32 %v1129_v15, %v928_v43 }
 0x20f   : > { %v1807_v54 = vadd.f32 %v1727_v26, %v4888_v17  ;;  %v1374_v51 = vsel %vm1314_vm1, %v1371_v38, %v1373_v8  ;;  %v1808_v23 = vadd.f32 %v1729_v2, %v1564_v36  ;;  %v2135_v28 = vmul.f32 %v3570_v53, %v887_v33 }
 0x210   : > { %v5738_v49 = vrot.slane %v4874_v25, 2  ;;  %v1973_v10 = vsel %vm1314_vm1, %v1970_v12, %v1972_v5  ;;  %v2212_v7 = vmul.f32 %v3552_v35, %v887_v33  ;;  %v2213_v31 = vmul.f32 %v3552_v35, %v2093_v40 }
 0x211   : > { %v5739_v17 = vrot.slane %v4860_v58, 2  ;;  %v2052_v56 = vadd.f32 %v1973_v10, %v1808_v23  ;;  %v2167_v8 = vadd.f32 %v2135_v28, %v4822_v44  ;;  %v2456_v25 = vmul.f32 %v4320_v19, %v887_v33  ;;  %v895_v58 = vld [vmem:[#allocation2 + $0x150] sm:$0xff] }
 0x212   : > { %v1971_v61 = vsel %vm1314_vm1, %v5738_v49, %v1970_v12  ;;  %v2326_v36 = vrot.slane %v2212_v7, 1  ;;  %v2328_v15 = vrot.slane %v2213_v31, 1  ;;  %v2457_v4 = vmul.f32 %v4320_v19, %v2093_v40 }
 0x213   : > { %v1372_v1 = vsel %vm1314_vm1, %v5739_v17, %v1371_v38  ;;  %v2051_v43 = vadd.f32 %v1971_v61, %v1807_v54  ;;  %v1204_v39 = vadd.f32 %v1127_v63, %v4871_v50  ;;  %v1450_v26 = vadd.f32 %v1374_v51, %v1205_v57  ;;  %v5042_v63 = vld [vmem:[#allocation2 + $0x198] sm:$0xff] }
 0x214   : > { %v2169_v2 = vadd.f32 %v4908_v3, %v2052_v56  ;;  %v5740_v38 = vrot.slane %v4879_v21, 1  ;;  %v2329_v44 = vsel %vm1069_vm0, %v2326_v36, %v2328_v15  ;;  %v2570_v12 = vrot.slane %v2456_v25, 2 }
 0x215   : > { %v2168_v60 = vadd.f32 %v4857_v46, %v2051_v43  ;;  %v2572_v5 = vrot.slane %v2457_v4, 2  ;;  %v2411_v23 = vadd.f32 %v2329_v44, %v2167_v8  ;;  %v5044_v46 = vld [vmem:[#allocation2 + $0x1a0] sm:$0xff]  ;;  %v5741_v3 = vrot.slane %v4882_v48, 2  ;;  %v5742_v48 = vld [vmem:[#allocation16_spill] sm:$0xff] }
 0x216   : > { %v2327_v54 = vsel %vm1069_vm0, %v5740_v38, %v2326_v36  ;;  %v2413_v50 = vadd.f32 %v4956_v14, %v2169_v2  ;;  %v5051_v57 = vmul.f32 %v3494_v29, %v895_v58  ;;  %v1449_v49 = vadd.f32 %v1372_v1, %v1204_v39 }
 0x217   : > { %v2410_v33 = vadd.f32 %v2327_v54, %v4895_v6  ;;  %v2412_v19 = vadd.f32 %v4953_v13, %v2168_v60  ;;  %v2571_v21 = vsel %vm1314_vm1, %v5741_v3, %v2570_v12  ;;  %v2573_v40 = vsel %vm1314_vm1, %v2570_v12, %v2572_v5  ;;  %v5088_v60 = vld [vmem:[%s5512_s4 + $0x8] ss:$0 sm:$0xff] }
 0x218   : > { %v5054_v6 = vmul.f32 %v3501_v37, %v895_v58  ;;  %v2655_v13 = vadd.f32 %v2573_v40, %v2411_v23  ;;  %v2657_v28 = vadd.f32 %v4964_v22, %v2413_v50  ;;  %v1566_v61 = vadd.f32 %v5742_v48, %v1450_v26 }
 0x219   : > { %v2654_v51 = vadd.f32 %v2571_v21, %v2410_v33  ;;  %v2656_v14 = vadd.f32 %v4961_v24, %v2412_v19  ;;  %v5061_v10 = vmul.f32 %v3570_v53, %v5042_v63  ;;  %v5065_v7 = vmul.f32 %v3570_v53, %v5044_v46  ;;  %v892_v24 = vld [vmem:[#allocation2 + $0x138] sm:$0xff]  ;;  %v5743_v19 = vld [vmem:[#allocation23_spill] sm:$0xff] }
 0x21a   : > { %v5069_v8 = vmul.f32 %v3515_v41, %v895_v58  ;;  %v1140_v22 = vrot.slane %v5051_v57, 1  ;;  %v5074_v36 = vmul.f32 %v3544_v27, %v895_v58  ;;  %v2885_v25 = vmul.f32 %v2655_v13, %v2655_v13 }
 0x21b   : > { %v3194_v31 = vpack.c.bf16 %v2655_v13, %v2654_v51  ;;  %v3199_v17 = vpack.c.bf16 %v2657_v28, %v2656_v14  ;;  %v2845_v43 = vadd.f32 %v4929_v59, %v2654_v51  ;;  %v2884_v56 = vmul.f32 %v2654_v51, %v2654_v51 }
 0x21c   : > { %v5080_v59 = vmul.f32 %v3549_v34, %v895_v58  ;;  %v2886_v39 = vmul.f32 %v2656_v14, %v2656_v14  ;;  %v5083_v26 = vmul.f32 %v3552_v35, %v895_v58  ;;  %v5091_v2 = vmul.f32 %v5088_v60, %v895_v58 }
 0x21d   : > { %3234 = vst [vmem:[%s3439_s13 + $0x48] sm:$0xff] %v3194_v31   ;;  %3235 = vst [vmem:[%s3439_s13 + $0x50] sm:$0xff] %v3199_v17   ;;  %v2846_v15 = vadd.f32 %v2845_v43, %v2655_v13  ;;  %v2915_v4 = vadd.f32 %v4933_v62, %v2884_v56  ;;  %v5094_v38 = vmul.f32 %v3494_v29, %v892_v24  ;;  %v1740_v23 = vrot.slane %v5074_v36, 1 }
 0x21e   : > { %v5097_v44 = vmul.f32 %v3501_v37, %v892_v24  ;;  %v1535_v12 = vmul.f32 %v3567_v52, %v892_v24  ;;  %v2887_v5 = vmul.f32 %v2657_v28, %v2657_v28  ;;  %v5101_v33 = vmul.f32 %v3567_v52, %v895_v58 }
 0x21f   : > { %v2847_v54 = vadd.f32 %v2846_v15, %v2656_v14  ;;  %v2916_v62 = vadd.f32 %v2915_v4, %v2885_v25  ;;  %v1565_v50 = vadd.f32 %v5743_v19, %v1449_v49  ;;  %v5107_v40 = vmul.f32 %v3570_v53, %v895_v58  ;;  %v3366_v19 = vld [vmem:[%s5511_s3] ss:$0 sm:$0xff] }
 0x220   : > { %v5110_v51 = vmul.f32 %v3515_v41, %v892_v24  ;;  %v5118_v49 = vadd.f32 %v1535_v12, %v4966_v20  ;;  %v813_v43 = vmax.f32 %v4974_v16, 0.0  ;;  %v811_v58 = vmax.f32 %v4977_v9, 0.0 }
 0x221   : > { %v2917_v3 = vadd.f32 %v2916_v62, %v2886_v39  ;;  %v1809_v31 = vadd.f32 %v4919_v45, %v1565_v50  ;;  %v5123_v56 = vmul.f32 %v3544_v27, %v892_v24  ;;  %v5126_v15 = vmul.f32 %v3549_v34, %v892_v24  ;;  %v2111_v45 = vld [vmem:[#allocation2 + $0x1a8] sm:$0x3] }
 0x222   : > { %v2138_v25 = vmul.f32 %v3570_v53, %v892_v24  ;;  %v5130_v4 = vmul.f32 %v3552_v35, %v892_v24  ;;  %v5133_v39 = vmul.f32 %v5088_v60, %v892_v24  ;;  %846 = vst [vmem:[#allocation2 + $0x159] sm:$0xff] %v813_v43  ;;  %844 = vst [vmem:[#allocation2 + $0x141] sm:$0xff] %v811_v58  ;;  %v816_v9 = vmax.f32 %v5010_v18, 0.0 }
 0x223   : > { %v5135_v20 = vadd.f32 %v2847_v54, %v2657_v28  ;;  %v5137_v16 = vadd.f32 %v2917_v3, %v2887_v5  ;;  %v2053_v62 = vadd.f32 %v4971_v11, %v1809_v31  ;;  %v1810_v12 = vadd.f32 %v4941_v0, %v1566_v61 }
 0x224   : > { %v782_v50 = vadd.f32 %v3366_v19, %v4997_v30  ;;  %v785_v24 = vadd.f32 %v3366_v19, %v5001_v32  ;;  %849 = vst [vmem:[#allocation2 + $0x181] sm:$0xff] %v816_v9  ;;  %v783_v28 = vadd.f32 %v3366_v19, %v5014_v47  ;;  %v2229_v54 = vmul.f32 %v3552_v35, %v5042_v63 }
 0x225   : > { %v2230_v18 = vmul.f32 %v3552_v35, %v5044_v46  ;;  %v2231_v11 = vmul.f32 %v3552_v35, %v2111_v45  ;;  %v2473_v5 = vmul.f32 %v5088_v60, %v5042_v63  ;;  %v5157_v30 = vmul.f32 %v5088_v60, %v5044_v46 }
 0x226   : > { %v814_v0 = vmax.f32 %v782_v50, 0.0  ;;  %v817_v61 = vmax.f32 %v785_v24, 0.0  ;;  %v815_v32 = vmax.f32 %v783_v28, 0.0  ;;  %v2355_v3 = vrot.slane %v2229_v54, 1 }
 0x227   : > { %5744 = vst [vmem:[#allocation36_spill] sm:$0xff] %v5157_v30  ;;  %v2356_v47 = vrot.slane %v2230_v18, 1  ;;  %v2358_v31 = vrot.slane %v2231_v11, 1  ;;  %v5161_v58 = vmul.f32 %v5088_v60, %v2111_v45  ;;  %v2599_v9 = vrot.slane %v2473_v5, 2 }
 0x228   : > { %847 = vst [vmem:[#allocation2 + $0x169] sm:$0xff] %v814_v0  ;;  %850 = vst [vmem:[#allocation2 + $0x189] sm:$0xff] %v817_v61  ;;  %v5539_v19 = vrot.slane %v5157_v30, 2  ;;  %v5165_v50 = vadd.f32 %v2138_v25, %v2053_v62  ;;  %v5170_v11 = vadd.f32 %v4948_v42, %v1810_v12 }
 0x229   : > { %5745 = vst [vmem:[#allocation37_spill] sm:$0xff] %v5161_v58  ;;  %848 = vst [vmem:[#allocation2 + $0x171] sm:$0xff] %v815_v32  ;;  %v896_v28 = vld [vmem:[#allocation2 + $0x158] sm:$0xff]  ;;  %v897_v54 = vld [vmem:[#allocation2 + $0x160] sm:$0x3]  ;;  %v5173_v45 = vsel %vm1069_vm0, %v2355_v3, %v2356_v47  ;;  %v5176_v0 = vsel %vm1069_vm0, %v2356_v47, %v2358_v31 }
 0x22a   : > { %v1500_v18 = vld [vmem:[#allocation2 + $0x160] sm:$0x3]  ;;  %5746 = vst [vmem:[#allocation14_spill] sm:$0xff] %v5173_v45  ;;  %5747 = vst [vmem:[#allocation40_spill] sm:$0xff] %v5176_v0  ;;  %v5181_v25 = vsel %vm1314_vm1, %v2599_v9, %v5539_v19  ;;  %v1016_v62 = vmul.f32 %v3494_v29, %v896_v28  ;;  %v1017_v61 = vmul.f32 %v3494_v29, %v897_v54  ;;  %v1497_v30 = vld [vmem:[#allocation2 + $0x148] sm:$0x3] }
 0x22b   : > { %5748 = vst [vmem:[#allocation38_spill] sm:$0xff] %v5181_v25  ;;  %v5186_v5 = vmul.f32 %v3501_v37, %v896_v28  ;;  %v934_v12 = vmul.f32 %v3515_v41, %v896_v28  ;;  %v1262_v32 = vmul.f32 %v3501_v37, %v897_v54  ;;  %v1619_v3 = vmul.f32 %v3544_v27, %v896_v28  ;;  %v2102_v63 = vld [vmem:[#allocation2 + $0x160] sm:$0x3] }
 0x22c   : > { %v1620_v47 = vmul.f32 %v3544_v27, %v1500_v18  ;;  %v1141_v31 = vrot.slane %v1016_v62, 1  ;;  %v1143_v9 = vrot.slane %v1017_v61, 1  ;;  %v5195_v21 = vmul.f32 %v3549_v34, %v896_v28  ;;  %v5208_v17 = vld [vmem:[#allocation2 + $0x140] sm:$0xff] }
 0x22d   : > { %v5540_v19 = vrot.slane %v5186_v5, 2  ;;  %v1388_v1 = vrot.slane %v1262_v32, 2  ;;  %v1741_v24 = vrot.slane %v1619_v3, 1  ;;  %v1864_v42 = vmul.f32 %v3549_v34, %v1500_v18  ;;  %v894_v32 = vld [vmem:[#allocation2 + $0x148] sm:$0x3] }
 0x22e   : > { %v1743_v46 = vrot.slane %v1620_v47, 1  ;;  %v5201_v54 = vsel %vm1069_vm0, %v1140_v22, %v1141_v31  ;;  %v1144_v43 = vsel %vm1069_vm0, %v1141_v31, %v1143_v9  ;;  %v5205_v62 = vmul.f32 %v3567_v52, %v896_v28 }
 0x22f   : > { %v5210_v3 = vadd.f32 %v1144_v43, %v934_v12  ;;  %v5215_v18 = vsel %vm1314_vm1, %v5540_v19, %v1388_v1  ;;  %v5220_v57 = vsel %vm1069_vm0, %v1740_v23, %v1741_v24  ;;  %v5223_v22 = vmul.f32 %v3570_v53, %v896_v28 }
 0x230   : > { %v1987_v47 = vrot.slane %v1864_v42, 2  ;;  %v2221_v31 = vmul.f32 %v3552_v35, %v896_v28  ;;  %v2222_v9 = vmul.f32 %v3552_v35, %v2102_v63  ;;  %v2465_v43 = vmul.f32 %v5088_v60, %v896_v28 }
 0x231   : > { %v5229_v12 = vsel %vm1069_vm0, %v1741_v24, %v1743_v46  ;;  %v2466_v1 = vmul.f32 %v5088_v60, %v2102_v63  ;;  %v1013_v36 = vmul.f32 %v3494_v29, %v5208_v17  ;;  %v1014_v23 = vmul.f32 %v3494_v29, %v894_v32 }
 0x232   : > { %v2341_v19 = vrot.slane %v2221_v31, 1  ;;  %v2343_v48 = vrot.slane %v2222_v9, 1  ;;  %v2585_v14 = vrot.slane %v2465_v43, 2  ;;  %v932_v42 = vmul.f32 %v3515_v41, %v5208_v17 }
 0x233   : > { %v2587_v13 = vrot.slane %v2466_v1, 2  ;;  %v1136_v61 = vrot.slane %v1013_v36, 1  ;;  %v1138_v25 = vrot.slane %v1014_v23, 1  ;;  %v1258_v46 = vmul.f32 %v3501_v37, %v5208_v17 }
 0x234   : > { %v5749_v24 = vrot.slane %v5195_v21, 2  ;;  %v5750_v28 = vrot.slane %v5083_v26, 1  ;;  %v2344_v9 = vsel %vm1069_vm0, %v2341_v19, %v2343_v48  ;;  %v1259_v43 = vmul.f32 %v3501_v37, %v894_v32 }
 0x235   : > { %v5751_v1 = vrot.slane %v5091_v2, 2  ;;  %v5752_v23 = vrot.slane %v5094_v38, 1  ;;  %v2588_v26 = vsel %vm1314_vm1, %v2585_v14, %v2587_v13  ;;  %v1536_v48 = vmul.f32 %v3567_v52, %v5208_v17 }
 0x236   : > { %v5242_v63 = vsel %vm1314_vm1, %v5749_v24, %v1987_v47  ;;  %v2342_v31 = vsel %vm1069_vm0, %v5750_v28, %v2341_v19  ;;  %v1139_v47 = vsel %vm1069_vm0, %v1136_v61, %v1138_v25  ;;  %v1381_v24 = vrot.slane %v1258_v46, 2 }
 0x237   : > { %v2586_v36 = vsel %vm1314_vm1, %v5751_v1, %v2585_v14  ;;  %v1137_v58 = vsel %vm1069_vm0, %v5752_v23, %v1136_v61  ;;  %v1209_v0 = vadd.f32 %v1139_v47, %v932_v42  ;;  %v1383_v28 = vrot.slane %v1259_v43, 2  ;;  %v2099_v1 = vld [vmem:[#allocation2 + $0x148] sm:$0x3] }
 0x238   : > { %v1208_v19 = vadd.f32 %v1137_v58, %v5110_v51  ;;  %v1616_v2 = vmul.f32 %v3544_v27, %v5208_v17  ;;  %v1617_v32 = vmul.f32 %v3544_v27, %v1497_v30  ;;  %v1860_v38 = vmul.f32 %v3549_v34, %v5208_v17 }
 0x239   : > { %v5753_v25 = vrot.slane %v5097_v44, 2  ;;  %v1384_v14 = vsel %vm1314_vm1, %v1381_v24, %v1383_v28  ;;  %v1568_v61 = vadd.f32 %v1536_v48, %v4979_v55  ;;  %v1861_v42 = vmul.f32 %v3549_v34, %v1497_v30  ;;  %v1504_v48 = vld [vmem:[#allocation2 + $0x180] sm:$0xff] }
 0x23a   : > { %v1454_v51 = vadd.f32 %v1384_v14, %v1209_v0  ;;  %v1736_v58 = vrot.slane %v1616_v2, 1  ;;  %v1738_v46 = vrot.slane %v1617_v32, 1  ;;  %v1980_v43 = vrot.slane %v1860_v38, 2 }
 0x23b   : > { %v1382_v13 = vsel %vm1314_vm1, %v5753_v25, %v1381_v24  ;;  %v1982_v23 = vrot.slane %v1861_v42, 2  ;;  %v2139_v47 = vmul.f32 %v3570_v53, %v5208_v17  ;;  %v2218_v45 = vmul.f32 %v3552_v35, %v5208_v17 }
 0x23c   : > { %v2219_v44 = vmul.f32 %v3552_v35, %v2099_v1  ;;  %v5276_v25 = vadd.f32 %v1382_v13, %v1208_v19  ;;  %v5754_v24 = vrot.slane %v5123_v56, 1  ;;  %v1739_v30 = vsel %vm1069_vm0, %v1736_v58, %v1738_v46 }
 0x23d   : > { %v5755_v0 = vrot.slane %v5126_v15, 2  ;;  %v1812_v32 = vadd.f32 %v1739_v30, %v1568_v61  ;;  %v1983_v38 = vsel %vm1314_vm1, %v1980_v43, %v1982_v23  ;;  %v2171_v14 = vadd.f32 %v2139_v47, %v5170_v11 }
 0x23e   : > { %v1737_v55 = vsel %vm1069_vm0, %v5754_v24, %v1736_v58  ;;  %v2336_v19 = vrot.slane %v2218_v45, 1  ;;  %v2338_v13 = vrot.slane %v2219_v44, 1  ;;  %v2462_v56 = vmul.f32 %v5088_v60, %v5208_v17 }
 0x23f   : > { %v1981_v28 = vsel %vm1314_vm1, %v5755_v0, %v1980_v43  ;;  %v1811_v2 = vadd.f32 %v1737_v55, %v5118_v49  ;;  %v2463_v42 = vmul.f32 %v5088_v60, %v2099_v1  ;;  %v5292_v58 = vadd.f32 %v5205_v62, %v1454_v51 }
 0x240   : > { %v2056_v46 = vadd.f32 %v1983_v38, %v1812_v32  ;;  %v5295_v24 = vmul.f32 %v3544_v27, %v1504_v48  ;;  %v5756_v49 = vrot.slane %v5130_v4, 1  ;;  %v2339_v11 = vsel %vm1069_vm0, %v2336_v19, %v2338_v13 }
 0x241   : > { %v2055_v15 = vadd.f32 %v1981_v28, %v1811_v2  ;;  %v2580_v45 = vrot.slane %v2462_v56, 2  ;;  %v2582_v43 = vrot.slane %v2463_v42, 2  ;;  %v2415_v51 = vadd.f32 %v2339_v11, %v2171_v14 }
 0x242   : > { %v2337_v61 = vsel %vm1069_vm0, %v5756_v49, %v2336_v19  ;;  %v2173_v1 = vadd.f32 %v5223_v22, %v2056_v46  ;;  %v5757_v23 = vrot.slane %v5133_v39, 2  ;;  %v5309_v4 = vmul.f32 %v3567_v52, %v1504_v48 }
 0x243   : > { %v2172_v17 = vadd.f32 %v5107_v40, %v2055_v15  ;;  %v2414_v62 = vadd.f32 %v2337_v61, %v5165_v50  ;;  %v2583_v44 = vsel %vm1314_vm1, %v2580_v45, %v2582_v43  ;;  %v5312_v55 = vmul.f32 %v3549_v34, %v1504_v48 }
 0x244   : > { %v2581_v47 = vsel %vm1314_vm1, %v5757_v23, %v2580_v45  ;;  %v2417_v0 = vadd.f32 %v2344_v9, %v2173_v1  ;;  %v2659_v22 = vadd.f32 %v2583_v44, %v2415_v51  ;;  %v1750_v50 = vrot.slane %v5295_v24, 1  ;;  %v898_v9 = vld [vmem:[#allocation2 + $0x168] sm:$0xff] }
 0x245   : > { %v2416_v30 = vadd.f32 %v2342_v31, %v2172_v17  ;;  %v2658_v40 = vadd.f32 %v2581_v47, %v2414_v62  ;;  %v1994_v28 = vrot.slane %v5312_v55, 2  ;;  %v5317_v39 = vmul.f32 %v3552_v35, %v1504_v48 }
 0x246   : > { %v5320_v2 = vmul.f32 %v5088_v60, %v1504_v48  ;;  %v5322_v38 = vadd.f32 %v2588_v26, %v2417_v0  ;;  %v2889_v13 = vmul.f32 %v2659_v22, %v2659_v22  ;;  %v5326_v56 = vmul.f32 %v3570_v53, %v1504_v48  ;;  %v1505_v0 = vld [vmem:[#allocation2 + $0x188] sm:$0xff] }
 0x247   : > { %v2660_v32 = vadd.f32 %v2586_v36, %v2416_v30  ;;  %v3204_v14 = vpack.c.bf16 %v2659_v22, %v2658_v40  ;;  %v2849_v31 = vadd.f32 %v5135_v20, %v2658_v40  ;;  %v2888_v19 = vmul.f32 %v2658_v40, %v2658_v40  ;;  %v1506_v40 = vld [vmem:[#allocation2 + $0x190] sm:$0x3] }
 0x248   : > { %v2350_v42 = vrot.slane %v5317_v39, 1  ;;  %v2594_v36 = vrot.slane %v5320_v2, 2  ;;  %v5334_v61 = vmul.f32 %v3515_v41, %v898_v9  ;;  %v5337_v20 = vmul.f32 %v3494_v29, %v898_v9 }
 0x249   : > { %3236 = vst [vmem:[%s3439_s13 + $0x58] sm:$0xff] %v3204_v14   ;;  %v3209_v15 = vpack.c.bf16 %v5322_v38, %v2660_v32  ;;  %v2850_v46 = vadd.f32 %v2849_v31, %v2659_v22  ;;  %v2890_v49 = vmul.f32 %v2660_v32, %v2660_v32  ;;  %v2919_v26 = vadd.f32 %v5137_v16, %v2888_v19 }
 0x24a   : > { %v1210_v48 = vadd.f32 %v5201_v54, %v5069_v8  ;;  %v5345_v45 = vmul.f32 %v3501_v37, %v898_v9  ;;  %v5758_v43 = vrot.slane %v5186_v5, 2  ;;  %v5759_v17 = vrot.slane %v5054_v6, 2 }
 0x24b   : > { %3237 = vst [vmem:[%s3439_s13 + $0x60] sm:$0xff] %v3209_v15   ;;  %v5342_v11 = vadd.f32 %v2850_v46, %v2660_v32  ;;  %v1539_v1 = vmul.f32 %v3567_v52, %v898_v9  ;;  %v2920_v62 = vadd.f32 %v2919_v26, %v2889_v13  ;;  %v1145_v51 = vrot.slane %v5337_v20, 1  ;;  %v2108_v46 = vld [vmem:[#allocation2 + $0x190] sm:$0x3] }
 0x24c   : > { %v1387_v16 = vsel %vm1314_vm1, %v5759_v17, %v5758_v43  ;;  %v1569_v8 = vadd.f32 %v5101_v33, %v5276_v25  ;;  %v1390_v54 = vrot.slane %v5345_v45, 2  ;;  %v5358_v47 = vmul.f32 %v3544_v27, %v898_v9 }
 0x24d   : > { %v1455_v23 = vadd.f32 %v1387_v16, %v1210_v48  ;;  %v5361_v5 = vmul.f32 %v3549_v34, %v898_v9  ;;  %v5760_v6 = vrot.slane %v5195_v21, 2  ;;  %v5761_v44 = vrot.slane %v5080_v59, 2 }
 0x24e   : > { %v5368_v22 = vadd.f32 %v2920_v62, %v2890_v49  ;;  %v1813_v33 = vadd.f32 %v5220_v57, %v1569_v8  ;;  %v2142_v25 = vmul.f32 %v3570_v53, %v898_v9  ;;  %v1745_v14 = vrot.slane %v5358_v47, 1 }
 0x24f   : > { %v1986_v30 = vsel %vm1314_vm1, %v5761_v44, %v5760_v6  ;;  %v5370_v32 = vadd.f32 %v1539_v1, %v1455_v23  ;;  %v1989_v31 = vrot.slane %v5361_v5, 2  ;;  %v5377_v21 = vmul.f32 %v3552_v35, %v898_v9  ;;  %v899_v6 = vld [vmem:[#allocation2 + $0x170] sm:$0xff] }
 0x250   : > { %v5380_v59 = vmul.f32 %v5088_v60, %v898_v9  ;;  %v2057_v19 = vadd.f32 %v1986_v30, %v1813_v33  ;;  %v5383_v13 = vmul.f32 %v3567_v52, %v1505_v0  ;;  %v1625_v15 = vmul.f32 %v3544_v27, %v1505_v0 }
 0x251   : > { %v1626_v57 = vmul.f32 %v3544_v27, %v1506_v40  ;;  %v2345_v49 = vrot.slane %v5377_v21, 1  ;;  %v1869_v20 = vmul.f32 %v3549_v34, %v1505_v0  ;;  %v1870_v48 = vmul.f32 %v3549_v34, %v1506_v40 }
 0x252   : > { %v5391_v43 = vadd.f32 %v2142_v25, %v2057_v19  ;;  %v1751_v9 = vrot.slane %v1625_v15, 1  ;;  %v5394_v16 = vmul.f32 %v3570_v53, %v1505_v0  ;;  %v2227_v23 = vmul.f32 %v3552_v35, %v1505_v0  ;;  %v900_v25 = vld [vmem:[#allocation2 + $0x178] sm:$0x3] }
 0x253   : > { %v1753_v17 = vrot.slane %v1626_v57, 1  ;;  %v1995_v1 = vrot.slane %v1869_v20, 2  ;;  %v1997_v62 = vrot.slane %v1870_v48, 2  ;;  %v2228_v8 = vmul.f32 %v3552_v35, %v2108_v46 }
 0x254   : > { %v1752_v44 = vsel %vm1069_vm0, %v1750_v50, %v1751_v9  ;;  %v2471_v40 = vmul.f32 %v5088_v60, %v1505_v0  ;;  %v2472_v33 = vmul.f32 %v5088_v60, %v2108_v46  ;;  %v2351_v57 = vrot.slane %v2227_v23, 1 }
 0x255   : > { %v1754_v30 = vsel %vm1069_vm0, %v1751_v9, %v1753_v17  ;;  %v1996_v19 = vsel %vm1314_vm1, %v1994_v28, %v1995_v1  ;;  %v1998_v15 = vsel %vm1314_vm1, %v1995_v1, %v1997_v62  ;;  %v2353_v20 = vrot.slane %v2228_v8, 1  ;;  %v1503_v9 = vld [vmem:[#allocation2 + $0x178] sm:$0x3] }
 0x256   : > { %v2595_v48 = vrot.slane %v2471_v40, 2  ;;  %v2597_v26 = vrot.slane %v2472_v33, 2  ;;  %v936_v24 = vmul.f32 %v3515_v41, %v899_v6  ;;  %v1019_v50 = vmul.f32 %v3494_v29, %v899_v6 }
 0x257   : > { %v5413_v0 = vsel %vm1069_vm0, %v2350_v42, %v2351_v57  ;;  %v5416_v46 = vsel %vm1069_vm0, %v2351_v57, %v2353_v20  ;;  %v1020_v55 = vmul.f32 %v3494_v29, %v900_v25  ;;  %v1264_v28 = vmul.f32 %v3501_v37, %v899_v6 }
 0x258   : > { %v5423_v17 = vsel %vm1314_vm1, %v2594_v36, %v2595_v48  ;;  %v5426_v41 = vsel %vm1314_vm1, %v2595_v48, %v2597_v26  ;;  %v1146_v39 = vrot.slane %v1019_v50, 1  ;;  %v1265_v42 = vmul.f32 %v3501_v37, %v900_v25 }
 0x259   : > { %v1148_v1 = vrot.slane %v1020_v55, 1  ;;  %v1391_v62 = vrot.slane %v1264_v28, 2  ;;  %v1456_v23 = vadd.f32 %v5215_v18, %v5210_v3  ;;  %v1540_v29 = vmul.f32 %v3567_v52, %v899_v6 }
 0x25a   : > { %v1147_v8 = vsel %vm1069_vm0, %v1145_v51, %v1146_v39  ;;  %v1393_v40 = vrot.slane %v1265_v42, 2  ;;  %v1622_v2 = vmul.f32 %v3544_v27, %v899_v6  ;;  %v1623_v36 = vmul.f32 %v3544_v27, %v1503_v9 }
 0x25b   : > { %v1149_v26 = vsel %vm1069_vm0, %v1146_v39, %v1148_v1  ;;  %v1212_v33 = vadd.f32 %v1147_v8, %v5334_v61  ;;  %v1392_v37 = vsel %vm1314_vm1, %v1390_v54, %v1391_v62  ;;  %v1572_v25 = vadd.f32 %v1540_v29, %v1456_v23  ;;  %v2105_v54 = vld [vmem:[#allocation2 + $0x178] sm:$0x3] }
 0x25c   : > { %v1213_v57 = vadd.f32 %v1149_v26, %v936_v24  ;;  %v1394_v3 = vsel %vm1314_vm1, %v1391_v62, %v1393_v40  ;;  %v1746_v52 = vrot.slane %v1622_v2, 1  ;;  %v1748_v18 = vrot.slane %v1623_v36, 1  ;;  %v5762_v26 = vld [vmem:[#allocation14_spill] sm:$0xff] }
 0x25d   : > { %v1457_v51 = vadd.f32 %v1392_v37, %v1212_v33  ;;  %v1814_v20 = vadd.f32 %v5229_v12, %v5292_v58  ;;  %v1866_v27 = vmul.f32 %v3549_v34, %v899_v6  ;;  %v1867_v48 = vmul.f32 %v3549_v34, %v1503_v9  ;;  %v5764_v37 = vld [vmem:[#allocation40_spill] sm:$0xff] }
 0x25e   : > { %v1458_v50 = vadd.f32 %v1394_v3, %v1213_v57  ;;  %v1747_v61 = vsel %vm1069_vm0, %v1745_v14, %v1746_v52  ;;  %v1749_v45 = vsel %vm1069_vm0, %v1746_v52, %v1748_v18  ;;  %v2143_v24 = vmul.f32 %v3570_v53, %v899_v6  ;;  %v5769_v18 = vld [vmem:[#allocation38_spill] sm:$0xff] }
 0x25f   : > { %v1573_v55 = vadd.f32 %v5309_v4, %v1457_v51  ;;  %v1815_v28 = vadd.f32 %v1747_v61, %v5370_v32  ;;  %v1816_v39 = vadd.f32 %v1749_v45, %v1572_v25  ;;  %v1990_v12 = vrot.slane %v1866_v27, 2  ;;  %v5765_v25 = vld [vmem:[#allocation37_spill] sm:$0xff] }
 0x260   : > { %v1574_v58 = vadd.f32 %v5383_v13, %v1458_v50  ;;  %v1992_v42 = vrot.slane %v1867_v48, 2  ;;  %v2058_v34 = vadd.f32 %v5242_v63, %v1814_v20  ;;  %v2224_v47 = vmul.f32 %v3552_v35, %v899_v6 }
 0x261   : > { %v1817_v9 = vadd.f32 %v1752_v44, %v1573_v55  ;;  %v1991_v14 = vsel %vm1314_vm1, %v1989_v31, %v1990_v12  ;;  %v2225_v53 = vmul.f32 %v3552_v35, %v2105_v54  ;;  %v2468_v4 = vmul.f32 %v5088_v60, %v899_v6 }
 0x262   : > { %v1818_v1 = vadd.f32 %v1754_v30, %v1574_v58  ;;  %v1993_v32 = vsel %vm1314_vm1, %v1990_v12, %v1992_v42  ;;  %v2059_v62 = vadd.f32 %v1991_v14, %v1815_v28  ;;  %v2175_v23 = vadd.f32 %v2143_v24, %v2058_v34 }
 0x263   : > { %v2060_v13 = vadd.f32 %v1993_v32, %v1816_v39  ;;  %v2061_v29 = vadd.f32 %v1996_v19, %v1817_v9  ;;  %v2346_v8 = vrot.slane %v2224_v47, 1  ;;  %v2348_v63 = vrot.slane %v2225_v53, 1 }
 0x264   : > { %v2062_v40 = vadd.f32 %v1998_v15, %v1818_v1  ;;  %v2176_v44 = vadd.f32 %v5326_v56, %v2059_v62  ;;  %v2469_v5 = vmul.f32 %v5088_v60, %v2105_v54  ;;  %v2590_v2 = vrot.slane %v2468_v4, 2 }
 0x265   : > { %v2177_v31 = vadd.f32 %v5394_v16, %v2060_v13  ;;  %v2178_v35 = vadd.f32 %v5061_v10, %v2061_v29  ;;  %v2347_v6 = vsel %vm1069_vm0, %v2345_v49, %v2346_v8  ;;  %v2349_v30 = vsel %vm1069_vm0, %v2346_v8, %v2348_v63 }
 0x266   : > { %v2179_v19 = vadd.f32 %v5065_v7, %v2062_v40  ;;  %v2418_v36 = vadd.f32 %v2347_v6, %v5391_v43  ;;  %v2419_v15 = vadd.f32 %v2349_v30, %v2175_v23  ;;  %v2420_v56 = vadd.f32 %v5413_v0, %v2176_v44  ;;  %v5767_v7 = vld [vmem:[#allocation36_spill] sm:$0xff] }
 0x267   : > { %v2421_v60 = vadd.f32 %v5416_v46, %v2177_v31  ;;  %v2422_v33 = vadd.f32 %v5762_v26, %v2178_v35  ;;  %v5763_v16 = vrot.slane %v5380_v59, 2  ;;  %v2592_v21 = vrot.slane %v2469_v5, 2 }
 0x268   : > { %v2423_v49 = vadd.f32 %v5764_v37, %v2179_v19  ;;  %v5766_v57 = vrot.slane %v5765_v25, 2  ;;  %v5768_v3 = vrot.slane %v5767_v7, 2  ;;  %v2664_v0 = vadd.f32 %v5423_v17, %v2420_v56 }
 0x269   : > { %v2591_v10 = vsel %vm1314_vm1, %v5763_v16, %v2590_v2  ;;  %v2593_v46 = vsel %vm1314_vm1, %v2590_v2, %v2592_v21  ;;  %v2665_v59 = vadd.f32 %v5426_v41, %v2421_v60  ;;  %v2666_v51 = vadd.f32 %v5769_v18, %v2422_v33 }
 0x26a   : > { %v2603_v43 = vsel %vm1314_vm1, %v5768_v3, %v5766_v57  ;;  %v2662_v52 = vadd.f32 %v2591_v10, %v2418_v36  ;;  %v2852_v20 = vadd.f32 %v5342_v11, %v5322_v38  ;;  %v2663_v27 = vadd.f32 %v2593_v46, %v2419_v15 }
 0x26b   : > { %v2667_v48 = vadd.f32 %v2603_v43, %v2423_v49  ;;  %v2891_v50 = vmul.f32 %v5322_v38, %v5322_v38  ;;  %v3219_v61 = vpack.c.bf16 %v2665_v59, %v2664_v0  ;;  %v2894_v58 = vmul.f32 %v2664_v0, %v2664_v0 }
 0x26c   : > { %v2853_v45 = vadd.f32 %v2852_v20, %v2662_v52  ;;  %v3214_v54 = vpack.c.bf16 %v2663_v27, %v2662_v52  ;;  %v2892_v55 = vmul.f32 %v2662_v52, %v2662_v52  ;;  %v2893_v39 = vmul.f32 %v2663_v27, %v2663_v27 }
 0x26d   : > { %v3224_v17 = vpack.c.bf16 %v2667_v48, %v2666_v51  ;;  %3239 = vst [vmem:[%s3439_s13 + $0x70] sm:$0xff] %v3219_v61   ;;  %v2922_v28 = vadd.f32 %v5368_v22, %v2891_v50  ;;  %v2895_v47 = vmul.f32 %v2665_v59, %v2665_v59  ;;  %v2896_v14 = vmul.f32 %v2666_v51, %v2666_v51 }
 0x26e   : > { %v2854_v24 = vadd.f32 %v2853_v45, %v2663_v27  ;;  %3238 = vst [vmem:[%s3439_s13 + $0x68] sm:$0xff] %v3214_v54   ;;  %v2897_v1 = vmul.f32 %v2667_v48, %v2667_v48 }
 0x26f   : > { %3240 = vst [vmem:[%s3439_s13 + $0x78] sm:$0xff] %v3224_v17   ;;  %v2923_v12 = vadd.f32 %v2922_v28, %v2892_v55 }
 0x270   : > { %v2855_v41 = vadd.f32 %v2854_v24, %v2664_v0 }
 0x271   : > { %v2924_v42 = vadd.f32 %v2923_v12, %v2893_v39 }
 0x272   : > { %v2856_v11 = vadd.f32 %v2855_v41, %v2665_v59 }
 0x273   : > { %v2925_v38 = vadd.f32 %v2924_v42, %v2894_v58 }
 0x274   : > { %v2857_v34 = vadd.f32 %v2856_v11, %v2666_v51 }
 0x275   : > { %v2926_v53 = vadd.f32 %v2925_v38, %v2895_v47 }
 0x276   : > { %v2858_v9 = vadd.f32 %v2857_v34, %v2667_v48 }
 0x277   : > { %v2927_v32 = vadd.f32 %v2926_v53, %v2896_v14 }
 0x278   : > { %v2859_v4 = vrot.slane %v2858_v9, 4 }
 0x279   : > { %v2928_v62 = vadd.f32 %v2927_v32, %v2897_v1 }
 0x27a   : > { %v2860_v22 = vadd.f32 %v2859_v4, %v2858_v9 }
 0x27b   : > { %v2929_v13 = vrot.slane %v2928_v62, 4 }
 0x27c   : > { %v2861_v23 = vrot.slane %v2860_v22, 2 }
 0x27d   : > { %v2930_v8 = vadd.f32 %v2929_v13, %v2928_v62 }
 0x27e   : > { %v2862_v29 = vadd.f32 %v2861_v23, %v2860_v22 }
 0x27f   : > { %v2931_v40 = vrot.slane %v2930_v8, 2 }
 0x280   : > { %v2863_v63 = vrot.slane %v2862_v29, 1 }
 0x281   : > { %v2932_v5 = vadd.f32 %v2931_v40, %v2930_v8 }
 0x282   : > { %v2864_v44 = vadd.f32 %v2863_v63, %v2862_v29 }
 0x283   : > { %v2933_v2 = vrot.slane %v2932_v5, 1 }
 0x284   : > { %2865 = vst [vmem:[%s292_s30] sm:$0x1] %v2864_v44 }
 0x285   : > { %v2934_v31 = vadd.f32 %v2933_v2, %v2932_v5 }
 0x287   : > { %2935 = vst [vmem:[%s295_s16] sm:$0x1] %v2934_v31 }
 0x288 PF: > { %s18_s24 = sadd.s32 1, %s3373_s24  }
 0x289   : > { %p15_p5 = scmp.ge.s32.totalorder %s18_s24, 4  }
 0x28b   :  { %17 = sbr.rel (!%p15_p5) target bundleno = 1 (0x1), region = 100 }

// kernel: inverted_residual_block.13
= control target key start
LH: loop header
LB: loop body
LE: loop exit
PB: predicated region body
PF: predicated region fallthrough
CT: control target
= control target key end

     0   :  { %s1414_s0 = inlined_call_operand.vmem [shape: bf16[512,128], index: 0, kind: input, shape index: {}]   ;;  %s1415_s1 = inlined_call_operand.vmem [shape: f32[1,128], index: 1, kind: input, shape index: {}]   ;;  %s1416_s2 = inlined_call_operand.vmem [shape: f32[1,128], index: 2, kind: input, shape index: {}]   ;;  %s1417_s3 = inlined_call_operand.vmem [shape: bf16[512,128], index: 3, kind: input, shape index: {}]   ;;  %s1418_s4 = inlined_call_operand.vmem [shape: f32[512,128], index: 4, kind: output, shape index: {}]  }
   0x1   :  { %v550_v0 = vld [vmem:[%s1414_s0] sm:$0xff]   ;;  %v805_v5 = vld [vmem:[%s1414_s0 + $0x8] sm:$0xff]   ;;  %v806_v12 = vld [vmem:[%s1414_s0 + $0x10] sm:$0xff]  }
   0x2   :  { %v898_v1 = vld [vmem:[%s1415_s1] ss:$0 sm:$0xff]  ;;  %v551_v2 = vunpack.c.l.bf16 %v550_v0  ;;  %v552_v4 = vunpack.c.h.bf16 %v550_v0  ;;  %v836_v6 = vld [vmem:[%s1417_s3 + $0x8] sm:$0xff]   ;;  %v555_v10 = vunpack.c.l.bf16 %v805_v5  ;;  %v837_v13 = vld [vmem:[%s1417_s3 + $0x10] sm:$0xff]   ;;  %v556_v16 = vunpack.c.h.bf16 %v805_v5 }
   0x3   :  { %v678_v3 = vld [vmem:[%s1417_s3] sm:$0xff]   ;;  %v683_v11 = vunpack.c.l.bf16 %v836_v6  ;;  %v684_v17 = vunpack.c.h.bf16 %v836_v6  ;;  %v807_v18 = vld [vmem:[%s1414_s0 + $0x18] sm:$0xff]   ;;  %v559_v20 = vunpack.c.l.bf16 %v806_v12  ;;  %v687_v21 = vunpack.c.l.bf16 %v837_v13  ;;  %v809_v45 = vld [vmem:[%s1414_s0 + $0x28] sm:$0xff]  }
   0x4   :  { %v912_v7 = vld [vmem:[%s1416_s2] ss:$0 sm:$0xff]  ;;  %v679_v8 = vunpack.c.l.bf16 %v678_v3  ;;  %v680_v9 = vunpack.c.h.bf16 %v678_v3  ;;  %v152_v14 = vmul.f32 %v551_v2, %v898_v1  ;;  %v153_v15 = vmul.f32 %v552_v4, %v898_v1  ;;  %v838_v23 = vld [vmem:[%s1417_s3 + $0x18] sm:$0xff]   ;;  %v840_v50 = vld [vmem:[%s1417_s3 + $0x28] sm:$0xff]  }
   0x5   :  { %v154_v19 = vmul.f32 %v555_v10, %v898_v1  ;;  %v560_v22 = vunpack.c.h.bf16 %v806_v12  ;;  %v155_v26 = vmul.f32 %v556_v16, %v898_v1  ;;  %v688_v27 = vunpack.c.h.bf16 %v837_v13  ;;  %v808_v32 = vld [vmem:[%s1414_s0 + $0x20] sm:$0xff]   ;;  %v810_v55 = vld [vmem:[%s1414_s0 + $0x30] sm:$0xff]   ;;  %v811_v6 = vld [vmem:[%s1414_s0 + $0x38] sm:$0xff]  }
   0x6   :  { %v223_v24 = vadd.f32 %v912_v7, %v152_v14  ;;  %v224_v25 = vadd.f32 %v912_v7, %v153_v15  ;;  %v156_v29 = vmul.f32 %v559_v20, %v898_v1  ;;  %v563_v31 = vunpack.c.l.bf16 %v807_v18  ;;  %v839_v41 = vld [vmem:[%s1417_s3 + $0x20] sm:$0xff]   ;;  %v841_v0 = vld [vmem:[%s1417_s3 + $0x30] sm:$0xff]   ;;  %v842_v16 = vld [vmem:[%s1417_s3 + $0x38] sm:$0xff]  }
   0x7   :  { %v225_v28 = vadd.f32 %v912_v7, %v154_v19  ;;  %v157_v30 = vmul.f32 %v560_v22, %v898_v1  ;;  %v226_v35 = vadd.f32 %v912_v7, %v155_v26  ;;  %v691_v36 = vunpack.c.l.bf16 %v838_v23  ;;  %v843_v26 = vld [vmem:[%s1417_s3 + $0x40] sm:$0xff]  }
   0x8   :  { %v415_v33 = vadd.f32 %v679_v8, %v223_v24  ;;  %v416_v34 = vadd.f32 %v680_v9, %v224_v25  ;;  %v227_v38 = vadd.f32 %v912_v7, %v156_v29  ;;  %v158_v40 = vmul.f32 %v563_v31, %v898_v1  ;;  %v813_v31 = vld [vmem:[%s1414_s0 + $0x48] sm:$0xff]  }
   0x9   :  { %v417_v37 = vadd.f32 %v683_v11, %v225_v28  ;;  %v228_v39 = vadd.f32 %v912_v7, %v157_v30  ;;  %v418_v42 = vadd.f32 %v684_v17, %v226_v35  ;;  %v564_v43 = vunpack.c.h.bf16 %v807_v18  ;;  %v812_v17 = vld [vmem:[%s1414_s0 + $0x40] sm:$0xff]  }
   0xa   :  { %479 = vst [vmem:[%s1418_s4] sm:$0xff] %v415_v33  ;;  %480 = vst [vmem:[%s1418_s4 + $0x8] sm:$0xff] %v416_v34  ;;  %v567_v44 = vunpack.c.l.bf16 %v808_v32  ;;  %v419_v46 = vadd.f32 %v687_v21, %v227_v38  ;;  %v229_v48 = vadd.f32 %v912_v7, %v158_v40  ;;  %v692_v49 = vunpack.c.h.bf16 %v838_v23 }
   0xb   :  { %481 = vst [vmem:[%s1418_s4 + $0x10] sm:$0xff] %v417_v37  ;;  %v420_v47 = vadd.f32 %v688_v27, %v228_v39  ;;  %482 = vst [vmem:[%s1418_s4 + $0x18] sm:$0xff] %v418_v42  ;;  %v159_v51 = vmul.f32 %v564_v43, %v898_v1  ;;  %v695_v53 = vunpack.c.l.bf16 %v839_v41  ;;  %v568_v54 = vunpack.c.h.bf16 %v808_v32 }
   0xc   :  { %v160_v52 = vmul.f32 %v567_v44, %v898_v1  ;;  %483 = vst [vmem:[%s1418_s4 + $0x20] sm:$0xff] %v419_v46  ;;  %v421_v56 = vadd.f32 %v691_v36, %v229_v48  ;;  %v696_v57 = vunpack.c.h.bf16 %v839_v41  ;;  %v571_v58 = vunpack.c.l.bf16 %v809_v45  ;;  %v844_v36 = vld [vmem:[%s1417_s3 + $0x48] sm:$0xff]   ;;  %v814_v41 = vld [vmem:[%s1414_s0 + $0x50] sm:$0xff]  }
   0xd   :  { %484 = vst [vmem:[%s1418_s4 + $0x28] sm:$0xff] %v420_v47  ;;  %v572_v59 = vunpack.c.h.bf16 %v809_v45  ;;  %v230_v60 = vadd.f32 %v912_v7, %v159_v51  ;;  %v161_v62 = vmul.f32 %v568_v54, %v898_v1  ;;  %v699_v63 = vunpack.c.l.bf16 %v840_v50 }
   0xe   :  { %v231_v61 = vadd.f32 %v912_v7, %v160_v52  ;;  %485 = vst [vmem:[%s1418_s4 + $0x30] sm:$0xff] %v421_v56  ;;  %v162_v2 = vmul.f32 %v571_v58, %v898_v1  ;;  %v700_v4 = vunpack.c.h.bf16 %v840_v50  ;;  %v575_v5 = vunpack.c.l.bf16 %v810_v55  ;;  %v845_v50 = vld [vmem:[%s1417_s3 + $0x50] sm:$0xff]  }
   0xf   :  { %v163_v3 = vmul.f32 %v572_v59, %v898_v1  ;;  %v422_v8 = vadd.f32 %v692_v49, %v230_v60  ;;  %v232_v10 = vadd.f32 %v912_v7, %v161_v62  ;;  %v576_v11 = vunpack.c.h.bf16 %v810_v55  ;;  %v815_v55 = vld [vmem:[%s1414_s0 + $0x58] sm:$0xff]  }
  0x10   :  { %v423_v9 = vadd.f32 %v695_v53, %v231_v61  ;;  %v233_v12 = vadd.f32 %v912_v7, %v162_v2  ;;  %v164_v14 = vmul.f32 %v575_v5, %v898_v1  ;;  %v703_v15 = vunpack.c.l.bf16 %v841_v0  ;;  %v846_v60 = vld [vmem:[%s1417_s3 + $0x58] sm:$0xff]   ;;  %v816_v2 = vld [vmem:[%s1414_s0 + $0x60] sm:$0xff]  }
  0x11   :  { %v234_v13 = vadd.f32 %v912_v7, %v163_v3  ;;  %486 = vst [vmem:[%s1418_s4 + $0x38] sm:$0xff] %v422_v8  ;;  %v424_v18 = vadd.f32 %v696_v57, %v232_v10  ;;  %v165_v19 = vmul.f32 %v576_v11, %v898_v1  ;;  %v704_v20 = vunpack.c.h.bf16 %v841_v0 }
  0x12   :  { %487 = vst [vmem:[%s1418_s4 + $0x40] sm:$0xff] %v423_v9  ;;  %v579_v21 = vunpack.c.l.bf16 %v811_v6  ;;  %v425_v22 = vadd.f32 %v699_v63, %v233_v12  ;;  %v235_v24 = vadd.f32 %v912_v7, %v164_v14  ;;  %v580_v25 = vunpack.c.h.bf16 %v811_v6  ;;  %v847_v12 = vld [vmem:[%s1417_s3 + $0x60] sm:$0xff]  }
  0x13   :  { %v426_v23 = vadd.f32 %v700_v4, %v234_v13  ;;  %488 = vst [vmem:[%s1418_s4 + $0x48] sm:$0xff] %v424_v18  ;;  %v236_v27 = vadd.f32 %v912_v7, %v165_v19  ;;  %v707_v29 = vunpack.c.l.bf16 %v842_v16  ;;  %v583_v30 = vunpack.c.l.bf16 %v812_v17 }
  0x14   :  { %v166_v28 = vmul.f32 %v579_v21, %v898_v1  ;;  %489 = vst [vmem:[%s1418_s4 + $0x50] sm:$0xff] %v425_v22  ;;  %v427_v32 = vadd.f32 %v703_v15, %v235_v24  ;;  %v167_v33 = vmul.f32 %v580_v25, %v898_v1  ;;  %v708_v34 = vunpack.c.h.bf16 %v842_v16  ;;  %v848_v22 = vld [vmem:[%s1417_s3 + $0x68] sm:$0xff]  }
  0x15   :  { %490 = vst [vmem:[%s1418_s4 + $0x58] sm:$0xff] %v426_v23  ;;  %v584_v35 = vunpack.c.h.bf16 %v812_v17  ;;  %v428_v37 = vadd.f32 %v704_v20, %v236_v27  ;;  %v168_v39 = vmul.f32 %v583_v30, %v898_v1  ;;  %v711_v40 = vunpack.c.l.bf16 %v843_v26  ;;  %v817_v17 = vld [vmem:[%s1414_s0 + $0x68] sm:$0xff]   ;;  %v818_v27 = vld [vmem:[%s1414_s0 + $0x70] sm:$0xff]  }
  0x16   :  { %v237_v38 = vadd.f32 %v912_v7, %v166_v28  ;;  %491 = vst [vmem:[%s1418_s4 + $0x60] sm:$0xff] %v427_v32  ;;  %v238_v42 = vadd.f32 %v912_v7, %v167_v33  ;;  %v712_v44 = vunpack.c.h.bf16 %v843_v26  ;;  %v587_v45 = vunpack.c.l.bf16 %v813_v31 }
  0x17   :  { %v169_v43 = vmul.f32 %v584_v35, %v898_v1  ;;  %492 = vst [vmem:[%s1418_s4 + $0x68] sm:$0xff] %v428_v37  ;;  %v239_v47 = vadd.f32 %v912_v7, %v168_v39  ;;  %v715_v48 = vunpack.c.l.bf16 %v844_v36  ;;  %v588_v49 = vunpack.c.h.bf16 %v813_v31 }
  0x18   :  { %v429_v46 = vadd.f32 %v707_v29, %v237_v38  ;;  %v430_v51 = vadd.f32 %v708_v34, %v238_v42  ;;  %v170_v53 = vmul.f32 %v587_v45, %v898_v1  ;;  %v591_v54 = vunpack.c.l.bf16 %v814_v41 }
  0x19   :  { %v240_v52 = vadd.f32 %v912_v7, %v169_v43  ;;  %v431_v56 = vadd.f32 %v711_v40, %v239_v47  ;;  %v171_v57 = vmul.f32 %v588_v49, %v898_v1  ;;  %v716_v58 = vunpack.c.h.bf16 %v844_v36  ;;  %v849_v36 = vld [vmem:[%s1417_s3 + $0x70] sm:$0xff]  }
  0x1a   :  { %493 = vst [vmem:[%s1418_s4 + $0x70] sm:$0xff] %v429_v46  ;;  %v592_v59 = vunpack.c.h.bf16 %v814_v41  ;;  %494 = vst [vmem:[%s1418_s4 + $0x78] sm:$0xff] %v430_v51  ;;  %v241_v62 = vadd.f32 %v912_v7, %v170_v53  ;;  %v172_v63 = vmul.f32 %v591_v54, %v898_v1  ;;  %v719_v0 = vunpack.c.l.bf16 %v845_v50  ;;  %v819_v41 = vld [vmem:[%s1414_s0 + $0x78] sm:$0xff]   ;;  %v820_v51 = vld [vmem:[%s1414_s0 + $0x80] sm:$0xff]  }
  0x1b   :  { %v432_v61 = vadd.f32 %v712_v44, %v240_v52  ;;  %495 = vst [vmem:[%s1418_s4 + $0x80] sm:$0xff] %v431_v56  ;;  %v242_v3 = vadd.f32 %v912_v7, %v171_v57  ;;  %v720_v5 = vunpack.c.h.bf16 %v845_v50  ;;  %v595_v6 = vunpack.c.l.bf16 %v815_v55  ;;  %v850_v46 = vld [vmem:[%s1417_s3 + $0x78] sm:$0xff]  }
  0x1c   :  { %v173_v4 = vmul.f32 %v592_v59, %v898_v1  ;;  %v433_v8 = vadd.f32 %v715_v48, %v241_v62  ;;  %v243_v9 = vadd.f32 %v912_v7, %v172_v63  ;;  %v723_v10 = vunpack.c.l.bf16 %v846_v60 }
  0x1d   :  { %496 = vst [vmem:[%s1418_s4 + $0x88] sm:$0xff] %v432_v61  ;;  %v596_v11 = vunpack.c.h.bf16 %v815_v55  ;;  %v434_v13 = vadd.f32 %v716_v58, %v242_v3  ;;  %v174_v15 = vmul.f32 %v595_v6, %v898_v1  ;;  %v599_v16 = vunpack.c.l.bf16 %v816_v2 }
  0x1e   :  { %v244_v14 = vadd.f32 %v912_v7, %v173_v4  ;;  %497 = vst [vmem:[%s1418_s4 + $0x90] sm:$0xff] %v433_v8  ;;  %v435_v18 = vadd.f32 %v719_v0, %v243_v9  ;;  %v724_v20 = vunpack.c.h.bf16 %v846_v60  ;;  %v600_v21 = vunpack.c.h.bf16 %v816_v2  ;;  %v851_v60 = vld [vmem:[%s1417_s3 + $0x80] sm:$0xff]   ;;  %v821_v2 = vld [vmem:[%s1414_s0 + $0x88] sm:$0xff]  }
  0x1f   :  { %v175_v19 = vmul.f32 %v596_v11, %v898_v1  ;;  %498 = vst [vmem:[%s1418_s4 + $0x98] sm:$0xff] %v434_v13  ;;  %v245_v24 = vadd.f32 %v912_v7, %v174_v15  ;;  %v176_v25 = vmul.f32 %v599_v16, %v898_v1  ;;  %v727_v26 = vunpack.c.l.bf16 %v847_v12  ;;  %v852_v8 = vld [vmem:[%s1417_s3 + $0x88] sm:$0xff]   ;;  %v822_v13 = vld [vmem:[%s1414_s0 + $0x90] sm:$0xff]  }
  0x20   :  { %v436_v23 = vadd.f32 %v720_v5, %v244_v14  ;;  %499 = vst [vmem:[%s1418_s4 + $0xa0] sm:$0xff] %v435_v18  ;;  %v177_v29 = vmul.f32 %v600_v21, %v898_v1  ;;  %v728_v30 = vunpack.c.h.bf16 %v847_v12  ;;  %v603_v31 = vunpack.c.l.bf16 %v817_v17 }
  0x21   :  { %v246_v28 = vadd.f32 %v912_v7, %v175_v19  ;;  %v437_v32 = vadd.f32 %v723_v10, %v245_v24  ;;  %v247_v33 = vadd.f32 %v912_v7, %v176_v25  ;;  %v731_v34 = vunpack.c.l.bf16 %v848_v22 }
  0x22   :  { %500 = vst [vmem:[%s1418_s4 + $0xa8] sm:$0xff] %v436_v23  ;;  %v604_v35 = vunpack.c.h.bf16 %v817_v17  ;;  %v248_v38 = vadd.f32 %v912_v7, %v177_v29  ;;  %v178_v39 = vmul.f32 %v603_v31, %v898_v1  ;;  %v607_v40 = vunpack.c.l.bf16 %v818_v27 }
  0x23   :  { %v438_v37 = vadd.f32 %v724_v20, %v246_v28  ;;  %501 = vst [vmem:[%s1418_s4 + $0xb0] sm:$0xff] %v437_v32  ;;  %v439_v42 = vadd.f32 %v727_v26, %v247_v33  ;;  %v732_v44 = vunpack.c.h.bf16 %v848_v22  ;;  %v608_v45 = vunpack.c.h.bf16 %v818_v27  ;;  %v853_v22 = vld [vmem:[%s1417_s3 + $0x90] sm:$0xff]   ;;  %v823_v27 = vld [vmem:[%s1414_s0 + $0x98] sm:$0xff]  }
  0x24   :  { %v179_v43 = vmul.f32 %v604_v35, %v898_v1  ;;  %v440_v47 = vadd.f32 %v728_v30, %v248_v38  ;;  %v249_v48 = vadd.f32 %v912_v7, %v178_v39  ;;  %v180_v49 = vmul.f32 %v607_v40, %v898_v1  ;;  %v854_v32 = vld [vmem:[%s1417_s3 + $0x98] sm:$0xff]  }
  0x25   :  { %502 = vst [vmem:[%s1418_s4 + $0xb8] sm:$0xff] %v438_v37  ;;  %v735_v50 = vunpack.c.l.bf16 %v849_v36  ;;  %503 = vst [vmem:[%s1418_s4 + $0xc0] sm:$0xff] %v439_v42  ;;  %v181_v53 = vmul.f32 %v608_v45, %v898_v1  ;;  %v736_v54 = vunpack.c.h.bf16 %v849_v36  ;;  %v611_v55 = vunpack.c.l.bf16 %v819_v41  ;;  %v824_v37 = vld [vmem:[%s1414_s0 + $0xa0] sm:$0xff]  }
  0x26   :  { %v250_v52 = vadd.f32 %v912_v7, %v179_v43  ;;  %504 = vst [vmem:[%s1418_s4 + $0xc8] sm:$0xff] %v440_v47  ;;  %v441_v56 = vadd.f32 %v731_v34, %v249_v48  ;;  %v251_v57 = vadd.f32 %v912_v7, %v180_v49  ;;  %v739_v58 = vunpack.c.l.bf16 %v850_v46 }
  0x27   :  { %v612_v59 = vunpack.c.h.bf16 %v819_v41  ;;  %v252_v62 = vadd.f32 %v912_v7, %v181_v53  ;;  %v182_v63 = vmul.f32 %v611_v55, %v898_v1  ;;  %v615_v0 = vunpack.c.l.bf16 %v820_v51 }
  0x28   :  { %v442_v61 = vadd.f32 %v732_v44, %v250_v52  ;;  %505 = vst [vmem:[%s1418_s4 + $0xd0] sm:$0xff] %v441_v56  ;;  %v443_v3 = vadd.f32 %v735_v50, %v251_v57  ;;  %v740_v5 = vunpack.c.h.bf16 %v850_v46  ;;  %v616_v6 = vunpack.c.h.bf16 %v820_v51  ;;  %v855_v46 = vld [vmem:[%s1417_s3 + $0xa0] sm:$0xff]   ;;  %v825_v51 = vld [vmem:[%s1414_s0 + $0xa8] sm:$0xff]  }
  0x29   :  { %v183_v4 = vmul.f32 %v612_v59, %v898_v1  ;;  %v444_v9 = vadd.f32 %v736_v54, %v252_v62  ;;  %v253_v10 = vadd.f32 %v912_v7, %v182_v63  ;;  %v184_v11 = vmul.f32 %v615_v0, %v898_v1  ;;  %v856_v56 = vld [vmem:[%s1417_s3 + $0xa8] sm:$0xff]  }
  0x2a   :  { %506 = vst [vmem:[%s1418_s4 + $0xd8] sm:$0xff] %v442_v61  ;;  %v743_v12 = vunpack.c.l.bf16 %v851_v60  ;;  %507 = vst [vmem:[%s1418_s4 + $0xe0] sm:$0xff] %v443_v3  ;;  %v185_v15 = vmul.f32 %v616_v6, %v898_v1  ;;  %v744_v16 = vunpack.c.h.bf16 %v851_v60  ;;  %v619_v17 = vunpack.c.l.bf16 %v821_v2  ;;  %v826_v61 = vld [vmem:[%s1414_s0 + $0xb0] sm:$0xff]  }
  0x2b   :  { %v254_v14 = vadd.f32 %v912_v7, %v183_v4  ;;  %508 = vst [vmem:[%s1418_s4 + $0xe8] sm:$0xff] %v444_v9  ;;  %v445_v18 = vadd.f32 %v739_v58, %v253_v10  ;;  %v255_v19 = vadd.f32 %v912_v7, %v184_v11  ;;  %v747_v20 = vunpack.c.l.bf16 %v852_v8 }
  0x2c   :  { %v620_v21 = vunpack.c.h.bf16 %v821_v2  ;;  %v256_v24 = vadd.f32 %v912_v7, %v185_v15  ;;  %v186_v25 = vmul.f32 %v619_v17, %v898_v1  ;;  %v623_v26 = vunpack.c.l.bf16 %v822_v13 }
  0x2d   :  { %v446_v23 = vadd.f32 %v740_v5, %v254_v14  ;;  %509 = vst [vmem:[%s1418_s4 + $0xf0] sm:$0xff] %v445_v18  ;;  %v447_v28 = vadd.f32 %v743_v12, %v255_v19  ;;  %v748_v30 = vunpack.c.h.bf16 %v852_v8  ;;  %v624_v31 = vunpack.c.h.bf16 %v822_v13  ;;  %v857_v8 = vld [vmem:[%s1417_s3 + $0xb0] sm:$0xff]   ;;  %v827_v13 = vld [vmem:[%s1414_s0 + $0xb8] sm:$0xff]  }
  0x2e   :  { %v187_v29 = vmul.f32 %v620_v21, %v898_v1  ;;  %v448_v33 = vadd.f32 %v744_v16, %v256_v24  ;;  %v257_v34 = vadd.f32 %v912_v7, %v186_v25  ;;  %v188_v35 = vmul.f32 %v623_v26, %v898_v1  ;;  %v858_v18 = vld [vmem:[%s1417_s3 + $0xb8] sm:$0xff]  }
  0x2f   :  { %510 = vst [vmem:[%s1418_s4 + $0xf8] sm:$0xff] %v446_v23  ;;  %v751_v36 = vunpack.c.l.bf16 %v853_v22  ;;  %511 = vst [vmem:[%s1418_s4 + $0x100] sm:$0xff] %v447_v28  ;;  %v189_v39 = vmul.f32 %v624_v31, %v898_v1  ;;  %v752_v40 = vunpack.c.h.bf16 %v853_v22  ;;  %v627_v41 = vunpack.c.l.bf16 %v823_v27  ;;  %v828_v23 = vld [vmem:[%s1414_s0 + $0xc0] sm:$0xff]  }
  0x30   :  { %v258_v38 = vadd.f32 %v912_v7, %v187_v29  ;;  %512 = vst [vmem:[%s1418_s4 + $0x108] sm:$0xff] %v448_v33  ;;  %v449_v42 = vadd.f32 %v747_v20, %v257_v34  ;;  %v259_v43 = vadd.f32 %v912_v7, %v188_v35  ;;  %v755_v44 = vunpack.c.l.bf16 %v854_v32 }
  0x31   :  { %v628_v45 = vunpack.c.h.bf16 %v823_v27  ;;  %v260_v48 = vadd.f32 %v912_v7, %v189_v39  ;;  %v190_v49 = vmul.f32 %v627_v41, %v898_v1  ;;  %v631_v50 = vunpack.c.l.bf16 %v824_v37 }
  0x32   :  { %v450_v47 = vadd.f32 %v748_v30, %v258_v38  ;;  %513 = vst [vmem:[%s1418_s4 + $0x110] sm:$0xff] %v449_v42  ;;  %v451_v52 = vadd.f32 %v751_v36, %v259_v43  ;;  %v756_v54 = vunpack.c.h.bf16 %v854_v32  ;;  %v632_v55 = vunpack.c.h.bf16 %v824_v37  ;;  %v859_v32 = vld [vmem:[%s1417_s3 + $0xc0] sm:$0xff]   ;;  %v829_v37 = vld [vmem:[%s1414_s0 + $0xc8] sm:$0xff]  }
  0x33   :  { %v191_v53 = vmul.f32 %v628_v45, %v898_v1  ;;  %v452_v57 = vadd.f32 %v752_v40, %v260_v48  ;;  %v261_v58 = vadd.f32 %v912_v7, %v190_v49  ;;  %v192_v59 = vmul.f32 %v631_v50, %v898_v1  ;;  %v860_v42 = vld [vmem:[%s1417_s3 + $0xc8] sm:$0xff]  }
  0x34   :  { %514 = vst [vmem:[%s1418_s4 + $0x118] sm:$0xff] %v450_v47  ;;  %v759_v60 = vunpack.c.l.bf16 %v855_v46  ;;  %515 = vst [vmem:[%s1418_s4 + $0x120] sm:$0xff] %v451_v52  ;;  %v193_v63 = vmul.f32 %v632_v55, %v898_v1  ;;  %v760_v0 = vunpack.c.h.bf16 %v855_v46  ;;  %v635_v2 = vunpack.c.l.bf16 %v825_v51  ;;  %v830_v47 = vld [vmem:[%s1414_s0 + $0xd0] sm:$0xff]  }
  0x35   :  { %v262_v62 = vadd.f32 %v912_v7, %v191_v53  ;;  %516 = vst [vmem:[%s1418_s4 + $0x128] sm:$0xff] %v452_v57  ;;  %v453_v3 = vadd.f32 %v755_v44, %v261_v58  ;;  %v263_v4 = vadd.f32 %v912_v7, %v192_v59  ;;  %v763_v5 = vunpack.c.l.bf16 %v856_v56 }
  0x36   :  { %v636_v6 = vunpack.c.h.bf16 %v825_v51  ;;  %v264_v10 = vadd.f32 %v912_v7, %v193_v63  ;;  %v194_v11 = vmul.f32 %v635_v2, %v898_v1  ;;  %v639_v12 = vunpack.c.l.bf16 %v826_v61 }
  0x37   :  { %v454_v9 = vadd.f32 %v756_v54, %v262_v62  ;;  %517 = vst [vmem:[%s1418_s4 + $0x130] sm:$0xff] %v453_v3  ;;  %v455_v14 = vadd.f32 %v759_v60, %v263_v4  ;;  %v764_v16 = vunpack.c.h.bf16 %v856_v56  ;;  %v640_v17 = vunpack.c.h.bf16 %v826_v61  ;;  %v861_v56 = vld [vmem:[%s1417_s3 + $0xd0] sm:$0xff]   ;;  %v831_v61 = vld [vmem:[%s1414_s0 + $0xd8] sm:$0xff]  }
  0x38   :  { %v195_v15 = vmul.f32 %v636_v6, %v898_v1  ;;  %v456_v19 = vadd.f32 %v760_v0, %v264_v10  ;;  %v265_v20 = vadd.f32 %v912_v7, %v194_v11  ;;  %v196_v21 = vmul.f32 %v639_v12, %v898_v1  ;;  %v862_v3 = vld [vmem:[%s1417_s3 + $0xd8] sm:$0xff]  }
  0x39   :  { %518 = vst [vmem:[%s1418_s4 + $0x138] sm:$0xff] %v454_v9  ;;  %v767_v22 = vunpack.c.l.bf16 %v857_v8  ;;  %519 = vst [vmem:[%s1418_s4 + $0x140] sm:$0xff] %v455_v14  ;;  %v197_v25 = vmul.f32 %v640_v17, %v898_v1  ;;  %v768_v26 = vunpack.c.h.bf16 %v857_v8  ;;  %v643_v27 = vunpack.c.l.bf16 %v827_v13  ;;  %v832_v9 = vld [vmem:[%s1414_s0 + $0xe0] sm:$0xff]  }
  0x3a   :  { %v266_v24 = vadd.f32 %v912_v7, %v195_v15  ;;  %520 = vst [vmem:[%s1418_s4 + $0x148] sm:$0xff] %v456_v19  ;;  %v457_v28 = vadd.f32 %v763_v5, %v265_v20  ;;  %v267_v29 = vadd.f32 %v912_v7, %v196_v21  ;;  %v771_v30 = vunpack.c.l.bf16 %v858_v18 }
  0x3b   :  { %v644_v31 = vunpack.c.h.bf16 %v827_v13  ;;  %v268_v34 = vadd.f32 %v912_v7, %v197_v25  ;;  %v198_v35 = vmul.f32 %v643_v27, %v898_v1  ;;  %v647_v36 = vunpack.c.l.bf16 %v828_v23 }
  0x3c   :  { %v458_v33 = vadd.f32 %v764_v16, %v266_v24  ;;  %521 = vst [vmem:[%s1418_s4 + $0x150] sm:$0xff] %v457_v28  ;;  %v459_v38 = vadd.f32 %v767_v22, %v267_v29  ;;  %v772_v40 = vunpack.c.h.bf16 %v858_v18  ;;  %v648_v41 = vunpack.c.h.bf16 %v828_v23  ;;  %v863_v18 = vld [vmem:[%s1417_s3 + $0xe0] sm:$0xff]   ;;  %v833_v23 = vld [vmem:[%s1414_s0 + $0xe8] sm:$0xff]  }
  0x3d   :  { %v199_v39 = vmul.f32 %v644_v31, %v898_v1  ;;  %v460_v43 = vadd.f32 %v768_v26, %v268_v34  ;;  %v269_v44 = vadd.f32 %v912_v7, %v198_v35  ;;  %v200_v45 = vmul.f32 %v647_v36, %v898_v1  ;;  %v864_v28 = vld [vmem:[%s1417_s3 + $0xe8] sm:$0xff]  }
  0x3e   :  { %522 = vst [vmem:[%s1418_s4 + $0x158] sm:$0xff] %v458_v33  ;;  %v775_v46 = vunpack.c.l.bf16 %v859_v32  ;;  %523 = vst [vmem:[%s1418_s4 + $0x160] sm:$0xff] %v459_v38  ;;  %v201_v49 = vmul.f32 %v648_v41, %v898_v1  ;;  %v776_v50 = vunpack.c.h.bf16 %v859_v32  ;;  %v651_v51 = vunpack.c.l.bf16 %v829_v37  ;;  %v834_v33 = vld [vmem:[%s1414_s0 + $0xf0] sm:$0xff]  }
  0x3f   :  { %v270_v48 = vadd.f32 %v912_v7, %v199_v39  ;;  %524 = vst [vmem:[%s1418_s4 + $0x168] sm:$0xff] %v460_v43  ;;  %v461_v52 = vadd.f32 %v771_v30, %v269_v44  ;;  %v271_v53 = vadd.f32 %v912_v7, %v200_v45  ;;  %v779_v54 = vunpack.c.l.bf16 %v860_v42 }
  0x40   :  { %v652_v55 = vunpack.c.h.bf16 %v829_v37  ;;  %v272_v58 = vadd.f32 %v912_v7, %v201_v49  ;;  %v202_v59 = vmul.f32 %v651_v51, %v898_v1  ;;  %v655_v60 = vunpack.c.l.bf16 %v830_v47 }
  0x41   :  { %v462_v57 = vadd.f32 %v772_v40, %v270_v48  ;;  %525 = vst [vmem:[%s1418_s4 + $0x170] sm:$0xff] %v461_v52  ;;  %v463_v62 = vadd.f32 %v775_v46, %v271_v53  ;;  %v780_v0 = vunpack.c.h.bf16 %v860_v42  ;;  %v656_v2 = vunpack.c.h.bf16 %v830_v47  ;;  %v865_v42 = vld [vmem:[%s1417_s3 + $0xf0] sm:$0xff]   ;;  %v835_v47 = vld [vmem:[%s1414_s0 + $0xf8] sm:$0xff]  }
  0x42   :  { %v203_v63 = vmul.f32 %v652_v55, %v898_v1  ;;  %v464_v4 = vadd.f32 %v776_v50, %v272_v58  ;;  %v273_v5 = vadd.f32 %v912_v7, %v202_v59  ;;  %v204_v6 = vmul.f32 %v655_v60, %v898_v1 }
  0x43   :  { %526 = vst [vmem:[%s1418_s4 + $0x178] sm:$0xff] %v462_v57  ;;  %v783_v8 = vunpack.c.l.bf16 %v861_v56  ;;  %527 = vst [vmem:[%s1418_s4 + $0x180] sm:$0xff] %v463_v62  ;;  %v205_v11 = vmul.f32 %v656_v2, %v898_v1  ;;  %v784_v12 = vunpack.c.h.bf16 %v861_v56  ;;  %v659_v13 = vunpack.c.l.bf16 %v831_v61  ;;  %v866_v56 = vld [vmem:[%s1417_s3 + $0xf8] sm:$0xff]  }
  0x44   :  { %v274_v10 = vadd.f32 %v912_v7, %v203_v63  ;;  %528 = vst [vmem:[%s1418_s4 + $0x188] sm:$0xff] %v464_v4  ;;  %v465_v14 = vadd.f32 %v779_v54, %v273_v5  ;;  %v275_v15 = vadd.f32 %v912_v7, %v204_v6  ;;  %v787_v16 = vunpack.c.l.bf16 %v862_v3 }
  0x45   :  { %v660_v17 = vunpack.c.h.bf16 %v831_v61  ;;  %v276_v20 = vadd.f32 %v912_v7, %v205_v11  ;;  %v206_v21 = vmul.f32 %v659_v13, %v898_v1  ;;  %v663_v22 = vunpack.c.l.bf16 %v832_v9 }
  0x46   :  { %v466_v19 = vadd.f32 %v780_v0, %v274_v10  ;;  %529 = vst [vmem:[%s1418_s4 + $0x190] sm:$0xff] %v465_v14  ;;  %v467_v24 = vadd.f32 %v783_v8, %v275_v15  ;;  %v788_v26 = vunpack.c.h.bf16 %v862_v3  ;;  %v664_v27 = vunpack.c.h.bf16 %v832_v9 }
  0x47   :  { %v207_v25 = vmul.f32 %v660_v17, %v898_v1  ;;  %v468_v29 = vadd.f32 %v784_v12, %v276_v20  ;;  %v277_v30 = vadd.f32 %v912_v7, %v206_v21  ;;  %v208_v31 = vmul.f32 %v663_v22, %v898_v1 }
  0x48   :  { %530 = vst [vmem:[%s1418_s4 + $0x198] sm:$0xff] %v466_v19  ;;  %v791_v32 = vunpack.c.l.bf16 %v863_v18  ;;  %531 = vst [vmem:[%s1418_s4 + $0x1a0] sm:$0xff] %v467_v24  ;;  %v209_v35 = vmul.f32 %v664_v27, %v898_v1  ;;  %v792_v36 = vunpack.c.h.bf16 %v863_v18  ;;  %v667_v37 = vunpack.c.l.bf16 %v833_v23 }
  0x49   :  { %v278_v34 = vadd.f32 %v912_v7, %v207_v25  ;;  %532 = vst [vmem:[%s1418_s4 + $0x1a8] sm:$0xff] %v468_v29  ;;  %v469_v38 = vadd.f32 %v787_v16, %v277_v30  ;;  %v279_v39 = vadd.f32 %v912_v7, %v208_v31  ;;  %v795_v40 = vunpack.c.l.bf16 %v864_v28 }
  0x4a   :  { %v668_v41 = vunpack.c.h.bf16 %v833_v23  ;;  %v280_v44 = vadd.f32 %v912_v7, %v209_v35  ;;  %v210_v45 = vmul.f32 %v667_v37, %v898_v1  ;;  %v671_v46 = vunpack.c.l.bf16 %v834_v33 }
  0x4b   :  { %v470_v43 = vadd.f32 %v788_v26, %v278_v34  ;;  %533 = vst [vmem:[%s1418_s4 + $0x1b0] sm:$0xff] %v469_v38  ;;  %v471_v48 = vadd.f32 %v791_v32, %v279_v39  ;;  %v796_v50 = vunpack.c.h.bf16 %v864_v28  ;;  %v672_v51 = vunpack.c.h.bf16 %v834_v33 }
  0x4c   :  { %v211_v49 = vmul.f32 %v668_v41, %v898_v1  ;;  %v472_v52 = vadd.f32 %v792_v36, %v280_v44  ;;  %v281_v53 = vadd.f32 %v912_v7, %v210_v45  ;;  %v212_v54 = vmul.f32 %v671_v46, %v898_v1 }
  0x4d   :  { %534 = vst [vmem:[%s1418_s4 + $0x1b8] sm:$0xff] %v470_v43  ;;  %v799_v55 = vunpack.c.l.bf16 %v865_v42  ;;  %535 = vst [vmem:[%s1418_s4 + $0x1c0] sm:$0xff] %v471_v48  ;;  %v213_v58 = vmul.f32 %v672_v51, %v898_v1  ;;  %v800_v59 = vunpack.c.h.bf16 %v865_v42  ;;  %v675_v60 = vunpack.c.l.bf16 %v835_v47 }
  0x4e   :  { %v282_v57 = vadd.f32 %v912_v7, %v211_v49  ;;  %536 = vst [vmem:[%s1418_s4 + $0x1c8] sm:$0xff] %v472_v52  ;;  %v473_v61 = vadd.f32 %v795_v40, %v281_v53  ;;  %v283_v62 = vadd.f32 %v912_v7, %v212_v54  ;;  %v676_v63 = vunpack.c.h.bf16 %v835_v47 }
  0x4f   :  { %v284_v2 = vadd.f32 %v912_v7, %v213_v58  ;;  %v214_v3 = vmul.f32 %v675_v60, %v898_v1  ;;  %v803_v4 = vunpack.c.l.bf16 %v866_v56  ;;  %v804_v8 = vunpack.c.h.bf16 %v866_v56 }
  0x50   :  { %v474_v0 = vadd.f32 %v796_v50, %v282_v57  ;;  %537 = vst [vmem:[%s1418_s4 + $0x1d0] sm:$0xff] %v473_v61  ;;  %v475_v5 = vadd.f32 %v799_v55, %v283_v62  ;;  %v215_v6 = vmul.f32 %v676_v63, %v898_v1 }
  0x51   :  { %v476_v9 = vadd.f32 %v800_v59, %v284_v2  ;;  %v285_v10 = vadd.f32 %v912_v7, %v214_v3 }
  0x52   :  { %538 = vst [vmem:[%s1418_s4 + $0x1d8] sm:$0xff] %v474_v0  ;;  %539 = vst [vmem:[%s1418_s4 + $0x1e0] sm:$0xff] %v475_v5  ;;  %v286_v11 = vadd.f32 %v912_v7, %v215_v6 }
  0x53   :  { %540 = vst [vmem:[%s1418_s4 + $0x1e8] sm:$0xff] %v476_v9  ;;  %v477_v12 = vadd.f32 %v803_v4, %v285_v10 }
  0x54   :  { %v478_v1 = vadd.f32 %v804_v8, %v286_v11 }
  0x55   :  { %541 = vst [vmem:[%s1418_s4 + $0x1f0] sm:$0xff] %v477_v12 }
  0x56   :  { %542 = vst [vmem:[%s1418_s4 + $0x1f8] sm:$0xff] %v478_v1 }

</bundles_post_ra>
